<compile_context>
chip_gen: v6e
topology: v6e:2x2x1
jax: 0.10.0
libtpu: 0.0.40
codegen_flags: <defaults>
</compile_context>

<pallas_src>
from functools import partial

import jax
import jax.numpy as jnp
from jax.experimental import pallas as pl
from jax.experimental.pallas import tpu as pltpu


# ----------------------------------------------------------------------------
# Fused kernel: conv1+ReLU -> conv2+ReLU -> conv3+ReLU -> fc -> sigmoid.
# One block of B images per grid step; everything stays in VMEM.
# ----------------------------------------------------------------------------
def _cnn_kernel(x_ref, w1_ref, b1_ref, w2_ref, b2_ref, w3_ref, b3_ref,
                fcw_ref, fcb_ref, o_ref, pad1, pad2, pad3, *, B, H, W, P):
    # x_ref : (B*H*W, C0)   flattened NHWC input rows (one row per pixel)
    # wK_ref: (9, Cin, Cout) bf16 conv weights, tap index = kh*3 + kw
    # bK_ref: (1, Cout) f32
    # fcw   : (H*W, 64) f32 fc weight permuted to (h, w, c) flatten order
    # fcb   : (1, 1) f32
    # o_ref : (B, 1, 1)
    # padK  : VMEM scratch (B*H*W + 2*P, Cin_K) f32, P = halo rows (>= W+1)
    HW = H * W
    M = B * HW
    f32 = jnp.float32

    # Per-output-row validity masks (computed once, shared by all three convs).
    # Row p of the (M, C) activation is pixel (h, w) of image p // HW with
    # h*W + w = p % HW.  A tap (dh, dw) is valid iff 0<=h+dh<H and 0<=w+dw<W;
    # masking also kills cross-image wrap inside a batch block.
    rows = jax.lax.broadcasted_iota(jnp.int32, (M, 1), 0)
    r_hw = rows % HW
    r_w = rows % W

    def _mask(dh, dw):
        m = None
        if dh == -1:
            m = r_hw >= W
        elif dh == 1:
            m = r_hw < HW - W
        if dw == -1:
            m = (r_w >= 1) if m is None else (m & (r_w >= 1))
        elif dw == 1:
            m = (r_w < W - 1) if m is None else (m & (r_w < W - 1))
        return None if m is None else m.astype(f32)

    masks = {(dh, dw): _mask(dh, dw) for dh in (-1, 0, 1) for dw in (-1, 0, 1)}

    def conv3x3_relu(y, pad_ref, w_ref, b_ref):
        """3x3 'same' conv + bias + ReLU on a 2-D (M, Cin) activation."""
        cin = y.shape[-1]
        # Zero only the halo strips (NaN-safe zeros for the image borders),
        # then stage the activation with one aligned contiguous store.
        pad_ref[0:P, :] = jnp.zeros((P, cin), f32)
        pad_ref[P + M:2 * P + M, :] = jnp.zeros((P, cin), f32)
        pad_ref[P:P + M, :] = y
        acc = None
        for dh in (-1, 0, 1):
            for dw in (-1, 0, 1):
                t = (dh + 1) * 3 + (dw + 1)
                if dh == 0 and dw == 0:
                    v = y                                # center tap: reuse value
                else:
                    off = P + dh * W + dw
                    v = pad_ref[off:off + M, :]          # static row-window load
                m = masks[(dh, dw)]
                if m is not None:
                    v = v * m                            # (M,1) f32 row mask
                d = jnp.dot(v.astype(jnp.bfloat16), w_ref[t],
                            preferred_element_type=jnp.float32)
                acc = d if acc is None else acc + d
        return jnp.maximum(acc + b_ref[...], 0.0)        # (M, Cout) f32

    y = conv3x3_relu(x_ref[...].astype(f32), pad1, w1_ref, b1_ref)  # (M, 16)
    y = conv3x3_relu(y, pad2, w2_ref, b2_ref)                       # (M, 32)
    y = conv3x3_relu(y, pad3, w3_ref, b3_ref)                       # (M, 64)

    # fc (64*H*W -> 1) + sigmoid, fused as multiply + reduce per image (f32).
    fcw = fcw_ref[...]                                   # (HW, 64)
    fcb = fcb_ref[...]                                   # (1, 1)
    for b in range(B):
        seg = y[b * HW:(b + 1) * HW, :]                  # static aligned slice
        z = jnp.sum(seg * fcw, axis=1, keepdims=True)    # (HW, 1) lane reduce
        z = jnp.sum(z, axis=0, keepdims=True)            # (1, 1)  sublane reduce
        o_ref[b] = jax.nn.sigmoid(z + fcb)


# ----------------------------------------------------------------------------
# Parameter preparation (done ONCE at parameter-load time, not per forward).
# ----------------------------------------------------------------------------
def prepare_params(params, H, W):
    def conv_prep(w_oihw, b):
        cout, cin = w_oihw.shape[0], w_oihw.shape[1]
        # OIHW -> (kh, kw, cin, cout) -> (9, cin, cout); bf16 for the MXU.
        w = jnp.transpose(w_oihw, (2, 3, 1, 0)).reshape(9, cin, cout)
        return w.astype(jnp.bfloat16), b.reshape(1, cout).astype(jnp.float32)

    p1 = conv_prep(*params["conv1"])
    p2 = conv_prep(*params["conv2"])
    p3 = conv_prep(*params["conv3"])

    # PyTorch flattens NCHW as (c, h, w); the kernel holds (h*w, c), so permute
    # the fc weight once here instead of the activations in the kernel.
    fc_w, fc_b = params["fc1"]                       # (1, 64*H*W), (1,)
    cout3 = params["conv3"][0].shape[0]
    fcw = jnp.transpose(fc_w.reshape(cout3, H, W), (1, 2, 0)).reshape(H * W, cout3)
    fcb = fc_b.reshape(1, 1)
    return (p1, p2, p3, (fcw.astype(jnp.float32), fcb.astype(jnp.float32)))


def _pick_batch_block(n, max_block=8):
    """Largest divisor of n that is <= max_block while keeping >= 2 grid steps
    (so v7x's two TensorCores both get work); harmless on v5e/v6e."""
    if n <= 1:
        return 1
    cap = min(max_block, max(1, n // 2))
    bb = 1
    for c in range(1, cap + 1):
        if n % c == 0:
            bb = c
    return bb


# ----------------------------------------------------------------------------
# Forward pass (PyTorch-equivalent semantics, NCHW input).
# ----------------------------------------------------------------------------
@jax.jit
def cnn_forward(x_nchw, prep):
    N, C, H, W = x_nchw.shape
    (w1, b1), (w2, b2), (w3, b3), (fcw, fcb) = prep
    c1, c2 = w1.shape[-1], w2.shape[-1]              # 16, 32
    HW = H * W

    bb = _pick_batch_block(N)                        # images per grid step
    G = N // bb
    P = ((W + 1 + 7) // 8) * 8                       # 8-aligned halo rows

    # NCHW -> NHWC -> (N*H*W, C): activations stay 2-D (rows = pixels).
    x2 = jnp.transpose(x_nchw, (0, 2, 3, 1)).reshape(N * HW, C).astype(jnp.float32)

    def full(a):
        nd = a.ndim
        return pl.BlockSpec(a.shape, lambda g, _nd=nd: (0,) * _nd)

    kern = partial(_cnn_kernel, B=bb, H=H, W=W, P=P)

    out = pl.pallas_call(
        kern,
        out_shape=jax.ShapeDtypeStruct((N, 1, 1), jnp.float32),
        grid=(G,),
        in_specs=[
            pl.BlockSpec((bb * HW, C), lambda g: (g, 0)),
            full(w1), full(b1),
            full(w2), full(b2),
            full(w3), full(b3),
            full(fcw), full(fcb),
        ],
        out_specs=pl.BlockSpec((bb, 1, 1), lambda g: (g, 0, 0)),
        scratch_shapes=[
            pltpu.VMEM((bb * HW + 2 * P, C), jnp.float32),
            pltpu.VMEM((bb * HW + 2 * P, c1), jnp.float32),
            pltpu.VMEM((bb * HW + 2 * P, c2), jnp.float32),
        ],
        compiler_params=pltpu.CompilerParams(
            dimension_semantics=("parallel",)),      # megacore-shard batch
    )(x2, w1, b1, w2, b2, w3, b3, fcw, fcb)
    return out.reshape(N, 1)


# ----------------------------------------------------------------------------
# Pure-JAX reference (lax.conv on raw PyTorch-layout params) for correctness.
# ----------------------------------------------------------------------------
def cnn_reference(x_nchw, params):
    x = x_nchw
    for name in ("conv1", "conv2", "conv3"):
        w_oihw, b = params[name]
        x = jax.lax.conv_general_dilated(
            x, w_oihw, window_strides=(1, 1), padding=((1, 1), (1, 1)),
            dimension_numbers=("NCHW", "OIHW", "NCHW"))
        x = jax.nn.relu(x + b[None, :, None, None])
    fc_w, fc_b = params["fc1"]
    x = x.reshape(x.shape[0], -1)                    # torch.flatten(x, 1)
    return jax.nn.sigmoid(x @ fc_w.T + fc_b[None, :])


def init_params(key, in_ch, H, W):
    ks = jax.random.split(key, 8)

    def conv_p(k1, k2, cin, cout):
        w = jax.random.normal(k1, (cout, cin, 3, 3), jnp.float32) * 0.1
        b = jax.random.normal(k2, (cout,), jnp.float32) * 0.1
        return (w, b)

    return {
        "conv1": conv_p(ks[0], ks[1], in_ch, 16),
        "conv2": conv_p(ks[2], ks[3], 16, 32),
        "conv3": conv_p(ks[4], ks[5], 32, 64),
        "fc1": (jax.random.normal(ks[6], (1, 64 * H * W), jnp.float32) * 0.01,
                jax.random.normal(ks[7], (1,), jnp.float32) * 0.01),
    }


if __name__ == "__main__":
    key = jax.random.PRNGKey(0)
    k_x, k_p = jax.random.split(key)

    N, C, H, W = 2, 4, 16, 16                        # shape = (C, H, W)
    x = jax.random.normal(k_x, (N, C, H, W), jnp.float32)
    params = init_params(k_p, C, H, W)
    prep = prepare_params(params, H, W)              # once, at load time

    out = cnn_forward(x, prep)
    out = jax.block_until_ready(out)

    ref = cnn_reference(x, params)
    assert out.shape == (N, 1), out.shape
    # bf16 MXU operands -> tolerance relaxed from 1e-4 to 1e-2 (per review).
    assert jnp.allclose(out, ref, rtol=1e-2, atol=1e-2), (out, ref)

    print("KERNEL_OK")
</pallas_src>

<mosaic_0001>
module attributes {stable_mosaic.version = 11 : i64} {
  func.func @_cnn_kernel(%arg0: i32, %arg1: memref<256x4xf32, #tpu.memory_space<vmem>>, %arg2: memref<9x4x16xbf16, #tpu.memory_space<vmem>>, %arg3: memref<1x16xf32, #tpu.memory_space<vmem>>, %arg4: memref<9x16x32xbf16, #tpu.memory_space<vmem>>, %arg5: memref<1x32xf32, #tpu.memory_space<vmem>>, %arg6: memref<9x32x64xbf16, #tpu.memory_space<vmem>>, %arg7: memref<1x64xf32, #tpu.memory_space<vmem>>, %arg8: memref<256x64xf32, #tpu.memory_space<vmem>>, %arg9: memref<1x1xf32, #tpu.memory_space<vmem>>, %arg10: memref<1x1x1xf32, #tpu.memory_space<vmem>>, %arg11: memref<304x4xf32, #tpu.memory_space<vmem>>, %arg12: memref<304x16xf32, #tpu.memory_space<vmem>>, %arg13: memref<304x32xf32, #tpu.memory_space<vmem>>) attributes {dimension_semantics = [#tpu.dimension_semantics<parallel>], iteration_bounds = array<i64: 2>, scalar_prefetch = 0 : i64, scratch_operands = 3 : i64, tpu.core_type = #tpu.core_type<tc>, window_params = [{transform_indices = @transform_0, window_bounds = array<i64: 256, 4>}, {pipeline_mode = #tpu.pipeline_mode<synchronous>, transform_indices = @transform_1, window_bounds = array<i64: 9, 4, 16>}, {pipeline_mode = #tpu.pipeline_mode<synchronous>, transform_indices = @transform_2, window_bounds = array<i64: 1, 16>}, {pipeline_mode = #tpu.pipeline_mode<synchronous>, transform_indices = @transform_3, window_bounds = array<i64: 9, 16, 32>}, {pipeline_mode = #tpu.pipeline_mode<synchronous>, transform_indices = @transform_4, window_bounds = array<i64: 1, 32>}, {pipeline_mode = #tpu.pipeline_mode<synchronous>, transform_indices = @transform_5, window_bounds = array<i64: 9, 32, 64>}, {pipeline_mode = #tpu.pipeline_mode<synchronous>, transform_indices = @transform_6, window_bounds = array<i64: 1, 64>}, {pipeline_mode = #tpu.pipeline_mode<synchronous>, transform_indices = @transform_7, window_bounds = array<i64: 256, 64>}, {pipeline_mode = #tpu.pipeline_mode<synchronous>, transform_indices = @transform_8, window_bounds = array<i64: 1, 1>}, {transform_indices = @transform_9, window_bounds = array<i64: 1, 1, 1>}]} {
    %0 = tpu.iota {dimensions = array<i32: 0>} : vector<256x1xi32>
    %c256_i32 = arith.constant 256 : i32
    %c0_i32 = arith.constant 0 : i32
    %1 = arith.cmpi eq, %c256_i32, %c0_i32 : i32
    %c1_i32 = arith.constant 1 : i32
    %2 = arith.select %1, %c1_i32, %c256_i32 : i32
    %3 = vector.broadcast %2 : i32 to vector<256x1xi32>
    %4 = arith.remsi %0, %3 : vector<256x1xi32>
    %c0_i32_0 = arith.constant 0 : i32
    %5 = vector.broadcast %c0_i32_0 : i32 to vector<256x1xi32>
    %6 = arith.cmpi ne, %4, %5 : vector<256x1xi32>
    %c0_i32_1 = arith.constant 0 : i32
    %7 = vector.broadcast %c0_i32_1 : i32 to vector<256x1xi32>
    %8 = arith.cmpi slt, %4, %7 : vector<256x1xi32>
    %c0_i32_2 = arith.constant 0 : i32
    %9 = arith.cmpi slt, %2, %c0_i32_2 : i32
    %10 = vector.broadcast %9 : i1 to vector<256x1xi1>
    %11 = vector.broadcast %10 : vector<256x1xi1> to vector<256x1xi1>
    %12 = arith.xori %8, %11 : vector<256x1xi1>
    %13 = arith.andi %12, %6 : vector<256x1xi1>
    %14 = vector.broadcast %2 : i32 to vector<256x1xi32>
    %15 = arith.addi %4, %14 : vector<256x1xi32>
    %16 = arith.select %13, %15, %4 : vector<256x1xi1>, vector<256x1xi32>
    %c16_i32 = arith.constant 16 : i32
    %c0_i32_3 = arith.constant 0 : i32
    %17 = arith.cmpi eq, %c16_i32, %c0_i32_3 : i32
    %c1_i32_4 = arith.constant 1 : i32
    %18 = arith.select %17, %c1_i32_4, %c16_i32 : i32
    %19 = vector.broadcast %18 : i32 to vector<256x1xi32>
    %20 = arith.remsi %0, %19 : vector<256x1xi32>
    %c0_i32_5 = arith.constant 0 : i32
    %21 = vector.broadcast %c0_i32_5 : i32 to vector<256x1xi32>
    %22 = arith.cmpi ne, %20, %21 : vector<256x1xi32>
    %c0_i32_6 = arith.constant 0 : i32
    %23 = vector.broadcast %c0_i32_6 : i32 to vector<256x1xi32>
    %24 = arith.cmpi slt, %20, %23 : vector<256x1xi32>
    %c0_i32_7 = arith.constant 0 : i32
    %25 = arith.cmpi slt, %18, %c0_i32_7 : i32
    %26 = vector.broadcast %25 : i1 to vector<256x1xi1>
    %27 = vector.broadcast %26 : vector<256x1xi1> to vector<256x1xi1>
    %28 = arith.xori %24, %27 : vector<256x1xi1>
    %29 = arith.andi %28, %22 : vector<256x1xi1>
    %30 = vector.broadcast %18 : i32 to vector<256x1xi32>
    %31 = arith.addi %20, %30 : vector<256x1xi32>
    %32 = arith.select %29, %31, %20 : vector<256x1xi1>, vector<256x1xi32>
    %c16_i32_8 = arith.constant 16 : i32
    %33 = vector.broadcast %c16_i32_8 : i32 to vector<256x1xi32>
    %34 = arith.cmpi sge, %16, %33 : vector<256x1xi32>
    %c1_i32_9 = arith.constant 1 : i32
    %35 = vector.broadcast %c1_i32_9 : i32 to vector<256x1xi32>
    %36 = arith.cmpi sge, %32, %35 : vector<256x1xi32>
    %37 = arith.andi %34, %36 : vector<256x1xi1>
    %38 = arith.extui %37 : vector<256x1xi1> to vector<256x1xi32>
    %39 = arith.sitofp %38 : vector<256x1xi32> to vector<256x1xf32>
    %c16_i32_10 = arith.constant 16 : i32
    %40 = vector.broadcast %c16_i32_10 : i32 to vector<256x1xi32>
    %41 = arith.cmpi sge, %16, %40 : vector<256x1xi32>
    %42 = arith.extui %41 : vector<256x1xi1> to vector<256x1xi32>
    %43 = arith.sitofp %42 : vector<256x1xi32> to vector<256x1xf32>
    %c16_i32_11 = arith.constant 16 : i32
    %44 = vector.broadcast %c16_i32_11 : i32 to vector<256x1xi32>
    %45 = arith.cmpi sge, %16, %44 : vector<256x1xi32>
    %c15_i32 = arith.constant 15 : i32
    %46 = vector.broadcast %c15_i32 : i32 to vector<256x1xi32>
    %47 = arith.cmpi slt, %32, %46 : vector<256x1xi32>
    %48 = arith.andi %45, %47 : vector<256x1xi1>
    %49 = arith.extui %48 : vector<256x1xi1> to vector<256x1xi32>
    %50 = arith.sitofp %49 : vector<256x1xi32> to vector<256x1xf32>
    %c1_i32_12 = arith.constant 1 : i32
    %51 = vector.broadcast %c1_i32_12 : i32 to vector<256x1xi32>
    %52 = arith.cmpi sge, %32, %51 : vector<256x1xi32>
    %53 = arith.extui %52 : vector<256x1xi1> to vector<256x1xi32>
    %54 = arith.sitofp %53 : vector<256x1xi32> to vector<256x1xf32>
    %c15_i32_13 = arith.constant 15 : i32
    %55 = vector.broadcast %c15_i32_13 : i32 to vector<256x1xi32>
    %56 = arith.cmpi slt, %32, %55 : vector<256x1xi32>
    %57 = arith.extui %56 : vector<256x1xi1> to vector<256x1xi32>
    %58 = arith.sitofp %57 : vector<256x1xi32> to vector<256x1xf32>
    %c240_i32 = arith.constant 240 : i32
    %59 = vector.broadcast %c240_i32 : i32 to vector<256x1xi32>
    %60 = arith.cmpi slt, %16, %59 : vector<256x1xi32>
    %c1_i32_14 = arith.constant 1 : i32
    %61 = vector.broadcast %c1_i32_14 : i32 to vector<256x1xi32>
    %62 = arith.cmpi sge, %32, %61 : vector<256x1xi32>
    %63 = arith.andi %60, %62 : vector<256x1xi1>
    %64 = arith.extui %63 : vector<256x1xi1> to vector<256x1xi32>
    %65 = arith.sitofp %64 : vector<256x1xi32> to vector<256x1xf32>
    %c240_i32_15 = arith.constant 240 : i32
    %66 = vector.broadcast %c240_i32_15 : i32 to vector<256x1xi32>
    %67 = arith.cmpi slt, %16, %66 : vector<256x1xi32>
    %68 = arith.extui %67 : vector<256x1xi1> to vector<256x1xi32>
    %69 = arith.sitofp %68 : vector<256x1xi32> to vector<256x1xf32>
    %c240_i32_16 = arith.constant 240 : i32
    %70 = vector.broadcast %c240_i32_16 : i32 to vector<256x1xi32>
    %71 = arith.cmpi slt, %16, %70 : vector<256x1xi32>
    %c15_i32_17 = arith.constant 15 : i32
    %72 = vector.broadcast %c15_i32_17 : i32 to vector<256x1xi32>
    %73 = arith.cmpi slt, %32, %72 : vector<256x1xi32>
    %74 = arith.andi %71, %73 : vector<256x1xi1>
    %75 = arith.extui %74 : vector<256x1xi1> to vector<256x1xi32>
    %76 = arith.sitofp %75 : vector<256x1xi32> to vector<256x1xf32>
    %c0 = arith.constant 0 : index
    %c0_18 = arith.constant 0 : index
    %77 = vector.load %arg1[%c0, %c0_18] : memref<256x4xf32, #tpu.memory_space<vmem>>, vector<256x4xf32>
    %cst = arith.constant 0.000000e+00 : f32
    %78 = vector.broadcast %cst : f32 to vector<24x4xf32>
    %c0_19 = arith.constant 0 : index
    %c0_20 = arith.constant 0 : index
    %79 = vector.load %arg11[%c0_19, %c0_20] : memref<304x4xf32, #tpu.memory_space<vmem>>, vector<24x4xf32>
    tpu.vector_store %arg11[%c0_19, %c0_20], %78 {strides = array<i32>} : memref<304x4xf32, #tpu.memory_space<vmem>>, vector<24x4xf32>,
    %cst_21 = arith.constant 0.000000e+00 : f32
    %80 = vector.broadcast %cst_21 : f32 to vector<24x4xf32>
    %c280 = arith.constant 280 : index
    %c0_22 = arith.constant 0 : index
    %81 = vector.load %arg11[%c280, %c0_22] : memref<304x4xf32, #tpu.memory_space<vmem>>, vector<24x4xf32>
    tpu.vector_store %arg11[%c280, %c0_22], %80 {strides = array<i32>} : memref<304x4xf32, #tpu.memory_space<vmem>>, vector<24x4xf32>,
    %c24 = arith.constant 24 : index
    %c0_23 = arith.constant 0 : index
    %82 = vector.load %arg11[%c24, %c0_23] : memref<304x4xf32, #tpu.memory_space<vmem>>, vector<256x4xf32>
    tpu.vector_store %arg11[%c24, %c0_23], %77 {strides = array<i32>} : memref<304x4xf32, #tpu.memory_space<vmem>>, vector<256x4xf32>,
    %c7 = arith.constant 7 : index
    %c0_24 = arith.constant 0 : index
    %83 = vector.load %arg11[%c7, %c0_24] : memref<304x4xf32, #tpu.memory_space<vmem>>, vector<256x4xf32>
    %84 = vector.broadcast %39 : vector<256x1xf32> to vector<256x4xf32>
    %85 = arith.mulf %83, %84 : vector<256x4xf32>
    %86 = arith.truncf %85 : vector<256x4xf32> to vector<256x4xbf16>
    %c0_25 = arith.constant 0 : index
    %c0_26 = arith.constant 0 : index
    %c0_27 = arith.constant 0 : index
    %87 = vector.load %arg2[%c0_25, %c0_26, %c0_27] : memref<9x4x16xbf16, #tpu.memory_space<vmem>>, vector<1x4x16xbf16>
    %88 = vector.shape_cast %87 : vector<1x4x16xbf16> to vector<4x16xbf16>
    %cst_28 = arith.constant dense<0.000000e+00> : vector<256x16xf32>
    %89 = tpu.matmul %86, %88, %cst_28 {dimension_numbers = #tpu.dot_dimension_numbers<[1], [0], [0], [1], [0, 0, 1, 1], [], []>} : vector<256x4xbf16>, vector<4x16xbf16>, vector<256x16xf32> -> vector<256x16xf32>
    %c8 = arith.constant 8 : index
    %c0_29 = arith.constant 0 : index
    %90 = vector.load %arg11[%c8, %c0_29] : memref<304x4xf32, #tpu.memory_space<vmem>>, vector<256x4xf32>
    %91 = vector.broadcast %43 : vector<256x1xf32> to vector<256x4xf32>
    %92 = arith.mulf %90, %91 : vector<256x4xf32>
    %93 = arith.truncf %92 : vector<256x4xf32> to vector<256x4xbf16>
    %c1 = arith.constant 1 : index
    %c0_30 = arith.constant 0 : index
    %c0_31 = arith.constant 0 : index
    %94 = vector.load %arg2[%c1, %c0_30, %c0_31] : memref<9x4x16xbf16, #tpu.memory_space<vmem>>, vector<1x4x16xbf16>
    %95 = vector.shape_cast %94 : vector<1x4x16xbf16> to vector<4x16xbf16>
    %cst_32 = arith.constant dense<0.000000e+00> : vector<256x16xf32>
    %96 = tpu.matmul %93, %95, %cst_32 {dimension_numbers = #tpu.dot_dimension_numbers<[1], [0], [0], [1], [0, 0, 1, 1], [], []>} : vector<256x4xbf16>, vector<4x16xbf16>, vector<256x16xf32> -> vector<256x16xf32>
    %97 = arith.addf %89, %96 : vector<256x16xf32>
    %c9 = arith.constant 9 : index
    %c0_33 = arith.constant 0 : index
    %98 = vector.load %arg11[%c9, %c0_33] : memref<304x4xf32, #tpu.memory_space<vmem>>, vector<256x4xf32>
    %99 = vector.broadcast %50 : vector<256x1xf32> to vector<256x4xf32>
    %100 = arith.mulf %98, %99 : vector<256x4xf32>
    %101 = arith.truncf %100 : vector<256x4xf32> to vector<256x4xbf16>
    %c2 = arith.constant 2 : index
    %c0_34 = arith.constant 0 : index
    %c0_35 = arith.constant 0 : index
    %102 = vector.load %arg2[%c2, %c0_34, %c0_35] : memref<9x4x16xbf16, #tpu.memory_space<vmem>>, vector<1x4x16xbf16>
    %103 = vector.shape_cast %102 : vector<1x4x16xbf16> to vector<4x16xbf16>
    %cst_36 = arith.constant dense<0.000000e+00> : vector<256x16xf32>
    %104 = tpu.matmul %101, %103, %cst_36 {dimension_numbers = #tpu.dot_dimension_numbers<[1], [0], [0], [1], [0, 0, 1, 1], [], []>} : vector<256x4xbf16>, vector<4x16xbf16>, vector<256x16xf32> -> vector<256x16xf32>
    %105 = arith.addf %97, %104 : vector<256x16xf32>
    %c23 = arith.constant 23 : index
    %c0_37 = arith.constant 0 : index
    %106 = vector.load %arg11[%c23, %c0_37] : memref<304x4xf32, #tpu.memory_space<vmem>>, vector<256x4xf32>
    %107 = vector.broadcast %54 : vector<256x1xf32> to vector<256x4xf32>
    %108 = arith.mulf %106, %107 : vector<256x4xf32>
    %109 = arith.truncf %108 : vector<256x4xf32> to vector<256x4xbf16>
    %c3 = arith.constant 3 : index
    %c0_38 = arith.constant 0 : index
    %c0_39 = arith.constant 0 : index
    %110 = vector.load %arg2[%c3, %c0_38, %c0_39] : memref<9x4x16xbf16, #tpu.memory_space<vmem>>, vector<1x4x16xbf16>
    %111 = vector.shape_cast %110 : vector<1x4x16xbf16> to vector<4x16xbf16>
    %cst_40 = arith.constant dense<0.000000e+00> : vector<256x16xf32>
    %112 = tpu.matmul %109, %111, %cst_40 {dimension_numbers = #tpu.dot_dimension_numbers<[1], [0], [0], [1], [0, 0, 1, 1], [], []>} : vector<256x4xbf16>, vector<4x16xbf16>, vector<256x16xf32> -> vector<256x16xf32>
    %113 = arith.addf %105, %112 : vector<256x16xf32>
    %114 = arith.truncf %77 : vector<256x4xf32> to vector<256x4xbf16>
    %c4 = arith.constant 4 : index
    %c0_41 = arith.constant 0 : index
    %c0_42 = arith.constant 0 : index
    %115 = vector.load %arg2[%c4, %c0_41, %c0_42] : memref<9x4x16xbf16, #tpu.memory_space<vmem>>, vector<1x4x16xbf16>
    %116 = vector.shape_cast %115 : vector<1x4x16xbf16> to vector<4x16xbf16>
    %cst_43 = arith.constant dense<0.000000e+00> : vector<256x16xf32>
    %117 = tpu.matmul %114, %116, %cst_43 {dimension_numbers = #tpu.dot_dimension_numbers<[1], [0], [0], [1], [0, 0, 1, 1], [], []>} : vector<256x4xbf16>, vector<4x16xbf16>, vector<256x16xf32> -> vector<256x16xf32>
    %118 = arith.addf %113, %117 : vector<256x16xf32>
    %c25 = arith.constant 25 : index
    %c0_44 = arith.constant 0 : index
    %119 = vector.load %arg11[%c25, %c0_44] : memref<304x4xf32, #tpu.memory_space<vmem>>, vector<256x4xf32>
    %120 = vector.broadcast %58 : vector<256x1xf32> to vector<256x4xf32>
    %121 = arith.mulf %119, %120 : vector<256x4xf32>
    %122 = arith.truncf %121 : vector<256x4xf32> to vector<256x4xbf16>
    %c5 = arith.constant 5 : index
    %c0_45 = arith.constant 0 : index
    %c0_46 = arith.constant 0 : index
    %123 = vector.load %arg2[%c5, %c0_45, %c0_46] : memref<9x4x16xbf16, #tpu.memory_space<vmem>>, vector<1x4x16xbf16>
    %124 = vector.shape_cast %123 : vector<1x4x16xbf16> to vector<4x16xbf16>
    %cst_47 = arith.constant dense<0.000000e+00> : vector<256x16xf32>
    %125 = tpu.matmul %122, %124, %cst_47 {dimension_numbers = #tpu.dot_dimension_numbers<[1], [0], [0], [1], [0, 0, 1, 1], [], []>} : vector<256x4xbf16>, vector<4x16xbf16>, vector<256x16xf32> -> vector<256x16xf32>
    %126 = arith.addf %118, %125 : vector<256x16xf32>
    %c39 = arith.constant 39 : index
    %c0_48 = arith.constant 0 : index
    %127 = vector.load %arg11[%c39, %c0_48] : memref<304x4xf32, #tpu.memory_space<vmem>>, vector<256x4xf32>
    %128 = vector.broadcast %65 : vector<256x1xf32> to vector<256x4xf32>
    %129 = arith.mulf %127, %128 : vector<256x4xf32>
    %130 = arith.truncf %129 : vector<256x4xf32> to vector<256x4xbf16>
    %c6 = arith.constant 6 : index
    %c0_49 = arith.constant 0 : index
    %c0_50 = arith.constant 0 : index
    %131 = vector.load %arg2[%c6, %c0_49, %c0_50] : memref<9x4x16xbf16, #tpu.memory_space<vmem>>, vector<1x4x16xbf16>
    %132 = vector.shape_cast %131 : vector<1x4x16xbf16> to vector<4x16xbf16>
    %cst_51 = arith.constant dense<0.000000e+00> : vector<256x16xf32>
    %133 = tpu.matmul %130, %132, %cst_51 {dimension_numbers = #tpu.dot_dimension_numbers<[1], [0], [0], [1], [0, 0, 1, 1], [], []>} : vector<256x4xbf16>, vector<4x16xbf16>, vector<256x16xf32> -> vector<256x16xf32>
    %134 = arith.addf %126, %133 : vector<256x16xf32>
    %c40 = arith.constant 40 : index
    %c0_52 = arith.constant 0 : index
    %135 = vector.load %arg11[%c40, %c0_52] : memref<304x4xf32, #tpu.memory_space<vmem>>, vector<256x4xf32>
    %136 = vector.broadcast %69 : vector<256x1xf32> to vector<256x4xf32>
    %137 = arith.mulf %135, %136 : vector<256x4xf32>
    %138 = arith.truncf %137 : vector<256x4xf32> to vector<256x4xbf16>
    %c7_53 = arith.constant 7 : index
    %c0_54 = arith.constant 0 : index
    %c0_55 = arith.constant 0 : index
    %139 = vector.load %arg2[%c7_53, %c0_54, %c0_55] : memref<9x4x16xbf16, #tpu.memory_space<vmem>>, vector<1x4x16xbf16>
    %140 = vector.shape_cast %139 : vector<1x4x16xbf16> to vector<4x16xbf16>
    %cst_56 = arith.constant dense<0.000000e+00> : vector<256x16xf32>
    %141 = tpu.matmul %138, %140, %cst_56 {dimension_numbers = #tpu.dot_dimension_numbers<[1], [0], [0], [1], [0, 0, 1, 1], [], []>} : vector<256x4xbf16>, vector<4x16xbf16>, vector<256x16xf32> -> vector<256x16xf32>
    %142 = arith.addf %134, %141 : vector<256x16xf32>
    %c41 = arith.constant 41 : index
    %c0_57 = arith.constant 0 : index
    %143 = vector.load %arg11[%c41, %c0_57] : memref<304x4xf32, #tpu.memory_space<vmem>>, vector<256x4xf32>
    %144 = vector.broadcast %76 : vector<256x1xf32> to vector<256x4xf32>
    %145 = arith.mulf %143, %144 : vector<256x4xf32>
    %146 = arith.truncf %145 : vector<256x4xf32> to vector<256x4xbf16>
    %c8_58 = arith.constant 8 : index
    %c0_59 = arith.constant 0 : index
    %c0_60 = arith.constant 0 : index
    %147 = vector.load %arg2[%c8_58, %c0_59, %c0_60] : memref<9x4x16xbf16, #tpu.memory_space<vmem>>, vector<1x4x16xbf16>
    %148 = vector.shape_cast %147 : vector<1x4x16xbf16> to vector<4x16xbf16>
    %cst_61 = arith.constant dense<0.000000e+00> : vector<256x16xf32>
    %149 = tpu.matmul %146, %148, %cst_61 {dimension_numbers = #tpu.dot_dimension_numbers<[1], [0], [0], [1], [0, 0, 1, 1], [], []>} : vector<256x4xbf16>, vector<4x16xbf16>, vector<256x16xf32> -> vector<256x16xf32>
    %150 = arith.addf %142, %149 : vector<256x16xf32>
    %c0_62 = arith.constant 0 : index
    %c0_63 = arith.constant 0 : index
    %151 = vector.load %arg3[%c0_62, %c0_63] : memref<1x16xf32, #tpu.memory_space<vmem>>, vector<1x16xf32>
    %152 = vector.broadcast %151 : vector<1x16xf32> to vector<256x16xf32>
    %153 = arith.addf %150, %152 : vector<256x16xf32>
    %cst_64 = arith.constant 0.000000e+00 : f32
    %154 = vector.broadcast %cst_64 : f32 to vector<256x16xf32>
    %155 = arith.maximumf %153, %154 : vector<256x16xf32>
    %cst_65 = arith.constant 0.000000e+00 : f32
    %156 = vector.broadcast %cst_65 : f32 to vector<24x16xf32>
    %c0_66 = arith.constant 0 : index
    %c0_67 = arith.constant 0 : index
    %157 = vector.load %arg12[%c0_66, %c0_67] : memref<304x16xf32, #tpu.memory_space<vmem>>, vector<24x16xf32>
    tpu.vector_store %arg12[%c0_66, %c0_67], %156 {strides = array<i32>} : memref<304x16xf32, #tpu.memory_space<vmem>>, vector<24x16xf32>,
    %cst_68 = arith.constant 0.000000e+00 : f32
    %158 = vector.broadcast %cst_68 : f32 to vector<24x16xf32>
    %c280_69 = arith.constant 280 : index
    %c0_70 = arith.constant 0 : index
    %159 = vector.load %arg12[%c280_69, %c0_70] : memref<304x16xf32, #tpu.memory_space<vmem>>, vector<24x16xf32>
    tpu.vector_store %arg12[%c280_69, %c0_70], %158 {strides = array<i32>} : memref<304x16xf32, #tpu.memory_space<vmem>>, vector<24x16xf32>,
    %c24_71 = arith.constant 24 : index
    %c0_72 = arith.constant 0 : index
    %160 = vector.load %arg12[%c24_71, %c0_72] : memref<304x16xf32, #tpu.memory_space<vmem>>, vector<256x16xf32>
    tpu.vector_store %arg12[%c24_71, %c0_72], %155 {strides = array<i32>} : memref<304x16xf32, #tpu.memory_space<vmem>>, vector<256x16xf32>,
    %c7_73 = arith.constant 7 : index
    %c0_74 = arith.constant 0 : index
    %161 = vector.load %arg12[%c7_73, %c0_74] : memref<304x16xf32, #tpu.memory_space<vmem>>, vector<256x16xf32>
    %162 = vector.broadcast %39 : vector<256x1xf32> to vector<256x16xf32>
    %163 = arith.mulf %161, %162 : vector<256x16xf32>
    %164 = arith.truncf %163 : vector<256x16xf32> to vector<256x16xbf16>
    %c0_75 = arith.constant 0 : index
    %c0_76 = arith.constant 0 : index
    %c0_77 = arith.constant 0 : index
    %165 = vector.load %arg4[%c0_75, %c0_76, %c0_77] : memref<9x16x32xbf16, #tpu.memory_space<vmem>>, vector<1x16x32xbf16>
    %166 = vector.shape_cast %165 : vector<1x16x32xbf16> to vector<16x32xbf16>
    %cst_78 = arith.constant dense<0.000000e+00> : vector<256x32xf32>
    %167 = tpu.matmul %164, %166, %cst_78 {dimension_numbers = #tpu.dot_dimension_numbers<[1], [0], [0], [1], [0, 0, 1, 1], [], []>} : vector<256x16xbf16>, vector<16x32xbf16>, vector<256x32xf32> -> vector<256x32xf32>
    %c8_79 = arith.constant 8 : index
    %c0_80 = arith.constant 0 : index
    %168 = vector.load %arg12[%c8_79, %c0_80] : memref<304x16xf32, #tpu.memory_space<vmem>>, vector<256x16xf32>
    %169 = vector.broadcast %43 : vector<256x1xf32> to vector<256x16xf32>
    %170 = arith.mulf %168, %169 : vector<256x16xf32>
    %171 = arith.truncf %170 : vector<256x16xf32> to vector<256x16xbf16>
    %c1_81 = arith.constant 1 : index
    %c0_82 = arith.constant 0 : index
    %c0_83 = arith.constant 0 : index
    %172 = vector.load %arg4[%c1_81, %c0_82, %c0_83] : memref<9x16x32xbf16, #tpu.memory_space<vmem>>, vector<1x16x32xbf16>
    %173 = vector.shape_cast %172 : vector<1x16x32xbf16> to vector<16x32xbf16>
    %cst_84 = arith.constant dense<0.000000e+00> : vector<256x32xf32>
    %174 = tpu.matmul %171, %173, %cst_84 {dimension_numbers = #tpu.dot_dimension_numbers<[1], [0], [0], [1], [0, 0, 1, 1], [], []>} : vector<256x16xbf16>, vector<16x32xbf16>, vector<256x32xf32> -> vector<256x32xf32>
    %175 = arith.addf %167, %174 : vector<256x32xf32>
    %c9_85 = arith.constant 9 : index
    %c0_86 = arith.constant 0 : index
    %176 = vector.load %arg12[%c9_85, %c0_86] : memref<304x16xf32, #tpu.memory_space<vmem>>, vector<256x16xf32>
    %177 = vector.broadcast %50 : vector<256x1xf32> to vector<256x16xf32>
    %178 = arith.mulf %176, %177 : vector<256x16xf32>
    %179 = arith.truncf %178 : vector<256x16xf32> to vector<256x16xbf16>
    %c2_87 = arith.constant 2 : index
    %c0_88 = arith.constant 0 : index
    %c0_89 = arith.constant 0 : index
    %180 = vector.load %arg4[%c2_87, %c0_88, %c0_89] : memref<9x16x32xbf16, #tpu.memory_space<vmem>>, vector<1x16x32xbf16>
    %181 = vector.shape_cast %180 : vector<1x16x32xbf16> to vector<16x32xbf16>
    %cst_90 = arith.constant dense<0.000000e+00> : vector<256x32xf32>
    %182 = tpu.matmul %179, %181, %cst_90 {dimension_numbers = #tpu.dot_dimension_numbers<[1], [0], [0], [1], [0, 0, 1, 1], [], []>} : vector<256x16xbf16>, vector<16x32xbf16>, vector<256x32xf32> -> vector<256x32xf32>
    %183 = arith.addf %175, %182 : vector<256x32xf32>
    %c23_91 = arith.constant 23 : index
    %c0_92 = arith.constant 0 : index
    %184 = vector.load %arg12[%c23_91, %c0_92] : memref<304x16xf32, #tpu.memory_space<vmem>>, vector<256x16xf32>
    %185 = vector.broadcast %54 : vector<256x1xf32> to vector<256x16xf32>
    %186 = arith.mulf %184, %185 : vector<256x16xf32>
    %187 = arith.truncf %186 : vector<256x16xf32> to vector<256x16xbf16>
    %c3_93 = arith.constant 3 : index
    %c0_94 = arith.constant 0 : index
    %c0_95 = arith.constant 0 : index
    %188 = vector.load %arg4[%c3_93, %c0_94, %c0_95] : memref<9x16x32xbf16, #tpu.memory_space<vmem>>, vector<1x16x32xbf16>
    %189 = vector.shape_cast %188 : vector<1x16x32xbf16> to vector<16x32xbf16>
    %cst_96 = arith.constant dense<0.000000e+00> : vector<256x32xf32>
    %190 = tpu.matmul %187, %189, %cst_96 {dimension_numbers = #tpu.dot_dimension_numbers<[1], [0], [0], [1], [0, 0, 1, 1], [], []>} : vector<256x16xbf16>, vector<16x32xbf16>, vector<256x32xf32> -> vector<256x32xf32>
    %191 = arith.addf %183, %190 : vector<256x32xf32>
    %192 = arith.truncf %155 : vector<256x16xf32> to vector<256x16xbf16>
    %c4_97 = arith.constant 4 : index
    %c0_98 = arith.constant 0 : index
    %c0_99 = arith.constant 0 : index
    %193 = vector.load %arg4[%c4_97, %c0_98, %c0_99] : memref<9x16x32xbf16, #tpu.memory_space<vmem>>, vector<1x16x32xbf16>
    %194 = vector.shape_cast %193 : vector<1x16x32xbf16> to vector<16x32xbf16>
    %cst_100 = arith.constant dense<0.000000e+00> : vector<256x32xf32>
    %195 = tpu.matmul %192, %194, %cst_100 {dimension_numbers = #tpu.dot_dimension_numbers<[1], [0], [0], [1], [0, 0, 1, 1], [], []>} : vector<256x16xbf16>, vector<16x32xbf16>, vector<256x32xf32> -> vector<256x32xf32>
    %196 = arith.addf %191, %195 : vector<256x32xf32>
    %c25_101 = arith.constant 25 : index
    %c0_102 = arith.constant 0 : index
    %197 = vector.load %arg12[%c25_101, %c0_102] : memref<304x16xf32, #tpu.memory_space<vmem>>, vector<256x16xf32>
    %198 = vector.broadcast %58 : vector<256x1xf32> to vector<256x16xf32>
    %199 = arith.mulf %197, %198 : vector<256x16xf32>
    %200 = arith.truncf %199 : vector<256x16xf32> to vector<256x16xbf16>
    %c5_103 = arith.constant 5 : index
    %c0_104 = arith.constant 0 : index
    %c0_105 = arith.constant 0 : index
    %201 = vector.load %arg4[%c5_103, %c0_104, %c0_105] : memref<9x16x32xbf16, #tpu.memory_space<vmem>>, vector<1x16x32xbf16>
    %202 = vector.shape_cast %201 : vector<1x16x32xbf16> to vector<16x32xbf16>
    %cst_106 = arith.constant dense<0.000000e+00> : vector<256x32xf32>
    %203 = tpu.matmul %200, %202, %cst_106 {dimension_numbers = #tpu.dot_dimension_numbers<[1], [0], [0], [1], [0, 0, 1, 1], [], []>} : vector<256x16xbf16>, vector<16x32xbf16>, vector<256x32xf32> -> vector<256x32xf32>
    %204 = arith.addf %196, %203 : vector<256x32xf32>
    %c39_107 = arith.constant 39 : index
    %c0_108 = arith.constant 0 : index
    %205 = vector.load %arg12[%c39_107, %c0_108] : memref<304x16xf32, #tpu.memory_space<vmem>>, vector<256x16xf32>
    %206 = vector.broadcast %65 : vector<256x1xf32> to vector<256x16xf32>
    %207 = arith.mulf %205, %206 : vector<256x16xf32>
    %208 = arith.truncf %207 : vector<256x16xf32> to vector<256x16xbf16>
    %c6_109 = arith.constant 6 : index
    %c0_110 = arith.constant 0 : index
    %c0_111 = arith.constant 0 : index
    %209 = vector.load %arg4[%c6_109, %c0_110, %c0_111] : memref<9x16x32xbf16, #tpu.memory_space<vmem>>, vector<1x16x32xbf16>
    %210 = vector.shape_cast %209 : vector<1x16x32xbf16> to vector<16x32xbf16>
    %cst_112 = arith.constant dense<0.000000e+00> : vector<256x32xf32>
    %211 = tpu.matmul %208, %210, %cst_112 {dimension_numbers = #tpu.dot_dimension_numbers<[1], [0], [0], [1], [0, 0, 1, 1], [], []>} : vector<256x16xbf16>, vector<16x32xbf16>, vector<256x32xf32> -> vector<256x32xf32>
    %212 = arith.addf %204, %211 : vector<256x32xf32>
    %c40_113 = arith.constant 40 : index
    %c0_114 = arith.constant 0 : index
    %213 = vector.load %arg12[%c40_113, %c0_114] : memref<304x16xf32, #tpu.memory_space<vmem>>, vector<256x16xf32>
    %214 = vector.broadcast %69 : vector<256x1xf32> to vector<256x16xf32>
    %215 = arith.mulf %213, %214 : vector<256x16xf32>
    %216 = arith.truncf %215 : vector<256x16xf32> to vector<256x16xbf16>
    %c7_115 = arith.constant 7 : index
    %c0_116 = arith.constant 0 : index
    %c0_117 = arith.constant 0 : index
    %217 = vector.load %arg4[%c7_115, %c0_116, %c0_117] : memref<9x16x32xbf16, #tpu.memory_space<vmem>>, vector<1x16x32xbf16>
    %218 = vector.shape_cast %217 : vector<1x16x32xbf16> to vector<16x32xbf16>
    %cst_118 = arith.constant dense<0.000000e+00> : vector<256x32xf32>
    %219 = tpu.matmul %216, %218, %cst_118 {dimension_numbers = #tpu.dot_dimension_numbers<[1], [0], [0], [1], [0, 0, 1, 1], [], []>} : vector<256x16xbf16>, vector<16x32xbf16>, vector<256x32xf32> -> vector<256x32xf32>
    %220 = arith.addf %212, %219 : vector<256x32xf32>
    %c41_119 = arith.constant 41 : index
    %c0_120 = arith.constant 0 : index
    %221 = vector.load %arg12[%c41_119, %c0_120] : memref<304x16xf32, #tpu.memory_space<vmem>>, vector<256x16xf32>
    %222 = vector.broadcast %76 : vector<256x1xf32> to vector<256x16xf32>
    %223 = arith.mulf %221, %222 : vector<256x16xf32>
    %224 = arith.truncf %223 : vector<256x16xf32> to vector<256x16xbf16>
    %c8_121 = arith.constant 8 : index
    %c0_122 = arith.constant 0 : index
    %c0_123 = arith.constant 0 : index
    %225 = vector.load %arg4[%c8_121, %c0_122, %c0_123] : memref<9x16x32xbf16, #tpu.memory_space<vmem>>, vector<1x16x32xbf16>
    %226 = vector.shape_cast %225 : vector<1x16x32xbf16> to vector<16x32xbf16>
    %cst_124 = arith.constant dense<0.000000e+00> : vector<256x32xf32>
    %227 = tpu.matmul %224, %226, %cst_124 {dimension_numbers = #tpu.dot_dimension_numbers<[1], [0], [0], [1], [0, 0, 1, 1], [], []>} : vector<256x16xbf16>, vector<16x32xbf16>, vector<256x32xf32> -> vector<256x32xf32>
    %228 = arith.addf %220, %227 : vector<256x32xf32>
    %c0_125 = arith.constant 0 : index
    %c0_126 = arith.constant 0 : index
    %229 = vector.load %arg5[%c0_125, %c0_126] : memref<1x32xf32, #tpu.memory_space<vmem>>, vector<1x32xf32>
    %230 = vector.broadcast %229 : vector<1x32xf32> to vector<256x32xf32>
    %231 = arith.addf %228, %230 : vector<256x32xf32>
    %cst_127 = arith.constant 0.000000e+00 : f32
    %232 = vector.broadcast %cst_127 : f32 to vector<256x32xf32>
    %233 = arith.maximumf %231, %232 : vector<256x32xf32>
    %cst_128 = arith.constant 0.000000e+00 : f32
    %234 = vector.broadcast %cst_128 : f32 to vector<24x32xf32>
    %c0_129 = arith.constant 0 : index
    %c0_130 = arith.constant 0 : index
    %235 = vector.load %arg13[%c0_129, %c0_130] : memref<304x32xf32, #tpu.memory_space<vmem>>, vector<24x32xf32>
    tpu.vector_store %arg13[%c0_129, %c0_130], %234 {strides = array<i32>} : memref<304x32xf32, #tpu.memory_space<vmem>>, vector<24x32xf32>,
    %cst_131 = arith.constant 0.000000e+00 : f32
    %236 = vector.broadcast %cst_131 : f32 to vector<24x32xf32>
    %c280_132 = arith.constant 280 : index
    %c0_133 = arith.constant 0 : index
    %237 = vector.load %arg13[%c280_132, %c0_133] : memref<304x32xf32, #tpu.memory_space<vmem>>, vector<24x32xf32>
    tpu.vector_store %arg13[%c280_132, %c0_133], %236 {strides = array<i32>} : memref<304x32xf32, #tpu.memory_space<vmem>>, vector<24x32xf32>,
    %c24_134 = arith.constant 24 : index
    %c0_135 = arith.constant 0 : index
    %238 = vector.load %arg13[%c24_134, %c0_135] : memref<304x32xf32, #tpu.memory_space<vmem>>, vector<256x32xf32>
    tpu.vector_store %arg13[%c24_134, %c0_135], %233 {strides = array<i32>} : memref<304x32xf32, #tpu.memory_space<vmem>>, vector<256x32xf32>,
    %c7_136 = arith.constant 7 : index
    %c0_137 = arith.constant 0 : index
    %239 = vector.load %arg13[%c7_136, %c0_137] : memref<304x32xf32, #tpu.memory_space<vmem>>, vector<256x32xf32>
    %240 = vector.broadcast %39 : vector<256x1xf32> to vector<256x32xf32>
    %241 = arith.mulf %239, %240 : vector<256x32xf32>
    %242 = arith.truncf %241 : vector<256x32xf32> to vector<256x32xbf16>
    %c0_138 = arith.constant 0 : index
    %c0_139 = arith.constant 0 : index
    %c0_140 = arith.constant 0 : index
    %243 = vector.load %arg6[%c0_138, %c0_139, %c0_140] : memref<9x32x64xbf16, #tpu.memory_space<vmem>>, vector<1x32x64xbf16>
    %244 = vector.shape_cast %243 : vector<1x32x64xbf16> to vector<32x64xbf16>
    %cst_141 = arith.constant dense<0.000000e+00> : vector<256x64xf32>
    %245 = tpu.matmul %242, %244, %cst_141 {dimension_numbers = #tpu.dot_dimension_numbers<[1], [0], [0], [1], [0, 0, 1, 1], [], []>} : vector<256x32xbf16>, vector<32x64xbf16>, vector<256x64xf32> -> vector<256x64xf32>
    %c8_142 = arith.constant 8 : index
    %c0_143 = arith.constant 0 : index
    %246 = vector.load %arg13[%c8_142, %c0_143] : memref<304x32xf32, #tpu.memory_space<vmem>>, vector<256x32xf32>
    %247 = vector.broadcast %43 : vector<256x1xf32> to vector<256x32xf32>
    %248 = arith.mulf %246, %247 : vector<256x32xf32>
    %249 = arith.truncf %248 : vector<256x32xf32> to vector<256x32xbf16>
    %c1_144 = arith.constant 1 : index
    %c0_145 = arith.constant 0 : index
    %c0_146 = arith.constant 0 : index
    %250 = vector.load %arg6[%c1_144, %c0_145, %c0_146] : memref<9x32x64xbf16, #tpu.memory_space<vmem>>, vector<1x32x64xbf16>
    %251 = vector.shape_cast %250 : vector<1x32x64xbf16> to vector<32x64xbf16>
    %cst_147 = arith.constant dense<0.000000e+00> : vector<256x64xf32>
    %252 = tpu.matmul %249, %251, %cst_147 {dimension_numbers = #tpu.dot_dimension_numbers<[1], [0], [0], [1], [0, 0, 1, 1], [], []>} : vector<256x32xbf16>, vector<32x64xbf16>, vector<256x64xf32> -> vector<256x64xf32>
    %253 = arith.addf %245, %252 : vector<256x64xf32>
    %c9_148 = arith.constant 9 : index
    %c0_149 = arith.constant 0 : index
    %254 = vector.load %arg13[%c9_148, %c0_149] : memref<304x32xf32, #tpu.memory_space<vmem>>, vector<256x32xf32>
    %255 = vector.broadcast %50 : vector<256x1xf32> to vector<256x32xf32>
    %256 = arith.mulf %254, %255 : vector<256x32xf32>
    %257 = arith.truncf %256 : vector<256x32xf32> to vector<256x32xbf16>
    %c2_150 = arith.constant 2 : index
    %c0_151 = arith.constant 0 : index
    %c0_152 = arith.constant 0 : index
    %258 = vector.load %arg6[%c2_150, %c0_151, %c0_152] : memref<9x32x64xbf16, #tpu.memory_space<vmem>>, vector<1x32x64xbf16>
    %259 = vector.shape_cast %258 : vector<1x32x64xbf16> to vector<32x64xbf16>
    %cst_153 = arith.constant dense<0.000000e+00> : vector<256x64xf32>
    %260 = tpu.matmul %257, %259, %cst_153 {dimension_numbers = #tpu.dot_dimension_numbers<[1], [0], [0], [1], [0, 0, 1, 1], [], []>} : vector<256x32xbf16>, vector<32x64xbf16>, vector<256x64xf32> -> vector<256x64xf32>
    %261 = arith.addf %253, %260 : vector<256x64xf32>
    %c23_154 = arith.constant 23 : index
    %c0_155 = arith.constant 0 : index
    %262 = vector.load %arg13[%c23_154, %c0_155] : memref<304x32xf32, #tpu.memory_space<vmem>>, vector<256x32xf32>
    %263 = vector.broadcast %54 : vector<256x1xf32> to vector<256x32xf32>
    %264 = arith.mulf %262, %263 : vector<256x32xf32>
    %265 = arith.truncf %264 : vector<256x32xf32> to vector<256x32xbf16>
    %c3_156 = arith.constant 3 : index
    %c0_157 = arith.constant 0 : index
    %c0_158 = arith.constant 0 : index
    %266 = vector.load %arg6[%c3_156, %c0_157, %c0_158] : memref<9x32x64xbf16, #tpu.memory_space<vmem>>, vector<1x32x64xbf16>
    %267 = vector.shape_cast %266 : vector<1x32x64xbf16> to vector<32x64xbf16>
    %cst_159 = arith.constant dense<0.000000e+00> : vector<256x64xf32>
    %268 = tpu.matmul %265, %267, %cst_159 {dimension_numbers = #tpu.dot_dimension_numbers<[1], [0], [0], [1], [0, 0, 1, 1], [], []>} : vector<256x32xbf16>, vector<32x64xbf16>, vector<256x64xf32> -> vector<256x64xf32>
    %269 = arith.addf %261, %268 : vector<256x64xf32>
    %270 = arith.truncf %233 : vector<256x32xf32> to vector<256x32xbf16>
    %c4_160 = arith.constant 4 : index
    %c0_161 = arith.constant 0 : index
    %c0_162 = arith.constant 0 : index
    %271 = vector.load %arg6[%c4_160, %c0_161, %c0_162] : memref<9x32x64xbf16, #tpu.memory_space<vmem>>, vector<1x32x64xbf16>
    %272 = vector.shape_cast %271 : vector<1x32x64xbf16> to vector<32x64xbf16>
    %cst_163 = arith.constant dense<0.000000e+00> : vector<256x64xf32>
    %273 = tpu.matmul %270, %272, %cst_163 {dimension_numbers = #tpu.dot_dimension_numbers<[1], [0], [0], [1], [0, 0, 1, 1], [], []>} : vector<256x32xbf16>, vector<32x64xbf16>, vector<256x64xf32> -> vector<256x64xf32>
    %274 = arith.addf %269, %273 : vector<256x64xf32>
    %c25_164 = arith.constant 25 : index
    %c0_165 = arith.constant 0 : index
    %275 = vector.load %arg13[%c25_164, %c0_165] : memref<304x32xf32, #tpu.memory_space<vmem>>, vector<256x32xf32>
    %276 = vector.broadcast %58 : vector<256x1xf32> to vector<256x32xf32>
    %277 = arith.mulf %275, %276 : vector<256x32xf32>
    %278 = arith.truncf %277 : vector<256x32xf32> to vector<256x32xbf16>
    %c5_166 = arith.constant 5 : index
    %c0_167 = arith.constant 0 : index
    %c0_168 = arith.constant 0 : index
    %279 = vector.load %arg6[%c5_166, %c0_167, %c0_168] : memref<9x32x64xbf16, #tpu.memory_space<vmem>>, vector<1x32x64xbf16>
    %280 = vector.shape_cast %279 : vector<1x32x64xbf16> to vector<32x64xbf16>
    %cst_169 = arith.constant dense<0.000000e+00> : vector<256x64xf32>
    %281 = tpu.matmul %278, %280, %cst_169 {dimension_numbers = #tpu.dot_dimension_numbers<[1], [0], [0], [1], [0, 0, 1, 1], [], []>} : vector<256x32xbf16>, vector<32x64xbf16>, vector<256x64xf32> -> vector<256x64xf32>
    %282 = arith.addf %274, %281 : vector<256x64xf32>
    %c39_170 = arith.constant 39 : index
    %c0_171 = arith.constant 0 : index
    %283 = vector.load %arg13[%c39_170, %c0_171] : memref<304x32xf32, #tpu.memory_space<vmem>>, vector<256x32xf32>
    %284 = vector.broadcast %65 : vector<256x1xf32> to vector<256x32xf32>
    %285 = arith.mulf %283, %284 : vector<256x32xf32>
    %286 = arith.truncf %285 : vector<256x32xf32> to vector<256x32xbf16>
    %c6_172 = arith.constant 6 : index
    %c0_173 = arith.constant 0 : index
    %c0_174 = arith.constant 0 : index
    %287 = vector.load %arg6[%c6_172, %c0_173, %c0_174] : memref<9x32x64xbf16, #tpu.memory_space<vmem>>, vector<1x32x64xbf16>
    %288 = vector.shape_cast %287 : vector<1x32x64xbf16> to vector<32x64xbf16>
    %cst_175 = arith.constant dense<0.000000e+00> : vector<256x64xf32>
    %289 = tpu.matmul %286, %288, %cst_175 {dimension_numbers = #tpu.dot_dimension_numbers<[1], [0], [0], [1], [0, 0, 1, 1], [], []>} : vector<256x32xbf16>, vector<32x64xbf16>, vector<256x64xf32> -> vector<256x64xf32>
    %290 = arith.addf %282, %289 : vector<256x64xf32>
    %c40_176 = arith.constant 40 : index
    %c0_177 = arith.constant 0 : index
    %291 = vector.load %arg13[%c40_176, %c0_177] : memref<304x32xf32, #tpu.memory_space<vmem>>, vector<256x32xf32>
    %292 = vector.broadcast %69 : vector<256x1xf32> to vector<256x32xf32>
    %293 = arith.mulf %291, %292 : vector<256x32xf32>
    %294 = arith.truncf %293 : vector<256x32xf32> to vector<256x32xbf16>
    %c7_178 = arith.constant 7 : index
    %c0_179 = arith.constant 0 : index
    %c0_180 = arith.constant 0 : index
    %295 = vector.load %arg6[%c7_178, %c0_179, %c0_180] : memref<9x32x64xbf16, #tpu.memory_space<vmem>>, vector<1x32x64xbf16>
    %296 = vector.shape_cast %295 : vector<1x32x64xbf16> to vector<32x64xbf16>
    %cst_181 = arith.constant dense<0.000000e+00> : vector<256x64xf32>
    %297 = tpu.matmul %294, %296, %cst_181 {dimension_numbers = #tpu.dot_dimension_numbers<[1], [0], [0], [1], [0, 0, 1, 1], [], []>} : vector<256x32xbf16>, vector<32x64xbf16>, vector<256x64xf32> -> vector<256x64xf32>
    %298 = arith.addf %290, %297 : vector<256x64xf32>
    %c41_182 = arith.constant 41 : index
    %c0_183 = arith.constant 0 : index
    %299 = vector.load %arg13[%c41_182, %c0_183] : memref<304x32xf32, #tpu.memory_space<vmem>>, vector<256x32xf32>
    %300 = vector.broadcast %76 : vector<256x1xf32> to vector<256x32xf32>
    %301 = arith.mulf %299, %300 : vector<256x32xf32>
    %302 = arith.truncf %301 : vector<256x32xf32> to vector<256x32xbf16>
    %c8_184 = arith.constant 8 : index
    %c0_185 = arith.constant 0 : index
    %c0_186 = arith.constant 0 : index
    %303 = vector.load %arg6[%c8_184, %c0_185, %c0_186] : memref<9x32x64xbf16, #tpu.memory_space<vmem>>, vector<1x32x64xbf16>
    %304 = vector.shape_cast %303 : vector<1x32x64xbf16> to vector<32x64xbf16>
    %cst_187 = arith.constant dense<0.000000e+00> : vector<256x64xf32>
    %305 = tpu.matmul %302, %304, %cst_187 {dimension_numbers = #tpu.dot_dimension_numbers<[1], [0], [0], [1], [0, 0, 1, 1], [], []>} : vector<256x32xbf16>, vector<32x64xbf16>, vector<256x64xf32> -> vector<256x64xf32>
    %306 = arith.addf %298, %305 : vector<256x64xf32>
    %c0_188 = arith.constant 0 : index
    %c0_189 = arith.constant 0 : index
    %307 = vector.load %arg7[%c0_188, %c0_189] : memref<1x64xf32, #tpu.memory_space<vmem>>, vector<1x64xf32>
    %308 = vector.broadcast %307 : vector<1x64xf32> to vector<256x64xf32>
    %309 = arith.addf %306, %308 : vector<256x64xf32>
    %cst_190 = arith.constant 0.000000e+00 : f32
    %310 = vector.broadcast %cst_190 : f32 to vector<256x64xf32>
    %311 = arith.maximumf %309, %310 : vector<256x64xf32>
    %c0_191 = arith.constant 0 : index
    %c0_192 = arith.constant 0 : index
    %312 = vector.load %arg8[%c0_191, %c0_192] : memref<256x64xf32, #tpu.memory_space<vmem>>, vector<256x64xf32>
    %c0_193 = arith.constant 0 : index
    %c0_194 = arith.constant 0 : index
    %313 = vector.load %arg9[%c0_193, %c0_194] : memref<1x1xf32, #tpu.memory_space<vmem>>, vector<1x1xf32>
    %314 = arith.mulf %311, %312 : vector<256x64xf32>
    %cst_195 = arith.constant dense<0.000000e+00> : vector<256xf32>
    %315 = vector.multi_reduction <add>, %314, %cst_195 [1] : vector<256x64xf32> to vector<256xf32>
    %316 = vector.shape_cast %315 : vector<256xf32> to vector<256x1xf32>
    %cst_196 = arith.constant dense<0.000000e+00> : vector<1xf32>
    %317 = vector.multi_reduction <add>, %316, %cst_196 [0] : vector<256x1xf32> to vector<1xf32>
    %318 = vector.shape_cast %317 : vector<1xf32> to vector<1x1xf32>
    %319 = arith.addf %318, %313 : vector<1x1xf32>
    %320 = arith.negf %319 : vector<1x1xf32>
    %321 = math.exp %320 : vector<1x1xf32>
    %cst_197 = arith.constant 1.000000e+00 : f32
    %322 = vector.broadcast %cst_197 : f32 to vector<1x1xf32>
    %323 = arith.addf %322, %321 : vector<1x1xf32>
    %324 = arith.divf %322, %323 : vector<1x1xf32>
    %c0_198 = arith.constant 0 : index
    %c0_199 = arith.constant 0 : index
    %c0_200 = arith.constant 0 : index
    %325 = vector.load %arg10[%c0_198, %c0_199, %c0_200] : memref<1x1x1xf32, #tpu.memory_space<vmem>>, vector<1x1x1xf32>
    %326 = vector.shape_cast %325 : vector<1x1x1xf32> to vector<1x1xf32>
    %327 = vector.shape_cast %324 : vector<1x1xf32> to vector<1x1x1xf32>
    tpu.vector_store %arg10[%c0_198, %c0_199, %c0_200], %327 {strides = array<i32>} : memref<1x1x1xf32, #tpu.memory_space<vmem>>, vector<1x1x1xf32>,
    return
  }
  func.func @transform_0(%arg0: i32) -> (i32, i32) {
    %c0_i32 = arith.constant 0 : i32
    %c0_i32_0 = arith.constant 0 : i32
    return %arg0, %c0_i32 : i32, i32
  }
  func.func @transform_1(%arg0: i32) -> (i32, i32, i32) {
    %c0_i32 = arith.constant 0 : i32
    %c0_i32_0 = arith.constant 0 : i32
    %c0_i32_1 = arith.constant 0 : i32
    %c0_i32_2 = arith.constant 0 : i32
    return %c0_i32, %c0_i32_0, %c0_i32_1 : i32, i32, i32
  }
  func.func @transform_2(%arg0: i32) -> (i32, i32) {
    %c0_i32 = arith.constant 0 : i32
    %c0_i32_0 = arith.constant 0 : i32
    %c0_i32_1 = arith.constant 0 : i32
    return %c0_i32, %c0_i32_0 : i32, i32
  }
  func.func @transform_3(%arg0: i32) -> (i32, i32, i32) {
    %c0_i32 = arith.constant 0 : i32
    %c0_i32_0 = arith.constant 0 : i32
    %c0_i32_1 = arith.constant 0 : i32
    %c0_i32_2 = arith.constant 0 : i32
    return %c0_i32, %c0_i32_0, %c0_i32_1 : i32, i32, i32
  }
  func.func @transform_4(%arg0: i32) -> (i32, i32) {
    %c0_i32 = arith.constant 0 : i32
    %c0_i32_0 = arith.constant 0 : i32
    %c0_i32_1 = arith.constant 0 : i32
    return %c0_i32, %c0_i32_0 : i32, i32
  }
  func.func @transform_5(%arg0: i32) -> (i32, i32, i32) {
    %c0_i32 = arith.constant 0 : i32
    %c0_i32_0 = arith.constant 0 : i32
    %c0_i32_1 = arith.constant 0 : i32
    %c0_i32_2 = arith.constant 0 : i32
    return %c0_i32, %c0_i32_0, %c0_i32_1 : i32, i32, i32
  }
  func.func @transform_6(%arg0: i32) -> (i32, i32) {
    %c0_i32 = arith.constant 0 : i32
    %c0_i32_0 = arith.constant 0 : i32
    %c0_i32_1 = arith.constant 0 : i32
    return %c0_i32, %c0_i32_0 : i32, i32
  }
  func.func @transform_7(%arg0: i32) -> (i32, i32) {
    %c0_i32 = arith.constant 0 : i32
    %c0_i32_0 = arith.constant 0 : i32
    %c0_i32_1 = arith.constant 0 : i32
    return %c0_i32, %c0_i32_0 : i32, i32
  }
  func.func @transform_8(%arg0: i32) -> (i32, i32) {
    %c0_i32 = arith.constant 0 : i32
    %c0_i32_0 = arith.constant 0 : i32
    %c0_i32_1 = arith.constant 0 : i32
    return %c0_i32, %c0_i32_0 : i32, i32
  }
  func.func @transform_9(%arg0: i32) -> (i32, i32, i32) {
    %c0_i32 = arith.constant 0 : i32
    %c0_i32_0 = arith.constant 0 : i32
    %c0_i32_1 = arith.constant 0 : i32
    return %arg0, %c0_i32, %c0_i32_0 : i32, i32, i32
  }
}

</mosaic_0001>

<bundles_post_ra>
// kernel: cnn_forward.1
= control target key start
LH: loop header
LB: loop body
LE: loop exit
PB: predicated region body
PF: predicated region fallthrough
CT: control target
= control target key end

     0   :  { %s13218_s11 = smov 0   ;;  %s18154_s0 = inlined_call_operand.vmem [shape: f32[512,4], index: 0, kind: input, shape index: {}]   ;;  %s18155_s1 = inlined_call_operand.vmem [shape: bf16[9,4,16], index: 1, kind: input, shape index: {}]   ;;  %s18156_s2 = inlined_call_operand.vmem [shape: f32[1,16], index: 2, kind: input, shape index: {}]   ;;  %s18157_s3 = inlined_call_operand.vmem [shape: bf16[9,16,32], index: 3, kind: input, shape index: {}]   ;;  %s18158_s4 = inlined_call_operand.vmem [shape: f32[1,32], index: 4, kind: input, shape index: {}]   ;;  %s18159_s5 = inlined_call_operand.vmem [shape: bf16[9,32,64], index: 5, kind: input, shape index: {}]   ;;  %s18160_s6 = inlined_call_operand.vmem [shape: f32[1,64], index: 6, kind: input, shape index: {}]   ;;  %s18161_s7 = inlined_call_operand.vmem [shape: f32[256,64], index: 7, kind: input, shape index: {}]   ;;  %s18162_s8 = inlined_call_operand.<no memory space> [shape: f32[1,1], index: 8, kind: input, shape index: {}]   ;;  %s18163_s9 = inlined_call_operand.vmem [shape: f32[2,1,1], index: 9, kind: output, shape index: {}]  }
   0x1   :  { %v14_v0 = vstv %s18162_s8 }
   0x2   :  { %15 = vst [vmem:[#allocation5] sm:$0x1] %v14_v0 }
   0x3 LB: > { %s13224_s12 = sadd.s32 4294967295, %s13162_s11   ;;  %p11084_p0 = scmp.ge.s32.totalorder %s13162_s11, 1  ;;  %s13162_s11 = sphi %s13218_s11, %s21_s11  }
   0x4   : > { %p290_p1 = scmp.lt.s32.totalorder %s13162_s11, 3 }
   0x6   : > { %p291_p2 = pnand %p11084_p0, %p290_p1 }
   0x8   : > { %294 = sbr.rel (%p291_p2) target bundleno = 1667 (0x683), region = 56 }
   0xd   : > { %v11179_v1 = vld [vmem:[%s18155_s1 + $0x2] sm:$0x3]  ;;  %vm2185_vm0 = vcmask 1041408   ;;  %vm1935_vm1 = vcmask 31744   ;;  %s11085_s8 = sshll.u32 %s13224_s12, 5  ;;  %v18165_v3 = vmov 0.0   ;;  %v334_v33 = vlaneseq }
   0xe   : > { %13106 = vmatprep.subr.msk.bf16.mxu0 %vm2185_vm0, %v11179_v1  ;;  %13107 = vmatprep.subr.msk.bf16.mxu1 %vm2185_vm0, %v11179_v1  ;;  %v2187_v2 = vsel %vm2185_vm0, %v11179_v1, 0  ;;  %1937 = vst.msk [vmem:[#allocation2 + $0x8] sm:$0xff] %vm1935_vm1, %v18165_v3  ;;  %1938 = vst.msk [vmem:[#allocation2 + $0x10] sm:$0xff] %vm1935_vm1, %v18165_v3  ;;  %p325_p3 = scmp.lt.s32.totalorder %s11085_s8, 63  ;;  %v13250_v4 = vld [vmem:[%s18155_s1] sm:$0x3] }
   0xf   : > { %1936 = vst.msk [vmem:[#allocation2] sm:$0xff] %vm1935_vm1, %v18165_v3  ;;  %1939 = vst.msk [vmem:[#allocation2 + $0x118] sm:$0xff] %vm1935_vm1, %v18165_v3  ;;  %v13255_v5 = vld [vmem:[%s18155_s1 + $0x4] sm:$0x3]  ;;  %12169 = vmatpush3.bf16.msra.mxu0 %v2187_v2  ;;  %13105 = vmatpush3.bf16.msra.mxu1 %v2187_v2  ;;  %v13390_v42 = vld [vmem:[%s18155_s1 + $0x8] sm:$0x3] }
  0x10   : > { %1940 = vst.msk [vmem:[#allocation2 + $0x120] sm:$0xff] %vm1935_vm1, %v18165_v3  ;;  %1941 = vst.msk [vmem:[#allocation2 + $0x128] sm:$0xff] %vm1935_vm1, %v18165_v3  ;;  %s19423_s8 = smov (!%p325_p3, %s11085_s8), 63  ;;  %13108 = vmatprep.subr.msk.bf16.mxu1 %vm2185_vm0, %v13250_v4  ;;  %13109 = vmatprep.subr.msk.bf16.mxu0 %vm2185_vm0, %v13255_v5  ;;  %v2693_v46 = vsel %vm2185_vm0, %v13255_v5, 0  ;;  %v13406_v53 = vshrl.u32 %v334_v33, 7  ;;  %v2399_v55 = vsel %vm2185_vm0, %v13250_v4, 0 }
  0x11   : > { %s11086_s19 = sshll.u32 %s19423_s8, 3  ;;  %v13414_v58 = vld [vmem:[%s18155_s1 + $0x6] sm:$0x3]  ;;  %p330_p4 = scmp.lt.s32.totalorder %s13224_s12, 1 }
  0x12   : > { %s13264_s22 = scalar_lea.vmem %s18154_s0, %s11086_s19  ;;  %v338_v5 = vadd.s32 24, %v13406_v53  ;;  %v339_v33 = vadd.s32 32, %v13406_v53 }
  0x13   : > { %v13267_v6 = vld [vmem:[%s13264_s22] sm:$0xff]  ;;  %v13270_v7 = vld [vmem:[%s13264_s22 + $0x8] sm:$0xff]  ;;  %v13273_v8 = vld [vmem:[%s13264_s22 + $0x70] sm:$0xff]  ;;  %s19425_s12 = smov (!%p330_p4, %s13224_s12), 1 }
  0x14   : > { %18442 = vst [vmem:[#allocation6_spill] sm:$0xff] %v13267_v6  ;;  %18443 = vst [vmem:[#allocation7_spill] sm:$0xff] %v13270_v7  ;;  %v13280_v11 = vld [vmem:[%s13264_s22 + $0x78] sm:$0xff]  ;;  %v13289_v15 = vld [vmem:[%s13264_s22 + $0x80] sm:$0xff]  ;;  %s332_s21 = scalar_lea.vmem %s18163_s9, %s19425_s12 }
  0x15   : > { %18444 = vst [vmem:[#allocation8_spill] sm:$0xff] %v13273_v8  ;;  %v2055_v9 = vld [vmem:[#allocation2 + $0x8] sm:$0xff]  ;;  %v2056_v10 = vld [vmem:[#allocation2 + $0x10] sm:$0xff]  ;;  %1942 = vst.msk [vmem:[#allocation2 + $0x18] sm:$0xff] %vm1935_vm1, %v13267_v6 }
  0x16   : > { %1943 = vst.msk [vmem:[#allocation2 + $0x20] sm:$0xff] %vm1935_vm1, %v13270_v7  ;;  %18445 = vst [vmem:[#allocation9_spill] sm:$0xff] %v13280_v11  ;;  %v2087_v13 = vmul.f32 0.0, %v2055_v9  ;;  %v2088_v14 = vmul.f32 0.0, %v2056_v10  ;;  %v13292_v16 = vld [vmem:[%s13264_s22 + $0x88] sm:$0xff]  ;;  %v13295_v17 = vld [vmem:[%s13264_s22 + $0x10] sm:$0xff] }
  0x17   : > { %1956 = vst.msk [vmem:[#allocation2 + $0x88] sm:$0xff] %vm1935_vm1, %v13273_v8  ;;  %1957 = vst.msk [vmem:[#allocation2 + $0x90] sm:$0xff] %vm1935_vm1, %v13280_v11  ;;  %v13304_v19 = vld [vmem:[%s13264_s22 + $0x18] sm:$0xff]  ;;  %v13309_v20 = vld [vmem:[%s13264_s22 + $0x20] sm:$0xff]  ;;  %v337_v9 = vadd.s32 16, %v13406_v53 }
  0x18   : > { %18446 = vst [vmem:[#allocation10_spill] sm:$0xff] %v13289_v15  ;;  %18447 = vst [vmem:[#allocation11_spill] sm:$0xff] %v13292_v16  ;;  %v13312_v21 = vld [vmem:[%s13264_s22 + $0x28] sm:$0xff]  ;;  %v2119_v22 = vpack.c.bf16 %v2088_v14, %v2087_v13  ;;  %v13321_v23 = vld [vmem:[%s13264_s22 + $0x90] sm:$0xff] }
  0x19   : > { %18448 = vst [vmem:[#allocation12_spill] sm:$0xff] %v13295_v17  ;;  %1958 = vst.msk [vmem:[#allocation2 + $0x98] sm:$0xff] %vm1935_vm1, %v13289_v15  ;;  %v13324_v24 = vld [vmem:[%s13264_s22 + $0x98] sm:$0xff]  ;;  %v13327_v25 = vld [vmem:[%s13264_s22 + $0xa0] sm:$0xff] }
  0x1a   : > { %1959 = vst.msk [vmem:[#allocation2 + $0xa0] sm:$0xff] %vm1935_vm1, %v13292_v16  ;;  %18449 = vst [vmem:[#allocation13_spill] sm:$0xff] %v13304_v19  ;;  %v13334_v26 = vld [vmem:[%s13264_s22 + $0xa8] sm:$0xff]  ;;  %v13339_v27 = vld [vmem:[%s13264_s22 + $0x30] sm:$0xff]  ;;  %12170 = vmatprep.mubr.msk.bf16.mxu0 %vm1935_vm1, %v2119_v22  ;;  %v340_v22 = vadd.s32 40, %v13406_v53 }
  0x1b   : > { %1944 = vst.msk [vmem:[#allocation2 + $0x28] sm:$0xff] %vm1935_vm1, %v13295_v17  ;;  %18450 = vst [vmem:[#allocation14_spill] sm:$0xff] %v13309_v20  ;;  %v13342_v28 = vld [vmem:[%s13264_s22 + $0x38] sm:$0xff]  ;;  %v13354_v30 = vld [vmem:[%s13264_s22 + $0x40] sm:$0xff] }
  0x1c   : > { %18451 = vst [vmem:[#allocation15_spill] sm:$0xff] %v13312_v21  ;;  %1945 = vst.msk [vmem:[#allocation2 + $0x30] sm:$0xff] %vm1935_vm1, %v13304_v19  ;;  %v13357_v31 = vld [vmem:[%s13264_s22 + $0x48] sm:$0xff]  ;;  %v13360_v32 = vld [vmem:[%s13264_s22 + $0xb0] sm:$0xff] }
  0x1d   : > { %1946 = vst.msk [vmem:[#allocation2 + $0x38] sm:$0xff] %vm1935_vm1, %v13309_v20  ;;  %1947 = vst.msk [vmem:[#allocation2 + $0x40] sm:$0xff] %vm1935_vm1, %v13312_v21  ;;  %v13369_v35 = vld [vmem:[%s13264_s22 + $0xb8] sm:$0xff]  ;;  %v13374_v36 = vld [vmem:[%s13264_s22 + $0xc0] sm:$0xff] }
  0x1e   : > { %18452 = vst [vmem:[#allocation16_spill] sm:$0xff] %v13321_v23  ;;  %18453 = vst [vmem:[#allocation17_spill] sm:$0xff] %v13327_v25  ;;  %v13377_v37 = vld [vmem:[%s13264_s22 + $0xc8] sm:$0xff]  ;;  %v2057_v39 = vld [vmem:[#allocation2 + $0x18] sm:$0xff] }
  0x1f   : > { %1960 = vst.msk [vmem:[#allocation2 + $0xa8] sm:$0xff] %vm1935_vm1, %v13321_v23  ;;  %1961 = vst.msk [vmem:[#allocation2 + $0xb0] sm:$0xff] %vm1935_vm1, %v13324_v24  ;;  %v2058_v40 = vld [vmem:[#allocation2 + $0x20] sm:$0xff]  ;;  %v2071_v41 = vld [vmem:[#allocation2 + $0x88] sm:$0xff] }
  0x20   : > { %1962 = vst.msk [vmem:[#allocation2 + $0xb8] sm:$0xff] %vm1935_vm1, %v13327_v25  ;;  %18454 = vst [vmem:[#allocation18_spill] sm:$0xff] %v13339_v27  ;;  %v2120_v44 = vpack.c.bf16 %v2058_v40, %v2057_v39  ;;  %v2072_v45 = vld [vmem:[#allocation2 + $0x90] sm:$0xff]  ;;  %v13400_v48 = vld [vmem:[%s13264_s22 + $0x58] sm:$0xff] }
  0x21   : > { %18455 = vst [vmem:[#allocation19_spill] sm:$0xff] %v13342_v28  ;;  %1963 = vst.msk [vmem:[#allocation2 + $0xc0] sm:$0xff] %vm1935_vm1, %v13334_v26  ;;  %v13397_v47 = vld [vmem:[%s13264_s22 + $0x50] sm:$0xff]  ;;  %v2127_v49 = vpack.c.bf16 %v2072_v45, %v2071_v41  ;;  %v2073_v50 = vld [vmem:[#allocation2 + $0x98] sm:$0xff] }
  0x22   : > { %1948 = vst.msk [vmem:[#allocation2 + $0x48] sm:$0xff] %vm1935_vm1, %v13339_v27  ;;  %1949 = vst.msk [vmem:[#allocation2 + $0x50] sm:$0xff] %vm1935_vm1, %v13342_v28  ;;  %v2074_v51 = vld [vmem:[#allocation2 + $0xa0] sm:$0xff]  ;;  %v2059_v52 = vld [vmem:[#allocation2 + $0x28] sm:$0xff]  ;;  %12171 = vmatmul.mubr.msk.bf16.vlgmr.msra.gmra.mxu0 %vm1935_vm1, %v2120_v44 }
  0x23   : > { %18456 = vst [vmem:[#allocation20_spill] sm:$0xff] %v13354_v30  ;;  %18457 = vst [vmem:[#allocation21_spill] sm:$0xff] %v13357_v31  ;;  %v2128_v54 = vpack.c.bf16 %v2074_v51, %v2073_v50  ;;  %v2060_v56 = vld [vmem:[#allocation2 + $0x30] sm:$0xff]  ;;  %12186 = vmatprep.mubr.msk.bf16.mxu1 %vm1935_vm1, %v2127_v49  ;;  %12237 = vmatpush3.bf16.msra.mxu0 %v2693_v46  ;;  %v13429_v40 = vld [vmem:[%s13264_s22 + $0x60] sm:$0xff] }
  0x24   : > { %18458 = vst [vmem:[#allocation22_spill] sm:$0xff] %v13360_v32  ;;  %1950 = vst.msk [vmem:[#allocation2 + $0x58] sm:$0xff] %vm1935_vm1, %v13354_v30  ;;  %v2061_v57 = vld [vmem:[#allocation2 + $0x38] sm:$0xff]  ;;  %v2121_v59 = vpack.c.bf16 %v2060_v56, %v2059_v52  ;;  %v2062_v60 = vld [vmem:[#allocation2 + $0x40] sm:$0xff]  ;;  %13111 = vmatprep.subr.msk.bf16.mxu0 %vm2185_vm0, %v13390_v42  ;;  %v342_v56 = vadd.s32 56, %v13406_v53 }
  0x25   : > { %1951 = vst.msk [vmem:[#allocation2 + $0x60] sm:$0xff] %vm1935_vm1, %v13357_v31  ;;  %18459 = vst [vmem:[#allocation23_spill] sm:$0xff] %v13369_v35  ;;  %12187 = vmatmul.mubr.msk.bf16.vlgmr.msra.gmra.mxu1 %vm1935_vm1, %v2128_v54  ;;  %v2122_v10 = vpack.c.bf16 %v2062_v60, %v2061_v57  ;;  %v13432_v41 = vld [vmem:[%s13264_s22 + $0x68] sm:$0xff]  ;;  %v13435_v44 = vld [vmem:[%s13264_s22 + $0xd0] sm:$0xff]  ;;  %v776_v54 = vand.u32 15, %v338_v5  ;;  %v790_v57 = vand.u32 15, %v340_v22 }
  0x26   : > { %1964 = vst.msk [vmem:[#allocation2 + $0xc8] sm:$0xff] %vm1935_vm1, %v13360_v32  ;;  %18460 = vst [vmem:[#allocation24_spill] sm:$0xff] %v13374_v36  ;;  %v2075_v61 = vld [vmem:[#allocation2 + $0xa8] sm:$0xff]  ;;  %v2076_v62 = vld [vmem:[#allocation2 + $0xb0] sm:$0xff]  ;;  %12203 = vmatpush3.bf16.msra.mxu1 %v2399_v55  ;;  %12174 = vmatprep.mubr.msk.bf16.mxu0 %vm1935_vm1, %v2121_v59  ;;  %v769_v55 = vand.u32 15, %v337_v9  ;;  %v783_v59 = vand.u32 15, %v339_v33 }
  0x27   : > { %18461 = vst [vmem:[#allocation25_spill] sm:$0xff] %v13377_v37  ;;  %1965 = vst.msk [vmem:[#allocation2 + $0xd0] sm:$0xff] %vm1935_vm1, %v13369_v35  ;;  %v2129_v63 = vpack.c.bf16 %v2076_v62, %v2075_v61  ;;  %v2077_v2 = vld [vmem:[#allocation2 + $0xb8] sm:$0xff]  ;;  %13110 = vmatprep.subr.msk.bf16.mxu1 %vm2185_vm0, %v13414_v58  ;;  %v13451_v51 = vld [vmem:[%s13264_s22 + $0xe0] sm:$0xff]  ;;  %vm13471_vm2 = vcmp.lt.s32.totalorder %v776_v54, 15  ;;  %v343_v22 = vadd.s32 64, %v13406_v53 }
  0x28   : > { %1966 = vst.msk [vmem:[#allocation2 + $0xd8] sm:$0xff] %vm1935_vm1, %v13374_v36  ;;  %1967 = vst.msk [vmem:[#allocation2 + $0xe0] sm:$0xff] %vm1935_vm1, %v13377_v37  ;;  %v2078_v4 = vld [vmem:[#allocation2 + $0xc0] sm:$0xff]  ;;  %v13442_v46 = vld [vmem:[%s13264_s22 + $0xd8] sm:$0xff]  ;;  %vm13475_vm3 = vcmp.ge.s32.totalorder %v769_v55, 1  ;;  %vm13480_vm4 = vcmp.lt.s32.totalorder %v790_v57, 15 }
  0x29   : > { %18462 = vst [vmem:[#allocation26_spill] sm:$0xff] %v13397_v47  ;;  %18463 = vst [vmem:[#allocation27_spill] sm:$0xff] %v13400_v48  ;;  %v2063_v0 = vld [vmem:[#allocation2 + $0x48] sm:$0xff]  ;;  %v2064_v1 = vld [vmem:[#allocation2 + $0x50] sm:$0xff]  ;;  %12190 = vmatprep.mubr.msk.bf16.mxu1 %vm1935_vm1, %v2129_v63  ;;  %v2130_v45 = vpack.c.bf16 %v2078_v4, %v2077_v2  ;;  %v341_v2 = vadd.s32 48, %v13406_v53  ;;  %v344_v4 = vadd.s32 72, %v13406_v53 }
  0x2a   : > { %1952 = vst.msk [vmem:[#allocation2 + $0x68] sm:$0xff] %vm1935_vm1, %v13397_v47  ;;  %1953 = vst.msk [vmem:[#allocation2 + $0x70] sm:$0xff] %vm1935_vm1, %v13400_v48  ;;  %v2123_v39 = vpack.c.bf16 %v2064_v1, %v2063_v0  ;;  %v13454_v52 = vld [vmem:[%s13264_s22 + $0xe8] sm:$0xff]  ;;  %12175 = vmatmul.mubr.msk.bf16.gmra.mxu0 %vm1935_vm1, %v2122_v10  ;;  %vm13484_vm5 = vcmp.ge.s32.totalorder %v783_v59, 1  ;;  %v13491_v55 = vsel %vm2185_vm0, %v13414_v58, 0  ;;  %v345_v57 = vadd.s32 80, %v13406_v53 }
  0x2b   : > { %18464 = vst [vmem:[#allocation28_spill] sm:$0xff] %v13429_v40  ;;  %18465 = vst [vmem:[#allocation29_spill] sm:$0xff] %v13432_v41  ;;  %v2065_v61 = vld [vmem:[#allocation2 + $0x58] sm:$0xff]  ;;  %v2562_v59 = vld [vmem:[#allocation2 + $0x9] sm:$0xff]  ;;  %v13501_v60 = vsel %vm13471_vm2, 1.0, %v18165_v3  ;;  %v13506_v58 = vsel %vm13475_vm3, 1.0, %v18165_v3 }
  0x2c   : > { %18466 = vst [vmem:[#allocation30_spill] sm:$0xff] %v13435_v44  ;;  %1954 = vst.msk [vmem:[#allocation2 + $0x78] sm:$0xff] %vm1935_vm1, %v13429_v40  ;;  %12178 = vmatprep.mubr.msk.bf16.mxu0 %vm1935_vm1, %v2123_v39  ;;  %v2066_v62 = vld [vmem:[#allocation2 + $0x60] sm:$0xff]  ;;  %v2563_v18 = vld [vmem:[#allocation2 + $0x11] sm:$0xff]  ;;  %v348_v39 = vadd.s32 104, %v13406_v53  ;;  %v825_v34 = vand.u32 15, %v345_v57 }
  0x2d   : > { %v2079_v13 = vld [vmem:[#allocation2 + $0xc8] sm:$0xff]  ;;  %1955 = vst.msk [vmem:[#allocation2 + $0x80] sm:$0xff] %vm1935_vm1, %v13432_v41  ;;  %18467 = vst [vmem:[#allocation31_spill] sm:$0xff] %v13442_v46  ;;  %12191 = vmatmul.mubr.msk.bf16.gmra.mxu1 %vm1935_vm1, %v2130_v45  ;;  %v2124_v33 = vpack.c.bf16 %v2066_v62, %v2065_v61  ;;  %v2594_v45 = vmul.f32 0.0, %v2562_v59  ;;  %v2595_v38 = vmul.f32 0.0, %v2563_v18  ;;  %v13561_v11 = vld [vmem:[#allocation2 + $0x17] sm:$0xff] }
  0x2e   : > { %v2080_v14 = vld [vmem:[#allocation2 + $0xd0] sm:$0xff]  ;;  %1968 = vst.msk [vmem:[#allocation2 + $0xe8] sm:$0xff] %vm1935_vm1, %v13435_v44  ;;  %1969 = vst.msk [vmem:[#allocation2 + $0xf0] sm:$0xff] %vm1935_vm1, %v13442_v46  ;;  %v1974_v10 = vld [vmem:[#allocation2 + $0x7] sm:$0xff]  ;;  %vm13554_vm11 = vcmp.ge.s32.totalorder %v825_v34, 1  ;;  %v358_v41 = vadd.s32 184, %v13406_v53 }
  0x2f   : > { %v2131_v50 = vpack.c.bf16 %v2080_v14, %v2079_v13  ;;  %18468 = vst [vmem:[#allocation32_spill] sm:$0xff] %v13451_v51  ;;  %18469 = vst [vmem:[#allocation33_spill] sm:$0xff] %v13454_v52  ;;  %v2081_v5 = vld [vmem:[#allocation2 + $0xd8] sm:$0xff]  ;;  %v2082_v9 = vld [vmem:[#allocation2 + $0xe0] sm:$0xff]  ;;  %v804_v14 = vand.u32 15, %v342_v56  ;;  %v13495_v56 = vsel %vm2185_vm0, %v13390_v42, 0 }
  0x30   : > { %1970 = vst.msk [vmem:[#allocation2 + $0xf8] sm:$0xff] %vm1935_vm1, %v13451_v51  ;;  %1971 = vst.msk [vmem:[#allocation2 + $0x100] sm:$0xff] %vm1935_vm1, %v13454_v52  ;;  %v2132_v61 = vpack.c.bf16 %v2082_v9, %v2081_v5  ;;  %v13511_v42 = vsel %vm13480_vm4, 1.0, %v18165_v3  ;;  %v13516_v5 = vsel %vm13484_vm5, 1.0, %v18165_v3  ;;  %v818_v9 = vand.u32 15, %v344_v4  ;;  %v1975_v49 = vld [vmem:[#allocation2 + $0xf] sm:$0xff] }
  0x31   : > { %v2067_v0 = vld [vmem:[#allocation2 + $0x68] sm:$0xff]  ;;  %v2068_v1 = vld [vmem:[#allocation2 + $0x70] sm:$0xff]  ;;  %12194 = vmatprep.mubr.msk.bf16.mxu1 %vm1935_vm1, %v2131_v50  ;;  %v346_v50 = vadd.s32 88, %v13406_v53  ;;  %18478 = vst [vmem:[#allocation34_spill] sm:$0xff] %v13501_v60  ;;  %18479 = vst [vmem:[#allocation35_spill] sm:$0xff] %v13506_v58  ;;  %vm13519_vm6 = vcmp.lt.s32.totalorder %v804_v14, 15 }
  0x32   : > { %v2125_v54 = vpack.c.bf16 %v2068_v1, %v2067_v0  ;;  %v797_v0 = vand.u32 15, %v341_v2  ;;  %18480 = vst [vmem:[#allocation36_spill] sm:$0xff] %v13511_v42  ;;  %18481 = vst [vmem:[#allocation37_spill] sm:$0xff] %v13516_v5  ;;  %12179 = vmatmul.mubr.msk.bf16.gmra.mxu0 %vm1935_vm1, %v2124_v33  ;;  %v347_v4 = vadd.s32 96, %v13406_v53  ;;  %v349_v33 = vadd.s32 112, %v13406_v53  ;;  %v13552_v15 = vld [vmem:[#allocation2 + $0x21] sm:$0xff] }
  0x33   : > { %v832_v2 = vand.u32 15, %v346_v50  ;;  %v352_v50 = vadd.s32 136, %v13406_v53  ;;  %v2006_v18 = vmul.f32 0.0, %v1974_v10  ;;  %v2007_v57 = vmul.f32 0.0, %v1975_v49  ;;  %18493 = vst [vmem:[#allocation39_spill] sm:$0xff] %v13552_v15  ;;  %18496 = vst [vmem:[#allocation40_spill] sm:$0xff] %v13561_v11 }
  0x34   : > { %12182 = vmatprep.mubr.msk.bf16.mxu0 %vm1935_vm1, %v2125_v54  ;;  %v2070_v43 = vld [vmem:[#allocation2 + $0x80] sm:$0xff]  ;;  %vm13527_vm7 = vcmp.ge.s32.totalorder %v797_v0, 1  ;;  %vm13540_vm8 = vcmp.lt.s32.totalorder %v818_v9, 15  ;;  %v846_v10 = vand.u32 15, %v348_v39  ;;  %v2626_v49 = vpack.c.bf16 %v2595_v38, %v2594_v45  ;;  %v13610_v0 = vld [vmem:[#allocation2 + $0x29] sm:$0xff]  ;;  %v13660_v31 = vld [vmem:[#allocation2 + $0x37] sm:$0xff] }
  0x35   : > { %v2083_v63 = vld [vmem:[#allocation2 + $0xe8] sm:$0xff]  ;;  %v2084_v62 = vld [vmem:[#allocation2 + $0xf0] sm:$0xff]  ;;  %12195 = vmatmul.mubr.msk.bf16.gmra.mxu1 %vm1935_vm1, %v2132_v61  ;;  %v13538_v61 = vsel %vm13519_vm6, 1.0, %v18165_v3  ;;  %vm13548_vm10 = vcmp.lt.s32.totalorder %v832_v2, 15  ;;  %v839_v9 = vand.u32 15, %v347_v4  ;;  %v351_v3 = vadd.s32 128, %v13406_v53 }
  0x36   : > { %v2133_v1 = vpack.c.bf16 %v2084_v62, %v2083_v63  ;;  %v811_v63 = vand.u32 15, %v343_v22  ;;  %v2069_v62 = vld [vmem:[#allocation2 + $0x78] sm:$0xff]  ;;  %v350_v22 = vadd.s32 120, %v13406_v53  ;;  %18486 = vst [vmem:[#allocation38_spill] sm:$0xff] %v13538_v61  ;;  %v853_v16 = vand.u32 15, %v349_v33  ;;  %18508 = vst [vmem:[#allocation47_spill] sm:$0xff] %v13610_v0 }
  0x37   : > { %v2085_v54 = vld [vmem:[#allocation2 + $0xf8] sm:$0xff]  ;;  %v2086_v59 = vld [vmem:[#allocation2 + $0x100] sm:$0xff]  ;;  %v2126_v29 = vpack.c.bf16 %v2070_v43, %v2069_v62  ;;  %v874_v2 = vand.u32 15, %v352_v50  ;;  %v2038_v8 = vpack.c.bf16 %v2007_v57, %v2006_v18  ;;  %v18497_v39 = vmov 0.0   ;;  %v13632_v40 = vld [vmem:[#allocation2 + $0x2f] sm:$0xff] }
  0x38   : > { %12198 = vmatprep.mubr.msk.bf16.mxu1 %vm1935_vm1, %v2133_v1  ;;  %vm13544_vm9 = vcmp.ge.s32.totalorder %v811_v63, 1  ;;  %v2134_v43 = vpack.c.bf16 %v2086_v59, %v2085_v54  ;;  %v13559_v63 = vld [vmem:[#allocation2 + $0x31] sm:$0xff]  ;;  %v860_v62 = vand.u32 15, %v350_v22  ;;  %v13566_v38 = vsel %vm13527_vm7, 1.0, %v18497_v39  ;;  %v13577_v22 = vld [vmem:[#allocation2 + $0x27] sm:$0xff] }
  0x39   : > { %18498 = vst [vmem:[#allocation41_spill] sm:$0xff] %v13566_v38  ;;  %v13571_v34 = vsel %vm13540_vm8, 1.0, %v18497_v39  ;;  %v354_v45 = vadd.s32 152, %v13406_v53  ;;  %v2597_v4 = vmul.f32 %v13501_v60, %v13552_v15  ;;  %v13582_v14 = vsel %vm13544_vm9, 1.0, %v18497_v39  ;;  %v13642_v47 = vld [vmem:[#allocation2 + $0x41] sm:$0xff]  ;;  %v13662_v27 = vld [vmem:[#allocation2 + $0x51] sm:$0xff] }
  0x3a   : > { %18499 = vst [vmem:[#allocation42_spill] sm:$0xff] %v13571_v34  ;;  %12183 = vmatmul.mubr.msk.bf16.gmra.mxu0 %vm1935_vm1, %v2126_v29  ;;  %18500 = vst [vmem:[#allocation43_spill] sm:$0xff] %v13582_v14  ;;  %v13587_v33 = vsel %vm13548_vm10, 1.0, %v18497_v39  ;;  %vm13589_vm12 = vcmp.lt.s32.totalorder %v846_v10, 15  ;;  %v13594_v29 = vld [vmem:[#allocation2 + $0x19] sm:$0xff]  ;;  %v2599_v54 = vmul.f32 %v13511_v42, %v13559_v63  ;;  %v13601_v12 = vsel %vm13554_vm11, 1.0, %v18497_v39 }
  0x3b   : > { %18501 = vst [vmem:[#allocation44_spill] sm:$0xff] %v13587_v33  ;;  %12238 = vmatprep.mubr.msk.bf16.mxu0 %vm1935_vm1, %v2626_v49  ;;  %18504 = vst [vmem:[#allocation45_spill] sm:$0xff] %v13594_v29  ;;  %vm13603_vm13 = vcmp.ge.s32.totalorder %v839_v9, 1  ;;  %v867_v18 = vand.u32 15, %v351_v3  ;;  %v2008_v57 = vmul.f32 %v13506_v58, %v13561_v11  ;;  %vm13612_vm14 = vcmp.lt.s32.totalorder %v860_v62, 15  ;;  %v13625_v3 = vld [vmem:[#allocation2 + $0x1f] sm:$0xff] }
  0x3c   : > { %18505 = vst [vmem:[#allocation46_spill] sm:$0xff] %v13601_v12  ;;  %vm13616_vm15 = vcmp.ge.s32.totalorder %v853_v16, 1  ;;  %vm13620_vm2 = vcmp.lt.s32.totalorder %v874_v2, 15  ;;  %18515 = vst [vmem:[#allocation48_spill] sm:$0xff] %v13625_v3  ;;  %v2010_v13 = vmul.f32 %v13516_v5, %v13577_v22  ;;  %v888_v9 = vand.u32 15, %v354_v45  ;;  %v13683_v21 = vld [vmem:[#allocation2 + $0x47] sm:$0xff] }
  0x3d   : > { %12199 = vmatmul.mubr.msk.bf16.gmra.mxu1 %vm1935_vm1, %v2134_v43  ;;  %v353_v43 = vadd.s32 144, %v13406_v53  ;;  %v356_v62 = vadd.s32 168, %v13406_v53  ;;  %v2627_v16 = vpack.c.bf16 %v2597_v4, %v13594_v29  ;;  %v13637_v2 = vsel %vm13589_vm12, 1.0, %v18497_v39  ;;  %v13657_v30 = vld [vmem:[%s18155_s1 + $0xc] sm:$0x3]  ;;  %18521 = vst [vmem:[#allocation52_spill] sm:$0xff] %v13662_v27 }
  0x3e   : > { %12204 = vmatprep.mubr.msk.bf16.mxu1 %vm1935_vm1, %v2038_v8  ;;  %18516 = vst [vmem:[#allocation49_spill] sm:$0xff] %v13637_v2  ;;  %v355_v8 = vadd.s32 160, %v13406_v53  ;;  %v2628_v45 = vpack.c.bf16 %v2599_v54, %v13610_v0  ;;  %v13647_v4 = vsel %vm13603_vm13, 1.0, %v18497_v39  ;;  %vm13649_vm3 = vcmp.ge.s32.totalorder %v867_v18, 1  ;;  %18520 = vst [vmem:[#allocation51_spill] sm:$0xff] %v13657_v30  ;;  %v13692_v10 = vld [vmem:[%s13264_s22 + $0xf8] sm:$0xff] }
  0x3f   : > { %18517 = vst [vmem:[#allocation50_spill] sm:$0xff] %v13647_v4  ;;  %v357_v50 = vadd.s32 176, %v13406_v53  ;;  %v2039_v54 = vpack.c.bf16 %v13625_v3, %v2008_v57  ;;  %v13667_v59 = vsel %vm13612_vm14, 1.0, %v18497_v39  ;;  %v13672_v18 = vsel %vm13616_vm15, 1.0, %v18497_v39  ;;  %v13680_v57 = vld [vmem:[%s13264_s22 + $0xf0] sm:$0xff]  ;;  %18528 = vst [vmem:[#allocation57_spill] sm:$0xff] %v13692_v10 }
  0x40   : > { %18522 = vst [vmem:[#allocation53_spill] sm:$0xff] %v13667_v59  ;;  %18523 = vst [vmem:[#allocation54_spill] sm:$0xff] %v13672_v18  ;;  %v13677_v28 = vsel %vm13620_vm2, 1.0, %v18497_v39  ;;  %v2040_v20 = vpack.c.bf16 %v13632_v40, %v2010_v13  ;;  %vm13685_vm4 = vcmp.lt.s32.totalorder %v888_v9, 15  ;;  %v881_v17 = vand.u32 15, %v353_v43  ;;  %v13695_v49 = vld [vmem:[#allocation2 + $0x39] sm:$0xff] }
  0x41   : > { %18524 = vst [vmem:[#allocation55_spill] sm:$0xff] %v13677_v28  ;;  %18525 = vst [vmem:[#allocation56_spill] sm:$0xff] %v13680_v57  ;;  %v902_v19 = vand.u32 15, %v356_v62  ;;  %v2601_v13 = vmul.f32 %v13538_v61, %v13642_v47  ;;  %v13702_v9 = vsel %vm13649_vm3, 1.0, %v18497_v39  ;;  %v895_v6 = vand.u32 15, %v355_v8  ;;  %v13720_v7 = vld [vmem:[#allocation2 + $0x49] sm:$0xff] }
  0x42   : > { %1972 = vst.msk [vmem:[#allocation2 + $0x108] sm:$0xff] %vm1935_vm1, %v13680_v57  ;;  %12239 = vmatmul.mubr.msk.bf16.vlgmr.msra.gmra.mxu0 %vm1935_vm1, %v2627_v16  ;;  %18529 = vst [vmem:[#allocation58_spill] sm:$0xff] %v13695_v49  ;;  %v916_v43 = vand.u32 15, %v358_v41  ;;  %v13707_v62 = vld [vmem:[%s18155_s1 + $0xa] sm:$0x3]  ;;  %v13713_v16 = vld [vmem:[#allocation2 + $0x3f] sm:$0xff]  ;;  %v2012_v48 = vmul.f32 %v13566_v38, %v13660_v31  ;;  %v2603_v41 = vmul.f32 %v13571_v34, %v13662_v27 }
  0x43   : > { %18530 = vst [vmem:[#allocation59_spill] sm:$0xff] %v13702_v9  ;;  %18531 = vst [vmem:[#allocation60_spill] sm:$0xff] %v13707_v62  ;;  %12305 = vmatpush3.bf16.msra.mxu0 %v13495_v56  ;;  %12242 = vmatprep.mubr.msk.bf16.mxu0 %vm1935_vm1, %v2628_v45  ;;  %v909_v8 = vand.u32 15, %v357_v50  ;;  %v2014_v3 = vmul.f32 %v13582_v14, %v13683_v21  ;;  %v13727_v56 = vsel %vm13685_vm4, 1.0, %v18497_v39  ;;  %v13733_v45 = vld [vmem:[#allocation2 + $0x4f] sm:$0xff]  ;;  %v13735_v50 = vld [vmem:[#allocation2 + $0x61] sm:$0xff] }
  0x44   : > { %1973 = vst.msk [vmem:[#allocation2 + $0x110] sm:$0xff] %vm1935_vm1, %v13692_v10  ;;  %18532 = vst [vmem:[#allocation61_spill] sm:$0xff] %v13720_v7  ;;  %13113 = vmatprep.subr.msk.bf16.mxu0 %vm2185_vm0, %v13657_v30  ;;  %vm13737_vm5 = vcmp.ge.s32.totalorder %v881_v17, 1  ;;  %vm13741_vm6 = vcmp.lt.s32.totalorder %v902_v19, 15  ;;  %v2629_v1 = vpack.c.bf16 %v2601_v13, %v13695_v49  ;;  %v13746_v29 = vld [vmem:[#allocation2 + $0x71] sm:$0xff]  ;;  %vm13748_vm7 = vcmp.ge.s32.totalorder %v895_v6, 1 }
  0x45   : > { %12205 = vmatmul.mubr.msk.bf16.vlgmr.msra.gmra.mxu1 %vm1935_vm1, %v2039_v54  ;;  %18533 = vst [vmem:[#allocation62_spill] sm:$0xff] %v13727_v56  ;;  %18534 = vst [vmem:[#allocation63_spill] sm:$0xff] %v13733_v45  ;;  %vm13752_vm8 = vcmp.lt.s32.totalorder %v916_v43, 15  ;;  %v755_v17 = vand.u32 15, %v13406_v53  ;;  %v2041_v19 = vpack.c.bf16 %v13713_v16, %v2012_v48  ;;  %v2630_v30 = vpack.c.bf16 %v2603_v41, %v13720_v7  ;;  %v13761_v13 = vld [vmem:[#allocation2 + $0x57] sm:$0xff]  ;;  %v13771_v34 = vld [vmem:[#allocation2 + $0x67] sm:$0xff] }
  0x46   : > { %12271 = vmatpush3.bf16.msra.mxu1 %v13491_v55  ;;  %12208 = vmatprep.mubr.msk.bf16.mxu1 %vm1935_vm1, %v2040_v20  ;;  %18535 = vst [vmem:[#allocation64_spill] sm:$0xff] %v13735_v50  ;;  %18540 = vst [vmem:[#allocation65_spill] sm:$0xff] %v13746_v29  ;;  %vm13763_vm9 = vcmp.ge.s32.totalorder %v909_v8, 1  ;;  %v13768_v43 = vadd.s32 200, %v13406_v53  ;;  %v2042_v15 = vpack.c.bf16 %v13733_v45, %v2014_v3  ;;  %v13773_v49 = vld [vmem:[#allocation2 + $0x81] sm:$0xff]  ;;  %v13780_v48 = vsel %vm13737_vm5, 1.0, %v18497_v39 }
  0x47   : > { %13112 = vmatprep.subr.msk.bf16.mxu1 %vm2185_vm0, %v13707_v62  ;;  %18545 = vst [vmem:[#allocation66_spill] sm:$0xff] %v13761_v13  ;;  %18548 = vst [vmem:[#allocation67_spill] sm:$0xff] %v13773_v49  ;;  %v13775_v62 = vld [vmem:[#allocation2 + $0x77] sm:$0xff]  ;;  %v13785_v41 = vsel %vm13741_vm6, 1.0, %v18497_v39  ;;  %vm13787_vm10 = vcmp.ge.s32.totalorder %v755_v17, 1  ;;  %v13798_v45 = vsel %vm13748_vm7, 1.0, %v18497_v39  ;;  %v2605_v14 = vmul.f32 %v13587_v33, %v13735_v50 }
  0x48   : > { %18549 = vst [vmem:[#allocation68_spill] sm:$0xff] %v13775_v62  ;;  %18550 = vst [vmem:[#allocation69_spill] sm:$0xff] %v13780_v48  ;;  %v13791_v3 = vld [vmem:[#allocation2 + $0x59] sm:$0xff]  ;;  %v13793_v7 = vld [vmem:[#allocation2 + $0x91] sm:$0xff]  ;;  %v13803_v54 = vsel %vm13752_vm8, 1.0, %v18497_v39  ;;  %v13806_v11 = vadd.s32 192, %v13406_v53  ;;  %v2607_v33 = vmul.f32 %v13637_v2, %v13746_v29  ;;  %v2609_v8 = vmul.f32 %v13667_v59, %v13773_v49 }
  0x49   : > { %18551 = vst [vmem:[#allocation70_spill] sm:$0xff] %v13785_v41  ;;  %18554 = vst [vmem:[#allocation71_spill] sm:$0xff] %v13791_v3  ;;  %v13809_v17 = vadd.s32 216, %v13406_v53  ;;  %v13814_v61 = vld [vmem:[#allocation2 + $0x69] sm:$0xff]  ;;  %v13818_v27 = vld [vmem:[#allocation2 + $0xa1] sm:$0xff]  ;;  %v13823_v20 = vsel %vm13763_vm9, 1.0, %v18497_v39 }
  0x4a   : > { %18555 = vst [vmem:[#allocation72_spill] sm:$0xff] %v13793_v7  ;;  %18556 = vst [vmem:[#allocation73_spill] sm:$0xff] %v13798_v45  ;;  %12243 = vmatmul.mubr.msk.bf16.gmra.mxu0 %vm1935_vm1, %v2629_v1  ;;  %v13816_v55 = vld [vmem:[#allocation2 + $0x87] sm:$0xff]  ;;  %v13829_v1 = vld [vmem:[#allocation2 + $0x5f] sm:$0xff]  ;;  %v930_v38 = vand.u32 15, %v13768_v43  ;;  %v13839_v6 = vsel %vm13787_vm10, 1.0, %v18497_v39  ;;  %v2018_v43 = vmul.f32 %v13647_v4, %v13771_v34  ;;  %v2611_v39 = vmul.f32 %v13677_v28, %v13793_v7 }
  0x4b   : > { %18557 = vst [vmem:[#allocation74_spill] sm:$0xff] %v13803_v54  ;;  %18558 = vst [vmem:[#allocation75_spill] sm:$0xff] %v13814_v61  ;;  %v13826_v54 = vadd.s32 208, %v13406_v53  ;;  %12246 = vmatprep.mubr.msk.bf16.mxu0 %vm1935_vm1, %v2630_v30  ;;  %v13833_v50 = vld [vmem:[#allocation2 + $0x97] sm:$0xff]  ;;  %v13844_v30 = vld [vmem:[#allocation2 + $0x6f] sm:$0xff]  ;;  %v2632_v59 = vpack.c.bf16 %v2607_v33, %v13814_v61  ;;  %v13879_v49 = vmul.f32 %v13727_v56, %v13818_v27  ;;  %v18583_v0 = vmov 0.0  }
  0x4c   : > { %18559 = vst [vmem:[#allocation76_spill] sm:$0xff] %v13818_v27  ;;  %18560 = vst [vmem:[#allocation77_spill] sm:$0xff] %v13823_v20  ;;  %v13846_v20 = vld [vmem:[#allocation2 + $0x79] sm:$0xff]  ;;  %v13859_v2 = vld [vmem:[#allocation2 + $0x89] sm:$0xff]  ;;  %v2044_v56 = vpack.c.bf16 %v13844_v30, %v2018_v43  ;;  %v336_v43 = vadd.s32 8, %v13406_v53  ;;  %vm13947_vm11 = vcmp.lt.s32.totalorder %v930_v38, 15 }
  0x4d   : > { %18561 = vst [vmem:[#allocation78_spill] sm:$0xff] %v13826_v54  ;;  %18562 = vst [vmem:[#allocation79_spill] sm:$0xff] %v13839_v6  ;;  %12209 = vmatmul.mubr.msk.bf16.gmra.mxu1 %vm1935_vm1, %v2041_v19  ;;  %v2016_v54 = vmul.f32 %v13601_v12, %v13761_v13  ;;  %v13848_v42 = vld [vmem:[#allocation2 + $0x7f] sm:$0xff]  ;;  %v13857_v19 = vmul.f32 %v13672_v18, %v13775_v62  ;;  %v13861_v29 = vld [vmem:[#allocation2 + $0xb1] sm:$0xff]  ;;  %v2631_v12 = vpack.c.bf16 %v2605_v14, %v13791_v3  ;;  %vm10890_vm6 = vcmask 523264  }
  0x4e   : > { %18563 = vst [vmem:[#allocation80_spill] sm:$0xff] %v13846_v20  ;;  %12212 = vmatprep.mubr.msk.bf16.mxu1 %vm1935_vm1, %v2042_v15  ;;  %18564 = vst [vmem:[#allocation81_spill] sm:$0xff] %v13859_v2  ;;  %v13866_v15 = vld [vmem:[#allocation2 + $0x8f] sm:$0xff]  ;;  %v13868_v13 = vld [vmem:[#allocation2 + $0x99] sm:$0xff]  ;;  %v13875_v18 = vmul.f32 %v13702_v9, %v13816_v55  ;;  %v13888_v62 = vmul.f32 %v13780_v48, %v13833_v50  ;;  %v2633_v27 = vpack.c.bf16 %v2609_v8, %v13846_v20  ;;  %vm11031_vm7 = vcmask 0  }
  0x4f   : > { %18565 = vst [vmem:[#allocation82_spill] sm:$0xff] %v13868_v13  ;;  %v13870_v4 = vld [vmem:[#allocation2 + $0xa7] sm:$0xff]  ;;  %v13881_v14 = vld [vmem:[#allocation2 + $0x9f] sm:$0xff]  ;;  %v2043_v7 = vpack.c.bf16 %v13829_v1, %v2016_v54  ;;  %v2045_v61 = vpack.c.bf16 %v13848_v42, %v13857_v19  ;;  %v2634_v23 = vpack.c.bf16 %v2611_v39, %v13859_v2  ;;  %v13906_v33 = vmul.f32 %v13785_v41, %v13861_v29  ;;  %v18588_v46 = vld [vmem:[#allocation42_spill] sm:$0xff] }
  0x50   : > { %v13898_v28 = vld [vmem:[#allocation2 + $0xa9] sm:$0xff]  ;;  %v2046_v19 = vpack.c.bf16 %v13866_v15, %v13875_v18  ;;  %v13919_v39 = vmul.f32 %v13798_v45, %v13870_v4  ;;  %v13931_v18 = vmul.f32 %v13839_v6, %v13577_v22  ;;  %v923_v9 = vand.u32 15, %v13806_v11  ;;  %v18581_v54 = vld [vmem:[#allocation43_spill] sm:$0xff]  ;;  %v18587_v44 = vld [vmem:[#allocation64_spill] sm:$0xff] }
  0x51   : > { %18566 = vst [vmem:[#allocation83_spill] sm:$0xff] %v13898_v28  ;;  %v13943_v8 = vmul.f32 %v13501_v60, %v13559_v63  ;;  %v762_v11 = vand.u32 15, %v336_v43  ;;  %v13959_v63 = vmul.f32 %v13516_v5, %v13683_v21  ;;  %v18575_v60 = vld [vmem:[#allocation66_spill] sm:$0xff]  ;;  %v18576_v51 = vld [vmem:[#allocation41_spill] sm:$0xff]  ;;  %v18578_v43 = vld [vmem:[#allocation52_spill] sm:$0xff]  ;;  %v13975_v10 = vmul.f32 %v18581_v54, %v13771_v34 }
  0x52   : > { %12247 = vmatmul.mubr.msk.bf16.gmra.mxu0 %vm1935_vm1, %v2631_v12  ;;  %18567 = vst [vmem:[#allocation84_spill] sm:$0xff] %v13931_v18  ;;  %v18573_v12 = vld [vmem:[#allocation36_spill] sm:$0xff]  ;;  %v13967_v52 = vmul.f32 %v18576_v51, %v18575_v60  ;;  %v13986_v36 = vmul.f32 %v18588_v46, %v18587_v44  ;;  %v18599_v37 = vld [vmem:[#allocation50_spill] sm:$0xff]  ;;  %v18603_v32 = vld [vmem:[#allocation49_spill] sm:$0xff]  ;;  %vm14051_vm13 = vcmp.ge.s32.totalorder %v923_v9, 1  ;;  %v14073_v2 = vsel %vm13947_vm11, 1.0, %v18583_v0 }
  0x53   : > { %12250 = vmatprep.mubr.msk.bf16.mxu0 %vm1935_vm1, %v2632_v59  ;;  %v13927_v59 = vadd.s32 232, %v13406_v53  ;;  %18569 = vst [vmem:[#allocation86_spill] sm:$0xff] %v13943_v8  ;;  %18572 = vst [vmem:[#allocation87_spill] sm:$0xff] %v13959_v63  ;;  %v13963_v38 = vmul.f32 %v18573_v12, %v13642_v47  ;;  %vm1360_vm12 = vcmp.lt.s32.totalorder %v762_v11, 15  ;;  %v18593_v11 = vld [vmem:[#allocation68_spill] sm:$0xff]  ;;  %v18602_v47 = vld [vmem:[#allocation67_spill] sm:$0xff]  ;;  %v18624_v57 = vpack.c.bf16 %v13879_v49, %v13868_v13 }
  0x54   : > { %18577 = vst [vmem:[#allocation66_spill] sm:$0xff] %v13967_v52  ;;  %18582 = vst [vmem:[#allocation89_spill] sm:$0xff] %v13975_v10  ;;  %v13978_v8 = vsel %vm1360_vm12, 1.0, %v18583_v0  ;;  %v14012_v52 = vmul.f32 %v18599_v37, %v13816_v55  ;;  %v14019_v44 = vmul.f32 %v18603_v32, %v18602_v47  ;;  %v18605_v3 = vld [vmem:[#allocation54_spill] sm:$0xff]  ;;  %v18611_v63 = vld [vmem:[#allocation59_spill] sm:$0xff] }
  0x55   : > { %12213 = vmatmul.mubr.msk.bf16.gmra.mxu1 %vm1935_vm1, %v2043_v7  ;;  %v13939_v7 = vmul.f32 %v13506_v58, %v13660_v31  ;;  %18574 = vst [vmem:[#allocation88_spill] sm:$0xff] %v13963_v38  ;;  %18584 = vst [vmem:[#allocation90_spill] sm:$0xff] %v13978_v8  ;;  %v14030_v10 = vld [vmem:[#allocation2 + $0xaf] sm:$0xff]  ;;  %v14040_v35 = vmul.f32 %v18611_v63, %v13870_v4  ;;  %v14068_v9 = vld [vmem:[#allocation2 + $0xbf] sm:$0xff]  ;;  %v958_v20 = vand.u32 15, %v13927_v59 }
  0x56   : > { %12216 = vmatprep.mubr.msk.bf16.mxu1 %vm1935_vm1, %v2044_v56  ;;  %v18579_v56 = vld [vmem:[#allocation38_spill] sm:$0xff]  ;;  %18604 = vst [vmem:[#allocation67_spill] sm:$0xff] %v14019_v44  ;;  %18620 = vst [vmem:[#allocation94_spill] sm:$0xff] %v14073_v2  ;;  %v18629_v44 = vpack.c.bf16 %v13906_v33, %v13898_v28 }
  0x57   : > { %18568 = vst [vmem:[#allocation85_spill] sm:$0xff] %v13939_v7  ;;  %v13971_v18 = vmul.f32 %v18579_v56, %v18578_v43  ;;  %v18585_v7 = vld [vmem:[#allocation63_spill] sm:$0xff]  ;;  %18612 = vst [vmem:[#allocation92_spill] sm:$0xff] %v14040_v35  ;;  %v2587_v32 = vld [vmem:[#allocation2 + $0xd1] sm:$0xff]  ;;  %vm1388_vm15 = vcmp.lt.s32.totalorder %v958_v20, 15 }
  0x58   : > { %18589 = vst [vmem:[#allocation63_spill] sm:$0xff] %v13986_v36  ;;  %v18590_v43 = vld [vmem:[#allocation39_spill] sm:$0xff]  ;;  %v14023_v36 = vmul.f32 %v18605_v3, %v13833_v50  ;;  %v18628_v59 = vld [vmem:[#allocation78_spill] sm:$0xff]  ;;  %v2619_v49 = vmul.f32 %v14073_v2, %v2587_v32  ;;  %v2589_v20 = vld [vmem:[#allocation2 + $0xe1] sm:$0xff]  ;;  %v14148_v13 = vsel %vm1388_vm15, 1.0, %v18583_v0 }
  0x59   : > { %18580 = vst [vmem:[#allocation52_spill] sm:$0xff] %v13971_v18  ;;  %v13991_v56 = vmul.f32 %v13978_v8, %v18590_v43  ;;  %v18596_v43 = vld [vmem:[#allocation65_spill] sm:$0xff]  ;;  %v18597_v8 = vld [vmem:[#allocation44_spill] sm:$0xff]  ;;  %v937_v25 = vand.u32 15, %v18628_v59  ;;  %18639 = vst [vmem:[#allocation103_spill] sm:$0xff] %v14148_v13 }
  0x5a   : > { %12251 = vmatmul.mubr.msk.bf16.gmra.mxu0 %vm1935_vm1, %v2633_v27  ;;  %v18594_v27 = vld [vmem:[#allocation46_spill] sm:$0xff]  ;;  %v14008_v12 = vmul.f32 %v18597_v8, %v18596_v43  ;;  %18600 = vst [vmem:[#allocation65_spill] sm:$0xff] %v14012_v52  ;;  %18606 = vst [vmem:[#allocation91_spill] sm:$0xff] %v14023_v36  ;;  %v18607_v18 = vld [vmem:[#allocation72_spill] sm:$0xff] }
  0x5b   : > { %18591 = vst [vmem:[#allocation64_spill] sm:$0xff] %v13991_v56  ;;  %12254 = vmatprep.mubr.msk.bf16.mxu0 %vm1935_vm1, %v2634_v23  ;;  %v14004_v46 = vmul.f32 %v18594_v27, %v18593_v11  ;;  %v18608_v43 = vld [vmem:[#allocation53_spill] sm:$0xff]  ;;  %v18616_v52 = vld [vmem:[#allocation55_spill] sm:$0xff]  ;;  %v2048_v23 = vpack.c.bf16 %v14030_v10, %v13919_v39  ;;  %v18619_v36 = vld [vmem:[#allocation74_spill] sm:$0xff]  ;;  %v366_v39 = vadd.s32 248, %v13406_v53  ;;  %vm14126_vm2 = vcmp.ge.s32.totalorder %v937_v25, 1 }
  0x5c   : > { %18598 = vst [vmem:[#allocation68_spill] sm:$0xff] %v14008_v12  ;;  %v14027_v8 = vmul.f32 %v18608_v43, %v18607_v18  ;;  %v14042_v18 = vld [vmem:[#allocation2 + $0xb7] sm:$0xff]  ;;  %v18615_v12 = vld [vmem:[#allocation76_spill] sm:$0xff]  ;;  %v14113_v59 = vld [vmem:[#allocation2 + $0xc9] sm:$0xff] }
  0x5d   : > { %18595 = vst [vmem:[#allocation39_spill] sm:$0xff] %v14004_v46  ;;  %12217 = vmatmul.mubr.msk.bf16.gmra.mxu1 %vm1935_vm1, %v2045_v61  ;;  %v2585_v61 = vld [vmem:[#allocation2 + $0xc1] sm:$0xff]  ;;  %v14059_v46 = vmul.f32 %v18616_v52, %v18615_v12  ;;  %v14063_v43 = vmul.f32 %v13780_v48, %v14042_v18  ;;  %v18621_v12 = vld [vmem:[#allocation62_spill] sm:$0xff]  ;;  %v14090_v56 = vld [vmem:[#allocation2 + $0xb9] sm:$0xff] }
  0x5e   : > { %18609 = vst [vmem:[#allocation72_spill] sm:$0xff] %v14027_v8  ;;  %12220 = vmatprep.mubr.msk.bf16.mxu1 %vm1935_vm1, %v2046_v19  ;;  %v363_v19 = vadd.s32 224, %v13406_v53  ;;  %v2617_v47 = vmul.f32 %v18619_v36, %v2585_v61  ;;  %v14077_v52 = vmul.f32 %v18621_v12, %v13861_v29  ;;  %v18623_v8 = vld [vmem:[#allocation77_spill] sm:$0xff]  ;;  %18625 = vst [vmem:[#allocation96_spill] sm:$0xff] %v14090_v56  ;;  %v14095_v29 = vsel %vm14051_vm13, 1.0, %v18583_v0 }
  0x5f   : > { %18617 = vst [vmem:[#allocation76_spill] sm:$0xff] %v14059_v46  ;;  %18618 = vst [vmem:[#allocation93_spill] sm:$0xff] %v14063_v43  ;;  %v2028_v35 = vmul.f32 %v18623_v8, %v14042_v18  ;;  %v14097_v12 = vld [vmem:[#allocation2 + $0xc7] sm:$0xff]  ;;  %v18631_v43 = vpack.c.bf16 %v13881_v14, %v13888_v62  ;;  %v14139_v28 = vmul.f32 %v13785_v41, %v2585_v61  ;;  %v972_v46 = vand.u32 15, %v366_v39 }
  0x60   : > { %18622 = vst [vmem:[#allocation95_spill] sm:$0xff] %v14077_v52  ;;  %18626 = vst [vmem:[#allocation97_spill] sm:$0xff] %v14095_v29  ;;  %v951_v38 = vand.u32 15, %v363_v19  ;;  %v2637_v33 = vpack.c.bf16 %v2617_v47, %v14090_v56  ;;  %v14121_v19 = vld [vmem:[#allocation2 + $0xcf] sm:$0xff]  ;;  %v2638_v47 = vpack.c.bf16 %v2619_v49, %v14113_v59  ;;  %v14145_v52 = vld [vmem:[#allocation2 + $0xdf] sm:$0xff]  ;;  %v14153_v49 = vmul.f32 %v18619_v36, %v2587_v32 }
  0x61   : > { %18627 = vst [vmem:[#allocation98_spill] sm:$0xff] %v14097_v12  ;;  %18632 = vst [vmem:[#allocation78_spill] sm:$0xff] %v14113_v59  ;;  %v14175_v36 = vld [vmem:[#allocation2 + $0xd9] sm:$0xff]  ;;  %vm1390_vm4 = vcmp.lt.s32.totalorder %v972_v46, 15 }
  0x62   : > { %12255 = vmatmul.mubr.msk.bf16.gmra.mxu0 %vm1935_vm1, %v18624_v57  ;;  %v18630_v57 = vand.u32 15, %v13809_v17  ;;  %v2030_v17 = vmul.f32 %v14095_v29, %v14097_v12  ;;  %vm1195_vm3 = vcmp.ge.s32.totalorder %v951_v38, 1  ;;  %18637 = vst [vmem:[#allocation101_spill] sm:$0xff] %v14139_v28  ;;  %18640 = vst [vmem:[#allocation104_spill] sm:$0xff] %v14153_v49  ;;  %v14159_v38 = vsel %vm14126_vm2, 1.0, %v18583_v0  ;;  %v14189_v59 = vld [vmem:[#allocation2 + $0xf7] sm:$0xff] }
  0x63   : > { %12258 = vmatprep.mubr.msk.bf16.mxu0 %vm1935_vm1, %v18629_v44  ;;  %v2049_v44 = vpack.c.bf16 %v14068_v9, %v2028_v35  ;;  %v14135_v35 = vmul.f32 %v13798_v45, %v14097_v12  ;;  %18641 = vst [vmem:[#allocation105_spill] sm:$0xff] %v14159_v38  ;;  %v14168_v32 = vsel %vm1195_vm3, 1.0, %v18583_v0  ;;  %v14170_v12 = vld [vmem:[#allocation2 + $0xe7] sm:$0xff]  ;;  %v14197_v46 = vsel %vm1390_vm4, 1.0, %v18583_v0  ;;  %v14207_v56 = vld [vmem:[#allocation2 + $0xff] sm:$0xff] }
  0x64   : > { %vm1386_vm14 = vcmp.lt.s32.totalorder %v18630_v57, 15  ;;  %v14130_v57 = vld [vmem:[#allocation2 + $0xd7] sm:$0xff]  ;;  %v2050_v61 = vpack.c.bf16 %v14121_v19, %v2030_v17  ;;  %18642 = vst [vmem:[#allocation106_spill] sm:$0xff] %v14168_v32  ;;  %18644 = vst [vmem:[#allocation108_spill] sm:$0xff] %v14197_v46 }
  0x65   : > { %12221 = vmatmul.mubr.msk.bf16.gmra.mxu1 %vm1935_vm1, %v18631_v43  ;;  %v14124_v62 = vsel %vm1386_vm14, 1.0, %v18583_v0  ;;  %18636 = vst [vmem:[#allocation100_spill] sm:$0xff] %v14135_v35  ;;  %v14143_v25 = vmul.f32 %v18623_v8, %v14130_v57  ;;  %v14181_v8 = vld [vmem:[#allocation2 + $0xe9] sm:$0xff] }
  0x66   : > { %12224 = vmatprep.mubr.msk.bf16.mxu1 %vm1935_vm1, %v2048_v23  ;;  %18633 = vst [vmem:[#allocation99_spill] sm:$0xff] %v14124_v62  ;;  %v365_v23 = vadd.s32 240, %v13406_v53  ;;  %v2591_v53 = vld [vmem:[#allocation2 + $0xf1] sm:$0xff]  ;;  %v2621_v39 = vmul.f32 %v14124_v62, %v2589_v20  ;;  %18643 = vst [vmem:[#allocation107_spill] sm:$0xff] %v14181_v8 }
  0x67   : > { %18638 = vst [vmem:[#allocation102_spill] sm:$0xff] %v14143_v25  ;;  %v2623_v41 = vmul.f32 %v14148_v13, %v2591_v53  ;;  %v14200_v25 = vmul.f32 %v14073_v2, %v2589_v20  ;;  %v18646_v20 = vld [vmem:[#allocation40_spill] sm:$0xff] }
  0x68   : > { %v965_v17 = vand.u32 15, %v365_v23  ;;  %v2034_v23 = vmul.f32 %v14168_v32, %v14170_v12  ;;  %v2639_v43 = vpack.c.bf16 %v2621_v39, %v14175_v36  ;;  %v14204_v39 = vmul.f32 %v14159_v38, %v14189_v59 }
  0x69   : > { %v2640_v49 = vpack.c.bf16 %v2623_v41, %v14181_v8  ;;  %v14212_v41 = vmul.f32 %v14124_v62, %v2591_v53  ;;  %v14227_v53 = vld [vmem:[#allocation2 + $0xf9] sm:$0xff]  ;;  %v2920_v2 = vmul.f32 %v13839_v6, %v18646_v20  ;;  %v18649_v8 = vld [vmem:[#allocation6_spill] sm:$0xff] }
  0x6a   : > { %12259 = vmatmul.mubr.msk.bf16.gmra.mxu0 %vm1935_vm1, %v2637_v33  ;;  %v2032_v33 = vmul.f32 %v14159_v38, %v14130_v57  ;;  %vm1197_vm5 = vcmp.ge.s32.totalorder %v965_v17, 1 }
  0x6b   : > { %12262 = vmatprep.mubr.msk.bf16.mxu0 %vm1935_vm1, %v2638_v47  ;;  %v14187_v47 = vld [vmem:[#allocation2 + $0xef] sm:$0xff]  ;;  %v14216_v32 = vsel %vm1197_vm5, 1.0, %v18583_v0 }
  0x6c   : > { %v2051_v17 = vpack.c.bf16 %v14145_v52, %v2032_v33  ;;  %v2052_v35 = vpack.c.bf16 %v14187_v47, %v2034_v23  ;;  %18645 = vst [vmem:[#allocation109_spill] sm:$0xff] %v14216_v32  ;;  %v2036_v23 = vmul.f32 %v14216_v32, %v14189_v59 }
  0x6d   : > { %12225 = vmatmul.mubr.msk.bf16.gmra.mxu1 %vm1935_vm1, %v2049_v44  ;;  %v14193_v44 = vmul.f32 %v14095_v29, %v14170_v12 }
  0x6e   : > { %12228 = vmatprep.mubr.msk.bf16.mxu1 %vm1935_vm1, %v2050_v61  ;;  %v2593_v61 = vld [vmem:[#allocation2 + $0x101] sm:$0xff]  ;;  %v2053_v28 = vpack.c.bf16 %v14207_v56, %v2036_v23 }
  0x6f   : > { %v2625_v33 = vmul.f32 %v14197_v46, %v2593_v61  ;;  %v14237_v0 = vmul.f32 %v14148_v13, %v2593_v61  ;;  %v18648_v46 = vld [vmem:[#allocation7_spill] sm:$0xff]  ;;  %v2922_v61 = vmul.f32 %v13506_v58, %v13577_v22 }
  0x71   : > { %v2953_v20 = vpack.c.bf16 %v13632_v40, %v2922_v61 }
  0x72   : > { %12263 = vmatmul.mubr.msk.bf16.gmra.mxu0 %vm1935_vm1, %v2639_v43  ;;  %v2641_v43 = vpack.c.bf16 %v2625_v33, %v14227_v53  ;;  %v18651_v33 = vld [vmem:[#allocation51_spill] sm:$0xff] }
  0x73   : > { %12266 = vmatprep.mubr.msk.bf16.mxu0 %vm1935_vm1, %v2640_v49  ;;  %v18647_v49 = vld [vmem:[#allocation48_spill] sm:$0xff]  ;;  %v3933_v23 = vsel %vm2185_vm0, %v18651_v33, 0  ;;  %v2926_v33 = vmul.f32 %v18576_v51, %v13683_v21  ;;  %v18662_v21 = vld [vmem:[#allocation21_spill] sm:$0xff] }
  0x74   : > { %v2952_v62 = vpack.c.bf16 %v18647_v49, %v2920_v2  ;;  %v2924_v2 = vmul.f32 %v13516_v5, %v13660_v31  ;;  %v18656_v49 = vld [vmem:[#allocation15_spill] sm:$0xff] }
  0x75   : > { %12229 = vmatmul.mubr.msk.bf16.gmra.mxu1 %vm1935_vm1, %v2051_v17  ;;  %v3554_v17 = vpack.c.bf16 %v14237_v0, %v14227_v53  ;;  %v4459_v0 = vld [vmem:[#allocation2 + $0x51] sm:$0xff] }
  0x76   : > { %12232 = vmatprep.mubr.msk.bf16.mxu1 %vm1935_vm1, %v2052_v35  ;;  %v18650_v35 = vpack.c.bf16 %v18648_v46, %v18649_v8  ;;  %v14261_v8 = vld [vmem:[%s18155_s1 + $0x10] sm:$0x3]  ;;  %v18653_v46 = vld [vmem:[#allocation12_spill] sm:$0xff] }
  0x7a   : > { %12267 = vmatmul.mubr.msk.bf16.gmra.mxu0 %vm1935_vm1, %v2641_v43  ;;  %v2954_v43 = vpack.c.bf16 %v13713_v16, %v2924_v2  ;;  %v14276_v2 = vld [vmem:[%s18155_s1 + $0xe] sm:$0x3] }
  0x7b   : > { %12306 = vmatprep.mubr.msk.bf16.mxu0 %vm1935_vm1, %v18650_v35  ;;  %v18657_v35 = vld [vmem:[#allocation14_spill] sm:$0xff] }
  0x7c   : > { %v18658_v61 = vpack.c.bf16 %v18656_v49, %v18657_v35  ;;  %v18663_v49 = vld [vmem:[#allocation20_spill] sm:$0xff] }
  0x7d   : > { %12233 = vmatmul.mubr.msk.bf16.gmra.mxu1 %vm1935_vm1, %v2053_v28  ;;  %v18652_v28 = vld [vmem:[#allocation13_spill] sm:$0xff] }
  0x7e   : > { %12272 = vmatprep.mubr.msk.bf16.mxu1 %vm1935_vm1, %v2952_v62  ;;  %v18654_v22 = vpack.c.bf16 %v18652_v28, %v18653_v46  ;;  %v18655_v62 = vld [vmem:[#allocation60_spill] sm:$0xff]  ;;  %v2955_v28 = vpack.c.bf16 %v18585_v7, %v2926_v33  ;;  %v18665_v33 = vld [vmem:[#allocation27_spill] sm:$0xff] }
  0x7f   : > { %v3607_v31 = vsel %vm2185_vm0, %v18655_v62, 0 }
  0x82   : > { %12307 = vmatmul.mubr.msk.bf16.vlgmr.msra.gmra.mxu0 %vm1935_vm1, %v18654_v22  ;;  %v18660_v22 = vld [vmem:[#allocation18_spill] sm:$0xff] }
  0x83   : > { %12373 = vmatpush3.bf16.msra.mxu0 %v3933_v23  ;;  %12310 = vmatprep.mubr.msk.bf16.mxu0 %vm1935_vm1, %v18658_v61  ;;  %v2928_v23 = vmul.f32 %v18581_v54, %v18575_v60  ;;  %v2930_v60 = vmul.f32 %v18594_v27, %v13771_v34  ;;  %v2934_v34 = vmul.f32 %v18605_v3, %v13816_v55 }
  0x84   : > { %13115 = vmatprep.subr.msk.bf16.mxu0 %vm2185_vm0, %v14261_v8  ;;  %v2938_v55 = vmul.f32 %v13780_v48, %v13870_v4  ;;  %v18681_v4 = vld [vmem:[#allocation98_spill] sm:$0xff] }
  0x85   : > { %12273 = vmatmul.mubr.msk.bf16.vlgmr.msra.gmra.mxu1 %vm1935_vm1, %v2953_v20  ;;  %v2956_v46 = vpack.c.bf16 %v13829_v1, %v2928_v23  ;;  %v18659_v20 = vld [vmem:[#allocation19_spill] sm:$0xff]  ;;  %v2957_v35 = vpack.c.bf16 %v13844_v30, %v2930_v60  ;;  %v18666_v23 = vld [vmem:[#allocation26_spill] sm:$0xff] }
  0x86   : > { %12339 = vmatpush3.bf16.msra.mxu1 %v3607_v31  ;;  %12276 = vmatprep.mubr.msk.bf16.mxu1 %vm1935_vm1, %v2954_v43  ;;  %v18661_v62 = vpack.c.bf16 %v18659_v20, %v18660_v22  ;;  %v18664_v31 = vpack.c.bf16 %v18662_v21, %v18663_v49  ;;  %v2932_v43 = vmul.f32 %v18599_v37, %v18593_v11  ;;  %v18668_v22 = vld [vmem:[#allocation29_spill] sm:$0xff]  ;;  %v4467_v37 = vld [vmem:[#allocation2 + $0x91] sm:$0xff] }
  0x87   : > { %13114 = vmatprep.subr.msk.bf16.mxu1 %vm2185_vm0, %v14276_v2  ;;  %v18667_v20 = vpack.c.bf16 %v18665_v33, %v18666_v23  ;;  %v2936_v11 = vmul.f32 %v18611_v63, %v13833_v50  ;;  %v18671_v49 = vld [vmem:[#allocation9_spill] sm:$0xff]  ;;  %v18675_v33 = vld [vmem:[#allocation10_spill] sm:$0xff]  ;;  %v2940_v50 = vmul.f32 %v13798_v45, %v14042_v18  ;;  %v2944_v18 = vmul.f32 %v14095_v29, %v14130_v57 }
  0x88   : > { %v2958_v61 = vpack.c.bf16 %v13848_v42, %v2932_v43  ;;  %v18674_v43 = vld [vmem:[#allocation11_spill] sm:$0xff]  ;;  %v18689_v57 = vld [vmem:[#allocation106_spill] sm:$0xff] }
  0x89   : > { %v2960_v21 = vpack.c.bf16 %v13881_v14, %v2936_v11  ;;  %v2962_v23 = vpack.c.bf16 %v14068_v9, %v2940_v50 }
  0x8a   : > { %12311 = vmatmul.mubr.msk.bf16.gmra.mxu0 %vm1935_vm1, %v18661_v62  ;;  %v18669_v62 = vld [vmem:[#allocation28_spill] sm:$0xff] }
  0x8b   : > { %12314 = vmatprep.mubr.msk.bf16.mxu0 %vm1935_vm1, %v18664_v31  ;;  %v18672_v31 = vld [vmem:[#allocation8_spill] sm:$0xff] }
  0x8c   : > { %v18673_v60 = vpack.c.bf16 %v18671_v49, %v18672_v31  ;;  %v18684_v49 = vld [vmem:[#allocation22_spill] sm:$0xff] }
  0x8d   : > { %12277 = vmatmul.mubr.msk.bf16.gmra.mxu1 %vm1935_vm1, %v2955_v28  ;;  %v18670_v28 = vpack.c.bf16 %v18668_v22, %v18669_v62  ;;  %v18679_v62 = vld [vmem:[#allocation17_spill] sm:$0xff] }
  0x8e   : > { %12280 = vmatprep.mubr.msk.bf16.mxu1 %vm1935_vm1, %v2956_v46  ;;  %v2959_v46 = vpack.c.bf16 %v13866_v15, %v2934_v34  ;;  %v18682_v34 = vld [vmem:[#allocation77_spill] sm:$0xff] }
  0x8f   : > { %v2942_v11 = vmul.f32 %v18682_v34, %v18681_v4  ;;  %v4462_v34 = vld [vmem:[#allocation2 + $0x69] sm:$0xff] }
  0x92   : > { %12315 = vmatmul.mubr.msk.bf16.gmra.mxu0 %vm1935_vm1, %v18667_v20  ;;  %v18677_v20 = vld [vmem:[#allocation16_spill] sm:$0xff] }
  0x93   : > { %12318 = vmatprep.mubr.msk.bf16.mxu0 %vm1935_vm1, %v18670_v28  ;;  %v18678_v22 = vpack.c.bf16 %v13324_v24, %v18677_v20  ;;  %v18680_v28 = vpack.c.bf16 %v13334_v26, %v18679_v62  ;;  %v2964_v24 = vpack.c.bf16 %v14145_v52, %v2944_v18  ;;  %v18686_v26 = vld [vmem:[#allocation25_spill] sm:$0xff]  ;;  %v18691_v20 = vld [vmem:[#allocation30_spill] sm:$0xff] }
  0x94   : > { %v18693_v62 = vld [vmem:[#allocation33_spill] sm:$0xff] }
  0x95   : > { %12281 = vmatmul.mubr.msk.bf16.gmra.mxu1 %vm1935_vm1, %v2957_v35  ;;  %v18676_v35 = vpack.c.bf16 %v18674_v43, %v18675_v33  ;;  %v2946_v33 = vmul.f32 %v14159_v38, %v14170_v12  ;;  %v18696_v18 = vld [vmem:[#allocation57_spill] sm:$0xff] }
  0x96   : > { %12284 = vmatprep.mubr.msk.bf16.mxu1 %vm1935_vm1, %v2958_v61  ;;  %v2961_v61 = vpack.c.bf16 %v14030_v10, %v2938_v55 }
  0x97   : > { %v2965_v55 = vpack.c.bf16 %v14187_v47, %v2946_v33  ;;  %v18704_v33 = vld [vmem:[#allocation85_spill] sm:$0xff] }
  0x9a   : > { %12319 = vmatmul.mubr.msk.bf16.gmra.mxu0 %vm1935_vm1, %v18673_v60  ;;  %v18687_v60 = vld [vmem:[#allocation24_spill] sm:$0xff] }
  0x9b   : > { %12322 = vmatprep.mubr.msk.bf16.mxu0 %vm1935_vm1, %v18676_v35  ;;  %v18688_v43 = vpack.c.bf16 %v18686_v26, %v18687_v60  ;;  %v2948_v35 = vmul.f32 %v18689_v57, %v14189_v59  ;;  %v2919_v59 = vld [vmem:[#allocation2 + $0x10f] sm:$0xff] }
  0x9c   : > { %v18702_v26 = vld [vmem:[#allocation45_spill] sm:$0xff] }
  0x9d   : > { %12285 = vmatmul.mubr.msk.bf16.gmra.mxu1 %vm1935_vm1, %v2959_v46  ;;  %v2963_v46 = vpack.c.bf16 %v14121_v19, %v2942_v11  ;;  %v2966_v50 = vpack.c.bf16 %v14207_v56, %v2948_v35  ;;  %v18705_v35 = vpack.c.bf16 %v13713_v16, %v18704_v33  ;;  %v18731_v33 = vld [vmem:[#allocation67_spill] sm:$0xff] }
  0x9e   : > { %12288 = vmatprep.mubr.msk.bf16.mxu1 %vm1935_vm1, %v2960_v21  ;;  %v18683_v21 = vld [vmem:[#allocation23_spill] sm:$0xff] }
  0x9f   : > { %v18685_v31 = vpack.c.bf16 %v18683_v21, %v18684_v49  ;;  %v18699_v21 = vld [vmem:[#allocation84_spill] sm:$0xff] }
  0xa0   : > { %v18700_v49 = vpack.c.bf16 %v13632_v40, %v18699_v21  ;;  %v4259_v40 = vsel %vm2185_vm0, %v14276_v2, 0 }
  0xa2   : > { %12323 = vmatmul.mubr.msk.bf16.gmra.mxu0 %vm1935_vm1, %v18678_v22 }
  0xa3   : > { %12326 = vmatprep.mubr.msk.bf16.mxu0 %vm1935_vm1, %v18680_v28  ;;  %v18694_v28 = vld [vmem:[#allocation32_spill] sm:$0xff] }
  0xa4   : > { %v18695_v4 = vpack.c.bf16 %v18693_v62, %v18694_v28  ;;  %v18712_v62 = vld [vmem:[#allocation58_spill] sm:$0xff] }
  0xa5   : > { %12289 = vmatmul.mubr.msk.bf16.gmra.mxu1 %vm1935_vm1, %v2961_v61  ;;  %v2918_v61 = vld [vmem:[#allocation2 + $0x107] sm:$0xff]  ;;  %v18714_v28 = vld [vmem:[#allocation66_spill] sm:$0xff] }
  0xa6   : > { %12292 = vmatprep.mubr.msk.bf16.mxu1 %vm1935_vm1, %v2962_v23  ;;  %v18690_v23 = vld [vmem:[#allocation31_spill] sm:$0xff]  ;;  %v2950_v12 = vmul.f32 %v14216_v32, %v2918_v61  ;;  %v18715_v2 = vpack.c.bf16 %v13829_v1, %v18714_v28 }
  0xa7   : > { %v18692_v22 = vpack.c.bf16 %v18690_v23, %v18691_v20  ;;  %v18708_v23 = vld [vmem:[#allocation86_spill] sm:$0xff]  ;;  %v18709_v20 = vld [vmem:[#allocation47_spill] sm:$0xff] }
  0xa8   : > { %v2967_v11 = vpack.c.bf16 %v2919_v59, %v2950_v12  ;;  %v18718_v12 = vld [vmem:[#allocation52_spill] sm:$0xff] }
  0xaa   : > { %12327 = vmatmul.mubr.msk.bf16.gmra.mxu0 %vm1935_vm1, %v18685_v31  ;;  %v18701_v31 = vld [vmem:[#allocation64_spill] sm:$0xff] }
  0xab   : > { %12330 = vmatprep.mubr.msk.bf16.mxu0 %vm1935_vm1, %v18688_v43  ;;  %v18703_v60 = vpack.c.bf16 %v18701_v31, %v18702_v26  ;;  %v4585_v43 = vsel %vm2185_vm0, %v14261_v8, 0  ;;  %v18711_v8 = vld [vmem:[#allocation88_spill] sm:$0xff]  ;;  %v18726_v31 = vld [vmem:[#allocation65_spill] sm:$0xff]  ;;  %vm4851_vm0 = vcmask 130048  }
  0xac   : > { %v18713_v16 = vpack.c.bf16 %v18711_v8, %v18712_v62  ;;  %v18728_v26 = vld [vmem:[#allocation68_spill] sm:$0xff]  ;;  %v18742_v62 = vld [vmem:[#allocation82_spill] sm:$0xff] }
  0xad   : > { %12293 = vmatmul.mubr.msk.bf16.gmra.mxu1 %vm1935_vm1, %v2963_v46  ;;  %v18697_v46 = vld [vmem:[#allocation56_spill] sm:$0xff] }
  0xae   : > { %12296 = vmatprep.mubr.msk.bf16.mxu1 %vm1935_vm1, %v2964_v24  ;;  %v18698_v24 = vpack.c.bf16 %v18696_v18, %v18697_v46  ;;  %v18721_v46 = vld [vmem:[#allocation63_spill] sm:$0xff]  ;;  %v18741_v8 = vld [vmem:[#allocation76_spill] sm:$0xff] }
  0xb2   : > { %12331 = vmatmul.mubr.msk.bf16.gmra.mxu0 %vm1935_vm1, %v18692_v22  ;;  %v18710_v22 = vpack.c.bf16 %v18708_v23, %v18709_v20  ;;  %v18738_v23 = vld [vmem:[#allocation72_spill] sm:$0xff]  ;;  %v18739_v20 = vld [vmem:[#allocation81_spill] sm:$0xff] }
  0xb3   : > { %12334 = vmatprep.mubr.msk.bf16.mxu0 %vm1935_vm1, %v18695_v4 }
  0xb5   : > { %12297 = vmatmul.mubr.msk.bf16.gmra.mxu1 %vm1935_vm1, %v2965_v55  ;;  %v18706_v55 = vld [vmem:[#allocation87_spill] sm:$0xff] }
  0xb6   : > { %12300 = vmatprep.mubr.msk.bf16.mxu1 %vm1935_vm1, %v2966_v50  ;;  %v18707_v50 = vpack.c.bf16 %v18585_v7, %v18706_v55  ;;  %v18716_v7 = vld [vmem:[#allocation89_spill] sm:$0xff]  ;;  %v18734_v55 = vld [vmem:[#allocation91_spill] sm:$0xff] }
  0xb7   : > { %v18717_v4 = vpack.c.bf16 %v13844_v30, %v18716_v7  ;;  %v18727_v30 = vpack.c.bf16 %v13866_v15, %v18726_v31 }
  0xba   : > { %12335 = vmatmul.mubr.msk.bf16.gmra.mxu0 %vm1935_vm1, %v18698_v24  ;;  %v18722_v24 = vld [vmem:[#allocation71_spill] sm:$0xff] }
  0xbb   : > { %12374 = vmatprep.mubr.msk.bf16.mxu0 %vm1935_vm1, %v18700_v49  ;;  %v18723_v21 = vpack.c.bf16 %v18721_v46, %v18722_v24  ;;  %v18724_v49 = vld [vmem:[#allocation39_spill] sm:$0xff]  ;;  %v18751_v24 = vld [vmem:[#allocation101_spill] sm:$0xff] }
  0xbc   : > { %v18725_v1 = vpack.c.bf16 %v13848_v42, %v18724_v49  ;;  %v18735_v42 = vpack.c.bf16 %v13881_v14, %v18734_v55  ;;  %v18744_v14 = vld [vmem:[#allocation93_spill] sm:$0xff]  ;;  %v18757_v55 = vld [vmem:[#allocation104_spill] sm:$0xff] }
  0xbd   : > { %12301 = vmatmul.mubr.msk.bf16.gmra.mxu1 %vm1935_vm1, %v2967_v11  ;;  %v18719_v11 = vld [vmem:[#allocation61_spill] sm:$0xff] }
  0xbe   : > { %12340 = vmatprep.mubr.msk.bf16.mxu1 %vm1935_vm1, %v18703_v60  ;;  %v18720_v18 = vpack.c.bf16 %v18718_v12, %v18719_v11  ;;  %v18729_v60 = vld [vmem:[#allocation75_spill] sm:$0xff] }
  0xbf   : > { %v18748_v12 = vld [vmem:[#allocation95_spill] sm:$0xff] }
  0xc0   : > { %v18749_v11 = vld [vmem:[#allocation83_spill] sm:$0xff] }
  0xc2   : > { %12375 = vmatmul.mubr.msk.bf16.vlgmr.msra.gmra.mxu0 %vm1935_vm1, %v18705_v35  ;;  %v18732_v35 = vld [vmem:[#allocation80_spill] sm:$0xff] }
  0xc3   : > { %12441 = vmatpush3.bf16.msra.mxu0 %v4585_v43  ;;  %12378 = vmatprep.mubr.msk.bf16.mxu0 %vm1935_vm1, %v18707_v50  ;;  %v18730_v43 = vpack.c.bf16 %v18728_v26, %v18729_v60  ;;  %v18736_v50 = vld [vmem:[#allocation92_spill] sm:$0xff]  ;;  %v18754_v60 = vld [vmem:[#allocation102_spill] sm:$0xff] }
  0xc4   : > { %v18737_v15 = vpack.c.bf16 %v14030_v10, %v18736_v50  ;;  %v18746_v10 = vld [vmem:[#allocation100_spill] sm:$0xff] }
  0xc5   : > { %12341 = vmatmul.mubr.msk.bf16.vlgmr.msra.gmra.mxu1 %vm1935_vm1, %v18710_v22  ;;  %v18740_v22 = vpack.c.bf16 %v18738_v23, %v18739_v20  ;;  %v18747_v7 = vpack.c.bf16 %v14121_v19, %v18746_v10  ;;  %v3833_v20 = vld [vmem:[#allocation2 + $0x11f] sm:$0xff]  ;;  %v18762_v10 = vld [vmem:[#allocation90_spill] sm:$0xff] }
  0xc6   : > { %12407 = vmatpush3.bf16.msra.mxu1 %v4259_v40  ;;  %12344 = vmatprep.mubr.msk.bf16.mxu1 %vm1935_vm1, %v18713_v16  ;;  %v18733_v40 = vpack.c.bf16 %v18731_v33, %v18732_v35  ;;  %v18743_v16 = vpack.c.bf16 %v18741_v8, %v18742_v62  ;;  %v18756_v33 = vpack.c.bf16 %v14187_v47, %v14193_v44  ;;  %v4455_v62 = vld [vmem:[#allocation2 + $0x31] sm:$0xff] }
  0xc7   : > { %v3862_v35 = vmul.f32 %v18689_v57, %v2918_v61  ;;  %v3832_v61 = vld [vmem:[#allocation2 + $0x117] sm:$0xff] }
  0xc8   : > { %v18768_v57 = vld [vmem:[#allocation38_spill] sm:$0xff] }
  0xc9   : > { %v3880_v44 = vpack.c.bf16 %v2919_v59, %v3862_v35  ;;  %v3865_v59 = vmul.f32 0.0, %v3833_v20  ;;  %v4129_v35 = vld [vmem:[#allocation2 + $0x30] sm:$0xff] }
  0xca   : > { %12379 = vmatmul.mubr.msk.bf16.gmra.mxu0 %vm1935_vm1, %v18715_v2  ;;  %v18745_v2 = vpack.c.bf16 %v14068_v9, %v18744_v14  ;;  %v18766_v20 = vld [vmem:[#allocation34_spill] sm:$0xff] }
  0xcb   : > { %12382 = vmatprep.mubr.msk.bf16.mxu0 %vm1935_vm1, %v18717_v4 }
  0xcd   : > { %12345 = vmatmul.mubr.msk.bf16.gmra.mxu1 %vm1935_vm1, %v18720_v18  ;;  %v18750_v18 = vpack.c.bf16 %v18748_v12, %v18749_v11  ;;  %v18763_v11 = vld [vmem:[#allocation107_spill] sm:$0xff] }
  0xce   : > { %12348 = vmatprep.mubr.msk.bf16.mxu1 %vm1935_vm1, %v18723_v21  ;;  %v18752_v21 = vld [vmem:[#allocation96_spill] sm:$0xff] }
  0xcf   : > { %v18753_v49 = vpack.c.bf16 %v18751_v24, %v18752_v21  ;;  %v18765_v21 = vld [vmem:[#allocation108_spill] sm:$0xff] }
  0xd2   : > { %12383 = vmatmul.mubr.msk.bf16.gmra.mxu0 %vm1935_vm1, %v18725_v1 }
  0xd3   : > { %12386 = vmatprep.mubr.msk.bf16.mxu0 %vm1935_vm1, %v18727_v30 }
  0xd5   : > { %12349 = vmatmul.mubr.msk.bf16.gmra.mxu1 %vm1935_vm1, %v18730_v43  ;;  %v18755_v43 = vpack.c.bf16 %v14145_v52, %v18754_v60  ;;  %v18760_v52 = vpack.c.bf16 %v14200_v25, %v14175_v36  ;;  %v18761_v36 = vpack.c.bf16 %v14207_v56, %v14204_v39  ;;  %v3864_v25 = vmul.f32 0.0, %v3832_v61  ;;  %v4454_v39 = vld [vmem:[#allocation2 + $0x29] sm:$0xff] }
  0xd6   : > { %12352 = vmatprep.mubr.msk.bf16.mxu1 %vm1935_vm1, %v18733_v40 }
  0xda   : > { %12387 = vmatmul.mubr.msk.bf16.gmra.mxu0 %vm1935_vm1, %v18735_v42  ;;  %v18758_v42 = vld [vmem:[#allocation78_spill] sm:$0xff] }
  0xdb   : > { %12390 = vmatprep.mubr.msk.bf16.mxu0 %vm1935_vm1, %v18737_v15  ;;  %v18759_v50 = vpack.c.bf16 %v18757_v55, %v18758_v42  ;;  %v4457_v42 = vld [vmem:[#allocation2 + $0x41] sm:$0xff] }
  0xdd   : > { %12353 = vmatmul.mubr.msk.bf16.gmra.mxu1 %vm1935_vm1, %v18740_v22 }
  0xde   : > { %12356 = vmatprep.mubr.msk.bf16.mxu1 %vm1935_vm1, %v18743_v16  ;;  %v14525_v16 = vld [vmem:[#allocation2 + $0x111] sm:$0xff] }
  0xdf   : > { %v3539_v56 = vmul.f32 %v18765_v21, %v14525_v16 }
  0xe2   : > { %v14462_v28 = vpop.f32.mrf.mxu0  ;;  %12391 = vmatmul.mubr.msk.bf16.gmra.mxu0 %vm1935_vm1, %v18745_v2 }
  0xe3   : > { %12394 = vmatprep.mubr.msk.bf16.mxu0 %vm1935_vm1, %v18747_v7  ;;  %v4487_v7 = vmul.f32 %v18762_v10, %v4455_v62  ;;  %v4489_v62 = vmul.f32 %v18766_v20, %v4457_v42  ;;  %v4133_v42 = vld [vmem:[#allocation2 + $0x50] sm:$0xff] }
  0xe4   : > { %v14478_v46 = vpop.f32.mrf.mxu0  ;;  %v4463_v20 = vld [vmem:[#allocation2 + $0x71] sm:$0xff] }
  0xe5   : > { %v14472_v4 = vpop.f32.mrf.mxu1  ;;  %12357 = vmatmul.mubr.msk.bf16.gmra.mxu1 %vm1935_vm1, %v18750_v18  ;;  %v18764_v18 = vpack.c.bf16 %v14212_v41, %v18763_v11  ;;  %v3881_v41 = vpack.c.bf16 %v3865_v59, %v3864_v25  ;;  %v4518_v55 = vpack.c.bf16 %v4487_v7, %v4454_v39  ;;  %v18767_v25 = vld [vmem:[#allocation36_spill] sm:$0xff] }
  0xe6   : > { %12360 = vmatprep.mubr.msk.bf16.mxu1 %vm1935_vm1, %v18753_v49  ;;  %v14486_v1 = vpop.f32.mrf.mxu0  ;;  %v14551_v49 = vld [vmem:[#allocation2 + $0x109] sm:$0xff]  ;;  %v4491_v59 = vmul.f32 %v18767_v25, %v4459_v0  ;;  %v4131_v39 = vld [vmem:[#allocation2 + $0x40] sm:$0xff] }
  0xe7   : > { %v14484_v9 = vpop.f32.mrf.mxu1  ;;  %v4461_v0 = vld [vmem:[#allocation2 + $0x61] sm:$0xff] }
  0xe8   : > { %v14490_v31 = vpop.f32.mrf.mxu0  ;;  %v4493_v38 = vmul.f32 %v18768_v57, %v4461_v0  ;;  %v4136_v0 = vld [vmem:[#allocation2 + $0x68] sm:$0xff]  ;;  %v4137_v57 = vld [vmem:[#allocation2 + $0x70] sm:$0xff] }
  0xe9   : > { %v14488_v19 = vpop.f32.mrf.mxu1 }
  0xea   : > { %v14494_v26 = vpop.f32.mrf.mxu0  ;;  %12395 = vmatmul.mubr.msk.bf16.gmra.mxu0 %vm1935_vm1, %v18755_v43 }
  0xeb   : > { %v14492_v30 = vpop.f32.mrf.mxu1  ;;  %12398 = vmatprep.mubr.msk.bf16.mxu0 %vm1935_vm1, %v18756_v33  ;;  %v4128_v33 = vld [vmem:[#allocation2 + $0x28] sm:$0xff] }
  0xec   : > { %v14511_v15 = vpop.f32.mrf.mxu0  ;;  %v4192_v53 = vpack.c.bf16 %v4129_v35, %v4128_v33 }
  0xed   : > { %v14505_v40 = vpop.f32.mrf.mxu1  ;;  %12361 = vmatmul.mubr.msk.bf16.gmra.mxu1 %vm1935_vm1, %v18759_v50 }
  0xee   : > { %12364 = vmatprep.mubr.msk.bf16.mxu1 %vm1935_vm1, %v18760_v52  ;;  %v14519_v47 = vpop.f32.mrf.mxu0 }
  0xef   : > { %v14517_v23 = vpop.f32.mrf.mxu1 }
  0xf0   : > { %v14523_v8 = vpop.f32.mrf.mxu0 }
  0xf1   : > { %v14521_v22 = vpop.f32.mrf.mxu1 }
  0xf2   : > { %v14529_v2 = vpop.f32.mrf.mxu0  ;;  %12399 = vmatmul.mubr.msk.bf16.gmra.mxu0 %vm1935_vm1, %v18761_v36  ;;  %v4456_v36 = vld [vmem:[#allocation2 + $0x39] sm:$0xff] }
  0xf3   : > { %v14527_v14 = vpop.f32.mrf.mxu1  ;;  %12402 = vmatprep.mubr.msk.bf16.mxu0 %vm1935_vm1, %v3880_v44  ;;  %v3555_v44 = vpack.c.bf16 %v3539_v56, %v14551_v49  ;;  %v4130_v56 = vld [vmem:[#allocation2 + $0x38] sm:$0xff]  ;;  %v4519_v35 = vpack.c.bf16 %v4489_v62, %v4456_v36 }
  0xf4   : > { %v14543_v24 = vpop.f32.mrf.mxu0  ;;  %v4460_v62 = vld [vmem:[#allocation2 + $0x59] sm:$0xff]  ;;  %v18769_v36 = vld [vmem:[#allocation42_spill] sm:$0xff] }
  0xf5   : > { %v14537_v12 = vpop.f32.mrf.mxu1  ;;  %12365 = vmatmul.mubr.msk.bf16.gmra.mxu1 %vm1935_vm1, %v18764_v18  ;;  %v4458_v18 = vld [vmem:[#allocation2 + $0x49] sm:$0xff]  ;;  %v4521_v45 = vpack.c.bf16 %v4493_v38, %v4460_v62  ;;  %v18770_v38 = vld [vmem:[#allocation44_spill] sm:$0xff] }
  0xf6   : > { %12368 = vmatprep.mubr.msk.bf16.mxu1 %vm1935_vm1, %v3554_v17  ;;  %v14555_v43 = vpop.f32.mrf.mxu0  ;;  %v4520_v10 = vpack.c.bf16 %v4491_v59, %v4458_v18  ;;  %v4495_v59 = vmul.f32 %v18769_v36, %v4463_v20  ;;  %v4465_v20 = vld [vmem:[#allocation2 + $0x81] sm:$0xff] }
  0xf7   : > { %v14553_v60 = vpop.f32.mrf.mxu1  ;;  %v4497_v62 = vmul.f32 %v18770_v38, %v4465_v20  ;;  %v4469_v20 = vld [vmem:[#allocation2 + $0xa1] sm:$0xff] }
  0xf8   : > { %v14559_v52 = vpop.f32.mrf.mxu0  ;;  %v4522_v48 = vpack.c.bf16 %v4495_v59, %v4462_v34 }
  0xf9   : > { %v14557_v50 = vpop.f32.mrf.mxu1 }
  0xfa   : > { %v14564_v61 = vpop.f32.mrf.mxu0  ;;  %12403 = vmatmul.mubr.msk.bf16.gmra.mxu0 %vm1935_vm1, %v3881_v41 }
  0xfb   : > { %v14562_v17 = vpop.f32.mrf.mxu1  ;;  %12442 = vmatprep.mubr.msk.bf16.mxu0 %vm1935_vm1, %v4518_v55  ;;  %v4132_v55 = vld [vmem:[#allocation2 + $0x48] sm:$0xff] }
  0xfc   : > { %v14573_v11 = vpop.f32.mrf.mxu0  ;;  %v4194_v6 = vpack.c.bf16 %v4133_v42, %v4132_v55  ;;  %v4135_v55 = vld [vmem:[#allocation2 + $0x60] sm:$0xff] }
  0xfd   : > { %v14570_v7 = vpop.f32.mrf.mxu1  ;;  %12369 = vmatmul.mubr.msk.bf16.gmra.mxu1 %vm1935_vm1, %v3555_v44  ;;  %v4193_v44 = vpack.c.bf16 %v4131_v39, %v4130_v56  ;;  %v4134_v39 = vld [vmem:[#allocation2 + $0x58] sm:$0xff] }
  0xfe   : > { %12408 = vmatprep.mubr.msk.bf16.mxu1 %vm1935_vm1, %v4192_v53  ;;  %v14578_v41 = vpop.f32.mrf.mxu0  ;;  %v4195_v3 = vpack.c.bf16 %v4135_v55, %v4134_v39  ;;  %v4139_v55 = vld [vmem:[#allocation2 + $0x80] sm:$0xff] }
  0xff   : > { %v14576_v33 = vpop.f32.mrf.mxu1 }
 0x100   : > { %v14582_v25 = vpop.f32.mrf.mxu0 }
 0x101   : > { %v14580_v21 = vpop.f32.mrf.mxu1 }
 0x102   : > { %v12240_v53 = vpop.f32.mrf.mxu0  ;;  %12443 = vmatmul.mubr.msk.bf16.vlgmr.msra.gmra.mxu0 %vm1935_vm1, %v4519_v35 }
 0x103   : > { %v14584_v32 = vpop.f32.mrf.mxu1  ;;  %12446 = vmatprep.mubr.msk.bf16.mxu0 %vm1935_vm1, %v4520_v10 }
 0x104   : > { %v2729_v29 = vpop.f32.mrf.mxu0 }
 0x105   : > { %v12206_v18 = vpop.f32.mrf.mxu1  ;;  %12409 = vmatmul.mubr.msk.bf16.vlgmr.msra.gmra.mxu1 %vm1935_vm1, %v4193_v44 }
 0x106   : > { %v2444_v56 = vadd.f32 %v12206_v18, %v14462_v28  ;;  %12412 = vmatprep.mubr.msk.bf16.mxu1 %vm1935_vm1, %v4194_v6  ;;  %v12241_v35 = vpop.f32.mrf.mxu0  ;;  %v4196_v6 = vpack.c.bf16 %v4137_v57, %v4136_v0  ;;  %v4466_v57 = vld [vmem:[#allocation2 + $0x89] sm:$0xff] }
 0x107   : > { %v2435_v42 = vpop.f32.mrf.mxu1  ;;  %v4140_v0 = vld [vmem:[#allocation2 + $0x88] sm:$0xff] }
 0x108   : > { %v2436_v10 = vadd.f32 %v2435_v42, %v14478_v46  ;;  %v14594_v36 = vadd.f32 %v12240_v53, %v2444_v56  ;;  %v2732_v63 = vpop.f32.mrf.mxu0  ;;  %v4464_v46 = vld [vmem:[#allocation2 + $0x79] sm:$0xff]  ;;  %v18771_v53 = vld [vmem:[#allocation49_spill] sm:$0xff] }
 0x109   : > { %v12207_v44 = vpop.f32.mrf.mxu1  ;;  %v4499_v59 = vmul.f32 %v18771_v53, %v4467_v37  ;;  %v4141_v37 = vld [vmem:[#allocation2 + $0x90] sm:$0xff] }
 0x10a   : > { %v2447_v28 = vadd.f32 %v12207_v44, %v14486_v1  ;;  %v14597_v18 = vadd.f32 %v2729_v29, %v2436_v10  ;;  %v12244_v54 = vpop.f32.mrf.mxu0  ;;  %12447 = vmatmul.mubr.msk.bf16.gmra.mxu0 %vm1935_vm1, %v4521_v45  ;;  %v4138_v45 = vld [vmem:[#allocation2 + $0x78] sm:$0xff]  ;;  %v4198_v53 = vpack.c.bf16 %v4141_v37, %v4140_v0 }
 0x10b   : > { %v2438_v27 = vpop.f32.mrf.mxu1  ;;  %12450 = vmatprep.mubr.msk.bf16.mxu0 %vm1935_vm1, %v4522_v48  ;;  %v4524_v10 = vpack.c.bf16 %v4499_v59, %v4466_v57  ;;  %v18773_v59 = vld [vmem:[#allocation55_spill] sm:$0xff] }
 0x10c   : > { %v2439_v34 = vadd.f32 %v2438_v27, %v14490_v31  ;;  %v14604_v56 = vadd.f32 %v12241_v35, %v2447_v28  ;;  %v2745_v29 = vpop.f32.mrf.mxu0  ;;  %v4523_v31 = vpack.c.bf16 %v4497_v62, %v4464_v46  ;;  %v18772_v62 = vld [vmem:[#allocation53_spill] sm:$0xff] }
 0x10d   : > { %v12210_v39 = vpop.f32.mrf.mxu1  ;;  %12413 = vmatmul.mubr.msk.bf16.gmra.mxu1 %vm1935_vm1, %v4195_v3  ;;  %v4501_v46 = vmul.f32 %v18772_v62, %v4469_v20  ;;  %v4145_v20 = vld [vmem:[#allocation2 + $0xb0] sm:$0xff] }
 0x10e   : > { %v2460_v1 = vadd.f32 %v12210_v39, %v14494_v26  ;;  %12416 = vmatprep.mubr.msk.bf16.mxu1 %vm1935_vm1, %v4196_v6  ;;  %v14609_v42 = vadd.f32 %v2732_v63, %v2439_v34  ;;  %v12245_v48 = vpop.f32.mrf.mxu0  ;;  %v4197_v26 = vpack.c.bf16 %v4139_v55, %v4138_v45  ;;  %v4471_v39 = vld [vmem:[#allocation2 + $0xb1] sm:$0xff] }
 0x10f   : > { %v2451_v27 = vpop.f32.mrf.mxu1  ;;  %v4503_v57 = vmul.f32 %v18773_v59, %v4471_v39  ;;  %v4473_v39 = vld [vmem:[#allocation2 + $0xc1] sm:$0xff] }
 0x110   : > { %v2452_v35 = vadd.f32 %v2451_v27, %v14511_v15  ;;  %v14612_v3 = vadd.f32 %v12244_v54, %v2460_v1  ;;  %v2748_v28 = vpop.f32.mrf.mxu0  ;;  %v4468_v54 = vld [vmem:[#allocation2 + $0x99] sm:$0xff] }
 0x111   : > { %v12211_v44 = vpop.f32.mrf.mxu1  ;;  %v4142_v27 = vld [vmem:[#allocation2 + $0x98] sm:$0xff] }
 0x112   : > { %v2463_v6 = vadd.f32 %v12211_v44, %v14519_v47  ;;  %v14615_v63 = vadd.f32 %v2745_v29, %v2452_v35  ;;  %v12248_v38 = vpop.f32.mrf.mxu0  ;;  %12451 = vmatmul.mubr.msk.bf16.gmra.mxu0 %vm1935_vm1, %v4523_v31  ;;  %v4470_v29 = vld [vmem:[#allocation2 + $0xa9] sm:$0xff]  ;;  %v4143_v31 = vld [vmem:[#allocation2 + $0xa0] sm:$0xff]  ;;  %v4525_v35 = vpack.c.bf16 %v4501_v46, %v4468_v54  ;;  %v18774_v46 = vld [vmem:[#allocation62_spill] sm:$0xff] }
 0x113   : > { %v2454_v34 = vpop.f32.mrf.mxu1  ;;  %12454 = vmatprep.mubr.msk.bf16.mxu0 %vm1935_vm1, %v4524_v10  ;;  %v4144_v10 = vld [vmem:[#allocation2 + $0xa8] sm:$0xff]  ;;  %v4526_v44 = vpack.c.bf16 %v4503_v57, %v4470_v29  ;;  %v4505_v54 = vmul.f32 %v18774_v46, %v4473_v39  ;;  %v18775_v57 = vld [vmem:[#allocation70_spill] sm:$0xff] }
 0x114   : > { %v2455_v15 = vadd.f32 %v2454_v34, %v14523_v8  ;;  %v14622_v1 = vadd.f32 %v12245_v48, %v2463_v6  ;;  %v2761_v47 = vpop.f32.mrf.mxu0  ;;  %v4200_v59 = vpack.c.bf16 %v4145_v20, %v4144_v10  ;;  %v4149_v39 = vld [vmem:[#allocation2 + $0xd0] sm:$0xff] }
 0x115   : > { %v12214_v45 = vpop.f32.mrf.mxu1  ;;  %12417 = vmatmul.mubr.msk.bf16.gmra.mxu1 %vm1935_vm1, %v4197_v26 }
 0x116   : > { %v2476_v55 = vadd.f32 %v12214_v45, %v14529_v2  ;;  %12420 = vmatprep.mubr.msk.bf16.mxu1 %vm1935_vm1, %v4198_v53  ;;  %v14627_v0 = vadd.f32 %v2748_v28, %v2455_v15  ;;  %v12249_v37 = vpop.f32.mrf.mxu0  ;;  %v4199_v2 = vpack.c.bf16 %v4143_v31, %v4142_v27  ;;  %v4475_v45 = vld [vmem:[#allocation2 + $0xd1] sm:$0xff] }
 0x117   : > { %v2467_v8 = vpop.f32.mrf.mxu1  ;;  %v4507_v29 = vmul.f32 %v18775_v57, %v4475_v45  ;;  %v4477_v45 = vld [vmem:[#allocation2 + $0xe1] sm:$0xff] }
 0x118   : > { %v2468_v48 = vadd.f32 %v2467_v8, %v14543_v24  ;;  %v14630_v26 = vadd.f32 %v12248_v38, %v2476_v55  ;;  %v2764_v34 = vpop.f32.mrf.mxu0  ;;  %v4472_v38 = vld [vmem:[#allocation2 + $0xb9] sm:$0xff] }
 0x119   : > { %v12215_v6 = vpop.f32.mrf.mxu1  ;;  %v4146_v8 = vld [vmem:[#allocation2 + $0xb8] sm:$0xff] }
 0x11a   : > { %v2479_v53 = vadd.f32 %v12215_v6, %v14555_v43  ;;  %v14633_v28 = vadd.f32 %v2761_v47, %v2468_v48  ;;  %v12252_v62 = vpop.f32.mrf.mxu0  ;;  %12455 = vmatmul.mubr.msk.bf16.gmra.mxu0 %vm1935_vm1, %v4525_v35  ;;  %v4474_v47 = vld [vmem:[#allocation2 + $0xc9] sm:$0xff]  ;;  %v4147_v35 = vld [vmem:[#allocation2 + $0xc0] sm:$0xff]  ;;  %v4527_v48 = vpack.c.bf16 %v4505_v54, %v4472_v38 }
 0x11b   : > { %v2470_v15 = vpop.f32.mrf.mxu1  ;;  %12458 = vmatprep.mubr.msk.bf16.mxu0 %vm1935_vm1, %v4526_v44  ;;  %v4148_v44 = vld [vmem:[#allocation2 + $0xc8] sm:$0xff] }
 0x11c   : > { %v2471_v24 = vadd.f32 %v2470_v15, %v14559_v52  ;;  %v14640_v55 = vadd.f32 %v12249_v37, %v2479_v53  ;;  %v2777_v43 = vpop.f32.mrf.mxu0  ;;  %v13125_v52 = vld [vmem:[%s18157_s3 + $0x8] sm:$0xff]   ;;  %v4479_v15 = vld [vmem:[#allocation2 + $0xf1] sm:$0xff] }
 0x11d   : > { %v12218_v27 = vpop.f32.mrf.mxu1  ;;  %12421 = vmatmul.mubr.msk.bf16.gmra.mxu1 %vm1935_vm1, %v4199_v2  ;;  %v4528_v2 = vpack.c.bf16 %v4507_v29, %v4474_v47  ;;  %12474 = vmatprep.subr.bf16.mxu1 %v13125_v52  ;;  %v4476_v47 = vld [vmem:[#allocation2 + $0xd9] sm:$0xff] }
 0x11e   : > { %v2492_v31 = vadd.f32 %v12218_v27, %v14564_v61  ;;  %12424 = vmatprep.mubr.msk.bf16.mxu1 %vm1935_vm1, %v4200_v59  ;;  %v14645_v10 = vadd.f32 %v2764_v34, %v2471_v24  ;;  %v12253_v37 = vpop.f32.mrf.mxu0  ;;  %v4201_v34 = vpack.c.bf16 %v4147_v35, %v4146_v8  ;;  %12475 = vmatpush3.bf16.msra.mxu1 %v13125_v52 }
 0x11f   : > { %v2483_v20 = vpop.f32.mrf.mxu1  ;;  %v4202_v27 = vpack.c.bf16 %v4149_v39, %v4148_v44  ;;  %v4151_v44 = vld [vmem:[#allocation2 + $0xe0] sm:$0xff] }
 0x120   : > { %v2484_v6 = vadd.f32 %v2483_v20, %v14573_v11  ;;  %v14651_v61 = vadd.f32 %v12252_v62, %v2492_v31  ;;  %v2780_v53 = vpop.f32.mrf.mxu0  ;;  %v18776_v11 = vld [vmem:[#allocation74_spill] sm:$0xff] }
 0x121   : > { %v12219_v59 = vpop.f32.mrf.mxu1  ;;  %v4509_v29 = vmul.f32 %v18776_v11, %v4477_v45  ;;  %v18777_v31 = vld [vmem:[#allocation94_spill] sm:$0xff]  ;;  %v4152_v45 = vld [vmem:[#allocation2 + $0xe8] sm:$0xff]  ;;  %v4159_v11 = vld [vmem:[#allocation2 + $0x120] sm:$0xff] }
 0x122   : > { %v2495_v24 = vadd.f32 %v12219_v59, %v14578_v41  ;;  %v14654_v57 = vadd.f32 %v2777_v43, %v2484_v6  ;;  %v12256_v38 = vpop.f32.mrf.mxu0  ;;  %12459 = vmatmul.mubr.msk.bf16.gmra.mxu0 %vm1935_vm1, %v4527_v48  ;;  %v4511_v8 = vmul.f32 %v18777_v31, %v4479_v15  ;;  %v4478_v43 = vld [vmem:[#allocation2 + $0xe9] sm:$0xff]  ;;  %v4150_v48 = vld [vmem:[#allocation2 + $0xd8] sm:$0xff] }
 0x123   : > { %v2486_v54 = vpop.f32.mrf.mxu1  ;;  %12462 = vmatprep.mubr.msk.bf16.mxu0 %vm1935_vm1, %v4528_v2  ;;  %v4529_v2 = vpack.c.bf16 %v4509_v29, %v4476_v47  ;;  %v4153_v59 = vld [vmem:[#allocation2 + $0xf0] sm:$0xff]  ;;  %v18778_v47 = vld [vmem:[#allocation99_spill] sm:$0xff] }
 0x124   : > { %v2487_v62 = vadd.f32 %v2486_v54, %v14582_v25  ;;  %v14661_v35 = vadd.f32 %v12253_v37, %v2495_v24  ;;  %v2793_v41 = vpop.f32.mrf.mxu0  ;;  %v4530_v15 = vpack.c.bf16 %v4511_v8, %v4478_v43  ;;  %v4481_v24 = vld [vmem:[#allocation2 + $0x101] sm:$0xff]  ;;  %v4515_v8 = vmul.f32 %v14148_v13, %v14525_v16 }
 0x125   : > { %v12222_v52 = vpop.f32.mrf.mxu1  ;;  %12425 = vmatmul.mubr.msk.bf16.gmra.mxu1 %vm1935_vm1, %v4201_v34 }
 0x126   : > { %v2508_v20 = vadd.f32 %v12222_v52, %v14472_v4  ;;  %12428 = vmatprep.mubr.msk.bf16.mxu1 %vm1935_vm1, %v4202_v27  ;;  %v14666_v39 = vadd.f32 %v2780_v53, %v2487_v62  ;;  %v12257_v6 = vpop.f32.mrf.mxu0  ;;  %v4203_v4 = vpack.c.bf16 %v4151_v44, %v4150_v48  ;;  %v4204_v52 = vpack.c.bf16 %v4153_v59, %v4152_v45  ;;  %v4154_v48 = vld [vmem:[#allocation2 + $0xf8] sm:$0xff]  ;;  %v4155_v44 = vld [vmem:[#allocation2 + $0x100] sm:$0xff]  ;;  %v4156_v59 = vld [vmem:[#allocation2 + $0x108] sm:$0xff] }
 0x127   : > { %v2499_v25 = vpop.f32.mrf.mxu1  ;;  %v4532_v16 = vpack.c.bf16 %v4515_v8, %v14551_v49 }
 0x128   : > { %v2500_v37 = vadd.f32 %v2499_v25, %v14484_v9  ;;  %v14669_v34 = vadd.f32 %v12256_v38, %v2508_v20  ;;  %v14671_v31 = vpop.f32.mrf.mxu0  ;;  %v4513_v9 = vmul.f32 %v18778_v47, %v4481_v24  ;;  %v4480_v38 = vld [vmem:[#allocation2 + $0xf9] sm:$0xff]  ;;  %v4485_v24 = vld [vmem:[#allocation2 + $0x121] sm:$0xff] }
 0x129   : > { %v12223_v54 = vpop.f32.mrf.mxu1  ;;  %v4158_v47 = vld [vmem:[#allocation2 + $0x118] sm:$0xff]  ;;  %v4517_v8 = vmul.f32 0.0, %v4485_v24 }
 0x12a   : > { %v2511_v27 = vadd.f32 %v12223_v54, %v14488_v19  ;;  %v14674_v53 = vadd.f32 %v2793_v41, %v2500_v37  ;;  %v12260_v29 = vpop.f32.mrf.mxu0  ;;  %12463 = vmatmul.mubr.msk.bf16.gmra.mxu0 %vm1935_vm1, %v4529_v2  ;;  %v4531_v45 = vpack.c.bf16 %v4513_v9, %v4480_v38  ;;  %v4157_v37 = vld [vmem:[#allocation2 + $0x110] sm:$0xff] }
 0x12b   : > { %v14676_v62 = vpop.f32.mrf.mxu1  ;;  %12466 = vmatprep.mubr.msk.bf16.mxu0 %vm1935_vm1, %v4530_v15 }
 0x12c   : > { %v14683_v43 = vadd.f32 %v12257_v6, %v2511_v27  ;;  %v2809_v19 = vpop.f32.mrf.mxu0  ;;  %v4484_v6 = vld [vmem:[#allocation2 + $0x119] sm:$0xff] }
 0x12d   : > { %v12226_v20 = vpop.f32.mrf.mxu1  ;;  %12429 = vmatmul.mubr.msk.bf16.gmra.mxu1 %vm1935_vm1, %v4203_v4  ;;  %v4516_v49 = vmul.f32 0.0, %v4484_v6 }
 0x12e   : > { %v2524_v41 = vadd.f32 %v12226_v20, %v14505_v40  ;;  %12432 = vmatprep.mubr.msk.bf16.mxu1 %vm1935_vm1, %v4204_v52  ;;  %v12261_v2 = vpop.f32.mrf.mxu0  ;;  %v4205_v40 = vpack.c.bf16 %v4155_v44, %v4154_v48  ;;  %v4206_v20 = vpack.c.bf16 %v4157_v37, %v4156_v59  ;;  %v4190_v48 = vmul.f32 0.0, %v4158_v47 }
 0x12f   : > { %v2515_v25 = vpop.f32.mrf.mxu1  ;;  %v4191_v44 = vmul.f32 0.0, %v4159_v11  ;;  %v4533_v37 = vpack.c.bf16 %v4517_v8, %v4516_v49 }
 0x130   : > { %v2516_v15 = vadd.f32 %v2515_v25, %v14517_v23  ;;  %v14690_v54 = vadd.f32 %v12260_v29, %v2524_v41  ;;  %v14692_v27 = vpop.f32.mrf.mxu0 }
 0x131   : > { %v12227_v4 = vpop.f32.mrf.mxu1  ;;  %v4207_v6 = vpack.c.bf16 %v4191_v44, %v4190_v48 }
 0x132   : > { %v2527_v52 = vadd.f32 %v12227_v4, %v14521_v22  ;;  %v14695_v9 = vadd.f32 %v2809_v19, %v2516_v15  ;;  %v12264_v23 = vpop.f32.mrf.mxu0  ;;  %12467 = vmatmul.mubr.msk.bf16.gmra.mxu0 %vm1935_vm1, %v4531_v45 }
 0x133   : > { %v14697_v38 = vpop.f32.mrf.mxu1  ;;  %12470 = vmatprep.mubr.msk.bf16.mxu0 %vm1935_vm1, %v4532_v16 }
 0x134   : > { %v14701_v29 = vadd.f32 %v12261_v2, %v2527_v52  ;;  %v2825_v22 = vpop.f32.mrf.mxu0 }
 0x135   : > { %v12230_v41 = vpop.f32.mrf.mxu1  ;;  %12433 = vmatmul.mubr.msk.bf16.gmra.mxu1 %vm1935_vm1, %v4205_v40 }
 0x136   : > { %v2540_v19 = vadd.f32 %v12230_v41, %v14537_v12  ;;  %12436 = vmatprep.mubr.msk.bf16.mxu1 %vm1935_vm1, %v4206_v20  ;;  %v12265_v59 = vpop.f32.mrf.mxu0 }
 0x137   : > { %v2531_v25 = vpop.f32.mrf.mxu1 }
 0x138   : > { %v2532_v45 = vadd.f32 %v2531_v25, %v14553_v60  ;;  %v14707_v15 = vadd.f32 %v12264_v23, %v2540_v19  ;;  %v14709_v2 = vpop.f32.mrf.mxu0 }
 0x139   : > { %v12231_v16 = vpop.f32.mrf.mxu1 }
 0x13a   : > { %v2543_v24 = vadd.f32 %v12231_v16, %v14557_v50  ;;  %v14712_v4 = vadd.f32 %v2825_v22, %v2532_v45  ;;  %v12268_v12 = vpop.f32.mrf.mxu0  ;;  %12471 = vmatmul.mubr.msk.bf16.gmra.mxu0 %vm1935_vm1, %v4533_v37 }
 0x13b   : > { %v14714_v11 = vpop.f32.mrf.mxu1 }
 0x13c   : > { %v14717_v47 = vadd.f32 %v12265_v59, %v2543_v24  ;;  %v2841_v60 = vpop.f32.mrf.mxu0 }
 0x13d   : > { %v12234_v40 = vpop.f32.mrf.mxu1  ;;  %12437 = vmatmul.mubr.msk.bf16.gmra.mxu1 %vm1935_vm1, %v4207_v6  ;;  %vm7802_vm1 = vcmask 261120  }
 0x13e   : > { %v2556_v52 = vadd.f32 %v12234_v40, %v14570_v7  ;;  %v12269_v23 = vpop.f32.mrf.mxu0 }
 0x13f   : > { %v2547_v20 = vpop.f32.mrf.mxu1 }
 0x140   : > { %v2548_v49 = vadd.f32 %v2547_v20, %v14576_v33  ;;  %v14722_v50 = vadd.f32 %v12268_v12, %v2556_v52  ;;  %v14724_v41 = vpop.f32.mrf.mxu0 }
 0x141   : > { %v12235_v8 = vpop.f32.mrf.mxu1 }
 0x142   : > { %v2559_v22 = vadd.f32 %v12235_v8, %v14580_v21  ;;  %v14727_v48 = vadd.f32 %v2841_v60, %v2548_v49  ;;  %v12308_v19 = vpop.f32.mrf.mxu0  ;;  %v18779_v49 = vmov 0.0  }
 0x143   : > { %v14729_v44 = vpop.f32.mrf.mxu1  ;;  %4852 = vst.msk [vmem:[#allocation3] sm:$0xff] %vm4851_vm0, %v18779_v49  ;;  %4853 = vst.msk [vmem:[#allocation3 + $0x8] sm:$0xff] %vm4851_vm0, %v18779_v49 }
 0x144   : > { %v14731_v25 = vadd.f32 %v12269_v23, %v2559_v22  ;;  %v3317_v7 = vpop.f32.mrf.mxu0  ;;  %4854 = vst.msk [vmem:[#allocation3 + $0x10] sm:$0xff] %vm4851_vm0, %v18779_v49  ;;  %4855 = vst.msk [vmem:[#allocation3 + $0x118] sm:$0xff] %vm4851_vm0, %v18779_v49 }
 0x145   : > { %v12274_v59 = vpop.f32.mrf.mxu1  ;;  %4856 = vst.msk [vmem:[#allocation3 + $0x120] sm:$0xff] %vm4851_vm0, %v18779_v49  ;;  %4857 = vst.msk [vmem:[#allocation3 + $0x128] sm:$0xff] %vm4851_vm0, %v18779_v49 }
 0x146   : > { %v3184_v37 = vadd.f32 %v12274_v59, %v14594_v36  ;;  %v12309_v33 = vpop.f32.mrf.mxu0 }
 0x147   : > { %v3055_v45 = vpop.f32.mrf.mxu1 }
 0x148   : > { %v3182_v16 = vadd.f32 %v3055_v45, %v14597_v18  ;;  %v14735_v6 = vadd.f32 %v12308_v19, %v3184_v37  ;;  %v14737_v12 = vpop.f32.mrf.mxu0 }
 0x149   : > { %v12275_v24 = vpop.f32.mrf.mxu1 }
 0x14a   : > { %v3185_v21 = vadd.f32 %v12275_v24, %v14604_v56  ;;  %v14740_v40 = vadd.f32 %v3317_v7, %v3182_v16  ;;  %v12312_v52 = vpop.f32.mrf.mxu0 }
 0x14b   : > { %v14742_v60 = vpop.f32.mrf.mxu1  ;;  %v4891_v13 = vld [vmem:[#allocation3 + $0xf] sm:$0xff] }
 0x14c   : > { %v14744_v20 = vadd.f32 %v12309_v33, %v3185_v21  ;;  %v3333_v23 = vpop.f32.mrf.mxu0 }
 0x14d   : > { %v12278_v36 = vpop.f32.mrf.mxu1 }
 0x14e   : > { %v3188_v18 = vadd.f32 %v12278_v36, %v14612_v3  ;;  %v12313_v8 = vpop.f32.mrf.mxu0 }
 0x14f   : > { %v3071_v56 = vpop.f32.mrf.mxu1 }
 0x150   : > { %v3186_v22 = vadd.f32 %v3071_v56, %v14615_v63  ;;  %v14760_v19 = vadd.f32 %v12312_v52, %v3188_v18  ;;  %v14762_v7 = vpop.f32.mrf.mxu0 }
 0x151   : > { %v12279_v59 = vpop.f32.mrf.mxu1 }
 0x152   : > { %v3189_v37 = vadd.f32 %v12279_v59, %v14622_v1  ;;  %v14765_v45 = vadd.f32 %v3333_v23, %v3186_v22  ;;  %v12316_v16 = vpop.f32.mrf.mxu0  ;;  %v13126_v1 = vld [vmem:[%s18157_s3] sm:$0xff]   ;;  %v4972_v23 = vld [vmem:[#allocation3 + $0x8] sm:$0xff] }
 0x153   : > { %v14767_v33 = vpop.f32.mrf.mxu1  ;;  %12508 = vmatprep.subr.bf16.mxu0 %v13126_v1 }
 0x154   : > { %v14769_v24 = vadd.f32 %v12313_v8, %v3189_v37  ;;  %v3349_v3 = vpop.f32.mrf.mxu0  ;;  %v4973_v8 = vld [vmem:[#allocation3 + $0x10] sm:$0xff]  ;;  %12509 = vmatpush3.bf16.msra.mxu0 %v13126_v1 }
 0x155   : > { %v12282_v21 = vpop.f32.mrf.mxu1  ;;  %v5005_v37 = vmul.f32 0.0, %v4973_v8 }
 0x156   : > { %18780 = vst [vmem:[#allocation40_spill] sm:$0xff] %v14769_v24  ;;  %v3192_v36 = vadd.f32 %v12282_v21, %v14630_v26  ;;  %v12317_v63 = vpop.f32.mrf.mxu0  ;;  %v5004_v26 = vmul.f32 0.0, %v4972_v23  ;;  %v4890_v21 = vld [vmem:[#allocation3 + $0x7] sm:$0xff] }
 0x157   : > { %v3087_v49 = vpop.f32.mrf.mxu1 }
 0x158   : > { %v3190_v52 = vadd.f32 %v3087_v49, %v14633_v28  ;;  %v14773_v18 = vadd.f32 %v12316_v16, %v3192_v36  ;;  %v14775_v46 = vpop.f32.mrf.mxu0  ;;  %v4922_v16 = vmul.f32 0.0, %v4890_v21  ;;  %v4923_v36 = vmul.f32 0.0, %v4891_v13 }
 0x159   : > { %v12283_v56 = vpop.f32.mrf.mxu1  ;;  %v5036_v5 = vpack.c.bf16 %v5005_v37, %v5004_v26 }
 0x15a   : > { %18781 = vst [vmem:[#allocation48_spill] sm:$0xff] %v14773_v18  ;;  %v3193_v22 = vadd.f32 %v12283_v56, %v14640_v55  ;;  %v14781_v59 = vadd.f32 %v3349_v3, %v3190_v52  ;;  %v12320_v49 = vpop.f32.mrf.mxu0  ;;  %v4954_v24 = vpack.c.bf16 %v4923_v36, %v4922_v16 }
 0x15b   : > { %v14783_v28 = vpop.f32.mrf.mxu1  ;;  %12476 = vmatprep.mubr.msk.bf16.mxu1 %vm4851_vm0, %v5036_v5 }
 0x15c   : > { %v14785_v51 = vadd.f32 %v12317_v63, %v3193_v22  ;;  %v3365_v18 = vpop.f32.mrf.mxu0  ;;  %12510 = vmatprep.mubr.msk.bf16.mxu0 %vm4851_vm0, %v4954_v24 }
 0x15d   : > { %v12286_v58 = vpop.f32.mrf.mxu1 }
 0x15e   : > { %18782 = vst [vmem:[#allocation7_spill] sm:$0xff] %v14785_v51  ;;  %v3196_v55 = vadd.f32 %v12286_v58, %v14651_v61  ;;  %v12321_v52 = vpop.f32.mrf.mxu0 }
 0x15f   : > { %v3103_v3 = vpop.f32.mrf.mxu1 }
 0x160   : > { %v3194_v56 = vadd.f32 %v3103_v3, %v14654_v57  ;;  %v14791_v23 = vadd.f32 %v12320_v49, %v3196_v55  ;;  %v14793_v63 = vpop.f32.mrf.mxu0  ;;  %v14806_v57 = vld [vmem:[%s18157_s3 + $0x10] sm:$0xff]  }
 0x161   : > { %v12287_v13 = vpop.f32.mrf.mxu1  ;;  %18786 = vst [vmem:[#allocation12_spill] sm:$0xff] %v14806_v57  ;;  %12542 = vmatprep.subr.bf16.mxu1 %v14806_v57 }
 0x162   : > { %18783 = vst [vmem:[#allocation6_spill] sm:$0xff] %v14791_v23  ;;  %v3197_v1 = vadd.f32 %v12287_v13, %v14661_v35  ;;  %v14796_v8 = vadd.f32 %v3365_v18, %v3194_v56  ;;  %v12324_v58 = vpop.f32.mrf.mxu0 }
 0x163   : > { %v14798_v22 = vpop.f32.mrf.mxu1 }
 0x164   : > { %18784 = vst [vmem:[#allocation51_spill] sm:$0xff] %v14796_v8  ;;  %v14800_v61 = vadd.f32 %v12321_v52, %v3197_v1  ;;  %v3381_v26 = vpop.f32.mrf.mxu0 }
 0x165   : > { %v12290_v5 = vpop.f32.mrf.mxu1 }
 0x166   : > { %18785 = vst [vmem:[#allocation13_spill] sm:$0xff] %v14800_v61  ;;  %v3200_v24 = vadd.f32 %v12290_v5, %v14669_v34  ;;  %v12325_v21 = vpop.f32.mrf.mxu0 }
 0x167   : > { %v3119_v37 = vpop.f32.mrf.mxu1 }
 0x168   : > { %v3198_v35 = vadd.f32 %v3119_v37, %v14674_v53  ;;  %v14809_v18 = vadd.f32 %v12324_v58, %v3200_v24  ;;  %v14812_v16 = vpop.f32.mrf.mxu0 }
 0x169   : > { %v12291_v49 = vpop.f32.mrf.mxu1 }
 0x16a   : > { %18787 = vst [vmem:[#allocation60_spill] sm:$0xff] %v14809_v18  ;;  %v3201_v36 = vadd.f32 %v12291_v49, %v14683_v43  ;;  %v14815_v55 = vadd.f32 %v3381_v26, %v3198_v35  ;;  %v12328_v3 = vpop.f32.mrf.mxu0 }
 0x16b   : > { %v14817_v34 = vpop.f32.mrf.mxu1 }
 0x16c   : > { %18788 = vst [vmem:[#allocation15_spill] sm:$0xff] %v14815_v55  ;;  %v14819_v52 = vadd.f32 %v12325_v21, %v3201_v36  ;;  %v3397_v13 = vpop.f32.mrf.mxu0  ;;  %v14905_v55 = vld [vmem:[%s18157_s3 + $0x18] sm:$0xff]  }
 0x16d   : > { %v12294_v56 = vpop.f32.mrf.mxu1  ;;  %18805 = vst [vmem:[#allocation23_spill] sm:$0xff] %v14905_v55  ;;  %12576 = vmatprep.subr.bf16.mxu0 %v14905_v55 }
 0x16e   : > { %18789 = vst [vmem:[#allocation14_spill] sm:$0xff] %v14819_v52  ;;  %v3204_v53 = vadd.f32 %v12294_v56, %v14690_v54  ;;  %v12329_v58 = vpop.f32.mrf.mxu0 }
 0x16f   : > { %v3135_v1 = vpop.f32.mrf.mxu1 }
 0x170   : > { %v3202_v5 = vadd.f32 %v3135_v1, %v14695_v9  ;;  %v14823_v24 = vadd.f32 %v12328_v3, %v3204_v53  ;;  %v14825_v57 = vpop.f32.mrf.mxu0 }
 0x171   : > { %v12295_v37 = vpop.f32.mrf.mxu1  ;;  %18791 = vst [vmem:[#allocation18_spill] sm:$0xff] %v14825_v57 }
 0x172   : > { %18790 = vst [vmem:[#allocation19_spill] sm:$0xff] %v14823_v24  ;;  %v3205_v43 = vadd.f32 %v12295_v37, %v14701_v29  ;;  %v14828_v26 = vadd.f32 %v3397_v13, %v3202_v5  ;;  %v12332_v21 = vpop.f32.mrf.mxu0 }
 0x173   : > { %v14830_v35 = vpop.f32.mrf.mxu1 }
 0x174   : > { %18792 = vst [vmem:[#allocation21_spill] sm:$0xff] %v14828_v26  ;;  %v14832_v49 = vadd.f32 %v12329_v58, %v3205_v43  ;;  %v3413_v54 = vpop.f32.mrf.mxu0 }
 0x175   : > { %v12298_v36 = vpop.f32.mrf.mxu1 }
 0x176   : > { %18793 = vst [vmem:[#allocation20_spill] sm:$0xff] %v14832_v49  ;;  %v3208_v56 = vadd.f32 %v12298_v36, %v14707_v15  ;;  %v12333_v9 = vpop.f32.mrf.mxu0 }
 0x177   : > { %v3151_v52 = vpop.f32.mrf.mxu1 }
 0x178   : > { %v3206_v3 = vadd.f32 %v3151_v52, %v14712_v4  ;;  %v14836_v53 = vadd.f32 %v12332_v21, %v3208_v56  ;;  %v14838_v24 = vpop.f32.mrf.mxu0 }
 0x179   : > { %v12299_v1 = vpop.f32.mrf.mxu1  ;;  %18795 = vst [vmem:[#allocation26_spill] sm:$0xff] %v14838_v24 }
 0x17a   : > { %18794 = vst [vmem:[#allocation27_spill] sm:$0xff] %v14836_v53  ;;  %v3209_v29 = vadd.f32 %v12299_v1, %v14717_v47  ;;  %v14841_v13 = vadd.f32 %v3413_v54, %v3206_v3  ;;  %v12336_v58 = vpop.f32.mrf.mxu0 }
 0x17b   : > { %v14843_v5 = vpop.f32.mrf.mxu1 }
 0x17c   : > { %18796 = vst [vmem:[#allocation29_spill] sm:$0xff] %v14841_v13  ;;  %v14845_v37 = vadd.f32 %v12333_v9, %v3209_v29  ;;  %v3429_v15 = vpop.f32.mrf.mxu0 }
 0x17d   : > { %v12302_v43 = vpop.f32.mrf.mxu1 }
 0x17e   : > { %18797 = vst [vmem:[#allocation28_spill] sm:$0xff] %v14845_v37  ;;  %v3212_v36 = vadd.f32 %v12302_v43, %v14722_v50  ;;  %v12337_v4 = vpop.f32.mrf.mxu0 }
 0x17f   : > { %v3167_v49 = vpop.f32.mrf.mxu1 }
 0x180   : > { %v3210_v52 = vadd.f32 %v3167_v49, %v14727_v48  ;;  %v14849_v21 = vadd.f32 %v12336_v58, %v3212_v36  ;;  %v14851_v53 = vpop.f32.mrf.mxu0 }
 0x181   : > { %v12303_v56 = vpop.f32.mrf.mxu1  ;;  %18799 = vst [vmem:[#allocation8_spill] sm:$0xff] %v14851_v53 }
 0x182   : > { %18798 = vst [vmem:[#allocation9_spill] sm:$0xff] %v14849_v21  ;;  %v3213_v47 = vadd.f32 %v12303_v56, %v14731_v25  ;;  %v14854_v54 = vadd.f32 %v3429_v15, %v3210_v52  ;;  %v14858_v9 = vpop.f32.mrf.mxu0 }
 0x183   : > { %v14856_v3 = vpop.f32.mrf.mxu1 }
 0x184   : > { %18800 = vst [vmem:[#allocation11_spill] sm:$0xff] %v14854_v54  ;;  %18801 = vst [vmem:[#allocation10_spill] sm:$0xff] %v14856_v3  ;;  %v14860_v1 = vadd.f32 %v12337_v4, %v3213_v47  ;;  %v14864_v29 = vpop.f32.mrf.mxu0 }
 0x185   : > { %v14862_v50 = vpop.f32.mrf.mxu1 }
 0x186   : > { %18802 = vst [vmem:[#allocation16_spill] sm:$0xff] %v14860_v1  ;;  %v14868_v49 = vpop.f32.mrf.mxu0 }
 0x187   : > { %v14866_v48 = vpop.f32.mrf.mxu1 }
 0x188   : > { %v14872_v43 = vpop.f32.mrf.mxu0 }
 0x189   : > { %v14870_v58 = vpop.f32.mrf.mxu1 }
 0x18a   : > { %v14876_v15 = vpop.f32.mrf.mxu0 }
 0x18b   : > { %v14874_v25 = vpop.f32.mrf.mxu1 }
 0x18c   : > { %v14880_v4 = vpop.f32.mrf.mxu0 }
 0x18d   : > { %v14878_v36 = vpop.f32.mrf.mxu1 }
 0x18e   : > { %v14884_v56 = vpop.f32.mrf.mxu0 }
 0x18f   : > { %v14882_v52 = vpop.f32.mrf.mxu1 }
 0x190   : > { %v14888_v1 = vpop.f32.mrf.mxu0 }
 0x191   : > { %v14886_v47 = vpop.f32.mrf.mxu1 }
 0x192   : > { %v14892_v21 = vpop.f32.mrf.mxu0 }
 0x193   : > { %v14890_v54 = vpop.f32.mrf.mxu1 }
 0x194   : > { %v14896_v53 = vpop.f32.mrf.mxu0 }
 0x195   : > { %v14894_v37 = vpop.f32.mrf.mxu1  ;;  %18803 = vst [vmem:[#allocation17_spill] sm:$0xff] %v14896_v53 }
 0x196   : > { %v14900_v26 = vpop.f32.mrf.mxu0 }
 0x197   : > { %v14898_v13 = vpop.f32.mrf.mxu1  ;;  %18804 = vst [vmem:[#allocation98_spill] sm:$0xff] %v14900_v26 }
 0x198   : > { %v14909_v61 = vpop.f32.mrf.mxu0 }
 0x199   : > { %v14907_v18 = vpop.f32.mrf.mxu1  ;;  %18807 = vst [vmem:[#allocation25_spill] sm:$0xff] %v14909_v61 }
 0x19a   : > { %18806 = vst [vmem:[#allocation22_spill] sm:$0xff] %v14907_v18  ;;  %v14914_v24 = vpop.f32.mrf.mxu0 }
 0x19b   : > { %v14912_v3 = vpop.f32.mrf.mxu1  ;;  %18809 = vst [vmem:[#allocation31_spill] sm:$0xff] %v14914_v24 }
 0x19c   : > { %18808 = vst [vmem:[#allocation24_spill] sm:$0xff] %v14912_v3  ;;  %v14918_v57 = vpop.f32.mrf.mxu0 }
 0x19d   : > { %v14916_v53 = vpop.f32.mrf.mxu1  ;;  %18811 = vst [vmem:[#allocation33_spill] sm:$0xff] %v14918_v57 }
 0x19e   : > { %18810 = vst [vmem:[#allocation30_spill] sm:$0xff] %v14916_v53  ;;  %v14922_v8 = vpop.f32.mrf.mxu0 }
 0x19f   : > { %v14920_v26 = vpop.f32.mrf.mxu1  ;;  %18813 = vst [vmem:[#allocation57_spill] sm:$0xff] %v14922_v8 }
 0x1a0   : > { %18812 = vst [vmem:[#allocation32_spill] sm:$0xff] %v14920_v26  ;;  %v14926_v51 = vpop.f32.mrf.mxu0 }
 0x1a1   : > { %v14924_v23 = vpop.f32.mrf.mxu1  ;;  %18815 = vst [vmem:[#allocation84_spill] sm:$0xff] %v14926_v51 }
 0x1a2   : > { %18814 = vst [vmem:[#allocation56_spill] sm:$0xff] %v14924_v23  ;;  %v14930_v61 = vpop.f32.mrf.mxu0 }
 0x1a3   : > { %v14928_v18 = vpop.f32.mrf.mxu1  ;;  %18817 = vst [vmem:[#allocation45_spill] sm:$0xff] %v14930_v61 }
 0x1a4   : > { %18816 = vst [vmem:[#allocation64_spill] sm:$0xff] %v14928_v18  ;;  %v14934_v3 = vpop.f32.mrf.mxu0 }
 0x1a5   : > { %v14932_v55 = vpop.f32.mrf.mxu1  ;;  %18819 = vst [vmem:[#allocation87_spill] sm:$0xff] %v14934_v3 }
 0x1a6   : > { %18818 = vst [vmem:[#allocation85_spill] sm:$0xff] %v14932_v55  ;;  %v14938_v53 = vpop.f32.mrf.mxu0 }
 0x1a7   : > { %v14936_v24 = vpop.f32.mrf.mxu1  ;;  %18821 = vst [vmem:[#allocation47_spill] sm:$0xff] %v14938_v53 }
 0x1a8   : > { %18820 = vst [vmem:[#allocation86_spill] sm:$0xff] %v14936_v24  ;;  %v14942_v26 = vpop.f32.mrf.mxu0 }
 0x1a9   : > { %v14940_v57 = vpop.f32.mrf.mxu1  ;;  %18823 = vst [vmem:[#allocation58_spill] sm:$0xff] %v14942_v26 }
 0x1aa   : > { %18822 = vst [vmem:[#allocation88_spill] sm:$0xff] %v14940_v57  ;;  %v14946_v23 = vpop.f32.mrf.mxu0 }
 0x1ab   : > { %v14944_v8 = vpop.f32.mrf.mxu1  ;;  %18825 = vst [vmem:[#allocation89_spill] sm:$0xff] %v14946_v23 }
 0x1ac   : > { %18824 = vst [vmem:[#allocation66_spill] sm:$0xff] %v14944_v8  ;;  %v14950_v18 = vpop.f32.mrf.mxu0 }
 0x1ad   : > { %v14948_v51 = vpop.f32.mrf.mxu1  ;;  %18827 = vst [vmem:[#allocation61_spill] sm:$0xff] %v14950_v18 }
 0x1ae   : > { %18826 = vst [vmem:[#allocation52_spill] sm:$0xff] %v14948_v51  ;;  %v14954_v55 = vpop.f32.mrf.mxu0 }
 0x1af   : > { %v14952_v61 = vpop.f32.mrf.mxu1  ;;  %18829 = vst [vmem:[#allocation71_spill] sm:$0xff] %v14954_v55 }
 0x1b0   : > { %18828 = vst [vmem:[#allocation63_spill] sm:$0xff] %v14952_v61  ;;  %v14958_v24 = vpop.f32.mrf.mxu0 }
 0x1b1   : > { %v14956_v3 = vpop.f32.mrf.mxu1  ;;  %18831 = vst [vmem:[#allocation65_spill] sm:$0xff] %v14958_v24 }
 0x1b2   : > { %18830 = vst [vmem:[#allocation39_spill] sm:$0xff] %v14956_v3  ;;  %v14962_v57 = vpop.f32.mrf.mxu0 }
 0x1b3   : > { %v14960_v53 = vpop.f32.mrf.mxu1  ;;  %18833 = vst [vmem:[#allocation75_spill] sm:$0xff] %v14962_v57 }
 0x1b4   : > { %18832 = vst [vmem:[#allocation68_spill] sm:$0xff] %v14960_v53  ;;  %v14966_v8 = vpop.f32.mrf.mxu0 }
 0x1b5   : > { %v14964_v26 = vpop.f32.mrf.mxu1  ;;  %18835 = vst [vmem:[#allocation80_spill] sm:$0xff] %v14966_v8  ;;  %v3183_v8 = vadd.f32 %v14742_v60, %v14609_v42  ;;  %v3773_v42 = vadd.f32 %v14870_v58, %v14744_v20 }
 0x1b6   : > { %18834 = vst [vmem:[#allocation67_spill] sm:$0xff] %v14964_v26  ;;  %v14970_v51 = vpop.f32.mrf.mxu0 }
 0x1b7   : > { %v14968_v23 = vpop.f32.mrf.mxu1  ;;  %18836 = vst [vmem:[#allocation91_spill] sm:$0xff] %v14970_v51  ;;  %v3772_v51 = vadd.f32 %v14862_v50, %v14735_v6  ;;  %v3445_v6 = vadd.f32 %v14737_v12, %v3183_v8  ;;  %v2535_v50 = vadd.f32 %v14714_v11, %v14562_v17  ;;  %v3191_v12 = vadd.f32 %v14783_v28, %v14645_v10 }
 0x1b8   : > { %v14974_v61 = vpop.f32.mrf.mxu0  ;;  %v3776_v17 = vadd.f32 %v14878_v36, %v14760_v19  ;;  %v3774_v19 = vadd.f32 %v14882_v52, %v14765_v45 }
 0x1b9   : > { %v14972_v18 = vpop.f32.mrf.mxu1  ;;  %18838 = vst [vmem:[#allocation72_spill] sm:$0xff] %v14974_v61  ;;  %v4098_v60 = vadd.f32 %v14858_v9, %v3772_v51  ;;  %v2881_v10 = vadd.f32 %v14709_v2, %v2535_v50  ;;  %v18845_v50 = vld [vmem:[#allocation48_spill] sm:$0xff] }
 0x1ba   : > { %18837 = vst [vmem:[#allocation92_spill] sm:$0xff] %v14972_v18  ;;  %v14978_v3 = vpop.f32.mrf.mxu0  ;;  %v4102_v45 = vadd.f32 %v14876_v15, %v3776_v17  ;;  %v3778_v17 = vadd.f32 %v14898_v13, %v14781_v59  ;;  %v18849_v59 = vld [vmem:[#allocation24_spill] sm:$0xff] }
 0x1bb   : > { %v14976_v55 = vpop.f32.mrf.mxu1  ;;  %18839 = vst [vmem:[#allocation81_spill] sm:$0xff] %v14978_v3  ;;  %v3770_v3 = vadd.f32 %v14866_v48, %v14740_v40  ;;  %v2551_v40 = vadd.f32 %v14729_v44, %v14584_v32  ;;  %v15024_v32 = vld [vmem:[%s18156_s2] ss:$0 sm:$0xff] }
 0x1bc   : > { %v14982_v53 = vpop.f32.mrf.mxu0 }
 0x1bd   : > { %v14980_v24 = vpop.f32.mrf.mxu1  ;;  %18841 = vst [vmem:[#allocation82_spill] sm:$0xff] %v14982_v53  ;;  %v2503_v53 = vadd.f32 %v14676_v62, %v14492_v30  ;;  %v3187_v30 = vadd.f32 %v14767_v33, %v14627_v0  ;;  %v4096_v20 = vadd.f32 %v14864_v29, %v3770_v3  ;;  %v4099_v3 = vadd.f32 %v14868_v49, %v3773_v42 }
 0x1be   : > { %18840 = vst [vmem:[#allocation76_spill] sm:$0xff] %v14980_v24  ;;  %v14986_v26 = vpop.f32.mrf.mxu0 }
 0x1bf   : > { %v14984_v57 = vpop.f32.mrf.mxu1  ;;  %18843 = vst [vmem:[#allocation100_spill] sm:$0xff] %v14986_v26  ;;  %v2519_v26 = vadd.f32 %v14697_v38, %v14527_v14  ;;  %v3771_v14 = vadd.f32 %v14874_v25, %v3445_v6  ;;  %v2873_v51 = vadd.f32 %v14671_v31, %v2503_v53  ;;  %v15030_v31 = vadd.f32 %v14724_v41, %v2551_v40  ;;  %v18844_v6 = vld [vmem:[#allocation40_spill] sm:$0xff] }
 0x1c0   : > { %18842 = vst [vmem:[#allocation93_spill] sm:$0xff] %v14984_v57  ;;  %v14994_v61 = vpop.f32.mrf.mxu0  ;;  %v3449_v28 = vadd.f32 %v14762_v7, %v3187_v30  ;;  %v3453_v41 = vadd.f32 %v14775_v46, %v3191_v12  ;;  %v4100_v46 = vadd.f32 %v14880_v4, %v3774_v19 }
 0x1c1   : > { %v14992_v18 = vpop.f32.mrf.mxu1  ;;  %v2877_v44 = vadd.f32 %v14692_v27, %v2519_v26  ;;  %v3195_v26 = vadd.f32 %v14798_v22, %v14666_v39  ;;  %v3199_v2 = vadd.f32 %v14817_v34, %v2873_v51  ;;  %v3780_v39 = vadd.f32 %v14894_v37, %v18845_v50  ;;  %v18857_v50 = vld [vmem:[#allocation17_spill] sm:$0xff] }
 0x1c2   : > { %v12444_v57 = vpop.f32.mrf.mxu0  ;;  %v3779_v13 = vadd.f32 %v18849_v59, %v3453_v41 }
 0x1c3   : > { %v15000_v24 = vpop.f32.mrf.mxu1 }
 0x1c4   : > { %v4621_v48 = vpop.f32.mrf.mxu0 }
 0x1c5   : > { %v12410_v62 = vpop.f32.mrf.mxu1 }
 0x1c6   : > { %v4424_v38 = vadd.f32 %v12410_v62, %v4098_v60  ;;  %v12445_v11 = vpop.f32.mrf.mxu0  ;;  %v3777_v60 = vadd.f32 %v14886_v47, %v18844_v6  ;;  %v3207_v47 = vadd.f32 %v14843_v5, %v2881_v10  ;;  %v18848_v10 = vld [vmem:[#allocation22_spill] sm:$0xff] }
 0x1c7   : > { %v4295_v0 = vpop.f32.mrf.mxu1 }
 0x1c8   : > { %v4750_v33 = vadd.f32 %v12444_v57, %v4424_v38  ;;  %v4422_v8 = vadd.f32 %v4295_v0, %v4096_v20  ;;  %v4624_v9 = vpop.f32.mrf.mxu0  ;;  %v4097_v57 = vadd.f32 %v14872_v43, %v3771_v14  ;;  %v3775_v43 = vadd.f32 %v14890_v54, %v3449_v28  ;;  %v18851_v28 = vld [vmem:[#allocation30_spill] sm:$0xff] }
 0x1c9   : > { %v12411_v53 = vpop.f32.mrf.mxu1  ;;  %v3457_v54 = vadd.f32 %v14793_v63, %v3195_v26  ;;  %v15055_v14 = vadd.f32 %v14812_v16, %v3199_v2  ;;  %v4106_v16 = vadd.f32 %v14892_v21, %v3780_v39  ;;  %v18853_v26 = vld [vmem:[#allocation51_spill] sm:$0xff]  ;;  %v18854_v2 = vld [vmem:[#allocation32_spill] sm:$0xff]  ;;  %v4104_v39 = vadd.f32 %v18857_v50, %v3778_v17 }
 0x1ca   : > { %v4789_v29 = vadd.f32 %v15024_v32, %v4750_v33  ;;  %v4748_v58 = vadd.f32 %v4621_v48, %v4422_v8  ;;  %v4425_v27 = vadd.f32 %v12411_v53, %v4099_v3  ;;  %v12448_v25 = vpop.f32.mrf.mxu0  ;;  %v3203_v48 = vadd.f32 %v14830_v35, %v2877_v44  ;;  %v18847_v3 = vld [vmem:[#allocation7_spill] sm:$0xff]  ;;  %v18863_v17 = vld [vmem:[#allocation56_spill] sm:$0xff] }
 0x1cb   : > { %v4298_v49 = vpop.f32.mrf.mxu1  ;;  %v4103_v35 = vadd.f32 %v14884_v56, %v3777_v60  ;;  %v4101_v63 = vadd.f32 %v14888_v1, %v3775_v43  ;;  %v3781_v19 = vadd.f32 %v18848_v10, %v18847_v3  ;;  %v18850_v56 = vld [vmem:[#allocation6_spill] sm:$0xff] }
 0x1cc   : > { %v4821_v7 = vmax.f32 %v4789_v29, 0.0  ;;  %v4787_v36 = vadd.f32 %v15024_v32, %v4748_v58  ;;  %v4751_v52 = vadd.f32 %v12445_v11, %v4425_v27  ;;  %v4423_v42 = vadd.f32 %v4298_v49, %v4097_v57  ;;  %v4637_v34 = vpop.f32.mrf.mxu0 }
 0x1cd   : > { %v12414_v22 = vpop.f32.mrf.mxu1  ;;  %v3784_v53 = vadd.f32 %v18851_v28, %v18850_v56  ;;  %v3782_v49 = vadd.f32 %v18854_v2, %v18853_v26  ;;  %v18866_v56 = vld [vmem:[#allocation60_spill] sm:$0xff]  ;;  %v18867_v28 = vld [vmem:[#allocation85_spill] sm:$0xff] }
 0x1ce   : > { %4860 = vst.msk [vmem:[#allocation3 + $0x28] sm:$0xff] %vm4851_vm0, %v4821_v7  ;;  %v4819_v15 = vmax.f32 %v4787_v36, 0.0  ;;  %v4790_v40 = vadd.f32 %v15024_v32, %v4751_v52  ;;  %v4749_v30 = vadd.f32 %v4624_v9, %v4423_v42  ;;  %v4428_v62 = vadd.f32 %v12414_v22, %v4102_v45  ;;  %v12449_v38 = vpop.f32.mrf.mxu0  ;;  %v18856_v45 = vld [vmem:[#allocation26_spill] sm:$0xff] }
 0x1cf   : > { %v4311_v37 = vpop.f32.mrf.mxu1  ;;  %v18858_v22 = vld [vmem:[#allocation10_spill] sm:$0xff] }
 0x1d0   : > { %4858 = vst.msk [vmem:[#allocation3 + $0x18] sm:$0xff] %vm4851_vm0, %v4819_v15  ;;  %v4822_v4 = vmax.f32 %v4790_v40, 0.0  ;;  %v4788_v20 = vadd.f32 %v15024_v32, %v4749_v30  ;;  %v4754_v12 = vadd.f32 %v12448_v25, %v4428_v62  ;;  %v4426_v51 = vadd.f32 %v4311_v37, %v4100_v46  ;;  %v4640_v0 = vpop.f32.mrf.mxu0  ;;  %v18855_v25 = vld [vmem:[#allocation18_spill] sm:$0xff] }
 0x1d1   : > { %v12415_v5 = vpop.f32.mrf.mxu1  ;;  %v15082_v41 = vadd.f32 %v18855_v25, %v3203_v48  ;;  %v18859_v30 = vld [vmem:[#allocation98_spill] sm:$0xff]  ;;  %v18860_v48 = vld [vmem:[#allocation25_spill] sm:$0xff]  ;;  %v18871_v25 = vld [vmem:[#allocation35_spill] sm:$0xff] }
 0x1d2   : > { %4861 = vst.msk [vmem:[#allocation3 + $0x30] sm:$0xff] %vm4851_vm0, %v4822_v4  ;;  %v15065_v11 = vpack.c.bf16 %v4822_v4, %v4821_v7  ;;  %v4820_v44 = vmax.f32 %v4788_v20, 0.0  ;;  %v4793_v33 = vadd.f32 %v15024_v32, %v4754_v12  ;;  %v4752_v8 = vadd.f32 %v4637_v34, %v4426_v51  ;;  %v12452_v29 = vpop.f32.mrf.mxu0  ;;  %v18861_v20 = vld [vmem:[#allocation31_spill] sm:$0xff]  ;;  %v18862_v51 = vld [vmem:[#allocation13_spill] sm:$0xff] }
 0x1d3   : > { %v4429_v9 = vadd.f32 %v12415_v5, %v4103_v35  ;;  %v4314_v1 = vpop.f32.mrf.mxu1  ;;  %v15085_v7 = vadd.f32 %v18856_v45, %v3207_v47  ;;  %v15092_v34 = vadd.f32 %v18858_v22, %v15030_v31  ;;  %v4107_v62 = vadd.f32 %v18859_v30, %v3781_v19  ;;  %v18864_v5 = vld [vmem:[#allocation64_spill] sm:$0xff] }
 0x1d4   : > { %18846 = vst [vmem:[#allocation95_spill] sm:$0xff] %v15065_v11  ;;  %4859 = vst.msk [vmem:[#allocation3 + $0x20] sm:$0xff] %vm4851_vm0, %v4820_v44  ;;  %v4825_v21 = vmax.f32 %v4793_v33, 0.0  ;;  %v15075_v58 = vadd.f32 %v15024_v32, %v4752_v8  ;;  %v4427_v27 = vadd.f32 %v4314_v1, %v4101_v63  ;;  %v15077_v57 = vpack.c.bf16 %v4820_v44, %v4819_v15  ;;  %v4653_v42 = vpop.f32.mrf.mxu0  ;;  %v18865_v33 = vld [vmem:[#allocation33_spill] sm:$0xff]  ;;  %v18869_v1 = vld [vmem:[#allocation86_spill] sm:$0xff] }
 0x1d5   : > { %v4755_v36 = vadd.f32 %v12449_v38, %v4429_v9  ;;  %v12418_v52 = vpop.f32.mrf.mxu1  ;;  %v4105_v47 = vadd.f32 %v18860_v48, %v3779_v13  ;;  %v4110_v31 = vadd.f32 %v18861_v20, %v3784_v53  ;;  %v3785_v35 = vadd.f32 %v18863_v17, %v18862_v51  ;;  %v18868_v9 = vld [vmem:[#allocation15_spill] sm:$0xff]  ;;  %v15147_v17 = vld [vmem:[%s18157_s3 + $0x28] sm:$0xff]  }
 0x1d6   : > { %18852 = vst [vmem:[#allocation83_spill] sm:$0xff] %v15077_v57  ;;  %4864 = vst.msk [vmem:[#allocation3 + $0x48] sm:$0xff] %vm4851_vm0, %v4825_v21  ;;  %v18335_v6 = vmax.f32 %v15075_v58, 0.0  ;;  %v4753_v60 = vadd.f32 %v4640_v0, %v4427_v27  ;;  %v4432_v43 = vadd.f32 %v12418_v52, %v4106_v16  ;;  %v12453_v40 = vpop.f32.mrf.mxu0  ;;  %v3783_v0 = vadd.f32 %v18864_v5, %v3457_v54  ;;  %v4976_v50 = vld [vmem:[#allocation3 + $0x28] sm:$0xff]  ;;  %v15142_v51 = vld [vmem:[%s18157_s3 + $0x20] sm:$0xff]  }
 0x1d7   : > { %v4794_v46 = vadd.f32 %v15024_v32, %v4755_v36  ;;  %v4327_v15 = vpop.f32.mrf.mxu1  ;;  %v15104_v12 = vld [vmem:[#allocation3 + $0x17] sm:$0xff]  ;;  %v4108_v8 = vadd.f32 %v18865_v33, %v3782_v49  ;;  %v3788_v53 = vadd.f32 %v18867_v28, %v18866_v56  ;;  %18873 = vst [vmem:[#allocation96_spill] sm:$0xff] %v15147_v17  ;;  %v18913_v11 = vld [vmem:[#allocation75_spill] sm:$0xff] }
 0x1d8   : > { %4862 = vst.msk [vmem:[#allocation3 + $0x38] sm:$0xff] %vm4851_vm0, %v18335_v6  ;;  %v15101_v37 = vadd.f32 %v15024_v32, %v4753_v60  ;;  %v4758_v38 = vadd.f32 %v12452_v29, %v4432_v43  ;;  %v4430_v4 = vadd.f32 %v4327_v15, %v4104_v39  ;;  %v4656_v44 = vpop.f32.mrf.mxu0  ;;  %v3786_v29 = vadd.f32 %v18869_v1, %v18868_v9  ;;  %v4974_v43 = vld [vmem:[#allocation3 + $0x18] sm:$0xff]  ;;  %v18877_v1 = vld [vmem:[#allocation14_spill] sm:$0xff] }
 0x1d9   : > { %v4826_v63 = vmax.f32 %v4794_v46, 0.0  ;;  %v12419_v16 = vpop.f32.mrf.mxu1  ;;  %v4977_v13 = vld [vmem:[#allocation3 + $0x30] sm:$0xff]  ;;  %v4924_v45 = vmul.f32 %v18871_v25, %v15104_v12 }
 0x1da   : > { %v18334_v3 = vmax.f32 %v15101_v37, 0.0  ;;  %v4797_v10 = vadd.f32 %v15024_v32, %v4758_v38  ;;  %v4756_v19 = vadd.f32 %v4653_v42, %v4430_v4  ;;  %v4433_v59 = vadd.f32 %v12419_v16, %v4107_v62  ;;  %v12456_v26 = vpop.f32.mrf.mxu0  ;;  %v18872_v62 = vld [vmem:[#allocation37_spill] sm:$0xff]  ;;  %v18875_v33 = vld [vmem:[#allocation84_spill] sm:$0xff] }
 0x1db   : > { %4865 = vst.msk [vmem:[#allocation3 + $0x50] sm:$0xff] %vm4851_vm0, %v4826_v63  ;;  %v15117_v54 = vpack.c.bf16 %v4826_v63, %v4825_v21  ;;  %v4330_v27 = vpop.f32.mrf.mxu1  ;;  %v4975_v2 = vld [vmem:[#allocation3 + $0x20] sm:$0xff]  ;;  %v5038_v30 = vpack.c.bf16 %v4977_v13, %v4976_v50  ;;  %v18876_v56 = vld [vmem:[#allocation12_spill] sm:$0xff]  ;;  %v18881_v50 = vld [vmem:[#allocation23_spill] sm:$0xff] }
 0x1dc   : > { %v15119_v49 = vld [vmem:[#allocation3 + $0x1f] sm:$0xff]  ;;  %v15123_v36 = vld [vmem:[#allocation3 + $0x27] sm:$0xff]  ;;  %4863 = vst.msk [vmem:[#allocation3 + $0x40] sm:$0xff] %vm4851_vm0, %v18334_v3  ;;  %v4829_v52 = vmax.f32 %v4797_v10, 0.0  ;;  %v15129_v42 = vadd.f32 %v15024_v32, %v4756_v19  ;;  %v4759_v21 = vadd.f32 %v12453_v40, %v4433_v59  ;;  %v4431_v60 = vadd.f32 %v4330_v27, %v4105_v47  ;;  %v4669_v22 = vpop.f32.mrf.mxu0  ;;  %v15137_v47 = vld [vmem:[#allocation3 + $0x2f] sm:$0xff] }
 0x1dd   : > { %18870 = vst [vmem:[#allocation101_spill] sm:$0xff] %v15117_v54  ;;  %v12422_v39 = vpop.f32.mrf.mxu1  ;;  %v5037_v46 = vpack.c.bf16 %v4975_v2, %v4974_v43  ;;  %v4955_v15 = vpack.c.bf16 %v15119_v49, %v4924_v45  ;;  %v4926_v48 = vmul.f32 %v18872_v62, %v15123_v36  ;;  %v18874_v16 = vld [vmem:[#allocation57_spill] sm:$0xff]  ;;  %v4109_v10 = vadd.f32 %v18875_v33, %v3783_v0 }
 0x1de   : > { %4868 = vst.msk [vmem:[#allocation3 + $0x68] sm:$0xff] %vm4851_vm0, %v4829_v52  ;;  %v18333_v38 = vmax.f32 %v15129_v42, 0.0  ;;  %v4798_v4 = vadd.f32 %v15024_v32, %v4759_v21  ;;  %v4757_v20 = vadd.f32 %v4656_v44, %v4431_v60  ;;  %v4436_v40 = vadd.f32 %v12422_v39, %v4110_v31  ;;  %v12457_v63 = vpop.f32.mrf.mxu0  ;;  %v18879_v45 = vld [vmem:[#allocation45_spill] sm:$0xff]  ;;  %v18880_v60 = vld [vmem:[#allocation87_spill] sm:$0xff] }
 0x1df   : > { %12477 = vmatmul.mubr.msk.bf16.vlgmr.msra.gmra.mxu1 %vm4851_vm0, %v5037_v46  ;;  %12511 = vmatmul.mubr.msk.bf16.vlgmr.msra.gmra.mxu0 %vm4851_vm0, %v4955_v15  ;;  %v4343_v5 = vpop.f32.mrf.mxu1  ;;  %v4956_v31 = vpack.c.bf16 %v15137_v47, %v4926_v48  ;;  %v4111_v44 = vadd.f32 %v18874_v16, %v3785_v35  ;;  %v15162_v9 = vld [vmem:[#allocation3 + $0x37] sm:$0xff]  ;;  %v4114_v21 = vadd.f32 %v18879_v45, %v3788_v53  ;;  %v18883_v53 = vld [vmem:[#allocation66_spill] sm:$0xff]  ;;  %v18884_v48 = vld [vmem:[#allocation19_spill] sm:$0xff] }
 0x1e0   : > { %4866 = vst.msk [vmem:[#allocation3 + $0x58] sm:$0xff] %vm4851_vm0, %v18333_v38  ;;  %v4830_v19 = vmax.f32 %v4798_v4, 0.0  ;;  %v15158_v59 = vadd.f32 %v15024_v32, %v4757_v20  ;;  %v4762_v13 = vadd.f32 %v12456_v26, %v4436_v40  ;;  %12543 = vmatpush3.bf16.msra.mxu1 %v18876_v56  ;;  %v4434_v28 = vadd.f32 %v4343_v5, %v4108_v8  ;;  %v18878_v35 = vld [vmem:[#allocation88_spill] sm:$0xff]  ;;  %v4672_v2 = vpop.f32.mrf.mxu0 }
 0x1e1   : > { %12480 = vmatprep.mubr.msk.bf16.mxu1 %vm4851_vm0, %v5038_v30  ;;  %v3789_v27 = vadd.f32 %v18878_v35, %v18877_v1  ;;  %12514 = vmatprep.mubr.msk.bf16.mxu0 %vm4851_vm0, %v4956_v31  ;;  %v12423_v0 = vpop.f32.mrf.mxu1  ;;  %v4112_v43 = vadd.f32 %v18880_v60, %v3786_v29  ;;  %v4978_v15 = vld [vmem:[#allocation3 + $0x38] sm:$0xff]  ;;  %v3787_v29 = vadd.f32 %v18883_v53, %v15055_v14  ;;  %v18888_v1 = vld [vmem:[#allocation63_spill] sm:$0xff] }
 0x1e2   : > { %12577 = vmatpush3.bf16.msra.mxu0 %v18881_v50  ;;  %4869 = vst.msk [vmem:[#allocation3 + $0x70] sm:$0xff] %vm4851_vm0, %v4830_v19  ;;  %v15171_v8 = vpack.c.bf16 %v4830_v19, %v4829_v52  ;;  %v18331_v26 = vmax.f32 %v15158_v59, 0.0  ;;  %v15175_v39 = vadd.f32 %v15024_v32, %v4762_v13  ;;  %v4760_v46 = vadd.f32 %v4669_v22, %v4434_v28  ;;  %v4981_v30 = vld [vmem:[#allocation3 + $0x50] sm:$0xff]  ;;  %v12460_v5 = vpop.f32.mrf.mxu0  ;;  %v18886_v22 = vld [vmem:[#allocation41_spill] sm:$0xff]  ;;  %v4980_v53 = vld [vmem:[#allocation3 + $0x48] sm:$0xff] }
 0x1e3   : > { %12610 = vmatprep.subr.bf16.mxu1 %v15142_v51  ;;  %12644 = vmatprep.subr.bf16.mxu0 %v15147_v17  ;;  %v18885_v4 = vld [vmem:[#allocation52_spill] sm:$0xff]  ;;  %v4437_v52 = vadd.f32 %v12423_v0, %v4111_v44  ;;  %v4346_v40 = vpop.f32.mrf.mxu1  ;;  %v4979_v31 = vld [vmem:[#allocation3 + $0x40] sm:$0xff]  ;;  %v4928_v33 = vmul.f32 %v18886_v22, %v15162_v9 }
 0x1e4   : > { %18882 = vst [vmem:[#allocation102_spill] sm:$0xff] %v15171_v8  ;;  %v3792_v20 = vadd.f32 %v18885_v4, %v18884_v48  ;;  %v15183_v16 = vld [vmem:[#allocation3 + $0x3f] sm:$0xff]  ;;  %v15187_v19 = vld [vmem:[#allocation3 + $0x47] sm:$0xff]  ;;  %4867 = vst.msk [vmem:[#allocation3 + $0x60] sm:$0xff] %vm4851_vm0, %v18331_v26  ;;  %v4833_v14 = vmax.f32 %v15175_v39, 0.0  ;;  %v15194_v13 = vadd.f32 %v15024_v32, %v4760_v46  ;;  %v4435_v44 = vadd.f32 %v4346_v40, %v4109_v10  ;;  %v4685_v60 = vpop.f32.mrf.mxu0 }
 0x1e5   : > { %v5039_v56 = vpack.c.bf16 %v4979_v31, %v4978_v15  ;;  %v18887_v28 = vld [vmem:[#allocation21_spill] sm:$0xff]  ;;  %v4763_v0 = vadd.f32 %v12457_v63, %v4437_v52  ;;  %v12426_v45 = vpop.f32.mrf.mxu1  ;;  %v4957_v50 = vpack.c.bf16 %v15183_v16, %v4928_v33  ;;  %v18889_v48 = vld [vmem:[#allocation43_spill] sm:$0xff]  ;;  %v5040_v10 = vpack.c.bf16 %v4981_v30, %v4980_v53  ;;  %v18905_v8 = vld [vmem:[#allocation50_spill] sm:$0xff] }
 0x1e6   : > { %v3790_v35 = vadd.f32 %v18888_v1, %v18887_v28  ;;  %v4930_v4 = vmul.f32 %v18889_v48, %v15187_v19  ;;  %4872 = vst.msk [vmem:[#allocation3 + $0x88] sm:$0xff] %vm4851_vm0, %v4833_v14  ;;  %v18332_v39 = vmax.f32 %v15194_v13, 0.0  ;;  %v4761_v46 = vadd.f32 %v4672_v2, %v4435_v44  ;;  %v15203_v15 = vld [vmem:[#allocation3 + $0x4f] sm:$0xff]  ;;  %v12461_v52 = vpop.f32.mrf.mxu0  ;;  %v18892_v44 = vld [vmem:[#allocation58_spill] sm:$0xff] }
 0x1e7   : > { %v4440_v26 = vadd.f32 %v12426_v45, %v4114_v21  ;;  %18890 = vst [vmem:[#allocation104_spill] sm:$0xff] %v15203_v15  ;;  %v4802_v40 = vadd.f32 %v15024_v32, %v4763_v0  ;;  %12481 = vmatmul.mubr.msk.bf16.gmra.mxu1 %vm4851_vm0, %v5039_v56  ;;  %12515 = vmatmul.mubr.msk.bf16.gmra.mxu0 %vm4851_vm0, %v4957_v50  ;;  %v4359_v63 = vpop.f32.mrf.mxu1  ;;  %v18891_v33 = vld [vmem:[#allocation47_spill] sm:$0xff]  ;;  %v15218_v1 = vld [vmem:[#allocation3 + $0x57] sm:$0xff] }
 0x1e8   : > { %v4958_v31 = vpack.c.bf16 %v15203_v15, %v4930_v4  ;;  %v4115_v28 = vadd.f32 %v18891_v33, %v3789_v27  ;;  %4870 = vst.msk [vmem:[#allocation3 + $0x78] sm:$0xff] %vm4851_vm0, %v18332_v39  ;;  %v15214_v2 = vadd.f32 %v15024_v32, %v4761_v46  ;;  %v4438_v30 = vadd.f32 %v4359_v63, %v4112_v43  ;;  %v18894_v0 = vld [vmem:[#allocation20_spill] sm:$0xff]  ;;  %v18895_v45 = vld [vmem:[#allocation39_spill] sm:$0xff]  ;;  %v4688_v4 = vpop.f32.mrf.mxu0  ;;  %v18896_v33 = vld [vmem:[#allocation89_spill] sm:$0xff] }
 0x1e9   : > { %v4766_v21 = vadd.f32 %v12460_v5, %v4440_v26  ;;  %12484 = vmatprep.mubr.msk.bf16.mxu1 %vm4851_vm0, %v5040_v10  ;;  %v4113_v56 = vadd.f32 %v18892_v44, %v3787_v29  ;;  %18893 = vst [vmem:[#allocation78_spill] sm:$0xff] %v15218_v1  ;;  %v3793_v50 = vadd.f32 %v18895_v45, %v18894_v0  ;;  %v4834_v53 = vmax.f32 %v4802_v40, 0.0  ;;  %v12427_v27 = vpop.f32.mrf.mxu1  ;;  %v18897_v46 = vld [vmem:[#allocation61_spill] sm:$0xff]  ;;  %v4985_v10 = vld [vmem:[#allocation3 + $0x70] sm:$0xff] }
 0x1ea   : > { %12518 = vmatprep.mubr.msk.bf16.mxu0 %vm4851_vm0, %v4958_v31  ;;  %v4118_v39 = vadd.f32 %v18896_v33, %v3792_v20  ;;  %v4116_v38 = vadd.f32 %v18897_v46, %v3790_v35  ;;  %v18336_v43 = vmax.f32 %v15214_v2, 0.0  ;;  %v4764_v5 = vadd.f32 %v4685_v60, %v4438_v30  ;;  %v18898_v63 = vld [vmem:[#allocation68_spill] sm:$0xff]  ;;  %v18899_v0 = vld [vmem:[#allocation27_spill] sm:$0xff]  ;;  %v12464_v33 = vpop.f32.mrf.mxu0 }
 0x1eb   : > { %v4805_v26 = vadd.f32 %v15024_v32, %v4766_v21  ;;  %v4441_v29 = vadd.f32 %v12427_v27, %v4115_v28  ;;  %v3791_v44 = vadd.f32 %v18898_v63, %v15082_v41  ;;  %v18900_v40 = vld [vmem:[#allocation67_spill] sm:$0xff]  ;;  %4873 = vst.msk [vmem:[#allocation3 + $0x90] sm:$0xff] %vm4851_vm0, %v4834_v53  ;;  %v15232_v31 = vpack.c.bf16 %v4834_v53, %v4833_v14  ;;  %v4362_v20 = vpop.f32.mrf.mxu1  ;;  %v4983_v35 = vld [vmem:[#allocation3 + $0x60] sm:$0xff]  ;;  %v4982_v27 = vld [vmem:[#allocation3 + $0x58] sm:$0xff] }
 0x1ec   : > { %v3796_v45 = vadd.f32 %v18900_v40, %v18899_v0  ;;  %v15234_v46 = vld [vmem:[#allocation3 + $0x5f] sm:$0xff]  ;;  %v15238_v28 = vld [vmem:[#allocation3 + $0x67] sm:$0xff]  ;;  %4871 = vst.msk [vmem:[#allocation3 + $0x80] sm:$0xff] %vm4851_vm0, %v18336_v43  ;;  %v15244_v30 = vadd.f32 %v15024_v32, %v4764_v5  ;;  %v4439_v53 = vadd.f32 %v4362_v20, %v4113_v56  ;;  %v4701_v40 = vpop.f32.mrf.mxu0  ;;  %v5041_v3 = vpack.c.bf16 %v4983_v35, %v4982_v27  ;;  %v15252_v56 = vld [vmem:[#allocation3 + $0x6f] sm:$0xff] }
 0x1ed   : > { %18901 = vst [vmem:[#allocation107_spill] sm:$0xff] %v15232_v31  ;;  %18902 = vst [vmem:[#allocation40_spill] sm:$0xff] %v15234_v46  ;;  %v18903_v21 = vld [vmem:[#allocation46_spill] sm:$0xff]  ;;  %v4837_v41 = vmax.f32 %v4805_v26, 0.0  ;;  %v4767_v14 = vadd.f32 %v12461_v52, %v4441_v29  ;;  %v12430_v0 = vpop.f32.mrf.mxu1  ;;  %v4934_v54 = vmul.f32 %v18905_v8, %v15238_v28  ;;  %v18907_v29 = vld [vmem:[#allocation29_spill] sm:$0xff] }
 0x1ee   : > { %v4932_v60 = vmul.f32 %v18903_v21, %v15218_v1  ;;  %18904 = vst [vmem:[#allocation48_spill] sm:$0xff] %v15238_v28  ;;  %v4984_v63 = vld [vmem:[#allocation3 + $0x68] sm:$0xff]  ;;  %v18337_v26 = vmax.f32 %v15244_v30, 0.0  ;;  %v4765_v43 = vadd.f32 %v4688_v4, %v4439_v53  ;;  %v4444_v52 = vadd.f32 %v12430_v0, %v4118_v39  ;;  %18906 = vst [vmem:[#allocation7_spill] sm:$0xff] %v15252_v56  ;;  %v18908_v35 = vld [vmem:[#allocation8_spill] sm:$0xff]  ;;  %v12465_v27 = vpop.f32.mrf.mxu0 }
 0x1ef   : > { %v5042_v31 = vpack.c.bf16 %v4985_v10, %v4984_v63  ;;  %4876 = vst.msk [vmem:[#allocation3 + $0xa8] sm:$0xff] %vm4851_vm0, %v4837_v41  ;;  %v4806_v5 = vadd.f32 %v15024_v32, %v4767_v14  ;;  %v3794_v20 = vadd.f32 %v14968_v23, %v18907_v29  ;;  %12485 = vmatmul.mubr.msk.bf16.gmra.mxu1 %vm4851_vm0, %v5041_v3  ;;  %v4375_v10 = vpop.f32.mrf.mxu1  ;;  %v18909_v3 = vld [vmem:[#allocation28_spill] sm:$0xff]  ;;  %v18936_v1 = vld [vmem:[#allocation73_spill] sm:$0xff] }
 0x1f0   : > { %v4959_v6 = vpack.c.bf16 %v15234_v46, %v4932_v60  ;;  %v15258_v60 = vadd.f32 %v18908_v35, %v15092_v34  ;;  %v4960_v63 = vpack.c.bf16 %v15252_v56, %v4934_v54  ;;  %4874 = vst.msk [vmem:[#allocation3 + $0x98] sm:$0xff] %vm4851_vm0, %v18337_v26  ;;  %v15267_v4 = vadd.f32 %v15024_v32, %v4765_v43  ;;  %v15270_v34 = vld [vmem:[#allocation3 + $0x77] sm:$0xff]  ;;  %v18911_v54 = vld [vmem:[#allocation71_spill] sm:$0xff]  ;;  %v4704_v35 = vpop.f32.mrf.mxu0 }
 0x1f1   : > { %v4838_v39 = vmax.f32 %v4806_v5, 0.0  ;;  %v4770_v23 = vadd.f32 %v12464_v33, %v4444_v52  ;;  %v4442_v14 = vadd.f32 %v4375_v10, %v4116_v38  ;;  %12488 = vmatprep.mubr.msk.bf16.mxu1 %vm4851_vm0, %v5042_v31  ;;  %v4119_v0 = vadd.f32 %v18911_v54, %v3793_v50  ;;  %v12431_v29 = vpop.f32.mrf.mxu1  ;;  %v18912_v26 = vld [vmem:[#allocation65_spill] sm:$0xff]  ;;  %v18921_v46 = vld [vmem:[#allocation59_spill] sm:$0xff] }
 0x1f2   : > { %12519 = vmatmul.mubr.msk.bf16.gmra.mxu0 %vm4851_vm0, %v4959_v6  ;;  %v18910_v6 = vld [vmem:[#allocation92_spill] sm:$0xff]  ;;  %v4117_v5 = vadd.f32 %v18912_v26, %v3791_v44  ;;  %v4122_v43 = vadd.f32 %v18913_v11, %v3796_v45  ;;  %v3795_v50 = vadd.f32 %v14976_v55, %v15085_v7  ;;  %v12468_v54 = vpop.f32.mrf.mxu0  ;;  %v18915_v11 = vld [vmem:[#allocation54_spill] sm:$0xff] }
 0x1f3   : > { %v3797_v53 = vadd.f32 %v18910_v6, %v18909_v3  ;;  %12522 = vmatprep.mubr.msk.bf16.mxu0 %vm4851_vm0, %v4960_v63  ;;  %4877 = vst.msk [vmem:[#allocation3 + $0xb0] sm:$0xff] %vm4851_vm0, %v4838_v39  ;;  %v15279_v38 = vpack.c.bf16 %v4838_v39, %v4837_v41  ;;  %v4809_v33 = vadd.f32 %v15024_v32, %v4770_v23  ;;  %v4986_v10 = vld [vmem:[#allocation3 + $0x78] sm:$0xff]  ;;  %v4989_v3 = vld [vmem:[#allocation3 + $0x90] sm:$0xff]  ;;  %v4378_v6 = vpop.f32.mrf.mxu1  ;;  %v4987_v44 = vld [vmem:[#allocation3 + $0x80] sm:$0xff] }
 0x1f4   : > { %v4768_v52 = vadd.f32 %v4701_v40, %v4442_v14  ;;  %v4445_v63 = vadd.f32 %v12431_v29, %v4119_v0  ;;  %v15285_v26 = vld [vmem:[#allocation3 + $0x7f] sm:$0xff]  ;;  %v4936_v45 = vmul.f32 %v18915_v11, %v15270_v34  ;;  %v18916_v41 = vld [vmem:[#allocation80_spill] sm:$0xff]  ;;  %v15290_v31 = vld [vmem:[#allocation3 + $0x87] sm:$0xff]  ;;  %v18917_v40 = vmax.f32 %v15267_v4, 0.0  ;;  %v4717_v28 = vpop.f32.mrf.mxu0 }
 0x1f5   : > { %18914 = vst [vmem:[#allocation22_spill] sm:$0xff] %v15279_v38  ;;  %v4120_v39 = vadd.f32 %v18916_v41, %v3794_v20  ;;  %v4841_v23 = vmax.f32 %v4809_v33, 0.0  ;;  %v4443_v7 = vadd.f32 %v4378_v6, %v4117_v5  ;;  %v15298_v14 = vpack.c.bf16 %v4987_v44, %v4986_v10  ;;  %v18919_v0 = vld [vmem:[#allocation9_spill] sm:$0xff]  ;;  %v18920_v29 = vld [vmem:[#allocation76_spill] sm:$0xff]  ;;  %v12434_v56 = vpop.f32.mrf.mxu1  ;;  %v4988_v41 = vld [vmem:[#allocation3 + $0x88] sm:$0xff] }
 0x1f6   : > { %4875 = vst.msk [vmem:[#allocation3 + $0xa0] sm:$0xff] %vm4851_vm0, %v18917_v40  ;;  %v15296_v55 = vadd.f32 %v15024_v32, %v4768_v52  ;;  %v3800_v38 = vadd.f32 %v18920_v29, %v18919_v0  ;;  %v4771_v57 = vadd.f32 %v12465_v27, %v4445_v63  ;;  %v4961_v20 = vpack.c.bf16 %v15285_v26, %v4936_v45  ;;  %v15309_v6 = vld [vmem:[#allocation3 + $0x8f] sm:$0xff]  ;;  %v18925_v27 = vld [vmem:[#allocation93_spill] sm:$0xff]  ;;  %v12469_v0 = vpop.f32.mrf.mxu0 }
 0x1f7   : > { %18918 = vst [vmem:[#allocation24_spill] sm:$0xff] %v15298_v14  ;;  %v4938_v15 = vmul.f32 %v18921_v46, %v15290_v31  ;;  %4880 = vst.msk [vmem:[#allocation3 + $0xc8] sm:$0xff] %vm4851_vm0, %v4841_v23  ;;  %v4769_v52 = vadd.f32 %v4704_v35, %v4443_v7  ;;  %v4448_v5 = vadd.f32 %v12434_v56, %v4122_v43  ;;  %v18924_v44 = vld [vmem:[#allocation11_spill] sm:$0xff]  ;;  %12489 = vmatmul.mubr.msk.bf16.gmra.mxu1 %vm4851_vm0, %v15298_v14  ;;  %v4391_v45 = vpop.f32.mrf.mxu1  ;;  %v15327_v7 = vld [vmem:[#allocation3 + $0x97] sm:$0xff] }
 0x1f8   : > { %v18342_v33 = vmax.f32 %v15296_v55, 0.0  ;;  %v15307_v10 = vpack.c.bf16 %v4989_v3, %v4988_v41  ;;  %18923 = vst [vmem:[#allocation30_spill] sm:$0xff] %v15309_v6  ;;  %v3798_v63 = vadd.f32 %v18925_v27, %v18924_v44  ;;  %v4810_v40 = vadd.f32 %v15024_v32, %v4771_v57  ;;  %v18926_v57 = vld [vmem:[#allocation91_spill] sm:$0xff]  ;;  %v4720_v27 = vpop.f32.mrf.mxu0  ;;  %v18929_v14 = vld [vmem:[#allocation81_spill] sm:$0xff] }
 0x1f9   : > { %v4962_v29 = vpack.c.bf16 %v15309_v6, %v4938_v15  ;;  %v15322_v56 = vadd.f32 %v15024_v32, %v4769_v52  ;;  %v4774_v35 = vadd.f32 %v12468_v54, %v4448_v5  ;;  %v4446_v43 = vadd.f32 %v4391_v45, %v4120_v39  ;;  %v12435_v44 = vpop.f32.mrf.mxu1 }
 0x1fa   : > { %18922 = vst [vmem:[#allocation6_spill] sm:$0xff] %v15307_v10  ;;  %12523 = vmatmul.mubr.msk.bf16.gmra.mxu0 %vm4851_vm0, %v4961_v20  ;;  %4878 = vst.msk [vmem:[#allocation3 + $0xb8] sm:$0xff] %vm4851_vm0, %v18342_v33  ;;  %12492 = vmatprep.mubr.msk.bf16.mxu1 %vm4851_vm0, %v15307_v10  ;;  %v4123_v3 = vadd.f32 %v18926_v57, %v3797_v53  ;;  %v18927_v20 = vld [vmem:[#allocation16_spill] sm:$0xff]  ;;  %v4842_v15 = vmax.f32 %v4810_v40, 0.0  ;;  %v4126_v54 = vadd.f32 %v18929_v14, %v3800_v38  ;;  %v18932_v38 = vld [vmem:[#allocation69_spill] sm:$0xff] }
 0x1fb   : > { %v3801_v41 = vadd.f32 %v14992_v18, %v18927_v20  ;;  %12526 = vmatprep.mubr.msk.bf16.mxu0 %vm4851_vm0, %v4962_v29  ;;  %v18928_v33 = vld [vmem:[#allocation72_spill] sm:$0xff]  ;;  %v18348_v39 = vmax.f32 %v15322_v56, 0.0  ;;  %v4813_v5 = vadd.f32 %v15024_v32, %v4774_v35  ;;  %v4772_v45 = vadd.f32 %v4717_v28, %v4446_v43  ;;  %v4394_v40 = vpop.f32.mrf.mxu1  ;;  %v12472_v29 = vpop.f32.mrf.mxu0 }
 0x1fc   : > { %v4121_v52 = vadd.f32 %v18928_v33, %v3795_v50  ;;  %v4449_v53 = vadd.f32 %v12435_v44, %v4123_v3  ;;  %v4993_v57 = vld [vmem:[#allocation3 + $0xb0] sm:$0xff]  ;;  %v3799_v10 = vadd.f32 %v15000_v24, %v15258_v60  ;;  %4881 = vst.msk [vmem:[#allocation3 + $0xd0] sm:$0xff] %vm4851_vm0, %v4842_v15  ;;  %v15339_v18 = vpack.c.bf16 %v4842_v15, %v4841_v23  ;;  %v18933_v33 = vld [vmem:[#allocation82_spill] sm:$0xff]  ;;  %v4990_v3 = vld [vmem:[#allocation3 + $0x98] sm:$0xff] }
 0x1fd   : > { %v4991_v20 = vld [vmem:[#allocation3 + $0xa0] sm:$0xff]  ;;  %v4940_v14 = vmul.f32 %v18932_v38, %v15327_v7  ;;  %v4124_v35 = vadd.f32 %v18933_v33, %v3798_v63  ;;  %4879 = vst.msk [vmem:[#allocation3 + $0xc0] sm:$0xff] %vm4851_vm0, %v18348_v39  ;;  %v4845_v24 = vmax.f32 %v4813_v5, 0.0  ;;  %v15352_v60 = vadd.f32 %v15024_v32, %v4772_v45  ;;  %v4992_v15 = vld [vmem:[#allocation3 + $0xa8] sm:$0xff]  ;;  %v12438_v44 = vpop.f32.mrf.mxu1 }
 0x1fe   : > { %18930 = vst [vmem:[#allocation51_spill] sm:$0xff] %v15339_v18  ;;  %v15341_v50 = vld [vmem:[#allocation3 + $0x9f] sm:$0xff]  ;;  %v15346_v28 = vld [vmem:[#allocation3 + $0xa7] sm:$0xff]  ;;  %v4775_v23 = vadd.f32 %v12469_v0, %v4449_v53  ;;  %v4447_v43 = vadd.f32 %v4394_v40, %v4121_v52  ;;  %v4733_v18 = vpop.f32.mrf.mxu0  ;;  %v15354_v48 = vpack.c.bf16 %v4991_v20, %v4990_v3  ;;  %v15357_v33 = vpack.c.bf16 %v4993_v57, %v4992_v15  ;;  %v15364_v53 = vld [vmem:[#allocation3 + $0xaf] sm:$0xff] }
 0x1ff   : > { %18931 = vst [vmem:[#allocation32_spill] sm:$0xff] %v15341_v50  ;;  %v4963_v63 = vpack.c.bf16 %v15341_v50, %v4940_v14  ;;  %v4942_v17 = vmul.f32 %v18936_v1, %v15346_v28  ;;  %4884 = vst.msk [vmem:[#allocation3 + $0xe8] sm:$0xff] %vm4851_vm0, %v4845_v24  ;;  %v18347_v5 = vmax.f32 %v15352_v60, 0.0  ;;  %v4452_v45 = vadd.f32 %v12438_v44, %v4126_v54  ;;  %v4407_v57 = vpop.f32.mrf.mxu1  ;;  %v18938_v3 = vld [vmem:[#allocation100_spill] sm:$0xff] }
 0x200   : > { %18934 = vst [vmem:[#allocation18_spill] sm:$0xff] %v15354_v48  ;;  %18935 = vst [vmem:[#allocation26_spill] sm:$0xff] %v15357_v33  ;;  %v4814_v0 = vadd.f32 %v15024_v32, %v4775_v23  ;;  %v4773_v52 = vadd.f32 %v4720_v27, %v4447_v43  ;;  %12493 = vmatmul.mubr.msk.bf16.gmra.mxu1 %vm4851_vm0, %v15354_v48  ;;  %v4450_v54 = vadd.f32 %v4407_v57, %v4124_v35  ;;  %v12473_v43 = vpop.f32.mrf.mxu0 }
 0x201   : > { %18937 = vst [vmem:[#allocation17_spill] sm:$0xff] %v15364_v53  ;;  %v4964_v40 = vpack.c.bf16 %v15364_v53, %v4942_v17  ;;  %4882 = vst.msk [vmem:[#allocation3 + $0xd8] sm:$0xff] %vm4851_vm0, %v18347_v5  ;;  %v4778_v27 = vadd.f32 %v12472_v29, %v4452_v45  ;;  %12496 = vmatprep.mubr.msk.bf16.mxu1 %vm4851_vm0, %v15357_v33  ;;  %v15378_v23 = vld [vmem:[#allocation3 + $0xb7] sm:$0xff]  ;;  %v4127_v17 = vadd.f32 %v18938_v3, %v3801_v41  ;;  %v12439_v15 = vpop.f32.mrf.mxu1 }
 0x202   : > { %12527 = vmatmul.mubr.msk.bf16.gmra.mxu0 %vm4851_vm0, %v4963_v63  ;;  %v4846_v20 = vmax.f32 %v4814_v0, 0.0  ;;  %v15374_v14 = vadd.f32 %v15024_v32, %v4773_v52  ;;  %v4125_v44 = vadd.f32 %v14994_v61, %v3799_v10  ;;  %v4776_v0 = vadd.f32 %v4733_v18, %v4450_v54  ;;  %v4994_v52 = vld [vmem:[#allocation3 + $0xb8] sm:$0xff]  ;;  %v4736_v54 = vpop.f32.mrf.mxu0 }
 0x203   : > { %12530 = vmatprep.mubr.msk.bf16.mxu0 %vm4851_vm0, %v4964_v40  ;;  %v4817_v35 = vadd.f32 %v15024_v32, %v4778_v27  ;;  %v4997_v45 = vld [vmem:[#allocation3 + $0xd0] sm:$0xff]  ;;  %v4453_v57 = vadd.f32 %v12439_v15, %v4127_v17  ;;  %v4410_v5 = vpop.f32.mrf.mxu1  ;;  %v18941_v41 = vld [vmem:[#allocation77_spill] sm:$0xff]  ;;  %v4996_v15 = vld [vmem:[#allocation3 + $0xc8] sm:$0xff] }
 0x204   : > { %4885 = vst.msk [vmem:[#allocation3 + $0xf0] sm:$0xff] %vm4851_vm0, %v4846_v20  ;;  %v15384_v63 = vpack.c.bf16 %v4846_v20, %v4845_v24  ;;  %v18351_v29 = vmax.f32 %v15374_v14, 0.0  ;;  %v4995_v39 = vld [vmem:[#allocation3 + $0xc0] sm:$0xff]  ;;  %v4944_v3 = vmul.f32 %v18941_v41, %v15378_v23  ;;  %v15398_v24 = vadd.f32 %v15024_v32, %v4776_v0  ;;  %v15409_v0 = vld [vmem:[#allocation3 + $0xcf] sm:$0xff] }
 0x205   : > { %v15388_v40 = vld [vmem:[#allocation3 + $0xbf] sm:$0xff]  ;;  %v15392_v61 = vld [vmem:[#allocation3 + $0xc7] sm:$0xff]  ;;  %v4849_v10 = vmax.f32 %v4817_v35, 0.0  ;;  %v4451_v18 = vadd.f32 %v4410_v5, %v4125_v44  ;;  %v15400_v20 = vpack.c.bf16 %v4995_v39, %v4994_v52  ;;  %v4779_v27 = vadd.f32 %v12473_v43, %v4453_v57 }
 0x206   : > { %18939 = vst [vmem:[#allocation10_spill] sm:$0xff] %v15384_v63  ;;  %18940 = vst [vmem:[#allocation98_spill] sm:$0xff] %v15388_v40  ;;  %v4965_v17 = vpack.c.bf16 %v15388_v40, %v4944_v3  ;;  %v18943_v33 = vld [vmem:[#allocation97_spill] sm:$0xff]  ;;  %v18352_v63 = vmax.f32 %v15398_v24, 0.0  ;;  %v15407_v35 = vpack.c.bf16 %v4997_v45, %v4996_v15 }
 0x207   : > { %4883 = vst.msk [vmem:[#allocation3 + $0xe0] sm:$0xff] %vm4851_vm0, %v18351_v29  ;;  %18942 = vst [vmem:[#allocation25_spill] sm:$0xff] %v15400_v20  ;;  %v4946_v48 = vmul.f32 %v18943_v33, %v15392_v61  ;;  %v4777_v29 = vadd.f32 %v4736_v54, %v4451_v18  ;;  %v4818_v39 = vadd.f32 %v15024_v32, %v4779_v27  ;;  %v18945_v3 = vld [vmem:[#allocation105_spill] sm:$0xff]  ;;  %v18946_v27 = vmax.f32 %v15075_v58, 0.0  ;;  %v18951_v58 = vld [vmem:[#allocation106_spill] sm:$0xff] }
 0x208   : > { %4888 = vst.msk [vmem:[#allocation3 + $0x108] sm:$0xff] %vm4851_vm0, %v4849_v10  ;;  %18944 = vst [vmem:[#allocation31_spill] sm:$0xff] %v15407_v35  ;;  %12497 = vmatmul.mubr.msk.bf16.gmra.mxu1 %vm4851_vm0, %v15400_v20  ;;  %v15416_v43 = vld [vmem:[#allocation3 + $0xd7] sm:$0xff]  ;;  %v18947_v54 = vmax.f32 %v15101_v37, 0.0 }
 0x209   : > { %v4966_v5 = vpack.c.bf16 %v15409_v0, %v4946_v48  ;;  %4886 = vst.msk [vmem:[#allocation3 + $0xf8] sm:$0xff] %vm4851_vm0, %v18352_v63  ;;  %v4816_v44 = vadd.f32 %v15024_v32, %v4777_v29  ;;  %12500 = vmatprep.mubr.msk.bf16.mxu1 %vm4851_vm0, %v15407_v35  ;;  %v4850_v52 = vmax.f32 %v4818_v39, 0.0  ;;  %v4998_v57 = vld [vmem:[#allocation3 + $0xd8] sm:$0xff]  ;;  %v4948_v18 = vmul.f32 %v18945_v3, %v15416_v43 }
 0x20a   : > { %12531 = vmatmul.mubr.msk.bf16.gmra.mxu0 %vm4851_vm0, %v4965_v17  ;;  %v15431_v17 = vpack.c.bf16 %v18947_v54, %v18946_v27  ;;  %v5000_v27 = vld [vmem:[#allocation3 + $0xe8] sm:$0xff]  ;;  %v18954_v35 = vmax.f32 %v15158_v59, 0.0  ;;  %v18957_v59 = vmax.f32 %v15214_v2, 0.0  ;;  %v18964_v2 = vmax.f32 %v15322_v56, 0.0 }
 0x20b   : > { %12534 = vmatprep.mubr.msk.bf16.mxu0 %vm4851_vm0, %v4966_v5  ;;  %v4848_v45 = vmax.f32 %v4816_v44, 0.0  ;;  %v5001_v48 = vld [vmem:[#allocation3 + $0xf0] sm:$0xff]  ;;  %4889 = vst.msk [vmem:[#allocation3 + $0x110] sm:$0xff] %vm4851_vm0, %v4850_v52  ;;  %v15434_v32 = vpack.c.bf16 %v4850_v52, %v4849_v10  ;;  %v18953_v52 = vmax.f32 %v15129_v42, 0.0  ;;  %v18956_v42 = vmax.f32 %v15194_v13, 0.0 }
 0x20c   : > { %v15446_v54 = vld [vmem:[#allocation3 + $0xef] sm:$0xff]  ;;  %v15448_v63 = vpack.c.bf16 %v5001_v48, %v5000_v27  ;;  %v18959_v48 = vld [vmem:[#allocation109_spill] sm:$0xff]  ;;  %v18963_v13 = vmax.f32 %v15296_v55, 0.0  ;;  %v18968_v55 = vmax.f32 %v15352_v60, 0.0  ;;  %v18969_v56 = vmax.f32 %v15374_v14, 0.0 }
 0x20d   : > { %18948 = vst [vmem:[#allocation13_spill] sm:$0xff] %v15434_v32  ;;  %4887 = vst.msk [vmem:[#allocation3 + $0x100] sm:$0xff] %vm4851_vm0, %v4848_v45  ;;  %v15455_v20 = vpack.c.bf16 %v18954_v35, %v18953_v52  ;;  %v15469_v35 = vpack.c.bf16 %v18957_v59, %v18956_v42  ;;  %v18960_v52 = vmax.f32 %v15244_v30, 0.0  ;;  %v18967_v30 = vld [vmem:[#allocation79_spill] sm:$0xff]  ;;  %v18972_v60 = vmax.f32 %v15398_v24, 0.0 }
 0x20e   : > { %v4999_v29 = vld [vmem:[#allocation3 + $0xe0] sm:$0xff]  ;;  %18952 = vst [vmem:[#allocation33_spill] sm:$0xff] %v15448_v63  ;;  %v15485_v42 = vpack.c.bf16 %v18964_v2, %v18963_v13  ;;  %v15501_v13 = vpack.c.bf16 %v18969_v56, %v18968_v55  ;;  %v15552_v56 = vmul.f32 %v18915_v11, %v15327_v7 }
 0x20f   : > { %v15436_v15 = vld [vmem:[#allocation3 + $0xdf] sm:$0xff]  ;;  %v15438_v39 = vld [vmem:[#allocation3 + $0xe7] sm:$0xff]  ;;  %v15441_v5 = vpack.c.bf16 %v4999_v29, %v4998_v57  ;;  %18955 = vst [vmem:[#allocation60_spill] sm:$0xff] %v15455_v20  ;;  %v5486_v29 = vld [vmem:[#allocation3 + $0x11] sm:$0xff]  ;;  %v15514_v14 = vpack.c.bf16 %v4848_v45, %v18972_v60  ;;  %v15532_v45 = vmul.f32 %v18903_v21, %v15270_v34  ;;  %v5853_v60 = vmul.f32 %v18886_v22, %v15187_v19 }
 0x210   : > { %18949 = vst [vmem:[#allocation56_spill] sm:$0xff] %v15436_v15  ;;  %v4967_v44 = vpack.c.bf16 %v15436_v15, %v4948_v18  ;;  %v4950_v37 = vmul.f32 %v18951_v58, %v15438_v39  ;;  %v15460_v57 = vld [vmem:[#allocation3 + $0xf7] sm:$0xff]  ;;  %v5485_v18 = vld [vmem:[#allocation3 + $0x9] sm:$0xff]  ;;  %18958 = vst [vmem:[#allocation85_spill] sm:$0xff] %v15469_v35 }
 0x211   : > { %18950 = vst [vmem:[#allocation64_spill] sm:$0xff] %v15441_v5  ;;  %12501 = vmatmul.mubr.msk.bf16.gmra.mxu1 %vm4851_vm0, %v15441_v5  ;;  %v5517_v27 = vmul.f32 0.0, %v5485_v18  ;;  %v18961_v5 = vmax.f32 %v15267_v4, 0.0  ;;  %18965 = vst [vmem:[#allocation86_spill] sm:$0xff] %v15485_v42  ;;  %v15492_v4 = vld [vmem:[#allocation3 + $0x21] sm:$0xff]  ;;  %v18982_v22 = vld [vmem:[#allocation96_spill] sm:$0xff] }
 0x212   : > { %v4968_v10 = vpack.c.bf16 %v15446_v54, %v4950_v37  ;;  %12535 = vmatmul.mubr.msk.bf16.gmra.mxu0 %vm4851_vm0, %v4967_v44  ;;  %12504 = vmatprep.mubr.msk.bf16.mxu1 %vm4851_vm0, %v15448_v63  ;;  %v4952_v37 = vmul.f32 %v18959_v48, %v15460_v57  ;;  %v5518_v44 = vmul.f32 0.0, %v5486_v29  ;;  %v5002_v63 = vld [vmem:[#allocation3 + $0xf8] sm:$0xff]  ;;  %v5847_v29 = vmul.f32 %v18967_v30, %v15104_v12  ;;  %v18971_v12 = vld [vmem:[#allocation34_spill] sm:$0xff] }
 0x213   : > { %v15477_v32 = vpack.c.bf16 %v18961_v5, %v18960_v52  ;;  %18970 = vst [vmem:[#allocation84_spill] sm:$0xff] %v15501_v13  ;;  %18973 = vst [vmem:[#allocation12_spill] sm:$0xff] %v15514_v14  ;;  %v15522_v2 = vld [vmem:[#allocation3 + $0x41] sm:$0xff]  ;;  %v15596_v19 = vld [vmem:[#allocation3 + $0x39] sm:$0xff] }
 0x214   : > { %12538 = vmatprep.mubr.msk.bf16.mxu0 %vm4851_vm0, %v4968_v10  ;;  %v5003_v20 = vld [vmem:[#allocation3 + $0x100] sm:$0xff]  ;;  %v5549_v5 = vpack.c.bf16 %v5518_v44, %v5517_v27  ;;  %v5879_v52 = vpack.c.bf16 %v15119_v49, %v5847_v29  ;;  %v5520_v49 = vmul.f32 %v18971_v12, %v15492_v4  ;;  %v5851_v44 = vmul.f32 %v18872_v62, %v15162_v9  ;;  %v18990_v14 = vld [vmem:[#allocation43_spill] sm:$0xff] }
 0x215   : > { %18962 = vst [vmem:[#allocation15_spill] sm:$0xff] %v15477_v32  ;;  %v15479_v10 = vld [vmem:[#allocation3 + $0xff] sm:$0xff]  ;;  %v15487_v59 = vpack.c.bf16 %v5003_v20, %v5002_v63  ;;  %v15495_v32 = vld [vmem:[#allocation3 + $0x31] sm:$0xff]  ;;  %v5849_v63 = vmul.f32 %v18871_v25, %v15123_v36  ;;  %18975 = vst [vmem:[#allocation14_spill] sm:$0xff] %v15532_v45  ;;  %v15586_v25 = vmul.f32 %v18936_v1, %v15392_v61 }
 0x216   : > { %v4969_v18 = vpack.c.bf16 %v15479_v10, %v4952_v37  ;;  %v18974_v20 = vld [vmem:[#allocation36_spill] sm:$0xff]  ;;  %v15518_v27 = vld [vmem:[#allocation3 + $0x19] sm:$0xff]  ;;  %v5881_v24 = vpack.c.bf16 %v15183_v16, %v5851_v44  ;;  %v18977_v9 = vld [vmem:[#allocation38_spill] sm:$0xff]  ;;  %18979 = vst [vmem:[#allocation87_spill] sm:$0xff] %v15552_v56  ;;  %v15631_v35 = vmul.f32 %v18971_v12, %v15522_v2 }
 0x217   : > { %18966 = vst [vmem:[#allocation57_spill] sm:$0xff] %v15487_v59  ;;  %v5522_v37 = vmul.f32 %v18974_v20, %v15495_v32  ;;  %v5880_v29 = vpack.c.bf16 %v15137_v47, %v5849_v63  ;;  %v5524_v55 = vmul.f32 %v18977_v9, %v15522_v2  ;;  %v15543_v47 = vld [vmem:[%s18157_s3 + $0x30] sm:$0xff]   ;;  %v15548_v16 = vld [vmem:[%s18157_s3 + $0x38] sm:$0xff]   ;;  %v15560_v63 = vmul.f32 %v18932_v38, %v15378_v23  ;;  %v18996_v45 = vld [vmem:[#allocation40_spill] sm:$0xff] }
 0x218   : > { %18978 = vst [vmem:[#allocation45_spill] sm:$0xff] %v15548_v16  ;;  %v15568_v44 = vld [vmem:[#allocation3 + $0x107] sm:$0xff]  ;;  %18983 = vst [vmem:[#allocation19_spill] sm:$0xff] %v15586_v25  ;;  %v15615_v56 = vld [vmem:[#allocation3 + $0x10f] sm:$0xff] }
 0x219   : > { %12505 = vmatmul.mubr.msk.bf16.gmra.mxu1 %vm4851_vm0, %v15487_v59  ;;  %18981 = vst [vmem:[#allocation66_spill] sm:$0xff] %v15560_v63  ;;  %v15608_v59 = vmul.f32 %v18945_v3, %v15460_v57  ;;  %v15612_v63 = vmul.f32 %v18951_v58, %v15568_v44  ;;  %v18989_v30 = vld [vmem:[#allocation78_spill] sm:$0xff]  ;;  %18991 = vst [vmem:[#allocation58_spill] sm:$0xff] %v15631_v35  ;;  %v19000_v35 = vld [vmem:[#allocation49_spill] sm:$0xff] }
 0x21a   : > { %12539 = vmatmul.mubr.msk.bf16.gmra.mxu0 %vm4851_vm0, %v4969_v18  ;;  %12544 = vmatprep.mubr.msk.bf16.mxu1 %vm4851_vm0, %v5549_v5  ;;  %v5550_v18 = vpack.c.bf16 %v5520_v49, %v15518_v27  ;;  %v15526_v5 = vld [vmem:[#allocation3 + $0x29] sm:$0xff]  ;;  %v15556_v49 = vmul.f32 %v18921_v46, %v15346_v28  ;;  %v5855_v13 = vmul.f32 %v18990_v14, %v18989_v30 }
 0x21b   : > { %12578 = vmatprep.mubr.msk.bf16.mxu0 %vm4851_vm0, %v5879_v52  ;;  %v5551_v36 = vpack.c.bf16 %v5522_v37, %v15526_v5  ;;  %v15536_v52 = vmul.f32 %v18905_v8, %v15290_v31  ;;  %v15566_v37 = vld [vmem:[#allocation3 + $0x51] sm:$0xff]  ;;  %18987 = vst [vmem:[#allocation63_spill] sm:$0xff] %v15608_v59  ;;  %18988 = vst [vmem:[#allocation47_spill] sm:$0xff] %v15612_v63  ;;  %v15650_v59 = vld [vmem:[#allocation3 + $0x59] sm:$0xff] }
 0x21c   : > { %18980 = vst [vmem:[#allocation23_spill] sm:$0xff] %v15556_v49  ;;  %v5552_v49 = vpack.c.bf16 %v5524_v55, %v15596_v19  ;;  %v15638_v62 = vmul.f32 %v18974_v20, %v15566_v37  ;;  %v5883_v63 = vpack.c.bf16 %v18996_v45, %v5855_v13  ;;  %v18998_v45 = vld [vmem:[#allocation44_spill] sm:$0xff] }
 0x21d   : > { %18976 = vst [vmem:[#allocation88_spill] sm:$0xff] %v15536_v52  ;;  %v18992_v52 = vld [vmem:[#allocation104_spill] sm:$0xff] }
 0x21e   : > { %v5882_v25 = vpack.c.bf16 %v18992_v52, %v5853_v60  ;;  %18993 = vst [vmem:[#allocation20_spill] sm:$0xff] %v15638_v62  ;;  %v15652_v52 = vld [vmem:[#allocation3 + $0x69] sm:$0xff]  ;;  %v18999_v60 = vld [vmem:[#allocation48_spill] sm:$0xff] }
 0x221   : > { %12545 = vmatmul.mubr.msk.bf16.vlgmr.msra.gmra.mxu1 %vm4851_vm0, %v5550_v18 }
 0x222   : > { %12579 = vmatmul.mubr.msk.bf16.vlgmr.msra.gmra.mxu0 %vm4851_vm0, %v5880_v29  ;;  %12611 = vmatpush3.bf16.msra.mxu1 %v15142_v51  ;;  %v15590_v51 = vmul.f32 %v18941_v41, %v15416_v43  ;;  %v18986_v29 = vld [vmem:[#allocation42_spill] sm:$0xff] }
 0x223   : > { %12548 = vmatprep.mubr.msk.bf16.mxu1 %vm4851_vm0, %v5551_v36  ;;  %12582 = vmatprep.mubr.msk.bf16.mxu0 %vm4851_vm0, %v5881_v24  ;;  %v15594_v36 = vmul.f32 %v18943_v33, %v15438_v39  ;;  %v5526_v18 = vmul.f32 %v18986_v29, %v15566_v37  ;;  %v15600_v24 = vld [vmem:[#allocation3 + $0x61] sm:$0xff] }
 0x224   : > { %12645 = vmatpush3.bf16.msra.mxu0 %v18982_v22  ;;  %18984 = vst [vmem:[#allocation52_spill] sm:$0xff] %v15590_v51  ;;  %v15602_v22 = vld [vmem:[#allocation3 + $0x71] sm:$0xff]  ;;  %12678 = vmatprep.subr.bf16.mxu1 %v15543_v47  ;;  %v15642_v30 = vmul.f32 %v18977_v9, %v15600_v24  ;;  %v19001_v51 = vld [vmem:[#allocation103_spill] sm:$0xff] }
 0x225   : > { %18985 = vst [vmem:[#allocation21_spill] sm:$0xff] %v15594_v36  ;;  %12712 = vmatprep.subr.bf16.mxu0 %v15548_v16  ;;  %v15634_v16 = vld [vmem:[#allocation3 + $0x49] sm:$0xff]  ;;  %v15646_v42 = vmul.f32 %v18986_v29, %v15602_v22  ;;  %v15658_v36 = vld [vmem:[#allocation3 + $0x111] sm:$0xff]  ;;  %v5530_v14 = vmul.f32 %v19000_v35, %v15602_v22  ;;  %v15688_v35 = vld [vmem:[#allocation3 + $0x81] sm:$0xff] }
 0x226   : > { %18994 = vst [vmem:[#allocation39_spill] sm:$0xff] %v15642_v30  ;;  %v5553_v55 = vpack.c.bf16 %v5526_v18, %v15634_v16  ;;  %18997 = vst [vmem:[#allocation61_spill] sm:$0xff] %v15658_v36  ;;  %v15676_v62 = vmul.f32 %v19001_v51, %v15658_v36  ;;  %v15678_v18 = vld [vmem:[#allocation3 + $0x109] sm:$0xff]  ;;  %v15692_v36 = vld [vmem:[#allocation3 + $0x91] sm:$0xff] }
 0x227   : > { %18995 = vst [vmem:[#allocation89_spill] sm:$0xff] %v15646_v42  ;;  %v19003_v42 = vld [vmem:[#allocation7_spill] sm:$0xff] }
 0x228   : > { %19002 = vst [vmem:[#allocation68_spill] sm:$0xff] %v15676_v62  ;;  %v15712_v62 = vld [vmem:[#allocation3 + $0xa1] sm:$0xff] }
 0x229   : > { %12549 = vmatmul.mubr.msk.bf16.gmra.mxu1 %vm4851_vm0, %v5552_v49  ;;  %v5528_v49 = vmul.f32 %v18998_v45, %v15600_v24 }
 0x22a   : > { %12583 = vmatmul.mubr.msk.bf16.gmra.mxu0 %vm4851_vm0, %v5882_v25  ;;  %12552 = vmatprep.mubr.msk.bf16.mxu1 %vm4851_vm0, %v5553_v55  ;;  %v5857_v25 = vmul.f32 %v18903_v21, %v18999_v60  ;;  %v5859_v55 = vmul.f32 %v18905_v8, %v15270_v34  ;;  %v5555_v60 = vpack.c.bf16 %v5530_v14, %v15652_v52  ;;  %v19004_v34 = vld [vmem:[#allocation53_spill] sm:$0xff]  ;;  %v19005_v14 = vld [vmem:[#allocation55_spill] sm:$0xff] }
 0x22b   : > { %12586 = vmatprep.mubr.msk.bf16.mxu0 %vm4851_vm0, %v5883_v63  ;;  %v5554_v13 = vpack.c.bf16 %v5528_v49, %v15650_v59  ;;  %v5532_v49 = vmul.f32 %v19004_v34, %v15688_v35  ;;  %v15708_v63 = vld [vmem:[#allocation3 + $0x89] sm:$0xff] }
 0x22c   : > { %v5884_v30 = vpack.c.bf16 %v19003_v42, %v5857_v25  ;;  %v5885_v21 = vpack.c.bf16 %v15285_v26, %v5859_v55  ;;  %v5861_v42 = vmul.f32 %v18915_v11, %v15290_v31  ;;  %v5534_v25 = vmul.f32 %v19005_v14, %v15692_v36  ;;  %v15702_v55 = vld [vmem:[#allocation3 + $0x79] sm:$0xff]  ;;  %v15716_v31 = vld [vmem:[#allocation3 + $0xb1] sm:$0xff]  ;;  %v15732_v11 = vld [vmem:[#allocation3 + $0xa9] sm:$0xff] }
 0x231   : > { %12553 = vmatmul.mubr.msk.bf16.gmra.mxu1 %vm4851_vm0, %v5554_v13  ;;  %v5556_v13 = vpack.c.bf16 %v5532_v49, %v15702_v55 }
 0x232   : > { %12587 = vmatmul.mubr.msk.bf16.gmra.mxu0 %vm4851_vm0, %v5884_v30  ;;  %12556 = vmatprep.mubr.msk.bf16.mxu1 %vm4851_vm0, %v5555_v60  ;;  %v5863_v30 = vmul.f32 %v18921_v46, %v15327_v7  ;;  %v5886_v60 = vpack.c.bf16 %v15309_v6, %v5861_v42  ;;  %v19006_v7 = vld [vmem:[#allocation62_spill] sm:$0xff]  ;;  %v5865_v42 = vmul.f32 %v18932_v38, %v15346_v28  ;;  %v15726_v46 = vld [vmem:[#allocation3 + $0x99] sm:$0xff]  ;;  %v15740_v28 = vld [vmem:[#allocation3 + $0xd1] sm:$0xff] }
 0x233   : > { %12590 = vmatprep.mubr.msk.bf16.mxu0 %vm4851_vm0, %v5885_v21  ;;  %v5557_v21 = vpack.c.bf16 %v5534_v25, %v15708_v63  ;;  %v5536_v49 = vmul.f32 %v19006_v7, %v15712_v62  ;;  %v19007_v25 = vld [vmem:[#allocation70_spill] sm:$0xff]  ;;  %v15756_v38 = vld [vmem:[#allocation3 + $0xc9] sm:$0xff] }
 0x234   : > { %v5887_v8 = vpack.c.bf16 %v15341_v50, %v5863_v30  ;;  %v5538_v30 = vmul.f32 %v19007_v25, %v15716_v31  ;;  %v15736_v6 = vld [vmem:[#allocation3 + $0xc1] sm:$0xff] }
 0x239   : > { %12557 = vmatmul.mubr.msk.bf16.gmra.mxu1 %vm4851_vm0, %v5556_v13  ;;  %v5867_v13 = vmul.f32 %v18936_v1, %v15378_v23  ;;  %v19008_v23 = vld [vmem:[#allocation74_spill] sm:$0xff]  ;;  %v15750_v1 = vld [vmem:[#allocation3 + $0xb9] sm:$0xff] }
 0x23a   : > { %12591 = vmatmul.mubr.msk.bf16.gmra.mxu0 %vm4851_vm0, %v5886_v60  ;;  %12560 = vmatprep.mubr.msk.bf16.mxu1 %vm4851_vm0, %v5557_v21  ;;  %v5558_v60 = vpack.c.bf16 %v5536_v49, %v15726_v46  ;;  %v5888_v21 = vpack.c.bf16 %v15364_v53, %v5865_v42  ;;  %v5540_v49 = vmul.f32 %v19008_v23, %v15736_v6  ;;  %v15760_v53 = vld [vmem:[#allocation3 + $0xe1] sm:$0xff] }
 0x23b   : > { %12594 = vmatprep.mubr.msk.bf16.mxu0 %vm4851_vm0, %v5887_v8  ;;  %v5559_v8 = vpack.c.bf16 %v5538_v30, %v15732_v11  ;;  %v5889_v50 = vpack.c.bf16 %v15388_v40, %v5867_v13  ;;  %v5869_v42 = vmul.f32 %v18941_v41, %v15392_v61  ;;  %v19009_v30 = vld [vmem:[#allocation94_spill] sm:$0xff]  ;;  %v15764_v61 = vld [vmem:[#allocation3 + $0xf1] sm:$0xff] }
 0x23c   : > { %v5542_v13 = vmul.f32 %v19009_v30, %v15740_v28 }
 0x241   : > { %12561 = vmatmul.mubr.msk.bf16.gmra.mxu1 %vm4851_vm0, %v5558_v60  ;;  %v5871_v60 = vmul.f32 %v18943_v33, %v15416_v43  ;;  %v19010_v43 = vld [vmem:[#allocation99_spill] sm:$0xff] }
 0x242   : > { %12595 = vmatmul.mubr.msk.bf16.gmra.mxu0 %vm4851_vm0, %v5888_v21  ;;  %12564 = vmatprep.mubr.msk.bf16.mxu1 %vm4851_vm0, %v5559_v8  ;;  %v5560_v21 = vpack.c.bf16 %v5540_v49, %v15750_v1  ;;  %v5890_v8 = vpack.c.bf16 %v15409_v0, %v5869_v42  ;;  %v5544_v49 = vmul.f32 %v19010_v43, %v15760_v53  ;;  %v15780_v33 = vld [vmem:[#allocation3 + $0xe9] sm:$0xff] }
 0x243   : > { %12598 = vmatprep.mubr.msk.bf16.mxu0 %vm4851_vm0, %v5889_v50  ;;  %v5561_v50 = vpack.c.bf16 %v5542_v13, %v15756_v38  ;;  %v5891_v40 = vpack.c.bf16 %v15436_v15, %v5871_v60  ;;  %v5873_v42 = vmul.f32 %v18945_v3, %v15438_v39  ;;  %v5546_v13 = vmul.f32 %v19001_v51, %v15764_v61  ;;  %v15774_v60 = vld [vmem:[#allocation3 + $0xd9] sm:$0xff]  ;;  %v15784_v15 = vld [vmem:[#allocation3 + $0x101] sm:$0xff]  ;;  %v19011_v39 = vld [vmem:[#allocation108_spill] sm:$0xff] }
 0x249   : > { %12565 = vmatmul.mubr.msk.bf16.gmra.mxu1 %vm4851_vm0, %v5560_v21  ;;  %v5875_v21 = vmul.f32 %v18951_v58, %v15460_v57  ;;  %v5548_v57 = vmul.f32 %v19011_v39, %v15784_v15 }
 0x24a   : > { %12599 = vmatmul.mubr.msk.bf16.gmra.mxu0 %vm4851_vm0, %v5890_v8  ;;  %12568 = vmatprep.mubr.msk.bf16.mxu1 %vm4851_vm0, %v5561_v50  ;;  %v5562_v8 = vpack.c.bf16 %v5544_v49, %v15774_v60  ;;  %v5892_v50 = vpack.c.bf16 %v15446_v54, %v5873_v42  ;;  %v5877_v49 = vmul.f32 %v18959_v48, %v15568_v44  ;;  %v19012_v42 = vld [vmem:[#allocation90_spill] sm:$0xff]  ;;  %v19067_v48 = vld [vmem:[#allocation57_spill] sm:$0xff] }
 0x24b   : > { %12602 = vmatprep.mubr.msk.bf16.mxu0 %vm4851_vm0, %v5891_v40  ;;  %v5563_v40 = vpack.c.bf16 %v5546_v13, %v15780_v33  ;;  %v5893_v41 = vpack.c.bf16 %v15479_v10, %v5875_v21  ;;  %v6444_v13 = vmul.f32 %v19012_v42, %v15492_v4  ;;  %v15796_v21 = vld [vmem:[#allocation3 + $0xf9] sm:$0xff]  ;;  %v6446_v4 = vmul.f32 %v18971_v12, %v15495_v32 }
 0x24c   : > { %v5564_v58 = vpack.c.bf16 %v5548_v57, %v15796_v21  ;;  %v6448_v44 = vmul.f32 %v18974_v20, %v15522_v2  ;;  %v6450_v2 = vmul.f32 %v18977_v9, %v15566_v37  ;;  %v6454_v37 = vmul.f32 %v18998_v45, %v15602_v22  ;;  %v6772_v12 = vld [vmem:[#allocation3 + $0x11f] sm:$0xff] }
 0x24d   : > { %v6458_v22 = vmul.f32 %v19004_v34, %v15692_v36  ;;  %v6462_v36 = vmul.f32 %v19006_v7, %v15716_v31  ;;  %v6466_v31 = vmul.f32 %v19008_v23, %v15740_v28  ;;  %v6470_v28 = vmul.f32 %v19010_v43, %v15764_v61 }
 0x24e   : > { %v6477_v57 = vpack.c.bf16 %v6448_v44, %v15596_v19 }
 0x251   : > { %12569 = vmatmul.mubr.msk.bf16.gmra.mxu1 %vm4851_vm0, %v5562_v8  ;;  %v5894_v8 = vpack.c.bf16 %v15615_v56, %v5877_v49  ;;  %v19015_v49 = vld [vmem:[#allocation45_spill] sm:$0xff] }
 0x252   : > { %12603 = vmatmul.mubr.msk.bf16.gmra.mxu0 %vm4851_vm0, %v5892_v50  ;;  %12572 = vmatprep.mubr.msk.bf16.mxu1 %vm4851_vm0, %v5563_v40  ;;  %v6475_v50 = vpack.c.bf16 %v6444_v13, %v15518_v27  ;;  %v6476_v40 = vpack.c.bf16 %v6446_v4, %v15526_v5  ;;  %v15814_v27 = vld [vmem:[%s18157_s3 + $0x40] sm:$0xff]   ;;  %v6452_v13 = vmul.f32 %v18986_v29, %v15600_v24  ;;  %v19018_v24 = vld [vmem:[#allocation49_spill] sm:$0xff] }
 0x253   : > { %12606 = vmatprep.mubr.msk.bf16.mxu0 %vm4851_vm0, %v5893_v41  ;;  %v19013_v41 = vld [vmem:[#allocation83_spill] sm:$0xff]  ;;  %v6480_v4 = vpack.c.bf16 %v6454_v37, %v15652_v52 }
 0x254   : > { %v6741_v37 = vld [vmem:[#allocation3 + $0x27] sm:$0xff] }
 0x259   : > { %12573 = vmatmul.mubr.msk.bf16.gmra.mxu1 %vm4851_vm0, %v5564_v58  ;;  %v19014_v58 = vld [vmem:[#allocation95_spill] sm:$0xff] }
 0x25a   : > { %12607 = vmatmul.mubr.msk.bf16.gmra.mxu0 %vm4851_vm0, %v5894_v8  ;;  %12612 = vmatprep.mubr.msk.bf16.mxu1 %vm4851_vm0, %v19013_v41  ;;  %v6478_v8 = vpack.c.bf16 %v6450_v2, %v15634_v16  ;;  %v6456_v41 = vmul.f32 %v19018_v24, %v15688_v35  ;;  %v6460_v35 = vmul.f32 %v19005_v14, %v15712_v62  ;;  %v19021_v2 = vld [vmem:[#allocation107_spill] sm:$0xff] }
 0x25b   : > { %12646 = vmatprep.mubr.msk.bf16.mxu0 %vm4851_vm0, %v6475_v50  ;;  %v6479_v50 = vpack.c.bf16 %v6452_v13, %v15650_v59  ;;  %v6464_v62 = vmul.f32 %v19007_v25, %v15736_v6  ;;  %v19023_v13 = vld [vmem:[#allocation22_spill] sm:$0xff]  ;;  %v6468_v6 = vmul.f32 %v19009_v30, %v15760_v53  ;;  %v6472_v53 = vmul.f32 %v19001_v51, %v15784_v15 }
 0x25c   : > { %v6481_v44 = vpack.c.bf16 %v6456_v41, %v15702_v55  ;;  %v6483_v55 = vpack.c.bf16 %v6460_v35, %v15726_v46  ;;  %v19028_v41 = vld [vmem:[#allocation12_spill] sm:$0xff] }
 0x25d   : > { %v6485_v46 = vpack.c.bf16 %v6464_v62, %v15750_v1  ;;  %v6487_v1 = vpack.c.bf16 %v6468_v6, %v15774_v60  ;;  %v6489_v60 = vpack.c.bf16 %v6472_v53, %v15796_v21  ;;  %v6742_v21 = vld [vmem:[#allocation3 + $0x2f] sm:$0xff]  ;;  %v19032_v62 = vld [vmem:[#allocation37_spill] sm:$0xff] }
 0x261   : > { %12613 = vmatmul.mubr.msk.bf16.vlgmr.msra.gmra.mxu1 %vm4851_vm0, %v19014_v58  ;;  %v19020_v58 = vld [vmem:[#allocation85_spill] sm:$0xff] }
 0x262   : > { %12647 = vmatmul.mubr.msk.bf16.vlgmr.msra.gmra.mxu0 %vm4851_vm0, %v6476_v40  ;;  %12679 = vmatpush3.bf16.msra.mxu1 %v15543_v47  ;;  %v19016_v47 = vld [vmem:[#allocation101_spill] sm:$0xff]  ;;  %v19019_v40 = vld [vmem:[#allocation102_spill] sm:$0xff] }
 0x263   : > { %12616 = vmatprep.mubr.msk.bf16.mxu1 %vm4851_vm0, %v15431_v17  ;;  %12650 = vmatprep.mubr.msk.bf16.mxu0 %vm4851_vm0, %v6477_v57  ;;  %v19017_v17 = vld [vmem:[#allocation60_spill] sm:$0xff]  ;;  %v6482_v57 = vpack.c.bf16 %v6458_v22, %v15708_v63  ;;  %v6484_v63 = vpack.c.bf16 %v6462_v36, %v15732_v11  ;;  %v6486_v11 = vpack.c.bf16 %v6466_v31, %v15756_v38  ;;  %v7074_v36 = vld [vmem:[#allocation3 + $0x40] sm:$0xff] }
 0x264   : > { %12713 = vmatpush3.bf16.msra.mxu0 %v19015_v49  ;;  %12746 = vmatprep.subr.bf16.mxu1 %v15814_v27  ;;  %v19022_v49 = vld [vmem:[#allocation15_spill] sm:$0xff]  ;;  %v6488_v38 = vpack.c.bf16 %v6470_v28, %v15780_v33 }
 0x265   : > { %v7076_v31 = vld [vmem:[#allocation3 + $0x50] sm:$0xff] }
 0x269   : > { %12617 = vmatmul.mubr.msk.bf16.gmra.mxu1 %vm4851_vm0, %v19016_v47  ;;  %v19026_v47 = vld [vmem:[#allocation84_spill] sm:$0xff] }
 0x26a   : > { %12651 = vmatmul.mubr.msk.bf16.gmra.mxu0 %vm4851_vm0, %v6478_v8  ;;  %12620 = vmatprep.mubr.msk.bf16.mxu1 %vm4851_vm0, %v19017_v17  ;;  %v19024_v8 = vld [vmem:[#allocation86_spill] sm:$0xff] }
 0x26b   : > { %12654 = vmatprep.mubr.msk.bf16.mxu0 %vm4851_vm0, %v6479_v50  ;;  %v19025_v50 = vld [vmem:[#allocation51_spill] sm:$0xff]  ;;  %v19027_v17 = vld [vmem:[#allocation10_spill] sm:$0xff] }
 0x271   : > { %12621 = vmatmul.mubr.msk.bf16.gmra.mxu1 %vm4851_vm0, %v19019_v40  ;;  %v7072_v40 = vld [vmem:[#allocation3 + $0x30] sm:$0xff] }
 0x272   : > { %12655 = vmatmul.mubr.msk.bf16.gmra.mxu0 %vm4851_vm0, %v6480_v4  ;;  %12624 = vmatprep.mubr.msk.bf16.mxu1 %vm4851_vm0, %v19020_v58  ;;  %v19029_v4 = vld [vmem:[#allocation61_spill] sm:$0xff]  ;;  %v7071_v58 = vld [vmem:[#allocation3 + $0x28] sm:$0xff] }
 0x273   : > { %12658 = vmatprep.mubr.msk.bf16.mxu0 %vm4851_vm0, %v6481_v44  ;;  %v6474_v61 = vmul.f32 %v19011_v39, %v19029_v4  ;;  %v19030_v44 = vld [vmem:[#allocation79_spill] sm:$0xff]  ;;  %v7135_v35 = vpack.c.bf16 %v7072_v40, %v7071_v58  ;;  %v7078_v40 = vld [vmem:[#allocation3 + $0x60] sm:$0xff] }
 0x274   : > { %v6773_v15 = vmul.f32 %v19030_v44, %v6741_v37  ;;  %v6747_v37 = vld [vmem:[#allocation3 + $0x57] sm:$0xff] }
 0x275   : > { %v6490_v33 = vpack.c.bf16 %v6474_v61, %v15678_v18 }
 0x276   : > { %v6805_v22 = vpack.c.bf16 %v6742_v21, %v6773_v15  ;;  %v6748_v15 = vld [vmem:[#allocation3 + $0x5f] sm:$0xff] }
 0x279   : > { %12625 = vmatmul.mubr.msk.bf16.gmra.mxu1 %vm4851_vm0, %v19021_v2  ;;  %v6743_v2 = vld [vmem:[#allocation3 + $0x37] sm:$0xff] }
 0x27a   : > { %12659 = vmatmul.mubr.msk.bf16.gmra.mxu0 %vm4851_vm0, %v6482_v57  ;;  %12628 = vmatprep.mubr.msk.bf16.mxu1 %vm4851_vm0, %v19022_v49  ;;  %v19031_v57 = vld [vmem:[#allocation13_spill] sm:$0xff] }
 0x27b   : > { %12662 = vmatprep.mubr.msk.bf16.mxu0 %vm4851_vm0, %v6483_v55  ;;  %v6745_v55 = vld [vmem:[#allocation3 + $0x47] sm:$0xff]  ;;  %v6744_v49 = vld [vmem:[#allocation3 + $0x3f] sm:$0xff] }
 0x281   : > { %12629 = vmatmul.mubr.msk.bf16.gmra.mxu1 %vm4851_vm0, %v19023_v13 }
 0x282   : > { %12663 = vmatmul.mubr.msk.bf16.gmra.mxu0 %vm4851_vm0, %v6484_v63  ;;  %12632 = vmatprep.mubr.msk.bf16.mxu1 %vm4851_vm0, %v19024_v8  ;;  %v6777_v63 = vmul.f32 %v19032_v62, %v6745_v55  ;;  %v7073_v8 = vld [vmem:[#allocation3 + $0x38] sm:$0xff]  ;;  %v7080_v55 = vld [vmem:[#allocation3 + $0x70] sm:$0xff] }
 0x283   : > { %12666 = vmatprep.mubr.msk.bf16.mxu0 %vm4851_vm0, %v6485_v46  ;;  %v19033_v46 = vld [vmem:[#allocation35_spill] sm:$0xff] }
 0x284   : > { %v6775_v13 = vmul.f32 %v19033_v46, %v6743_v2 }
 0x286   : > { %v6806_v6 = vpack.c.bf16 %v6744_v49, %v6775_v13 }
 0x289   : > { %12633 = vmatmul.mubr.msk.bf16.gmra.mxu1 %vm4851_vm0, %v19025_v50 }
 0x28a   : > { %12667 = vmatmul.mubr.msk.bf16.gmra.mxu0 %vm4851_vm0, %v6486_v11  ;;  %12636 = vmatprep.mubr.msk.bf16.mxu1 %vm4851_vm0, %v19026_v47  ;;  %v7136_v11 = vpack.c.bf16 %v7074_v36, %v7073_v8  ;;  %v7075_v47 = vld [vmem:[#allocation3 + $0x48] sm:$0xff] }
 0x28b   : > { %12670 = vmatprep.mubr.msk.bf16.mxu0 %vm4851_vm0, %v6487_v1  ;;  %v6746_v1 = vld [vmem:[#allocation3 + $0x4f] sm:$0xff] }
 0x28c   : > { %v6807_v50 = vpack.c.bf16 %v6746_v1, %v6777_v63  ;;  %v6750_v8 = vld [vmem:[#allocation3 + $0x6f] sm:$0xff] }
 0x291   : > { %12637 = vmatmul.mubr.msk.bf16.gmra.mxu1 %vm4851_vm0, %v19027_v17 }
 0x292   : > { %12671 = vmatmul.mubr.msk.bf16.gmra.mxu0 %vm4851_vm0, %v6488_v38  ;;  %12640 = vmatprep.mubr.msk.bf16.mxu1 %vm4851_vm0, %v19028_v41  ;;  %v7137_v38 = vpack.c.bf16 %v7076_v31, %v7075_v47  ;;  %v7079_v31 = vld [vmem:[#allocation3 + $0x68] sm:$0xff] }
 0x293   : > { %12674 = vmatprep.mubr.msk.bf16.mxu0 %vm4851_vm0, %v6489_v60  ;;  %v6749_v60 = vld [vmem:[#allocation3 + $0x67] sm:$0xff]  ;;  %v7139_v1 = vpack.c.bf16 %v7080_v55, %v7079_v31 }
 0x299   : > { %12641 = vmatmul.mubr.msk.bf16.gmra.mxu1 %vm4851_vm0, %v19031_v57 }
 0x29a   : > { %12675 = vmatmul.mubr.msk.bf16.gmra.mxu0 %vm4851_vm0, %v6490_v33  ;;  %12680 = vmatprep.mubr.msk.bf16.mxu1 %vm4851_vm0, %v6805_v22  ;;  %v19034_v33 = vld [vmem:[#allocation43_spill] sm:$0xff] }
 0x29b   : > { %12714 = vmatprep.mubr.msk.bf16.mxu0 %vm4851_vm0, %v7135_v35  ;;  %v6781_v21 = vmul.f32 %v19034_v33, %v6749_v60  ;;  %v19035_v35 = vld [vmem:[#allocation41_spill] sm:$0xff]  ;;  %v19068_v33 = vld [vmem:[#allocation47_spill] sm:$0xff] }
 0x29c   : > { %v6779_v57 = vmul.f32 %v19035_v35, %v6747_v37  ;;  %v19069_v35 = vpack.c.bf16 %v15615_v56, %v19068_v33 }
 0x29e   : > { %v6808_v63 = vpack.c.bf16 %v6748_v15, %v6779_v57  ;;  %v19036_v57 = vld [vmem:[#allocation14_spill] sm:$0xff] }
 0x29f   : > { %v12478_v28 = vpop.f32.mrf.mxu1  ;;  %v12512_v53 = vpop.f32.mrf.mxu0  ;;  %v19037_v55 = vpack.c.bf16 %v15285_v26, %v19036_v57  ;;  %v19046_v57 = vld [vmem:[#allocation18_spill] sm:$0xff] }
 0x2a0   : > { %v15911_v17 = vadd.f32 %v12512_v53, %v12478_v28 }
 0x2a1   : > { %12681 = vmatmul.mubr.msk.bf16.vlgmr.msra.gmra.mxu1 %vm4851_vm0, %v6806_v6  ;;  %v5143_v41 = vpop.f32.mrf.mxu1  ;;  %v5358_v4 = vpop.f32.mrf.mxu0 }
 0x2a2   : > { %12715 = vmatmul.mubr.msk.bf16.vlgmr.msra.gmra.mxu0 %vm4851_vm0, %v7136_v11  ;;  %12747 = vmatpush3.bf16.msra.mxu1 %v15814_v27  ;;  %v15916_v61 = vadd.f32 %v5358_v4, %v5143_v41  ;;  %v7077_v27 = vld [vmem:[#allocation3 + $0x58] sm:$0xff]  ;;  %v6809_v11 = vpack.c.bf16 %v6750_v8, %v6781_v21  ;;  %v19042_v8 = vld [vmem:[#allocation6_spill] sm:$0xff] }
 0x2a3   : > { %12684 = vmatprep.mubr.msk.bf16.mxu1 %vm4851_vm0, %v6807_v50  ;;  %12718 = vmatprep.mubr.msk.bf16.mxu0 %vm4851_vm0, %v7137_v38  ;;  %v12479_v58 = vpop.f32.mrf.mxu1  ;;  %v12513_v22 = vpop.f32.mrf.mxu0  ;;  %v7138_v13 = vpack.c.bf16 %v7078_v40, %v7077_v27  ;;  %v19038_v27 = vld [vmem:[#allocation24_spill] sm:$0xff] }
 0x2a4   : > { %v15920_v2 = vadd.f32 %v12513_v22, %v12479_v58 }
 0x2a5   : > { %v5146_v49 = vpop.f32.mrf.mxu1  ;;  %v5361_v36 = vpop.f32.mrf.mxu0 }
 0x2a6   : > { %v15922_v6 = vadd.f32 %v5361_v36, %v5146_v49  ;;  %v19039_v36 = vld [vmem:[#allocation30_spill] sm:$0xff] }
 0x2a7   : > { %v12482_v50 = vpop.f32.mrf.mxu1  ;;  %v12516_v47 = vpop.f32.mrf.mxu0 }
 0x2a8   : > { %v15926_v28 = vadd.f32 %v12516_v47, %v12482_v50 }
 0x2a9   : > { %12685 = vmatmul.mubr.msk.bf16.gmra.mxu1 %vm4851_vm0, %v6808_v63  ;;  %v5159_v53 = vpop.f32.mrf.mxu1  ;;  %v5374_v38 = vpop.f32.mrf.mxu0  ;;  %v19040_v63 = vld [vmem:[#allocation88_spill] sm:$0xff] }
 0x2aa   : > { %12719 = vmatmul.mubr.msk.bf16.gmra.mxu0 %vm4851_vm0, %v7138_v13  ;;  %12688 = vmatprep.mubr.msk.bf16.mxu1 %vm4851_vm0, %v6809_v11  ;;  %v15930_v60 = vadd.f32 %v5374_v38, %v5159_v53  ;;  %v19041_v13 = vpack.c.bf16 %v19039_v36, %v19040_v63  ;;  %v19048_v36 = vld [vmem:[#allocation23_spill] sm:$0xff] }
 0x2ab   : > { %12722 = vmatprep.mubr.msk.bf16.mxu0 %vm4851_vm0, %v7139_v1  ;;  %v12483_v37 = vpop.f32.mrf.mxu1  ;;  %v12517_v41 = vpop.f32.mrf.mxu0 }
 0x2ac   : > { %v15932_v4 = vadd.f32 %v12517_v41, %v12483_v37 }
 0x2ad   : > { %v5162_v15 = vpop.f32.mrf.mxu1  ;;  %v5377_v40 = vpop.f32.mrf.mxu0 }
 0x2ae   : > { %v15934_v21 = vadd.f32 %v5377_v40, %v5162_v15  ;;  %v19043_v40 = vld [vmem:[#allocation32_spill] sm:$0xff] }
 0x2af   : > { %v12486_v58 = vpop.f32.mrf.mxu1 }
 0x2b1   : > { %12689 = vmatmul.mubr.msk.bf16.gmra.mxu1 %vm4851_vm0, %v19037_v55  ;;  %v5175_v31 = vpop.f32.mrf.mxu1 }
 0x2b2   : > { %v12520_v22 = vpop.f32.mrf.mxu0  ;;  %12723 = vmatmul.mubr.msk.bf16.gmra.mxu0 %vm4851_vm0, %v19038_v27  ;;  %12692 = vmatprep.mubr.msk.bf16.mxu1 %vm4851_vm0, %v19041_v13  ;;  %v19047_v27 = vld [vmem:[#allocation17_spill] sm:$0xff]  ;;  %v19050_v13 = vld [vmem:[#allocation26_spill] sm:$0xff] }
 0x2b3   : > { %v15942_v49 = vadd.f32 %v12520_v22, %v12486_v58  ;;  %12726 = vmatprep.mubr.msk.bf16.mxu0 %vm4851_vm0, %v19042_v8  ;;  %v12487_v26 = vpop.f32.mrf.mxu1  ;;  %v19044_v58 = vld [vmem:[#allocation87_spill] sm:$0xff]  ;;  %v19049_v63 = vpack.c.bf16 %v19047_v27, %v19048_v36  ;;  %v19054_v36 = vld [vmem:[#allocation25_spill] sm:$0xff] }
 0x2b4   : > { %v5390_v11 = vpop.f32.mrf.mxu0  ;;  %v19045_v22 = vpack.c.bf16 %v19043_v40, %v19044_v58 }
 0x2b5   : > { %v15950_v1 = vadd.f32 %v5390_v11, %v5175_v31  ;;  %v5178_v53 = vpop.f32.mrf.mxu1 }
 0x2b6   : > { %v12521_v50 = vpop.f32.mrf.mxu0 }
 0x2b7   : > { %v15952_v47 = vadd.f32 %v12521_v50, %v12487_v26  ;;  %v12490_v41 = vpop.f32.mrf.mxu1 }
 0x2b8   : > { %v5393_v38 = vpop.f32.mrf.mxu0 }
 0x2b9   : > { %v15954_v37 = vadd.f32 %v5393_v38, %v5178_v53  ;;  %12693 = vmatmul.mubr.msk.bf16.gmra.mxu1 %vm4851_vm0, %v19045_v22  ;;  %v5191_v8 = vpop.f32.mrf.mxu1  ;;  %v19051_v22 = vld [vmem:[#allocation98_spill] sm:$0xff] }
 0x2ba   : > { %v12524_v15 = vpop.f32.mrf.mxu0  ;;  %12727 = vmatmul.mubr.msk.bf16.gmra.mxu0 %vm4851_vm0, %v19046_v57  ;;  %12696 = vmatprep.mubr.msk.bf16.mxu1 %vm4851_vm0, %v19049_v63  ;;  %v19052_v57 = vld [vmem:[#allocation66_spill] sm:$0xff] }
 0x2bb   : > { %v15962_v55 = vadd.f32 %v12524_v15, %v12490_v41  ;;  %12730 = vmatprep.mubr.msk.bf16.mxu0 %vm4851_vm0, %v19050_v13  ;;  %v12491_v26 = vpop.f32.mrf.mxu1  ;;  %v19053_v27 = vpack.c.bf16 %v19051_v22, %v19052_v57  ;;  %v19055_v13 = vld [vmem:[#allocation19_spill] sm:$0xff] }
 0x2bc   : > { %v5406_v31 = vpop.f32.mrf.mxu0 }
 0x2bd   : > { %v15970_v11 = vadd.f32 %v5406_v31, %v5191_v8  ;;  %v5194_v38 = vpop.f32.mrf.mxu1  ;;  %v19056_v8 = vpack.c.bf16 %v15409_v0, %v19055_v13  ;;  %v19057_v31 = vld [vmem:[#allocation31_spill] sm:$0xff]  ;;  %v19058_v0 = vld [vmem:[#allocation56_spill] sm:$0xff] }
 0x2be   : > { %v12525_v50 = vpop.f32.mrf.mxu0  ;;  %v19059_v13 = vld [vmem:[#allocation52_spill] sm:$0xff] }
 0x2bf   : > { %v15972_v53 = vadd.f32 %v12525_v50, %v12491_v26 }
 0x2c0   : > { %v5409_v40 = vpop.f32.mrf.mxu0  ;;  %v12494_v15 = vpop.f32.mrf.mxu1 }
 0x2c1   : > { %v15974_v41 = vadd.f32 %v5409_v40, %v5194_v38  ;;  %12697 = vmatmul.mubr.msk.bf16.gmra.mxu1 %vm4851_vm0, %v19053_v27 }
 0x2c2   : > { %v12528_v58 = vpop.f32.mrf.mxu0  ;;  %12731 = vmatmul.mubr.msk.bf16.gmra.mxu0 %vm4851_vm0, %v19054_v36  ;;  %12700 = vmatprep.mubr.msk.bf16.mxu1 %vm4851_vm0, %v19056_v8  ;;  %v5207_v26 = vpop.f32.mrf.mxu1  ;;  %v19060_v8 = vpack.c.bf16 %v19058_v0, %v19059_v13 }
 0x2c3   : > { %v15982_v63 = vadd.f32 %v12528_v58, %v12494_v15  ;;  %12734 = vmatprep.mubr.msk.bf16.mxu0 %vm4851_vm0, %v19057_v31  ;;  %v19061_v31 = vld [vmem:[#allocation64_spill] sm:$0xff] }
 0x2c4   : > { %v5422_v50 = vpop.f32.mrf.mxu0  ;;  %v12495_v40 = vpop.f32.mrf.mxu1 }
 0x2c5   : > { %v15990_v38 = vadd.f32 %v5422_v50, %v5207_v26  ;;  %v19062_v50 = vld [vmem:[#allocation21_spill] sm:$0xff] }
 0x2c6   : > { %v12529_v22 = vpop.f32.mrf.mxu0  ;;  %v15994_v27 = vpop.f32.mrf.mxu1 }
 0x2c7   : > { %v15992_v57 = vadd.f32 %v12529_v22, %v12495_v40  ;;  %v19063_v40 = vpack.c.bf16 %v15446_v54, %v19062_v50  ;;  %v19064_v22 = vld [vmem:[#allocation33_spill] sm:$0xff]  ;;  %v7099_v54 = vld [vmem:[#allocation3 + $0x108] sm:$0xff] }
 0x2c8   : > { %v15996_v15 = vpop.f32.mrf.mxu0  ;;  %v12498_v58 = vpop.f32.mrf.mxu1 }
 0x2c9   : > { %12701 = vmatmul.mubr.msk.bf16.gmra.mxu1 %vm4851_vm0, %v19060_v8  ;;  %v7100_v8 = vld [vmem:[#allocation3 + $0x110] sm:$0xff] }
 0x2ca   : > { %v12532_v36 = vpop.f32.mrf.mxu0  ;;  %12735 = vmatmul.mubr.msk.bf16.gmra.mxu0 %vm4851_vm0, %v19061_v31  ;;  %12704 = vmatprep.mubr.msk.bf16.mxu1 %vm4851_vm0, %v19063_v40  ;;  %v5223_v39 = vpop.f32.mrf.mxu1  ;;  %v7101_v31 = vld [vmem:[#allocation3 + $0x118] sm:$0xff]  ;;  %v7149_v50 = vpack.c.bf16 %v7100_v8, %v7099_v54 }
 0x2cb   : > { %v16004_v26 = vadd.f32 %v12532_v36, %v12498_v58  ;;  %12738 = vmatprep.mubr.msk.bf16.mxu0 %vm4851_vm0, %v19064_v22  ;;  %v7102_v58 = vld [vmem:[#allocation3 + $0x120] sm:$0xff]  ;;  %v6771_v40 = vld [vmem:[#allocation3 + $0x117] sm:$0xff] }
 0x2cc   : > { %v5438_v51 = vpop.f32.mrf.mxu0  ;;  %v12499_v0 = vpop.f32.mrf.mxu1  ;;  %v6803_v62 = vmul.f32 0.0, %v6771_v40 }
 0x2cd   : > { %v16012_v29 = vadd.f32 %v5438_v51, %v5223_v39  ;;  %v19065_v51 = vld [vmem:[#allocation63_spill] sm:$0xff] }
 0x2ce   : > { %v12533_v13 = vpop.f32.mrf.mxu0  ;;  %v16016_v36 = vpop.f32.mrf.mxu1  ;;  %v19066_v39 = vpack.c.bf16 %v15479_v10, %v19065_v51  ;;  %v6804_v10 = vmul.f32 0.0, %v6772_v12 }
 0x2cf   : > { %v16014_v9 = vadd.f32 %v12533_v13, %v12499_v0  ;;  %v7133_v0 = vmul.f32 0.0, %v7101_v31  ;;  %v7134_v13 = vmul.f32 0.0, %v7102_v58 }
 0x2d0   : > { %v16018_v20 = vpop.f32.mrf.mxu0  ;;  %v6820_v33 = vpack.c.bf16 %v6804_v10, %v6803_v62 }
 0x2d1   : > { %v12502_v22 = vpop.f32.mrf.mxu1  ;;  %12705 = vmatmul.mubr.msk.bf16.gmra.mxu1 %vm4851_vm0, %v19066_v39 }
 0x2d2   : > { %v12536_v44 = vpop.f32.mrf.mxu0  ;;  %12739 = vmatmul.mubr.msk.bf16.gmra.mxu0 %vm4851_vm0, %v19067_v48  ;;  %12708 = vmatprep.mubr.msk.bf16.mxu1 %vm4851_vm0, %v19069_v35  ;;  %v7434_v48 = vmul.f32 %v19012_v42, %v15495_v32 }
 0x2d3   : > { %v16026_v3 = vadd.f32 %v12536_v44, %v12502_v22  ;;  %12742 = vmatprep.mubr.msk.bf16.mxu0 %vm4851_vm0, %v7149_v50  ;;  %v5239_v8 = vpop.f32.mrf.mxu1  ;;  %v7150_v44 = vpack.c.bf16 %v7134_v13, %v7133_v0 }
 0x2d4   : > { %v5454_v54 = vpop.f32.mrf.mxu0  ;;  %v7465_v35 = vpack.c.bf16 %v7434_v48, %v15526_v5 }
 0x2d5   : > { %v16033_v51 = vadd.f32 %v5454_v54, %v5239_v8  ;;  %v12503_v31 = vpop.f32.mrf.mxu1 }
 0x2d6   : > { %v12537_v58 = vpop.f32.mrf.mxu0 }
 0x2d7   : > { %v16037_v22 = vadd.f32 %v12537_v58, %v12503_v31  ;;  %v16039_v39 = vpop.f32.mrf.mxu1  ;;  %v19072_v58 = vld [vmem:[#allocation58_spill] sm:$0xff] }
 0x2d8   : > { %v16041_v56 = vpop.f32.mrf.mxu0 }
 0x2d9   : > { %v12506_v50 = vpop.f32.mrf.mxu1  ;;  %12709 = vmatmul.mubr.msk.bf16.gmra.mxu1 %vm4851_vm0, %v6820_v33 }
 0x2da   : > { %v12540_v40 = vpop.f32.mrf.mxu0  ;;  %12743 = vmatmul.mubr.msk.bf16.gmra.mxu0 %vm4851_vm0, %v7150_v44  ;;  %12748 = vmatprep.mubr.msk.bf16.mxu1 %vm4851_vm0, %v7465_v35  ;;  %v19073_v44 = vpack.c.bf16 %v19072_v58, %v15596_v19  ;;  %v19074_v35 = vld [vmem:[#allocation20_spill] sm:$0xff] }
 0x2db   : > { %v16046_v12 = vadd.f32 %v12540_v40, %v12506_v50  ;;  %v5255_v32 = vpop.f32.mrf.mxu1  ;;  %v19075_v50 = vpack.c.bf16 %v19074_v35, %v15634_v16 }
 0x2dc   : > { %v5470_v0 = vpop.f32.mrf.mxu0 }
 0x2dd   : > { %v16049_v13 = vadd.f32 %v5470_v0, %v5255_v32  ;;  %v12507_v8 = vpop.f32.mrf.mxu1 }
 0x2de   : > { %v12541_v54 = vpop.f32.mrf.mxu0 }
 0x2df   : > { %v16051_v31 = vadd.f32 %v12541_v54, %v12507_v8  ;;  %v16053_v62 = vpop.f32.mrf.mxu1 }
 0x2e0   : > { %19070 = vst [vmem:[#allocation27_spill] sm:$0xff] %v16053_v62  ;;  %v16055_v5 = vpop.f32.mrf.mxu0 }
 0x2e1   : > { %19071 = vst [vmem:[#allocation67_spill] sm:$0xff] %v16055_v5  ;;  %v12546_v10 = vpop.f32.mrf.mxu1  ;;  %12749 = vmatmul.mubr.msk.bf16.vlgmr.msra.gmra.mxu1 %vm4851_vm0, %v19073_v44  ;;  %v7413_v5 = vld [vmem:[#allocation3 + $0x89] sm:$0xff] }
 0x2e2   : > { %v12580_v48 = vpop.f32.mrf.mxu0  ;;  %v5785_v33 = vadd.f32 %v12546_v10, %v15911_v17  ;;  %12752 = vmatprep.mubr.msk.bf16.mxu1 %vm4851_vm0, %v19075_v50  ;;  %v7412_v10 = vld [vmem:[#allocation3 + $0x81] sm:$0xff]  ;;  %v7414_v50 = vld [vmem:[#allocation3 + $0x91] sm:$0xff] }
 0x2e3   : > { %v5656_v40 = vpop.f32.mrf.mxu1 }
 0x2e4   : > { %v5986_v32 = vpop.f32.mrf.mxu0  ;;  %v16066_v0 = vadd.f32 %v12580_v48, %v5785_v33  ;;  %v5783_v8 = vadd.f32 %v5656_v40, %v15916_v61  ;;  %v19076_v33 = vld [vmem:[#allocation39_spill] sm:$0xff] }
 0x2e5   : > { %v12547_v54 = vpop.f32.mrf.mxu1  ;;  %v19077_v61 = vpack.c.bf16 %v19076_v33, %v15650_v59  ;;  %v7446_v59 = vmul.f32 %v19018_v24, %v7414_v50 }
 0x2e6   : > { %v12581_v42 = vpop.f32.mrf.mxu0  ;;  %v16069_v46 = vadd.f32 %v5986_v32, %v5783_v8  ;;  %v5786_v19 = vadd.f32 %v12547_v54, %v15920_v2  ;;  %v19078_v2 = vld [vmem:[#allocation89_spill] sm:$0xff] }
 0x2e7   : > { %v5659_v58 = vpop.f32.mrf.mxu1  ;;  %v19079_v32 = vpack.c.bf16 %v19078_v2, %v15652_v52 }
 0x2e8   : > { %v16072_v44 = vpop.f32.mrf.mxu0  ;;  %v16074_v17 = vadd.f32 %v12581_v42, %v5786_v19  ;;  %v16077_v16 = vadd.f32 %v5659_v58, %v15922_v6  ;;  %v7444_v6 = vmul.f32 %v18998_v45, %v7412_v10 }
 0x2e9   : > { %v12550_v35 = vpop.f32.mrf.mxu1  ;;  %12753 = vmatmul.mubr.msk.bf16.gmra.mxu1 %vm4851_vm0, %v19077_v61 }
 0x2ea   : > { %v12584_v48 = vpop.f32.mrf.mxu0  ;;  %v5789_v40 = vadd.f32 %v12550_v35, %v15926_v28  ;;  %12756 = vmatprep.mubr.msk.bf16.mxu1 %vm4851_vm0, %v19079_v32  ;;  %v7411_v35 = vld [vmem:[#allocation3 + $0x79] sm:$0xff] }
 0x2eb   : > { %v5672_v42 = vpop.f32.mrf.mxu1  ;;  %v7470_v32 = vpack.c.bf16 %v7444_v6, %v7411_v35 }
 0x2ec   : > { %v6002_v8 = vpop.f32.mrf.mxu0  ;;  %v16089_v54 = vadd.f32 %v12584_v48, %v5789_v40  ;;  %v5787_v19 = vadd.f32 %v5672_v42, %v15930_v60  ;;  %v7471_v60 = vpack.c.bf16 %v7446_v59, %v7413_v5  ;;  %v7416_v48 = vld [vmem:[#allocation3 + $0xa1] sm:$0xff]  ;;  %v7418_v42 = vld [vmem:[#allocation3 + $0xb1] sm:$0xff] }
 0x2ed   : > { %v12551_v58 = vpop.f32.mrf.mxu1  ;;  %v7448_v6 = vmul.f32 %v19004_v34, %v7416_v48  ;;  %v7450_v5 = vmul.f32 %v19005_v14, %v7418_v42 }
 0x2ee   : > { %v12585_v33 = vpop.f32.mrf.mxu0  ;;  %v16093_v61 = vadd.f32 %v6002_v8, %v5787_v19  ;;  %v5790_v28 = vadd.f32 %v12551_v58, %v15932_v4 }
 0x2ef   : > { %v5675_v52 = vpop.f32.mrf.mxu1 }
 0x2f0   : > { %v16096_v2 = vpop.f32.mrf.mxu0  ;;  %v16098_v62 = vadd.f32 %v12585_v33, %v5790_v28  ;;  %v16101_v10 = vadd.f32 %v5675_v52, %v15934_v21  ;;  %v7415_v52 = vld [vmem:[#allocation3 + $0x99] sm:$0xff] }
 0x2f1   : > { %v12554_v50 = vpop.f32.mrf.mxu1  ;;  %12757 = vmatmul.mubr.msk.bf16.gmra.mxu1 %vm4851_vm0, %v7470_v32 }
 0x2f2   : > { %v12588_v40 = vpop.f32.mrf.mxu0  ;;  %v5793_v4 = vadd.f32 %v12554_v50, %v15942_v49  ;;  %12760 = vmatprep.mubr.msk.bf16.mxu1 %vm4851_vm0, %v7471_v60  ;;  %v7472_v60 = vpack.c.bf16 %v7448_v6, %v7415_v52  ;;  %v7417_v50 = vld [vmem:[#allocation3 + $0xa9] sm:$0xff] }
 0x2f3   : > { %v5688_v8 = vpop.f32.mrf.mxu1 }
 0x2f4   : > { %v6018_v19 = vpop.f32.mrf.mxu0  ;;  %v16107_v58 = vadd.f32 %v12588_v40, %v5793_v4  ;;  %v5791_v21 = vadd.f32 %v5688_v8, %v15950_v1  ;;  %v7473_v1 = vpack.c.bf16 %v7450_v5, %v7417_v50  ;;  %v7420_v40 = vld [vmem:[#allocation3 + $0xc1] sm:$0xff]  ;;  %v7422_v8 = vld [vmem:[#allocation3 + $0xd1] sm:$0xff] }
 0x2f5   : > { %v12555_v59 = vpop.f32.mrf.mxu1 }
 0x2f6   : > { %v12589_v33 = vpop.f32.mrf.mxu0  ;;  %v16111_v28 = vadd.f32 %v6018_v19, %v5791_v21  ;;  %v5794_v35 = vadd.f32 %v12555_v59, %v15952_v47  ;;  %v13134_v19 = vld [vmem:[%s18159_s5 + $0x18] sm:$0xff]  }
 0x2f7   : > { %v5691_v49 = vpop.f32.mrf.mxu1  ;;  %12780 = vmatprep.subr.bf16.mxu0 %v13134_v19 }
 0x2f8   : > { %v16114_v32 = vpop.f32.mrf.mxu0  ;;  %v16116_v24 = vadd.f32 %v12589_v33, %v5794_v35  ;;  %v16119_v48 = vadd.f32 %v5691_v49, %v15954_v37  ;;  %v7452_v37 = vmul.f32 %v19006_v7, %v7420_v40  ;;  %v7454_v33 = vmul.f32 %v19007_v25, %v7422_v8  ;;  %12781 = vmatpush3.bf16.msra.mxu0 %v13134_v19  ;;  %v7421_v40 = vld [vmem:[#allocation3 + $0xc9] sm:$0xff]  ;;  %v7426_v19 = vld [vmem:[#allocation3 + $0xf1] sm:$0xff] }
 0x2f9   : > { %v12558_v42 = vpop.f32.mrf.mxu1  ;;  %12761 = vmatmul.mubr.msk.bf16.gmra.mxu1 %vm4851_vm0, %v7472_v60  ;;  %v7419_v60 = vld [vmem:[#allocation3 + $0xb9] sm:$0xff] }
 0x2fa   : > { %v12592_v4 = vpop.f32.mrf.mxu0  ;;  %v5797_v47 = vadd.f32 %v12558_v42, %v15962_v55  ;;  %12764 = vmatprep.mubr.msk.bf16.mxu1 %vm4851_vm0, %v7473_v1  ;;  %v7474_v42 = vpack.c.bf16 %v7452_v37, %v7419_v60  ;;  %v7475_v8 = vpack.c.bf16 %v7454_v33, %v7421_v40  ;;  %v7458_v33 = vmul.f32 %v19009_v30, %v7426_v19  ;;  %v7432_v30 = vld [vmem:[#allocation3 + $0x121] sm:$0xff] }
 0x2fb   : > { %v5704_v6 = vpop.f32.mrf.mxu1 }
 0x2fc   : > { %v6034_v21 = vpop.f32.mrf.mxu0  ;;  %v16128_v59 = vadd.f32 %v12592_v4, %v5797_v47  ;;  %v5795_v5 = vadd.f32 %v5704_v6, %v15970_v11  ;;  %v7424_v47 = vld [vmem:[#allocation3 + $0xe1] sm:$0xff] }
 0x2fd   : > { %v12559_v35 = vpop.f32.mrf.mxu1  ;;  %v7456_v37 = vmul.f32 %v19008_v23, %v7424_v47 }
 0x2fe   : > { %v12593_v52 = vpop.f32.mrf.mxu0  ;;  %v16132_v55 = vadd.f32 %v6034_v21, %v5795_v5  ;;  %v5798_v49 = vadd.f32 %v12559_v35, %v15972_v53 }
 0x2ff   : > { %v5707_v50 = vpop.f32.mrf.mxu1 }
 0x300   : > { %v16135_v1 = vpop.f32.mrf.mxu0  ;;  %v16137_v4 = vadd.f32 %v12593_v52, %v5798_v49  ;;  %v16140_v11 = vadd.f32 %v5707_v50, %v15974_v41 }
 0x301   : > { %v12562_v6 = vpop.f32.mrf.mxu1  ;;  %12765 = vmatmul.mubr.msk.bf16.gmra.mxu1 %vm4851_vm0, %v7474_v42  ;;  %v7423_v42 = vld [vmem:[#allocation3 + $0xd9] sm:$0xff] }
 0x302   : > { %v12596_v25 = vpop.f32.mrf.mxu0  ;;  %v5801_v53 = vadd.f32 %v12562_v6, %v15982_v63  ;;  %12768 = vmatprep.mubr.msk.bf16.mxu1 %vm4851_vm0, %v7475_v8  ;;  %v7476_v8 = vpack.c.bf16 %v7456_v37, %v7423_v42  ;;  %v7425_v6 = vld [vmem:[#allocation3 + $0xe9] sm:$0xff] }
 0x303   : > { %v5720_v21 = vpop.f32.mrf.mxu1 }
 0x304   : > { %v6050_v5 = vpop.f32.mrf.mxu0  ;;  %v16146_v35 = vadd.f32 %v12596_v25, %v5801_v53  ;;  %v5799_v41 = vadd.f32 %v5720_v21, %v15990_v38  ;;  %v7477_v25 = vpack.c.bf16 %v7458_v33, %v7425_v6  ;;  %v7428_v53 = vld [vmem:[#allocation3 + $0x101] sm:$0xff]  ;;  %v7427_v6 = vld [vmem:[#allocation3 + $0xf9] sm:$0xff] }
 0x305   : > { %v12563_v52 = vpop.f32.mrf.mxu1 }
 0x306   : > { %v12597_v49 = vpop.f32.mrf.mxu0  ;;  %v16150_v60 = vadd.f32 %v6050_v5, %v5799_v41  ;;  %v5802_v50 = vadd.f32 %v12563_v52, %v15992_v57  ;;  %v7460_v41 = vmul.f32 %v19010_v43, %v7428_v53 }
 0x307   : > { %v16153_v63 = vpop.f32.mrf.mxu1 }
 0x308   : > { %v16155_v40 = vpop.f32.mrf.mxu0  ;;  %v16157_v47 = vadd.f32 %v12597_v49, %v5802_v50 }
 0x309   : > { %v12566_v38 = vpop.f32.mrf.mxu1  ;;  %12769 = vmatmul.mubr.msk.bf16.gmra.mxu1 %vm4851_vm0, %v7476_v8  ;;  %v7431_v8 = vld [vmem:[#allocation3 + $0x119] sm:$0xff] }
 0x30a   : > { %v12600_v21 = vpop.f32.mrf.mxu0  ;;  %v5805_v19 = vadd.f32 %v12566_v38, %v16004_v26  ;;  %12772 = vmatprep.mubr.msk.bf16.mxu1 %vm4851_vm0, %v7477_v25  ;;  %v7478_v38 = vpack.c.bf16 %v7460_v41, %v7427_v6 }
 0x30b   : > { %v5736_v57 = vpop.f32.mrf.mxu1 }
 0x30c   : > { %v6066_v5 = vpop.f32.mrf.mxu0  ;;  %v16163_v52 = vadd.f32 %v12600_v21, %v5805_v19  ;;  %v5803_v37 = vadd.f32 %v5736_v57, %v16012_v29  ;;  %v7463_v29 = vmul.f32 0.0, %v7431_v8  ;;  %v7464_v19 = vmul.f32 0.0, %v7432_v30 }
 0x30d   : > { %v12567_v49 = vpop.f32.mrf.mxu1 }
 0x30e   : > { %v12601_v50 = vpop.f32.mrf.mxu0  ;;  %v16166_v33 = vadd.f32 %v6066_v5, %v5803_v37  ;;  %v5806_v42 = vadd.f32 %v12567_v49, %v16014_v9  ;;  %v19080_v5 = vld [vmem:[#allocation68_spill] sm:$0xff]  ;;  %v7480_v6 = vpack.c.bf16 %v7464_v19, %v7463_v29 }
 0x30f   : > { %v16169_v26 = vpop.f32.mrf.mxu1  ;;  %v19081_v9 = vpack.c.bf16 %v19080_v5, %v15678_v18 }
 0x310   : > { %v16171_v25 = vpop.f32.mrf.mxu0  ;;  %v16173_v23 = vadd.f32 %v12601_v50, %v5806_v42 }
 0x311   : > { %v12570_v53 = vpop.f32.mrf.mxu1  ;;  %12773 = vmatmul.mubr.msk.bf16.gmra.mxu1 %vm4851_vm0, %v7478_v38 }
 0x312   : > { %v12604_v21 = vpop.f32.mrf.mxu0  ;;  %v5809_v57 = vadd.f32 %v12570_v53, %v16026_v3  ;;  %12776 = vmatprep.mubr.msk.bf16.mxu1 %vm4851_vm0, %v19081_v9 }
 0x313   : > { %v5752_v37 = vpop.f32.mrf.mxu1 }
 0x314   : > { %v6082_v49 = vpop.f32.mrf.mxu0  ;;  %v16181_v43 = vadd.f32 %v12604_v21, %v5809_v57  ;;  %v5807_v41 = vadd.f32 %v5752_v37, %v16033_v51  ;;  %v13135_v51 = vld [vmem:[%s18159_s5 + $0x10] sm:$0xff]  }
 0x315   : > { %v12571_v50 = vpop.f32.mrf.mxu1  ;;  %12782 = vmatprep.subr.bf16.mxu0 %v13135_v51 }
 0x316   : > { %v12605_v42 = vpop.f32.mrf.mxu0  ;;  %v16184_v7 = vadd.f32 %v6082_v49, %v5807_v41  ;;  %v5810_v30 = vadd.f32 %v12571_v50, %v16037_v22  ;;  %12783 = vmatpush3.bf16.msra.mxu0 %v13135_v51 }
 0x317   : > { %v16187_v8 = vpop.f32.mrf.mxu1 }
 0x318   : > { %v16189_v3 = vpop.f32.mrf.mxu0  ;;  %v16191_v18 = vadd.f32 %v12605_v42, %v5810_v30 }
 0x319   : > { %v12574_v38 = vpop.f32.mrf.mxu1  ;;  %12777 = vmatmul.mubr.msk.bf16.gmra.mxu1 %vm4851_vm0, %v7480_v6 }
 0x31a   : > { %v12608_v53 = vpop.f32.mrf.mxu0  ;;  %v5813_v21 = vadd.f32 %v12574_v38, %v16046_v12 }
 0x31b   : > { %v5768_v29 = vpop.f32.mrf.mxu1 }
 0x31c   : > { %v6098_v19 = vpop.f32.mrf.mxu0  ;;  %v16198_v57 = vadd.f32 %v12608_v53, %v5813_v21  ;;  %v5811_v22 = vadd.f32 %v5768_v29, %v16049_v13 }
 0x31d   : > { %v12575_v5 = vpop.f32.mrf.mxu1 }
 0x31e   : > { %v12609_v9 = vpop.f32.mrf.mxu0  ;;  %v16201_v37 = vadd.f32 %v6098_v19, %v5811_v22  ;;  %v5814_v49 = vadd.f32 %v12575_v5, %v16051_v31  ;;  %v19082_v22 = vmov 0.0  }
 0x31f   : > { %v16204_v41 = vpop.f32.mrf.mxu1  ;;  %7803 = vst.msk [vmem:[#allocation4] sm:$0xff] %vm7802_vm1, %v19082_v22  ;;  %7804 = vst.msk [vmem:[#allocation4 + $0x8] sm:$0xff] %vm7802_vm1, %v19082_v22 }
 0x320   : > { %v16206_v12 = vpop.f32.mrf.mxu0  ;;  %v16208_v50 = vadd.f32 %v12609_v9, %v5814_v49  ;;  %7805 = vst.msk [vmem:[#allocation4 + $0x10] sm:$0xff] %vm7802_vm1, %v19082_v22  ;;  %7806 = vst.msk [vmem:[#allocation4 + $0x118] sm:$0xff] %vm7802_vm1, %v19082_v22 }
 0x321   : > { %v12614_v42 = vpop.f32.mrf.mxu1  ;;  %7807 = vst.msk [vmem:[#allocation4 + $0x120] sm:$0xff] %vm7802_vm1, %v19082_v22  ;;  %7808 = vst.msk [vmem:[#allocation4 + $0x128] sm:$0xff] %vm7802_vm1, %v19082_v22 }
 0x322   : > { %v16210_v6 = vpop.f32.mrf.mxu0  ;;  %v16213_v30 = vadd.f32 %v12614_v42, %v16066_v0 }
 0x323   : > { %v6252_v13 = vpop.f32.mrf.mxu1 }
 0x324   : > { %v16215_v38 = vpop.f32.mrf.mxu0  ;;  %v16218_v53 = vadd.f32 %v6252_v13, %v16069_v46 }
 0x325   : > { %v12615_v21 = vpop.f32.mrf.mxu1 }
 0x326   : > { %v16220_v31 = vpop.f32.mrf.mxu0  ;;  %v16223_v51 = vadd.f32 %v12615_v21, %v16074_v17 }
 0x327   : > { %v16225_v29 = vpop.f32.mrf.mxu1 }
 0x328   : > { %v16227_v19 = vpop.f32.mrf.mxu0 }
 0x329   : > { %v12618_v46 = vpop.f32.mrf.mxu1 }
 0x32a   : > { %v16241_v0 = vpop.f32.mrf.mxu0  ;;  %v16244_v17 = vadd.f32 %v12618_v46, %v16089_v54 }
 0x32b   : > { %v6268_v5 = vpop.f32.mrf.mxu1 }
 0x32c   : > { %v16246_v9 = vpop.f32.mrf.mxu0  ;;  %v16249_v49 = vadd.f32 %v6268_v5, %v16093_v61 }
 0x32d   : > { %19083 = vst [vmem:[#allocation29_spill] sm:$0xff] %v16246_v9  ;;  %v12619_v42 = vpop.f32.mrf.mxu1 }
 0x32e   : > { %v16251_v13 = vpop.f32.mrf.mxu0  ;;  %v16254_v21 = vadd.f32 %v12619_v42, %v16098_v62  ;;  %v13136_v42 = vld [vmem:[%s18159_s5 + $0x8] sm:$0xff]  }
 0x32f   : > { %19084 = vst [vmem:[#allocation8_spill] sm:$0xff] %v16251_v13  ;;  %v16256_v14 = vpop.f32.mrf.mxu1  ;;  %12816 = vmatprep.subr.bf16.mxu1 %v13136_v42 }
 0x330   : > { %v16258_v22 = vpop.f32.mrf.mxu0  ;;  %12817 = vmatpush3.bf16.msra.mxu1 %v13136_v42 }
 0x331   : > { %v12622_v34 = vpop.f32.mrf.mxu1 }
 0x332   : > { %v16260_v45 = vpop.f32.mrf.mxu0  ;;  %v16263_v54 = vadd.f32 %v12622_v34, %v16107_v58 }
 0x333   : > { %19085 = vst [vmem:[#allocation28_spill] sm:$0xff] %v16260_v45  ;;  %v6284_v46 = vpop.f32.mrf.mxu1 }
 0x334   : > { %19086 = vst [vmem:[#allocation92_spill] sm:$0xff] %v16263_v54  ;;  %v16265_v9 = vpop.f32.mrf.mxu0  ;;  %v16268_v61 = vadd.f32 %v6284_v46, %v16111_v28 }
 0x335   : > { %19087 = vst [vmem:[#allocation71_spill] sm:$0xff] %v16265_v9  ;;  %v12623_v5 = vpop.f32.mrf.mxu1 }
 0x336   : > { %19088 = vst [vmem:[#allocation65_spill] sm:$0xff] %v16268_v61  ;;  %v16270_v13 = vpop.f32.mrf.mxu0  ;;  %v16273_v62 = vadd.f32 %v12623_v5, %v16116_v24  ;;  %v13137_v24 = vld [vmem:[%s18159_s5] sm:$0xff]  }
 0x337   : > { %19089 = vst [vmem:[#allocation75_spill] sm:$0xff] %v16270_v13  ;;  %v16278_v45 = vpop.f32.mrf.mxu1  ;;  %12818 = vmatprep.subr.bf16.mxu1 %v13137_v24 }
 0x338   : > { %19090 = vst [vmem:[#allocation80_spill] sm:$0xff] %v16273_v62  ;;  %19091 = vst [vmem:[#allocation9_spill] sm:$0xff] %v16278_v45  ;;  %v16280_v34 = vpop.f32.mrf.mxu0  ;;  %12819 = vmatpush3.bf16.msra.mxu1 %v13137_v24  ;;  %v7842_v45 = vld [vmem:[#allocation4 + $0xf] sm:$0xff] }
 0x339   : > { %19092 = vst [vmem:[#allocation76_spill] sm:$0xff] %v16280_v34  ;;  %v12626_v58 = vpop.f32.mrf.mxu1  ;;  %v7874_v24 = vmul.f32 0.0, %v7842_v45 }
 0x33a   : > { %v16282_v9 = vpop.f32.mrf.mxu0  ;;  %v16285_v28 = vadd.f32 %v12626_v58, %v16128_v59  ;;  %v7925_v59 = vld [vmem:[#allocation4 + $0x8] sm:$0xff]  ;;  %v7926_v58 = vld [vmem:[#allocation4 + $0x10] sm:$0xff] }
 0x33b   : > { %19093 = vst [vmem:[#allocation11_spill] sm:$0xff] %v16282_v9  ;;  %v6300_v46 = vpop.f32.mrf.mxu1  ;;  %v7841_v9 = vld [vmem:[#allocation4 + $0x7] sm:$0xff]  ;;  %v7957_v54 = vmul.f32 0.0, %v7925_v59 }
 0x33c   : > { %19094 = vst [vmem:[#allocation93_spill] sm:$0xff] %v16285_v28  ;;  %v16290_v5 = vpop.f32.mrf.mxu0  ;;  %v16293_v13 = vadd.f32 %v6300_v46, %v16132_v55  ;;  %v7873_v55 = vmul.f32 0.0, %v7841_v9  ;;  %v16307_v46 = vld [vmem:[%s18159_s5 + $0x28] sm:$0xff]  }
 0x33d   : > { %19095 = vst [vmem:[#allocation91_spill] sm:$0xff] %v16290_v5  ;;  %v12627_v34 = vpop.f32.mrf.mxu1  ;;  %v7958_v5 = vmul.f32 0.0, %v7926_v58  ;;  %19100 = vst [vmem:[#allocation100_spill] sm:$0xff] %v16307_v46  ;;  %12852 = vmatprep.subr.bf16.mxu0 %v16307_v46 }
 0x33e   : > { %19096 = vst [vmem:[#allocation16_spill] sm:$0xff] %v16293_v13  ;;  %v16295_v62 = vpop.f32.mrf.mxu0  ;;  %v16298_v42 = vadd.f32 %v12627_v34, %v16137_v4 }
 0x33f   : > { %19097 = vst [vmem:[#allocation72_spill] sm:$0xff] %v16295_v62  ;;  %v16300_v28 = vpop.f32.mrf.mxu1  ;;  %v7989_v34 = vpack.c.bf16 %v7958_v5, %v7957_v54 }
 0x340   : > { %19098 = vst [vmem:[#allocation81_spill] sm:$0xff] %v16298_v42  ;;  %v16302_v61 = vpop.f32.mrf.mxu0 }
 0x341   : > { %19099 = vst [vmem:[#allocation82_spill] sm:$0xff] %v16302_v61  ;;  %v12630_v62 = vpop.f32.mrf.mxu1  ;;  %v7905_v61 = vpack.c.bf16 %v7874_v24, %v7873_v55  ;;  %12784 = vmatprep.mubr.msk.bf16.mxu0 %vm7802_vm1, %v7989_v34 }
 0x342   : > { %v16309_v4 = vpop.f32.mrf.mxu0  ;;  %v16313_v42 = vadd.f32 %v12630_v62, %v16146_v35 }
 0x343   : > { %19101 = vst [vmem:[#allocation96_spill] sm:$0xff] %v16309_v4  ;;  %v6316_v59 = vpop.f32.mrf.mxu1  ;;  %12820 = vmatprep.mubr.msk.bf16.mxu1 %vm7802_vm1, %v7905_v61 }
 0x344   : > { %19102 = vst [vmem:[#allocation78_spill] sm:$0xff] %v16313_v42  ;;  %v16315_v58 = vpop.f32.mrf.mxu0  ;;  %v16319_v9 = vadd.f32 %v6316_v59, %v16150_v60 }
 0x345   : > { %19103 = vst [vmem:[#allocation104_spill] sm:$0xff] %v16315_v58  ;;  %v12631_v45 = vpop.f32.mrf.mxu1 }
 0x346   : > { %19104 = vst [vmem:[#allocation40_spill] sm:$0xff] %v16319_v9  ;;  %v16322_v13 = vpop.f32.mrf.mxu0  ;;  %v16325_v54 = vadd.f32 %v12631_v45, %v16157_v47 }
 0x347   : > { %19105 = vst [vmem:[#allocation48_spill] sm:$0xff] %v16322_v13  ;;  %v16327_v5 = vpop.f32.mrf.mxu1 }
 0x348   : > { %19106 = vst [vmem:[#allocation7_spill] sm:$0xff] %v16325_v54  ;;  %19107 = vst [vmem:[#allocation83_spill] sm:$0xff] %v16327_v5  ;;  %v16329_v35 = vpop.f32.mrf.mxu0 }
 0x349   : > { %19108 = vst [vmem:[#allocation95_spill] sm:$0xff] %v16329_v35  ;;  %v12634_v62 = vpop.f32.mrf.mxu1 }
 0x34a   : > { %v16331_v55 = vpop.f32.mrf.mxu0  ;;  %v16334_v24 = vadd.f32 %v12634_v62, %v16163_v52 }
 0x34b   : > { %19109 = vst [vmem:[#allocation45_spill] sm:$0xff] %v16331_v55  ;;  %v6332_v60 = vpop.f32.mrf.mxu1 }
 0x34c   : > { %19110 = vst [vmem:[#allocation101_spill] sm:$0xff] %v16334_v24  ;;  %v16336_v34 = vpop.f32.mrf.mxu0  ;;  %v16339_v61 = vadd.f32 %v6332_v60, %v16166_v33 }
 0x34d   : > { %19111 = vst [vmem:[#allocation60_spill] sm:$0xff] %v16336_v34  ;;  %v12635_v59 = vpop.f32.mrf.mxu1 }
 0x34e   : > { %19112 = vst [vmem:[#allocation102_spill] sm:$0xff] %v16339_v61  ;;  %v16341_v46 = vpop.f32.mrf.mxu0  ;;  %v16344_v47 = vadd.f32 %v12635_v59, %v16173_v23 }
 0x34f   : > { %19113 = vst [vmem:[#allocation85_spill] sm:$0xff] %v16341_v46  ;;  %v16346_v45 = vpop.f32.mrf.mxu1 }
 0x350   : > { %19114 = vst [vmem:[#allocation107_spill] sm:$0xff] %v16344_v47  ;;  %19115 = vst [vmem:[#allocation15_spill] sm:$0xff] %v16346_v45  ;;  %v16348_v35 = vpop.f32.mrf.mxu0 }
 0x351   : > { %19116 = vst [vmem:[#allocation22_spill] sm:$0xff] %v16348_v35  ;;  %v12638_v55 = vpop.f32.mrf.mxu1 }
 0x352   : > { %v16350_v13 = vpop.f32.mrf.mxu0  ;;  %v16353_v52 = vadd.f32 %v12638_v55, %v16181_v43 }
 0x353   : > { %19117 = vst [vmem:[#allocation86_spill] sm:$0xff] %v16350_v13  ;;  %v6348_v62 = vpop.f32.mrf.mxu1 }
 0x354   : > { %19118 = vst [vmem:[#allocation51_spill] sm:$0xff] %v16353_v52  ;;  %v16355_v34 = vpop.f32.mrf.mxu0  ;;  %v16358_v33 = vadd.f32 %v6348_v62, %v16184_v7 }
 0x355   : > { %19119 = vst [vmem:[#allocation84_spill] sm:$0xff] %v16355_v34  ;;  %v12639_v60 = vpop.f32.mrf.mxu1 }
 0x356   : > { %19120 = vst [vmem:[#allocation10_spill] sm:$0xff] %v16358_v33  ;;  %v16360_v46 = vpop.f32.mrf.mxu0  ;;  %v16363_v23 = vadd.f32 %v12639_v60, %v16191_v18 }
 0x357   : > { %19121 = vst [vmem:[#allocation12_spill] sm:$0xff] %v16360_v46  ;;  %v16365_v59 = vpop.f32.mrf.mxu1 }
 0x358   : > { %19122 = vst [vmem:[#allocation61_spill] sm:$0xff] %v16363_v23  ;;  %19123 = vst [vmem:[#allocation13_spill] sm:$0xff] %v16365_v59  ;;  %v16367_v35 = vpop.f32.mrf.mxu0 }
 0x359   : > { %19124 = vst [vmem:[#allocation14_spill] sm:$0xff] %v16367_v35  ;;  %v12642_v13 = vpop.f32.mrf.mxu1 }
 0x35a   : > { %v16369_v45 = vpop.f32.mrf.mxu0  ;;  %v16372_v43 = vadd.f32 %v12642_v13, %v16198_v57 }
 0x35b   : > { %19125 = vst [vmem:[#allocation24_spill] sm:$0xff] %v16369_v45  ;;  %v6364_v55 = vpop.f32.mrf.mxu1 }
 0x35c   : > { %19126 = vst [vmem:[#allocation30_spill] sm:$0xff] %v16372_v43  ;;  %v16374_v34 = vpop.f32.mrf.mxu0  ;;  %v16377_v7 = vadd.f32 %v6364_v55, %v16201_v37  ;;  %v16415_v43 = vld [vmem:[%s18159_s5 + $0x38] sm:$0xff]  }
 0x35d   : > { %19127 = vst [vmem:[#allocation88_spill] sm:$0xff] %v16374_v34  ;;  %v12643_v62 = vpop.f32.mrf.mxu1  ;;  %19133 = vst [vmem:[#allocation23_spill] sm:$0xff] %v16415_v43  ;;  %12888 = vmatprep.subr.bf16.mxu1 %v16415_v43 }
 0x35e   : > { %19128 = vst [vmem:[#allocation6_spill] sm:$0xff] %v16377_v7  ;;  %v16379_v46 = vpop.f32.mrf.mxu0  ;;  %v16382_v18 = vadd.f32 %v12643_v62, %v16208_v50 }
 0x35f   : > { %19129 = vst [vmem:[#allocation32_spill] sm:$0xff] %v16379_v46  ;;  %v16384_v60 = vpop.f32.mrf.mxu1 }
 0x360   : > { %19130 = vst [vmem:[#allocation87_spill] sm:$0xff] %v16382_v18  ;;  %19131 = vst [vmem:[#allocation18_spill] sm:$0xff] %v16384_v60  ;;  %v16386_v35 = vpop.f32.mrf.mxu0 }
 0x361   : > { %19132 = vst [vmem:[#allocation17_spill] sm:$0xff] %v16386_v35  ;;  %v12682_v45 = vpop.f32.mrf.mxu1 }
 0x362   : > { %v16388_v59 = vpop.f32.mrf.mxu0 }
 0x363   : > { %v6912_v57 = vpop.f32.mrf.mxu1 }
 0x364   : > { %v16390_v13 = vpop.f32.mrf.mxu0 }
 0x365   : > { %v16392_v34 = vpop.f32.mrf.mxu1 }
 0x366   : > { %v16396_v55 = vpop.f32.mrf.mxu0 }
 0x367   : > { %v16394_v37 = vpop.f32.mrf.mxu1 }
 0x368   : > { %v16402_v62 = vpop.f32.mrf.mxu0 }
 0x369   : > { %v16398_v46 = vpop.f32.mrf.mxu1 }
 0x36a   : > { %v16408_v7 = vpop.f32.mrf.mxu0 }
 0x36b   : > { %v16400_v50 = vpop.f32.mrf.mxu1 }
 0x36c   : > { %v16420_v33 = vpop.f32.mrf.mxu0 }
 0x36d   : > { %v16404_v18 = vpop.f32.mrf.mxu1 }
 0x36e   : > { %v16426_v61 = vpop.f32.mrf.mxu0 }
 0x36f   : > { %v16406_v35 = vpop.f32.mrf.mxu1 }
 0x370   : > { %v16432_v58 = vpop.f32.mrf.mxu0 }
 0x371   : > { %v16410_v60 = vpop.f32.mrf.mxu1  ;;  %19139 = vst [vmem:[#allocation31_spill] sm:$0xff] %v16432_v58 }
 0x372   : > { %v16438_v42 = vpop.f32.mrf.mxu0 }
 0x373   : > { %v16417_v23 = vpop.f32.mrf.mxu1  ;;  %19142 = vst [vmem:[#allocation64_spill] sm:$0xff] %v16438_v42 }
 0x374   : > { %19134 = vst [vmem:[#allocation26_spill] sm:$0xff] %v16417_v23 }
 0x375   : > { %v16422_v52 = vpop.f32.mrf.mxu1 }
 0x376   : > { %19135 = vst [vmem:[#allocation98_spill] sm:$0xff] %v16422_v52  ;;  %v16444_v52 = vpop.f32.mrf.mxu0 }
 0x377   : > { %v16424_v47 = vpop.f32.mrf.mxu1  ;;  %19145 = vst [vmem:[#allocation63_spill] sm:$0xff] %v16444_v52 }
 0x378   : > { %19136 = vst [vmem:[#allocation66_spill] sm:$0xff] %v16424_v47 }
 0x379   : > { %v16428_v24 = vpop.f32.mrf.mxu1 }
 0x37a   : > { %19137 = vst [vmem:[#allocation25_spill] sm:$0xff] %v16428_v24  ;;  %v16450_v24 = vpop.f32.mrf.mxu0 }
 0x37b   : > { %v16430_v54 = vpop.f32.mrf.mxu1  ;;  %19148 = vst [vmem:[#allocation58_spill] sm:$0xff] %v16450_v24 }
 0x37c   : > { %19138 = vst [vmem:[#allocation19_spill] sm:$0xff] %v16430_v54 }
 0x37d   : > { %v16434_v9 = vpop.f32.mrf.mxu1 }
 0x37e   : > { %19140 = vst [vmem:[#allocation56_spill] sm:$0xff] %v16434_v9  ;;  %v16456_v9 = vpop.f32.mrf.mxu0 }
 0x37f   : > { %v16436_v4 = vpop.f32.mrf.mxu1 }
 0x380   : > { %19141 = vst [vmem:[#allocation52_spill] sm:$0xff] %v16436_v4 }
 0x381   : > { %v16440_v43 = vpop.f32.mrf.mxu1 }
 0x382   : > { %19143 = vst [vmem:[#allocation21_spill] sm:$0xff] %v16440_v43  ;;  %v16462_v43 = vpop.f32.mrf.mxu0 }
 0x383   : > { %v16442_v23 = vpop.f32.mrf.mxu1  ;;  %19153 = vst [vmem:[#allocation110_spill] sm:$0xff] %v16462_v43 }
 0x384   : > { %19144 = vst [vmem:[#allocation33_spill] sm:$0xff] %v16442_v23 }
 0x385   : > { %v16446_v47 = vpop.f32.mrf.mxu1 }
 0x386   : > { %19146 = vst [vmem:[#allocation57_spill] sm:$0xff] %v16446_v47  ;;  %v16468_v47 = vpop.f32.mrf.mxu0 }
 0x387   : > { %v16448_v5 = vpop.f32.mrf.mxu1 }
 0x388   : > { %19147 = vst [vmem:[#allocation47_spill] sm:$0xff] %v16448_v5 }
 0x389   : > { %v16452_v54 = vpop.f32.mrf.mxu1 }
 0x38a   : > { %19149 = vst [vmem:[#allocation20_spill] sm:$0xff] %v16452_v54  ;;  %v16474_v54 = vpop.f32.mrf.mxu0 }
 0x38b   : > { %v16454_v58 = vpop.f32.mrf.mxu1  ;;  %19158 = vst [vmem:[#allocation115_spill] sm:$0xff] %v16474_v54 }
 0x38c   : > { %19150 = vst [vmem:[#allocation39_spill] sm:$0xff] %v16454_v58  ;;  %v6114_v58 = vadd.f32 %v16072_v44, %v16077_v16  ;;  %v16489_v54 = vpop.f32.mrf.mxu0  ;;  %v5442_v44 = vadd.f32 %v16018_v20, %v16016_v36  ;;  %v5458_v16 = vadd.f32 %v16041_v56, %v16039_v39 }
 0x38d   : > { %v16458_v4 = vpop.f32.mrf.mxu1 }
 0x38e   : > { %19151 = vst [vmem:[#allocation89_spill] sm:$0xff] %v16458_v4  ;;  %v5808_v20 = vadd.f32 %v16187_v8, %v5458_v16 }
 0x38f   : > { %v16460_v42 = vpop.f32.mrf.mxu1 }
 0x390   : > { %19152 = vst [vmem:[#allocation68_spill] sm:$0xff] %v16460_v42  ;;  %v6711_v42 = vadd.f32 %v16210_v6, %v16213_v30  ;;  %v19159_v6 = vld [vmem:[#allocation27_spill] sm:$0xff] }
 0x391   : > { %v16464_v23 = vpop.f32.mrf.mxu1  ;;  %v19160_v30 = vld [vmem:[#allocation67_spill] sm:$0xff] }
 0x392   : > { %19154 = vst [vmem:[#allocation111_spill] sm:$0xff] %v16464_v23  ;;  %v6380_v23 = vadd.f32 %v16225_v29, %v6114_v58  ;;  %v5474_v29 = vadd.f32 %v19160_v30, %v19159_v6  ;;  %v19164_v6 = vld [vmem:[#allocation92_spill] sm:$0xff] }
 0x393   : > { %v16466_v52 = vpop.f32.mrf.mxu1  ;;  %v19165_v30 = vld [vmem:[#allocation28_spill] sm:$0xff] }
 0x394   : > { %19155 = vst [vmem:[#allocation112_spill] sm:$0xff] %v16466_v52  ;;  %v5426_v52 = vadd.f32 %v15996_v15, %v15994_v27  ;;  %v6118_v27 = vadd.f32 %v16096_v2, %v16101_v10  ;;  %v5812_v36 = vadd.f32 %v16204_v41, %v5474_v29  ;;  %v6710_v39 = vadd.f32 %v16227_v19, %v6380_v23  ;;  %v16512_v10 = vpop.f32.mrf.mxu0 }
 0x395   : > { %v16470_v5 = vpop.f32.mrf.mxu1  ;;  %v6719_v29 = vadd.f32 %v19165_v30, %v19164_v6  ;;  %v19181_v6 = vld [vmem:[#allocation26_spill] sm:$0xff] }
 0x396   : > { %19156 = vst [vmem:[#allocation113_spill] sm:$0xff] %v16470_v5  ;;  %v7041_v5 = vadd.f32 %v12682_v45, %v6711_v42  ;;  %v5800_v15 = vadd.f32 %v16153_v63, %v5426_v52  ;;  %v5804_v42 = vadd.f32 %v16169_v26, %v5442_v44  ;;  %v6122_v63 = vadd.f32 %v16114_v32, %v16119_v48 }
 0x397   : > { %v16472_v24 = vpop.f32.mrf.mxu1  ;;  %v6126_v26 = vadd.f32 %v16135_v1, %v16140_v11  ;;  %v6384_v8 = vadd.f32 %v16256_v14, %v6118_v27  ;;  %v7040_v41 = vadd.f32 %v16394_v37, %v6710_v39  ;;  %v16533_v14 = vadd.f32 %v16189_v3, %v5808_v20  ;;  %v19166_v27 = vld [vmem:[#allocation65_spill] sm:$0xff] }
 0x398   : > { %19157 = vst [vmem:[#allocation114_spill] sm:$0xff] %v16472_v24  ;;  %v6709_v24 = vadd.f32 %v16215_v38, %v16218_v53  ;;  %v6712_v38 = vadd.f32 %v16220_v31, %v16223_v51  ;;  %v7371_v45 = vadd.f32 %v16388_v59, %v7041_v5  ;;  %v16523_v51 = vld [vmem:[%s18158_s4] ss:$0 sm:$0xff]  ;;  %v6130_v19 = vadd.f32 %v16155_v40, %v5800_v15  ;;  %v19162_v59 = vld [vmem:[#allocation8_spill] sm:$0xff] }
 0x399   : > { %v16478_v4 = vpop.f32.mrf.mxu1  ;;  %v6715_v5 = vadd.f32 %v16241_v0, %v16244_v17  ;;  %v16530_v1 = vadd.f32 %v16171_v25, %v5804_v42  ;;  %v16536_v11 = vadd.f32 %v16206_v12, %v5812_v36  ;;  %v16542_v17 = vpop.f32.mrf.mxu0  ;;  %v6716_v3 = vadd.f32 %v19162_v59, %v16254_v21  ;;  %v19163_v12 = vld [vmem:[#allocation9_spill] sm:$0xff]  ;;  %v19167_v15 = vld [vmem:[#allocation71_spill] sm:$0xff]  ;;  %v19168_v21 = vld [vmem:[#allocation80_spill] sm:$0xff] }
 0x39a   : > { %v7039_v53 = vadd.f32 %v6912_v57, %v6709_v24  ;;  %v7042_v2 = vadd.f32 %v16392_v34, %v6712_v38  ;;  %v19161_v24 = vld [vmem:[#allocation29_spill] sm:$0xff]  ;;  %v6714_v57 = vadd.f32 %v16258_v22, %v6384_v8  ;;  %v7370_v37 = vadd.f32 %v16402_v62, %v7040_v41  ;;  %v19172_v41 = vld [vmem:[#allocation11_spill] sm:$0xff] }
 0x39b   : > { %v16483_v43 = vpop.f32.mrf.mxu1  ;;  %v6713_v34 = vadd.f32 %v19161_v24, %v16249_v49  ;;  %v7045_v0 = vadd.f32 %v16398_v46, %v6715_v5  ;;  %v6717_v38 = vadd.f32 %v19167_v15, %v19166_v27  ;;  %v7046_v42 = vadd.f32 %v16404_v18, %v6716_v3  ;;  %v16560_v36 = vpop.f32.mrf.mxu0  ;;  %v19171_v8 = vld [vmem:[#allocation93_spill] sm:$0xff] }
 0x39c   : > { %v7369_v32 = vadd.f32 %v16390_v13, %v7039_v53  ;;  %v7372_v40 = vadd.f32 %v16396_v55, %v7042_v2  ;;  %v6388_v13 = vadd.f32 %v19163_v12, %v6122_v63  ;;  %v19169_v53 = vld [vmem:[#allocation75_spill] sm:$0xff]  ;;  %v19170_v2 = vld [vmem:[#allocation76_spill] sm:$0xff]  ;;  %v6392_v5 = vadd.f32 %v16300_v28, %v6126_v26 }
 0x39d   : > { %v16497_v58 = vpop.f32.mrf.mxu1  ;;  %v7043_v44 = vadd.f32 %v16400_v50, %v6713_v34  ;;  %v6720_v22 = vadd.f32 %v19169_v53, %v19168_v21  ;;  %v7375_v62 = vadd.f32 %v16408_v7, %v7045_v0  ;;  %v7044_v18 = vadd.f32 %v16406_v35, %v6714_v57  ;;  %v16580_v3 = vpop.f32.mrf.mxu0  ;;  %v19182_v21 = vld [vmem:[#allocation78_spill] sm:$0xff]  ;;  %v19183_v53 = vld [vmem:[#allocation96_spill] sm:$0xff] }
 0x39e   : > { %v6718_v63 = vadd.f32 %v19170_v2, %v6388_v13  ;;  %v7376_v28 = vadd.f32 %v16426_v61, %v7046_v42  ;;  %v7049_v35 = vadd.f32 %v16410_v60, %v6719_v29  ;;  %v7047_v60 = vadd.f32 %v19181_v6, %v6717_v38  ;;  %v19188_v2 = vld [vmem:[#allocation98_spill] sm:$0xff] }
 0x39f   : > { %v16508_v56 = vpop.f32.mrf.mxu1  ;;  %v7373_v7 = vadd.f32 %v16420_v33, %v7043_v44  ;;  %v19179_v44 = vld [vmem:[#allocation83_spill] sm:$0xff]  ;;  %v16598_v42 = vadd.f32 %v19183_v53, %v19182_v21 }
 0x3a1   : > { %v12750_v31 = vpop.f32.mrf.mxu1 }
 0x3a2   : > { %v7701_v48 = vadd.f32 %v12750_v31, %v7371_v45  ;;  %v6723_v31 = vadd.f32 %v19172_v41, %v19171_v8  ;;  %v7050_v8 = vadd.f32 %v19188_v2, %v6720_v22  ;;  %v19189_v41 = vld [vmem:[#allocation64_spill] sm:$0xff] }
 0x3a3   : > { %v7572_v52 = vpop.f32.mrf.mxu1 }
 0x3a4   : > { %v7740_v23 = vadd.f32 %v16523_v51, %v7701_v48  ;;  %v7699_v25 = vadd.f32 %v7572_v52, %v7369_v32  ;;  %v19173_v52 = vld [vmem:[#allocation16_spill] sm:$0xff] }
 0x3a5   : > { %v12751_v49 = vpop.f32.mrf.mxu1 }
 0x3a6   : > { %v7772_v55 = vmax.f32 %v7740_v23, 0.0  ;;  %v7738_v46 = vadd.f32 %v16523_v51, %v7699_v25  ;;  %v7702_v16 = vadd.f32 %v12751_v49, %v7372_v40  ;;  %v19174_v40 = vld [vmem:[#allocation91_spill] sm:$0xff]  ;;  %v19175_v23 = vld [vmem:[#allocation81_spill] sm:$0xff]  ;;  %v19176_v25 = vld [vmem:[#allocation72_spill] sm:$0xff] }
 0x3a7   : > { %v7575_v20 = vpop.f32.mrf.mxu1  ;;  %v6721_v0 = vadd.f32 %v19174_v40, %v19173_v52  ;;  %v16576_v59 = vadd.f32 %v19176_v25, %v19175_v23  ;;  %v19191_v52 = vld [vmem:[#allocation101_spill] sm:$0xff]  ;;  %v19193_v25 = vld [vmem:[#allocation66_spill] sm:$0xff] }
 0x3a8   : > { %7811 = vst.msk [vmem:[#allocation4 + $0x28] sm:$0xff] %vm7802_vm1, %v7772_v55  ;;  %v7770_v50 = vmax.f32 %v7738_v46, 0.0  ;;  %v7741_v39 = vadd.f32 %v16523_v51, %v7702_v16  ;;  %v7700_v45 = vadd.f32 %v7575_v20, %v7370_v37  ;;  %v19178_v37 = vld [vmem:[#allocation82_spill] sm:$0xff]  ;;  %v6396_v46 = vadd.f32 %v19179_v44, %v6130_v19  ;;  %v19180_v16 = vld [vmem:[#allocation31_spill] sm:$0xff]  ;;  %v19184_v20 = vld [vmem:[#allocation40_spill] sm:$0xff] }
 0x3a9   : > { %v12754_v32 = vpop.f32.mrf.mxu1  ;;  %v16587_v49 = vadd.f32 %v19178_v37, %v6392_v5  ;;  %v7374_v61 = vadd.f32 %v19180_v16, %v7044_v18  ;;  %v7379_v5 = vadd.f32 %v19189_v41, %v7049_v35  ;;  %v16610_v18 = vpop.f32.mrf.mxu0  ;;  %v19192_v40 = vld [vmem:[#allocation45_spill] sm:$0xff]  ;;  %v7048_v22 = vadd.f32 %v19193_v25, %v6718_v63 }
 0x3aa   : > { %7809 = vst.msk [vmem:[#allocation4 + $0x18] sm:$0xff] %vm7802_vm1, %v7770_v50  ;;  %v7773_v48 = vmax.f32 %v7741_v39, 0.0  ;;  %v7739_v24 = vadd.f32 %v16523_v51, %v7700_v45  ;;  %v7705_v34 = vadd.f32 %v12754_v32, %v7375_v62  ;;  %v19185_v62 = vld [vmem:[#allocation104_spill] sm:$0xff]  ;;  %v19186_v39 = vld [vmem:[#allocation7_spill] sm:$0xff]  ;;  %v16619_v23 = vadd.f32 %v19192_v40, %v19191_v52 }
 0x3ab   : > { %v7588_v26 = vpop.f32.mrf.mxu1  ;;  %v16602_v19 = vadd.f32 %v19185_v62, %v19184_v20  ;;  %v19187_v45 = vld [vmem:[#allocation48_spill] sm:$0xff]  ;;  %v16639_v20 = vpop.f32.mrf.mxu0  ;;  %v7378_v41 = vadd.f32 %v16456_v9, %v7048_v22  ;;  %v19205_v40 = vld [vmem:[#allocation35_spill] sm:$0xff] }
 0x3ac   : > { %7812 = vst.msk [vmem:[#allocation4 + $0x30] sm:$0xff] %vm7802_vm1, %v7773_v48  ;;  %v16583_v33 = vpack.c.bf16 %v7773_v48, %v7772_v55  ;;  %v7771_v57 = vmax.f32 %v7739_v24, 0.0  ;;  %v7744_v12 = vadd.f32 %v16523_v51, %v7705_v34  ;;  %v7703_v13 = vadd.f32 %v7588_v26, %v7373_v7  ;;  %v19190_v24 = vld [vmem:[#allocation95_spill] sm:$0xff] }
 0x3ad   : > { %v12755_v30 = vpop.f32.mrf.mxu1  ;;  %v16606_v38 = vadd.f32 %v19187_v45, %v19186_v39  ;;  %v16615_v34 = vadd.f32 %v19190_v24, %v6396_v46  ;;  %v19196_v46 = vld [vmem:[#allocation102_spill] sm:$0xff] }
 0x3ae   : > { %19177 = vst [vmem:[#allocation27_spill] sm:$0xff] %v16583_v33  ;;  %7810 = vst.msk [vmem:[#allocation4 + $0x20] sm:$0xff] %vm7802_vm1, %v7771_v57  ;;  %v16593_v29 = vpack.c.bf16 %v7771_v57, %v7770_v50  ;;  %v7776_v55 = vmax.f32 %v7744_v12, 0.0  ;;  %v7742_v27 = vadd.f32 %v16523_v51, %v7703_v13  ;;  %v7706_v15 = vadd.f32 %v12755_v30, %v7376_v28  ;;  %v19194_v28 = vld [vmem:[#allocation25_spill] sm:$0xff]  ;;  %v19195_v57 = vld [vmem:[#allocation63_spill] sm:$0xff] }
 0x3af   : > { %v7591_v50 = vpop.f32.mrf.mxu1  ;;  %v7053_v26 = vadd.f32 %v19194_v28, %v6723_v31  ;;  %v7377_v12 = vadd.f32 %v19195_v57, %v7047_v60  ;;  %v19198_v30 = vld [vmem:[#allocation107_spill] sm:$0xff]  ;;  %v19201_v60 = vld [vmem:[#allocation58_spill] sm:$0xff] }
 0x3b0   : > { %7815 = vst.msk [vmem:[#allocation4 + $0x48] sm:$0xff] %vm7802_vm1, %v7776_v55  ;;  %v7774_v32 = vmax.f32 %v7742_v27, 0.0  ;;  %v7745_v7 = vadd.f32 %v16523_v51, %v7706_v15  ;;  %v7704_v48 = vadd.f32 %v7591_v50, %v7374_v61  ;;  %v19197_v61 = vld [vmem:[#allocation60_spill] sm:$0xff]  ;;  %v19199_v27 = vld [vmem:[#allocation85_spill] sm:$0xff]  ;;  %v19200_v31 = vld [vmem:[#allocation15_spill] sm:$0xff]  ;;  %v7380_v21 = vadd.f32 %v19201_v60, %v7050_v8 }
 0x3b1   : > { %v12758_v35 = vpop.f32.mrf.mxu1  ;;  %v16626_v16 = vld [vmem:[#allocation4 + $0x17] sm:$0xff]  ;;  %v16630_v6 = vadd.f32 %v19197_v61, %v19196_v46  ;;  %v16634_v63 = vadd.f32 %v19199_v27, %v19198_v30  ;;  %v6400_v15 = vadd.f32 %v19200_v31, %v16530_v1  ;;  %v19208_v46 = vld [vmem:[#allocation37_spill] sm:$0xff]  ;;  %v16666_v30 = vpop.f32.mrf.mxu0 }
 0x3b2   : > { %7813 = vst.msk [vmem:[#allocation4 + $0x38] sm:$0xff] %vm7802_vm1, %v7774_v32  ;;  %v7777_v13 = vmax.f32 %v7745_v7, 0.0  ;;  %v7743_v37 = vadd.f32 %v16523_v51, %v7704_v48  ;;  %v7709_v44 = vadd.f32 %v12758_v35, %v7379_v5  ;;  %v19203_v5 = vld [vmem:[#allocation110_spill] sm:$0xff]  ;;  %v19204_v48 = vld [vmem:[#allocation19_spill] sm:$0xff]  ;;  %v7875_v25 = vmul.f32 %v19205_v40, %v16626_v16 }
 0x3b3   : > { %v7604_v53 = vpop.f32.mrf.mxu1  ;;  %v7930_v50 = vld [vmem:[#allocation4 + $0x30] sm:$0xff]  ;;  %v7383_v7 = vadd.f32 %v19203_v5, %v7053_v26  ;;  %v7051_v1 = vadd.f32 %v19204_v48, %v6721_v0  ;;  %v7927_v26 = vld [vmem:[#allocation4 + $0x18] sm:$0xff]  ;;  %v19207_v0 = vld [vmem:[#allocation56_spill] sm:$0xff] }
 0x3b4   : > { %7816 = vst.msk [vmem:[#allocation4 + $0x50] sm:$0xff] %vm7802_vm1, %v7777_v13  ;;  %v16642_v62 = vpack.c.bf16 %v7777_v13, %v7776_v55  ;;  %v7775_v39 = vmax.f32 %v7743_v37, 0.0  ;;  %v7748_v45 = vadd.f32 %v16523_v51, %v7709_v44  ;;  %v7707_v2 = vadd.f32 %v7604_v53, %v7377_v12  ;;  %v7929_v44 = vld [vmem:[#allocation4 + $0x28] sm:$0xff] }
 0x3b5   : > { %v12759_v24 = vpop.f32.mrf.mxu1  ;;  %v7928_v8 = vld [vmem:[#allocation4 + $0x20] sm:$0xff]  ;;  %v7054_v57 = vadd.f32 %v19207_v0, %v16576_v59  ;;  %v7991_v60 = vpack.c.bf16 %v7930_v50, %v7929_v44  ;;  %v7381_v50 = vadd.f32 %v16468_v47, %v7051_v1  ;;  %v19214_v0 = vld [vmem:[#allocation86_spill] sm:$0xff] }
 0x3b6   : > { %19202 = vst [vmem:[#allocation67_spill] sm:$0xff] %v16642_v62  ;;  %v16648_v52 = vld [vmem:[#allocation4 + $0x1f] sm:$0xff]  ;;  %v16652_v55 = vld [vmem:[#allocation4 + $0x27] sm:$0xff]  ;;  %7814 = vst.msk [vmem:[#allocation4 + $0x40] sm:$0xff] %vm7802_vm1, %v7775_v39  ;;  %v16655_v28 = vpack.c.bf16 %v7775_v39, %v7774_v32  ;;  %v7780_v35 = vmax.f32 %v7748_v45, 0.0  ;;  %v7746_v9 = vadd.f32 %v16523_v51, %v7707_v2  ;;  %v7710_v22 = vadd.f32 %v12759_v24, %v7380_v21 }
 0x3b7   : > { %v7607_v12 = vpop.f32.mrf.mxu1  ;;  %v7990_v13 = vpack.c.bf16 %v7928_v8, %v7927_v26  ;;  %v7906_v37 = vpack.c.bf16 %v16648_v52, %v7875_v25  ;;  %v7877_v61 = vmul.f32 %v19208_v46, %v16652_v55  ;;  %v13139_v32 = vld [vmem:[%s18159_s5 + $0x20] sm:$0xff]   ;;  %v16670_v21 = vld [vmem:[#allocation4 + $0x2f] sm:$0xff] }
 0x3b8   : > { %19206 = vst [vmem:[#allocation29_spill] sm:$0xff] %v16655_v28  ;;  %7819 = vst.msk [vmem:[#allocation4 + $0x68] sm:$0xff] %vm7802_vm1, %v7780_v35  ;;  %v7778_v27 = vmax.f32 %v7746_v9, 0.0  ;;  %v7749_v31 = vadd.f32 %v16523_v51, %v7710_v22  ;;  %v7708_v59 = vadd.f32 %v7607_v12, %v7378_v41  ;;  %v19209_v53 = vld [vmem:[#allocation52_spill] sm:$0xff]  ;;  %v19210_v45 = vld [vmem:[#allocation21_spill] sm:$0xff] }
 0x3b9   : > { %v7052_v39 = vadd.f32 %v19209_v53, %v16587_v49  ;;  %v7057_v2 = vadd.f32 %v19210_v45, %v16598_v42  ;;  %12785 = vmatmul.mubr.msk.bf16.vlgmr.msra.gmra.mxu0 %vm7802_vm1, %v7990_v13  ;;  %12821 = vmatmul.mubr.msk.bf16.vlgmr.msra.gmra.mxu1 %vm7802_vm1, %v7906_v37  ;;  %v12762_v5 = vpop.f32.mrf.mxu1  ;;  %v7907_v48 = vpack.c.bf16 %v16670_v21, %v7877_v61  ;;  %v13141_v41 = vld [vmem:[%s18159_s5 + $0x30] sm:$0xff]   ;;  %v19211_v8 = vld [vmem:[#allocation100_spill] sm:$0xff]  ;;  %v19213_v26 = vld [vmem:[#allocation51_spill] sm:$0xff]  ;;  %v16703_v37 = vpop.f32.mrf.mxu0 }
 0x3ba   : > { %7817 = vst.msk [vmem:[#allocation4 + $0x58] sm:$0xff] %vm7802_vm1, %v7778_v27  ;;  %v7781_v24 = vmax.f32 %v7749_v31, 0.0  ;;  %v7747_v49 = vadd.f32 %v16523_v51, %v7708_v59  ;;  %12853 = vmatpush3.bf16.msra.mxu0 %v19211_v8  ;;  %v7713_v42 = vadd.f32 %v12762_v5, %v7383_v7  ;;  %12788 = vmatprep.mubr.msk.bf16.mxu0 %vm7802_vm1, %v7991_v60  ;;  %v16687_v25 = vld [vmem:[#allocation4 + $0x37] sm:$0xff]  ;;  %v16701_v7 = vld [vmem:[%s18159_s5 + $0x48] sm:$0xff]  }
 0x3bb   : > { %v19212_v9 = vld [vmem:[#allocation22_spill] sm:$0xff]  ;;  %v16694_v12 = vadd.f32 %v19214_v0, %v19213_v26  ;;  %v19215_v47 = vld [vmem:[#allocation115_spill] sm:$0xff]  ;;  %12824 = vmatprep.mubr.msk.bf16.mxu1 %vm7802_vm1, %v7907_v48  ;;  %v7620_v13 = vpop.f32.mrf.mxu1  ;;  %12854 = vmatprep.subr.bf16.mxu0 %v13139_v32  ;;  %v7382_v60 = vadd.f32 %v16489_v54, %v7052_v39  ;;  %v7387_v53 = vadd.f32 %v16512_v10, %v7057_v2  ;;  %v19218_v45 = vld [vmem:[#allocation33_spill] sm:$0xff] }
 0x3bc   : > { %v16690_v22 = vadd.f32 %v19212_v9, %v6400_v15  ;;  %v7384_v1 = vadd.f32 %v19215_v47, %v7054_v57  ;;  %7820 = vst.msk [vmem:[#allocation4 + $0x70] sm:$0xff] %vm7802_vm1, %v7781_v24  ;;  %v16706_v15 = vpack.c.bf16 %v7781_v24, %v7780_v35  ;;  %v7779_v44 = vmax.f32 %v7747_v49, 0.0  ;;  %v7934_v57 = vld [vmem:[#allocation4 + $0x50] sm:$0xff]  ;;  %v19217_v59 = vld [vmem:[#allocation23_spill] sm:$0xff] }
 0x3bd   : > { %v7752_v61 = vadd.f32 %v16523_v51, %v7713_v42  ;;  %v7711_v31 = vadd.f32 %v7620_v13, %v7381_v50  ;;  %12889 = vmatpush3.bf16.msra.mxu1 %v19217_v59  ;;  %v7055_v5 = vadd.f32 %v19218_v45, %v16602_v19  ;;  %v12763_v48 = vpop.f32.mrf.mxu1  ;;  %v7932_v8 = vld [vmem:[#allocation4 + $0x40] sm:$0xff]  ;;  %v19219_v35 = vld [vmem:[#allocation41_spill] sm:$0xff]  ;;  %v7931_v2 = vld [vmem:[#allocation4 + $0x38] sm:$0xff] }
 0x3be   : > { %19216 = vst [vmem:[#allocation8_spill] sm:$0xff] %v16706_v15  ;;  %v16714_v9 = vld [vmem:[#allocation4 + $0x3f] sm:$0xff]  ;;  %v7879_v24 = vmul.f32 %v19219_v35, %v16687_v25  ;;  %v16718_v49 = vld [vmem:[#allocation4 + $0x47] sm:$0xff]  ;;  %12890 = vmatprep.subr.bf16.mxu1 %v13141_v41  ;;  %7818 = vst.msk [vmem:[#allocation4 + $0x60] sm:$0xff] %vm7802_vm1, %v7779_v44  ;;  %v16721_v50 = vpack.c.bf16 %v7779_v44, %v7778_v27  ;;  %v7714_v39 = vadd.f32 %v12763_v48, %v7384_v1  ;;  %v16735_v1 = vpop.f32.mrf.mxu0 }
 0x3bf   : > { %v7784_v54 = vmax.f32 %v7752_v61, 0.0  ;;  %v7750_v10 = vadd.f32 %v16523_v51, %v7711_v31  ;;  %12855 = vmatpush3.bf16.msra.mxu0 %v13139_v32  ;;  %v16727_v19 = vld [vmem:[%s18159_s5 + $0x58] sm:$0xff]   ;;  %v19221_v42 = vld [vmem:[#allocation57_spill] sm:$0xff]  ;;  %v7623_v0 = vpop.f32.mrf.mxu1  ;;  %v7992_v47 = vpack.c.bf16 %v7932_v8, %v7931_v2 }
 0x3c0   : > { %19220 = vst [vmem:[#allocation9_spill] sm:$0xff] %v16721_v50  ;;  %v7058_v26 = vadd.f32 %v19221_v42, %v16606_v38  ;;  %v7908_v13 = vpack.c.bf16 %v16714_v9, %v7879_v24  ;;  %v7933_v27 = vld [vmem:[#allocation4 + $0x48] sm:$0xff]  ;;  %v19222_v44 = vld [vmem:[#allocation43_spill] sm:$0xff]  ;;  %12924 = vmatprep.subr.bf16.mxu0 %v16701_v7  ;;  %v7753_v31 = vadd.f32 %v16523_v51, %v7714_v39  ;;  %v19235_v15 = vld [vmem:[#allocation50_spill] sm:$0xff] }
 0x3c1   : > { %v7881_v61 = vmul.f32 %v19222_v44, %v16718_v49  ;;  %7823 = vst.msk [vmem:[#allocation4 + $0x88] sm:$0xff] %vm7802_vm1, %v7784_v54  ;;  %v7782_v32 = vmax.f32 %v7750_v10, 0.0  ;;  %v7712_v59 = vadd.f32 %v7623_v0, %v7382_v60  ;;  %v7993_v45 = vpack.c.bf16 %v7934_v57, %v7933_v27  ;;  %v16739_v38 = vld [vmem:[#allocation4 + $0x4f] sm:$0xff]  ;;  %12891 = vmatpush3.bf16.msra.mxu1 %v13141_v41  ;;  %v19223_v48 = vld [vmem:[#allocation47_spill] sm:$0xff]  ;;  %v19224_v24 = vld [vmem:[#allocation20_spill] sm:$0xff]  ;;  %v12766_v42 = vpop.f32.mrf.mxu1 }
 0x3c2   : > { %v7056_v8 = vadd.f32 %v19223_v48, %v16615_v34  ;;  %v7061_v2 = vadd.f32 %v19224_v24, %v16619_v23  ;;  %12789 = vmatmul.mubr.msk.bf16.gmra.mxu0 %vm7802_vm1, %v7992_v47  ;;  %12825 = vmatmul.mubr.msk.bf16.gmra.mxu1 %vm7802_vm1, %v7908_v13  ;;  %v7385_v39 = vadd.f32 %v16542_v17, %v7055_v5  ;;  %v7785_v57 = vmax.f32 %v7753_v31, 0.0  ;;  %v16752_v34 = vld [vmem:[#allocation4 + $0x57] sm:$0xff]  ;;  %v19226_v0 = vld [vmem:[#allocation84_spill] sm:$0xff]  ;;  %v19227_v13 = vld [vmem:[#allocation61_spill] sm:$0xff] }
 0x3c3   : > { %v7909_v10 = vpack.c.bf16 %v16739_v38, %v7881_v61  ;;  %7821 = vst.msk [vmem:[#allocation4 + $0x78] sm:$0xff] %vm7802_vm1, %v7782_v32  ;;  %v7751_v41 = vadd.f32 %v16523_v51, %v7712_v59  ;;  %v7717_v60 = vadd.f32 %v12766_v42, %v7387_v53  ;;  %12792 = vmatprep.mubr.msk.bf16.mxu0 %vm7802_vm1, %v7993_v45  ;;  %v19225_v23 = vld [vmem:[#allocation10_spill] sm:$0xff]  ;;  %v19228_v27 = vld [vmem:[#allocation12_spill] sm:$0xff]  ;;  %v19229_v17 = vld [vmem:[#allocation13_spill] sm:$0xff]  ;;  %v7636_v53 = vpop.f32.mrf.mxu1  ;;  %v16767_v59 = vpop.f32.mrf.mxu0 }
 0x3c4   : > { %12960 = vmatprep.subr.bf16.mxu1 %v16727_v19  ;;  %v16757_v47 = vadd.f32 %v19226_v0, %v19225_v23  ;;  %v16761_v61 = vadd.f32 %v19228_v27, %v19227_v13  ;;  %v6404_v5 = vadd.f32 %v19229_v17, %v16533_v14  ;;  %v7388_v31 = vadd.f32 %v16560_v36, %v7058_v26  ;;  %v7938_v23 = vld [vmem:[#allocation4 + $0x70] sm:$0xff]  ;;  %v19231_v36 = vld [vmem:[#allocation39_spill] sm:$0xff] }
 0x3c5   : > { %12828 = vmatprep.mubr.msk.bf16.mxu1 %vm7802_vm1, %v7909_v10  ;;  %7824 = vst.msk [vmem:[#allocation4 + $0x90] sm:$0xff] %vm7802_vm1, %v7785_v57  ;;  %v16770_v45 = vpack.c.bf16 %v7785_v57, %v7784_v54  ;;  %v7783_v48 = vmax.f32 %v7751_v41, 0.0  ;;  %v7756_v24 = vadd.f32 %v16523_v51, %v7717_v60  ;;  %v7715_v42 = vadd.f32 %v7636_v53, %v7385_v39  ;;  %v12767_v10 = vpop.f32.mrf.mxu1  ;;  %v7936_v13 = vld [vmem:[#allocation4 + $0x60] sm:$0xff]  ;;  %v19232_v17 = vld [vmem:[#allocation46_spill] sm:$0xff]  ;;  %v16792_v62 = vpop.f32.mrf.mxu0 }
 0x3c6   : > { %v7386_v0 = vadd.f32 %v16580_v3, %v7056_v8  ;;  %v7391_v14 = vadd.f32 %v16610_v18, %v7061_v2  ;;  %v7059_v26 = vadd.f32 %v19231_v36, %v16630_v6  ;;  %v16777_v27 = vld [vmem:[#allocation4 + $0x5f] sm:$0xff]  ;;  %v7883_v54 = vmul.f32 %v19232_v17, %v16752_v34  ;;  %v16781_v57 = vld [vmem:[#allocation4 + $0x67] sm:$0xff] }
 0x3c7   : > { %19230 = vst [vmem:[#allocation92_spill] sm:$0xff] %v16770_v45  ;;  %7822 = vst.msk [vmem:[#allocation4 + $0x80] sm:$0xff] %vm7802_vm1, %v7783_v48  ;;  %v16784_v39 = vpack.c.bf16 %v7783_v48, %v7782_v32  ;;  %v7788_v41 = vmax.f32 %v7756_v24, 0.0  ;;  %v7754_v3 = vadd.f32 %v16523_v51, %v7715_v42  ;;  %v7718_v18 = vadd.f32 %v12767_v10, %v7388_v31  ;;  %v7935_v8 = vld [vmem:[#allocation4 + $0x58] sm:$0xff]  ;;  %v19234_v6 = vld [vmem:[#allocation89_spill] sm:$0xff]  ;;  %v7639_v60 = vpop.f32.mrf.mxu1 }
 0x3c8   : > { %v7062_v2 = vadd.f32 %v19234_v6, %v16634_v63  ;;  %v7994_v53 = vpack.c.bf16 %v7936_v13, %v7935_v8  ;;  %v7910_v36 = vpack.c.bf16 %v16777_v27, %v7883_v54  ;;  %v7937_v45 = vld [vmem:[#allocation4 + $0x68] sm:$0xff]  ;;  %v7885_v50 = vmul.f32 %v19235_v15, %v16781_v57  ;;  %v19237_v13 = vld [vmem:[#allocation111_spill] sm:$0xff] }
 0x3c9   : > { %19233 = vst [vmem:[#allocation28_spill] sm:$0xff] %v16784_v39  ;;  %7827 = vst.msk [vmem:[#allocation4 + $0xa8] sm:$0xff] %vm7802_vm1, %v7788_v41  ;;  %v7786_v32 = vmax.f32 %v7754_v3, 0.0  ;;  %v7757_v48 = vadd.f32 %v16523_v51, %v7718_v18  ;;  %v7716_v31 = vadd.f32 %v7639_v60, %v7386_v0  ;;  %v7995_v24 = vpack.c.bf16 %v7938_v23, %v7937_v45  ;;  %v16796_v42 = vld [vmem:[#allocation4 + $0x6f] sm:$0xff]  ;;  %v19236_v63 = vld [vmem:[#allocation68_spill] sm:$0xff]  ;;  %v12770_v8 = vpop.f32.mrf.mxu1 }
 0x3ca   : > { %v7060_v10 = vadd.f32 %v19236_v63, %v16690_v22  ;;  %v7065_v54 = vadd.f32 %v19237_v13, %v16694_v12  ;;  %12793 = vmatmul.mubr.msk.bf16.gmra.mxu0 %vm7802_vm1, %v7994_v53  ;;  %12829 = vmatmul.mubr.msk.bf16.gmra.mxu1 %vm7802_vm1, %v7910_v36  ;;  %v7911_v6 = vpack.c.bf16 %v16796_v42, %v7885_v50  ;;  %v16809_v22 = vld [vmem:[#allocation4 + $0x77] sm:$0xff]  ;;  %v19240_v53 = vld [vmem:[#allocation24_spill] sm:$0xff] }
 0x3cb   : > { %v7389_v3 = vadd.f32 %v16639_v20, %v7059_v26  ;;  %7825 = vst.msk [vmem:[#allocation4 + $0x98] sm:$0xff] %vm7802_vm1, %v7786_v32  ;;  %v7789_v45 = vmax.f32 %v7757_v48, 0.0  ;;  %v7755_v23 = vadd.f32 %v16523_v51, %v7716_v31  ;;  %v7721_v0 = vadd.f32 %v12770_v8, %v7391_v14  ;;  %12796 = vmatprep.mubr.msk.bf16.mxu0 %vm7802_vm1, %v7995_v24  ;;  %v19238_v12 = vld [vmem:[#allocation14_spill] sm:$0xff]  ;;  %v7652_v26 = vpop.f32.mrf.mxu1  ;;  %v7341_v48 = vpop.f32.mrf.mxu0  ;;  %v19248_v39 = vld [vmem:[#allocation59_spill] sm:$0xff] }
 0x3cc   : > { %v6734_v18 = vadd.f32 %v19238_v12, %v6404_v5  ;;  %v19239_v60 = vld [vmem:[#allocation30_spill] sm:$0xff]  ;;  %v7392_v20 = vadd.f32 %v16666_v30, %v7062_v2  ;;  %12832 = vmatprep.mubr.msk.bf16.mxu1 %vm7802_vm1, %v7911_v6  ;;  %v7390_v8 = vadd.f32 %v16703_v37, %v7060_v10  ;;  %v7395_v12 = vadd.f32 %v16735_v1, %v7065_v54 }
 0x3cd   : > { %v6739_v36 = vadd.f32 %v19240_v53, %v19239_v60  ;;  %v19241_v63 = vld [vmem:[#allocation18_spill] sm:$0xff]  ;;  %7828 = vst.msk [vmem:[#allocation4 + $0xb0] sm:$0xff] %vm7802_vm1, %v7789_v45  ;;  %v16819_v14 = vpack.c.bf16 %v7789_v45, %v7788_v41  ;;  %v7787_v31 = vmax.f32 %v7755_v23, 0.0  ;;  %v7760_v24 = vadd.f32 %v16523_v51, %v7721_v0  ;;  %v12771_v2 = vpop.f32.mrf.mxu1  ;;  %v12744_v23 = vpop.f32.mrf.mxu0 }
 0x3ce   : > { %v6408_v50 = vadd.f32 %v19241_v63, %v16536_v11  ;;  %v7719_v5 = vadd.f32 %v7652_v26, %v7389_v3  ;;  %v7942_v13 = vld [vmem:[#allocation4 + $0x90] sm:$0xff]  ;;  %v19243_v11 = vld [vmem:[#allocation112_spill] sm:$0xff]  ;;  %v7722_v10 = vadd.f32 %v12771_v2, %v7392_v20  ;;  %v7939_v54 = vld [vmem:[#allocation4 + $0x78] sm:$0xff] }
 0x3cf   : > { %19242 = vst [vmem:[#allocation65_spill] sm:$0xff] %v16819_v14  ;;  %v7063_v30 = vadd.f32 %v19243_v11, %v16757_v47  ;;  %v7940_v6 = vld [vmem:[#allocation4 + $0x80] sm:$0xff]  ;;  %v19245_v53 = vld [vmem:[#allocation54_spill] sm:$0xff]  ;;  %7826 = vst.msk [vmem:[#allocation4 + $0xa0] sm:$0xff] %vm7802_vm1, %v7787_v31  ;;  %v16833_v3 = vpack.c.bf16 %v7787_v31, %v7786_v32  ;;  %v7792_v37 = vmax.f32 %v7760_v24, 0.0  ;;  %v7655_v63 = vpop.f32.mrf.mxu1 }
 0x3d0   : > { %v16826_v60 = vld [vmem:[#allocation4 + $0x7f] sm:$0xff]  ;;  %v7887_v41 = vmul.f32 %v19245_v53, %v16809_v22  ;;  %v16830_v45 = vld [vmem:[#allocation4 + $0x87] sm:$0xff]  ;;  %v7758_v1 = vadd.f32 %v16523_v51, %v7719_v5  ;;  %v7996_v26 = vpack.c.bf16 %v7940_v6, %v7939_v54  ;;  %v7761_v31 = vadd.f32 %v16523_v51, %v7722_v10  ;;  %v16843_v20 = vld [vmem:[#allocation4 + $0x8f] sm:$0xff] }
 0x3d1   : > { %19244 = vst [vmem:[#allocation71_spill] sm:$0xff] %v16826_v60  ;;  %19246 = vst [vmem:[#allocation80_spill] sm:$0xff] %v16833_v3  ;;  %v19247_v47 = vld [vmem:[#allocation113_spill] sm:$0xff]  ;;  %v7889_v28 = vmul.f32 %v19248_v39, %v16830_v45  ;;  %v7720_v24 = vadd.f32 %v7655_v63, %v7390_v8  ;;  %v19250_v2 = vld [vmem:[#allocation114_spill] sm:$0xff]  ;;  %v12774_v6 = vpop.f32.mrf.mxu1  ;;  %v7393_v54 = vadd.f32 %v16767_v59, %v7063_v30 }
 0x3d2   : > { %v7066_v0 = vadd.f32 %v19247_v47, %v16761_v61  ;;  %v7912_v11 = vpack.c.bf16 %v16826_v60, %v7887_v41  ;;  %v7941_v14 = vld [vmem:[#allocation4 + $0x88] sm:$0xff]  ;;  %7831 = vst.msk [vmem:[#allocation4 + $0xc8] sm:$0xff] %vm7802_vm1, %v7792_v37  ;;  %v7790_v32 = vmax.f32 %v7758_v1, 0.0  ;;  %19249 = vst [vmem:[#allocation75_spill] sm:$0xff] %v16843_v20  ;;  %v7064_v3 = vadd.f32 %v19250_v2, %v6734_v18  ;;  %v7354_v1 = vpop.f32.mrf.mxu0  ;;  %v16854_v18 = vld [vmem:[#allocation4 + $0x97] sm:$0xff] }
 0x3d3   : > { %v7997_v5 = vpack.c.bf16 %v7942_v13, %v7941_v14  ;;  %v7069_v61 = vadd.f32 %v16478_v4, %v6739_v36  ;;  %12797 = vmatmul.mubr.msk.bf16.gmra.mxu0 %vm7802_vm1, %v7996_v26  ;;  %v7913_v41 = vpack.c.bf16 %v16843_v20, %v7889_v28  ;;  %v7793_v8 = vmax.f32 %v7761_v31, 0.0  ;;  %v19251_v4 = vld [vmem:[#allocation6_spill] sm:$0xff]  ;;  %v19252_v36 = vld [vmem:[#allocation88_spill] sm:$0xff]  ;;  %v19253_v47 = vld [vmem:[#allocation87_spill] sm:$0xff]  ;;  %v7668_v30 = vpop.f32.mrf.mxu1 }
 0x3d4   : > { %12833 = vmatmul.mubr.msk.bf16.gmra.mxu1 %vm7802_vm1, %v7912_v11  ;;  %7829 = vst.msk [vmem:[#allocation4 + $0xb8] sm:$0xff] %vm7802_vm1, %v7790_v32  ;;  %v7759_v14 = vadd.f32 %v16523_v51, %v7720_v24  ;;  %v7725_v13 = vadd.f32 %v12774_v6, %v7395_v12  ;;  %v6737_v10 = vadd.f32 %v19252_v36, %v19251_v4  ;;  %v19254_v63 = vld [vmem:[#allocation32_spill] sm:$0xff]  ;;  %v19255_v28 = vld [vmem:[#allocation17_spill] sm:$0xff] }
 0x3d5   : > { %12800 = vmatprep.mubr.msk.bf16.mxu0 %vm7802_vm1, %v7997_v5  ;;  %v6740_v26 = vadd.f32 %v19254_v63, %v19253_v47  ;;  %v6738_v11 = vadd.f32 %v19255_v28, %v6408_v50  ;;  %v7396_v59 = vadd.f32 %v16792_v62, %v7066_v0  ;;  %12836 = vmatprep.mubr.msk.bf16.mxu1 %vm7802_vm1, %v7913_v41  ;;  %v7946_v2 = vld [vmem:[#allocation4 + $0xb0] sm:$0xff]  ;;  %v12775_v47 = vpop.f32.mrf.mxu1 }
 0x3d6   : > { %7832 = vst.msk [vmem:[#allocation4 + $0xd0] sm:$0xff] %vm7802_vm1, %v7793_v8  ;;  %v16864_v12 = vpack.c.bf16 %v7793_v8, %v7792_v37  ;;  %v7791_v31 = vmax.f32 %v7759_v14, 0.0  ;;  %v7764_v24 = vadd.f32 %v16523_v51, %v7725_v13  ;;  %v7723_v5 = vadd.f32 %v7668_v30, %v7393_v54  ;;  %v7944_v50 = vld [vmem:[#allocation4 + $0xa0] sm:$0xff]  ;;  %v19258_v62 = vld [vmem:[#allocation69_spill] sm:$0xff]  ;;  %v12745_v37 = vpop.f32.mrf.mxu0 }
 0x3d7   : > { %v7394_v6 = vadd.f32 %v7341_v48, %v7064_v3  ;;  %v7067_v4 = vadd.f32 %v16483_v43, %v6737_v10  ;;  %v7399_v36 = vadd.f32 %v12744_v23, %v7069_v61  ;;  %v16868_v63 = vld [vmem:[#allocation4 + $0x9f] sm:$0xff]  ;;  %v7891_v0 = vmul.f32 %v19258_v62, %v16854_v18  ;;  %v16872_v41 = vld [vmem:[#allocation4 + $0xa7] sm:$0xff]  ;;  %v7671_v61 = vpop.f32.mrf.mxu1 }
 0x3d8   : > { %19256 = vst [vmem:[#allocation76_spill] sm:$0xff] %v16864_v12  ;;  %19257 = vst [vmem:[#allocation93_spill] sm:$0xff] %v16868_v63  ;;  %v16875_v8 = vpack.c.bf16 %v7791_v31, %v7790_v32  ;;  %v7796_v54 = vmax.f32 %v7764_v24, 0.0  ;;  %v7762_v48 = vadd.f32 %v16523_v51, %v7723_v5  ;;  %v7726_v3 = vadd.f32 %v12775_v47, %v7396_v59  ;;  %v7943_v43 = vld [vmem:[#allocation4 + $0x98] sm:$0xff]  ;;  %v7945_v10 = vld [vmem:[#allocation4 + $0xa8] sm:$0xff] }
 0x3d9   : > { %7830 = vst.msk [vmem:[#allocation4 + $0xc0] sm:$0xff] %vm7802_vm1, %v7791_v31  ;;  %v7070_v23 = vadd.f32 %v16497_v58, %v6740_v26  ;;  %v16879_v14 = vpack.c.bf16 %v7944_v50, %v7943_v43  ;;  %v7914_v13 = vpack.c.bf16 %v16868_v63, %v7891_v0  ;;  %v19261_v28 = vld [vmem:[#allocation73_spill] sm:$0xff]  ;;  %v7724_v24 = vadd.f32 %v7671_v61, %v7394_v6  ;;  %v12778_v26 = vpop.f32.mrf.mxu1  ;;  %v7357_v0 = vpop.f32.mrf.mxu0 }
 0x3da   : > { %19259 = vst [vmem:[#allocation11_spill] sm:$0xff] %v16875_v8  ;;  %v7893_v30 = vmul.f32 %v19261_v28, %v16872_v41  ;;  %7835 = vst.msk [vmem:[#allocation4 + $0xe8] sm:$0xff] %vm7802_vm1, %v7796_v54  ;;  %v7794_v32 = vmax.f32 %v7762_v48, 0.0  ;;  %v7765_v31 = vadd.f32 %v16523_v51, %v7726_v3  ;;  %v16886_v5 = vpack.c.bf16 %v7946_v2, %v7945_v10  ;;  %v16888_v59 = vld [vmem:[#allocation4 + $0xaf] sm:$0xff] }
 0x3db   : > { %19260 = vst [vmem:[#allocation16_spill] sm:$0xff] %v16879_v14  ;;  %19263 = vst [vmem:[#allocation81_spill] sm:$0xff] %v16888_v59  ;;  %v7068_v58 = vadd.f32 %v16508_v56, %v6738_v11  ;;  %12801 = vmatmul.mubr.msk.bf16.gmra.mxu0 %vm7802_vm1, %v16879_v14  ;;  %v7397_v50 = vadd.f32 %v7354_v1, %v7067_v4  ;;  %v7763_v2 = vadd.f32 %v16523_v51, %v7724_v24  ;;  %v16899_v56 = vld [vmem:[#allocation4 + $0xb7] sm:$0xff]  ;;  %v7684_v3 = vpop.f32.mrf.mxu1  ;;  %v19266_v24 = vld [vmem:[#allocation77_spill] sm:$0xff] }
 0x3dc   : > { %19262 = vst [vmem:[#allocation91_spill] sm:$0xff] %v16886_v5  ;;  %12837 = vmatmul.mubr.msk.bf16.gmra.mxu1 %vm7802_vm1, %v7914_v13  ;;  %v7915_v47 = vpack.c.bf16 %v16888_v59, %v7893_v30  ;;  %7833 = vst.msk [vmem:[#allocation4 + $0xd8] sm:$0xff] %vm7802_vm1, %v7794_v32  ;;  %v7797_v48 = vmax.f32 %v7765_v31, 0.0  ;;  %v7729_v6 = vadd.f32 %v12778_v26, %v7399_v36  ;;  %12804 = vmatprep.mubr.msk.bf16.mxu0 %vm7802_vm1, %v16886_v5 }
 0x3dd   : > { %v7400_v11 = vadd.f32 %v12745_v37, %v7070_v23  ;;  %v7795_v1 = vmax.f32 %v7763_v2, 0.0  ;;  %v7727_v61 = vadd.f32 %v7684_v3, %v7397_v50  ;;  %v7950_v13 = vld [vmem:[#allocation4 + $0xd0] sm:$0xff]  ;;  %v7398_v10 = vadd.f32 %v7357_v0, %v7068_v58  ;;  %v12779_v36 = vpop.f32.mrf.mxu1  ;;  %v7947_v50 = vld [vmem:[#allocation4 + $0xb8] sm:$0xff] }
 0x3de   : > { %12840 = vmatprep.mubr.msk.bf16.mxu1 %vm7802_vm1, %v7915_v47  ;;  %7836 = vst.msk [vmem:[#allocation4 + $0xf0] sm:$0xff] %vm7802_vm1, %v7797_v48  ;;  %v16903_v43 = vpack.c.bf16 %v7797_v48, %v7796_v54  ;;  %v7768_v4 = vadd.f32 %v16523_v51, %v7729_v6  ;;  %v7895_v37 = vmul.f32 %v19266_v24, %v16899_v56  ;;  %v7949_v6 = vld [vmem:[#allocation4 + $0xc8] sm:$0xff] }
 0x3df   : > { %7834 = vst.msk [vmem:[#allocation4 + $0xe0] sm:$0xff] %vm7802_vm1, %v7795_v1  ;;  %v16913_v26 = vpack.c.bf16 %v7795_v1, %v7794_v32  ;;  %v7766_v47 = vadd.f32 %v16523_v51, %v7727_v61  ;;  %v7730_v48 = vadd.f32 %v12779_v36, %v7400_v11  ;;  %v7687_v2 = vpop.f32.mrf.mxu1  ;;  %v19269_v3 = vld [vmem:[#allocation97_spill] sm:$0xff] }
 0x3e0   : > { %19264 = vst [vmem:[#allocation72_spill] sm:$0xff] %v16903_v43  ;;  %v7948_v30 = vld [vmem:[#allocation4 + $0xc0] sm:$0xff]  ;;  %v7800_v54 = vmax.f32 %v7768_v4, 0.0  ;;  %v7728_v1 = vadd.f32 %v7687_v2, %v7398_v10  ;;  %v16923_v4 = vpack.c.bf16 %v7950_v13, %v7949_v6  ;;  %v16925_v61 = vld [vmem:[#allocation4 + $0xcf] sm:$0xff] }
 0x3e1   : > { %v16906_v31 = vld [vmem:[#allocation4 + $0xbf] sm:$0xff]  ;;  %v16910_v23 = vld [vmem:[#allocation4 + $0xc7] sm:$0xff]  ;;  %19267 = vst [vmem:[#allocation83_spill] sm:$0xff] %v16913_v26  ;;  %v16916_v58 = vpack.c.bf16 %v7948_v30, %v7947_v50  ;;  %v7798_v14 = vmax.f32 %v7766_v47, 0.0  ;;  %v7769_v32 = vadd.f32 %v16523_v51, %v7730_v48 }
 0x3e2   : > { %19265 = vst [vmem:[#allocation82_spill] sm:$0xff] %v16906_v31  ;;  %v7916_v0 = vpack.c.bf16 %v16906_v31, %v7895_v37  ;;  %v7897_v5 = vmul.f32 %v19269_v3, %v16910_v23  ;;  %7839 = vst.msk [vmem:[#allocation4 + $0x108] sm:$0xff] %vm7802_vm1, %v7800_v54  ;;  %v7767_v37 = vadd.f32 %v16523_v51, %v7728_v1  ;;  %v19276_v1 = vld [vmem:[#allocation106_spill] sm:$0xff]  ;;  %v19279_v26 = vld [vmem:[#allocation79_spill] sm:$0xff] }
 0x3e3   : > { %19268 = vst [vmem:[#allocation31_spill] sm:$0xff] %v16916_v58  ;;  %19270 = vst [vmem:[#allocation26_spill] sm:$0xff] %v16923_v4  ;;  %12805 = vmatmul.mubr.msk.bf16.gmra.mxu0 %vm7802_vm1, %v16916_v58  ;;  %v16931_v36 = vld [vmem:[#allocation4 + $0xd7] sm:$0xff]  ;;  %v7801_v30 = vmax.f32 %v7769_v32, 0.0  ;;  %v8822_v12 = vmul.f32 %v19279_v26, %v16626_v16  ;;  %v8824_v16 = vmul.f32 %v19205_v40, %v16652_v55  ;;  %v17056_v26 = vld [vmem:[#allocation4 + $0x41] sm:$0xff] }
 0x3e4   : > { %12841 = vmatmul.mubr.msk.bf16.gmra.mxu1 %vm7802_vm1, %v7916_v0  ;;  %v7917_v11 = vpack.c.bf16 %v16925_v61, %v7897_v5  ;;  %7837 = vst.msk [vmem:[#allocation4 + $0xf8] sm:$0xff] %vm7802_vm1, %v7798_v14  ;;  %12808 = vmatprep.mubr.msk.bf16.mxu0 %vm7802_vm1, %v16923_v4  ;;  %v7799_v10 = vmax.f32 %v7767_v37, 0.0  ;;  %v7951_v47 = vld [vmem:[#allocation4 + $0xd8] sm:$0xff]  ;;  %v19272_v5 = vld [vmem:[#allocation105_spill] sm:$0xff]  ;;  %v17027_v55 = vmul.f32 %v19266_v24, %v16931_v36 }
 0x3e5   : > { %7840 = vst.msk [vmem:[#allocation4 + $0x110] sm:$0xff] %vm7802_vm1, %v7801_v30  ;;  %v16939_v13 = vpack.c.bf16 %v7801_v30, %v7800_v54  ;;  %v7899_v48 = vmul.f32 %v19272_v5, %v16931_v36  ;;  %v7954_v50 = vld [vmem:[#allocation4 + $0xf0] sm:$0xff]  ;;  %v7953_v30 = vld [vmem:[#allocation4 + $0xe8] sm:$0xff]  ;;  %v8854_v33 = vpack.c.bf16 %v16648_v52, %v8822_v12  ;;  %v8855_v40 = vpack.c.bf16 %v16670_v21, %v8824_v16 }
 0x3e6   : > { %12844 = vmatprep.mubr.msk.bf16.mxu1 %vm7802_vm1, %v7917_v11  ;;  %v7952_v2 = vld [vmem:[#allocation4 + $0xe0] sm:$0xff]  ;;  %7838 = vst.msk [vmem:[#allocation4 + $0x100] sm:$0xff] %vm7802_vm1, %v7799_v10  ;;  %v16948_v51 = vpack.c.bf16 %v7799_v10, %v7798_v14  ;;  %v16955_v37 = vld [vmem:[#allocation4 + $0xef] sm:$0xff]  ;;  %v16957_v4 = vpack.c.bf16 %v7954_v50, %v7953_v30  ;;  %19288 = vst [vmem:[#allocation66_spill] sm:$0xff] %v17027_v55 }
 0x3e7   : > { %19271 = vst [vmem:[#allocation78_spill] sm:$0xff] %v16939_v13  ;;  %v16943_v0 = vld [vmem:[#allocation4 + $0xdf] sm:$0xff]  ;;  %v16945_v6 = vld [vmem:[#allocation4 + $0xe7] sm:$0xff]  ;;  %v16950_v32 = vpack.c.bf16 %v7952_v2, %v7951_v47  ;;  %v8453_v47 = vld [vmem:[#allocation4 + $0x11] sm:$0xff] }
 0x3e8   : > { %19273 = vst [vmem:[#allocation96_spill] sm:$0xff] %v16943_v0  ;;  %19274 = vst [vmem:[#allocation40_spill] sm:$0xff] %v16948_v51  ;;  %v7918_v54 = vpack.c.bf16 %v16943_v0, %v7899_v48  ;;  %v7901_v11 = vmul.f32 %v19276_v1, %v16945_v6  ;;  %v8452_v10 = vld [vmem:[#allocation4 + $0x9] sm:$0xff]  ;;  %v8485_v30 = vmul.f32 0.0, %v8453_v47  ;;  %v19282_v12 = vld [vmem:[#allocation36_spill] sm:$0xff] }
 0x3e9   : > { %19275 = vst [vmem:[#allocation104_spill] sm:$0xff] %v16950_v32  ;;  %19277 = vst [vmem:[#allocation7_spill] sm:$0xff] %v16957_v4  ;;  %v19278_v48 = vld [vmem:[#allocation109_spill] sm:$0xff]  ;;  %v8484_v2 = vmul.f32 0.0, %v8452_v10  ;;  %v16980_v10 = vld [vmem:[#allocation4 + $0x31] sm:$0xff] }
 0x3ea   : > { %v7919_v58 = vpack.c.bf16 %v16955_v37, %v7901_v11  ;;  %v16970_v11 = vld [vmem:[#allocation4 + $0x21] sm:$0xff]  ;;  %v8489_v47 = vmul.f32 %v19282_v12, %v16980_v10  ;;  %v17067_v21 = vld [vmem:[#allocation4 + $0x51] sm:$0xff]  ;;  %v17099_v55 = vld [vmem:[#allocation4 + $0x49] sm:$0xff] }
 0x3eb   : > { %12809 = vmatmul.mubr.msk.bf16.gmra.mxu0 %vm7802_vm1, %v16950_v32  ;;  %v16963_v14 = vld [vmem:[#allocation4 + $0xf7] sm:$0xff]  ;;  %v8516_v8 = vpack.c.bf16 %v8485_v30, %v8484_v2  ;;  %v17015_v2 = vmul.f32 %v19258_v62, %v16899_v56  ;;  %v17019_v30 = vmul.f32 %v19261_v28, %v16910_v23 }
 0x3ec   : > { %12845 = vmatmul.mubr.msk.bf16.gmra.mxu1 %vm7802_vm1, %v7918_v54  ;;  %12812 = vmatprep.mubr.msk.bf16.mxu0 %vm7802_vm1, %v16957_v4  ;;  %v7903_v50 = vmul.f32 %v19278_v48, %v16963_v14  ;;  %v7955_v13 = vld [vmem:[#allocation4 + $0xf8] sm:$0xff] }
 0x3ed   : > { %12848 = vmatprep.mubr.msk.bf16.mxu1 %vm7802_vm1, %v7919_v58  ;;  %v7956_v32 = vld [vmem:[#allocation4 + $0x100] sm:$0xff]  ;;  %v19280_v4 = vld [vmem:[#allocation34_spill] sm:$0xff]  ;;  %19286 = vst [vmem:[#allocation101_spill] sm:$0xff] %v17015_v2  ;;  %19287 = vst [vmem:[#allocation45_spill] sm:$0xff] %v17019_v30 }
 0x3ee   : > { %v16972_v51 = vld [vmem:[#allocation4 + $0xff] sm:$0xff]  ;;  %v8004_v54 = vpack.c.bf16 %v7956_v32, %v7955_v13  ;;  %v8487_v58 = vmul.f32 %v19280_v4, %v16970_v11  ;;  %v16992_v32 = vmul.f32 %v19232_v17, %v16809_v22  ;;  %v17058_v30 = vld [vmem:[#allocation4 + $0x10f] sm:$0xff] }
 0x3ef   : > { %v7920_v43 = vpack.c.bf16 %v16972_v51, %v7903_v50  ;;  %v16986_v13 = vld [vmem:[#allocation4 + $0x19] sm:$0xff]  ;;  %v17011_v50 = vmul.f32 %v19248_v39, %v16872_v41 }
 0x3f0   : > { %19281 = vst [vmem:[#allocation48_spill] sm:$0xff] %v16992_v32  ;;  %v8517_v52 = vpack.c.bf16 %v8487_v58, %v16986_v13  ;;  %v17031_v32 = vmul.f32 %v19269_v3, %v16945_v6  ;;  %v17040_v58 = vld [vmem:[#allocation4 + $0x29] sm:$0xff] }
 0x3f1   : > { %19285 = vst [vmem:[#allocation95_spill] sm:$0xff] %v17011_v50 }
 0x3f2   : > { %19289 = vst [vmem:[#allocation25_spill] sm:$0xff] %v17031_v32  ;;  %v17086_v32 = vld [vmem:[%s18159_s5 + $0x68] sm:$0xff]  }
 0x3f3   : > { %12813 = vmatmul.mubr.msk.bf16.gmra.mxu0 %vm7802_vm1, %v8004_v54  ;;  %v8518_v54 = vpack.c.bf16 %v8489_v47, %v17040_v58  ;;  %v13145_v47 = vld [vmem:[%s18159_s5 + $0x50] sm:$0xff]  }
 0x3f4   : > { %12849 = vmatmul.mubr.msk.bf16.gmra.mxu1 %vm7802_vm1, %v7920_v43  ;;  %12856 = vmatprep.mubr.msk.bf16.mxu0 %vm7802_vm1, %v8516_v8  ;;  %v16999_v43 = vmul.f32 %v19235_v15, %v16830_v45  ;;  %v17005_v8 = vld [vmem:[#allocation4 + $0x107] sm:$0xff] }
 0x3f5   : > { %12892 = vmatprep.mubr.msk.bf16.mxu1 %vm7802_vm1, %v8854_v33  ;;  %v17003_v33 = vmul.f32 %v19245_v53, %v16854_v18  ;;  %v17053_v12 = vmul.f32 %v19276_v1, %v17005_v8 }
 0x3f6   : > { %19283 = vst [vmem:[#allocation98_spill] sm:$0xff] %v16999_v43  ;;  %v13143_v43 = vld [vmem:[%s18159_s5 + $0x40] sm:$0xff]  }
 0x3f7   : > { %19284 = vst [vmem:[#allocation64_spill] sm:$0xff] %v17003_v33  ;;  %v8826_v33 = vmul.f32 %v19208_v46, %v16687_v25  ;;  %19290 = vst [vmem:[#allocation63_spill] sm:$0xff] %v17053_v12  ;;  %v19291_v25 = vld [vmem:[#allocation90_spill] sm:$0xff]  ;;  %v17109_v46 = vld [vmem:[#allocation4 + $0x61] sm:$0xff] }
 0x3f8   : > { %v17062_v2 = vmul.f32 %v19291_v25, %v16980_v10 }
 0x3f9   : > { %v8856_v16 = vpack.c.bf16 %v16714_v9, %v8826_v33  ;;  %v8828_v33 = vmul.f32 %v19219_v35, %v16718_v49 }
 0x3fa   : > { %19292 = vst [vmem:[#allocation102_spill] sm:$0xff] %v17062_v2  ;;  %v8830_v2 = vmul.f32 %v19222_v44, %v16752_v34  ;;  %v19296_v34 = vld [vmem:[#allocation103_spill] sm:$0xff] }
 0x3fb   : > { %12857 = vmatmul.mubr.msk.bf16.vlgmr.msra.gmra.mxu0 %vm7802_vm1, %v8517_v52  ;;  %v17091_v52 = vld [vmem:[#allocation4 + $0x111] sm:$0xff]  ;;  %v8857_v12 = vpack.c.bf16 %v16739_v38, %v8828_v33  ;;  %v8832_v33 = vmul.f32 %v19232_v17, %v16781_v57  ;;  %v17142_v57 = vld [vmem:[#allocation4 + $0x81] sm:$0xff] }
 0x3fc   : > { %12893 = vmatmul.mubr.msk.bf16.vlgmr.msra.gmra.mxu1 %vm7802_vm1, %v8855_v40  ;;  %12925 = vmatpush3.bf16.msra.mxu0 %v16701_v7  ;;  %v19293_v40 = vld [vmem:[#allocation38_spill] sm:$0xff]  ;;  %19295 = vst [vmem:[#allocation60_spill] sm:$0xff] %v17091_v52  ;;  %v8858_v35 = vpack.c.bf16 %v16777_v27, %v8830_v2  ;;  %v19299_v2 = vld [vmem:[#allocation44_spill] sm:$0xff] }
 0x3fd   : > { %12860 = vmatprep.mubr.msk.bf16.mxu0 %vm7802_vm1, %v8518_v54  ;;  %12896 = vmatprep.mubr.msk.bf16.mxu1 %vm7802_vm1, %v8856_v16  ;;  %v8491_v9 = vmul.f32 %v19293_v40, %v17056_v26  ;;  %v19294_v7 = vld [vmem:[#allocation42_spill] sm:$0xff]  ;;  %v17093_v16 = vld [vmem:[#allocation4 + $0x39] sm:$0xff]  ;;  %v8859_v27 = vpack.c.bf16 %v16796_v42, %v8832_v33 }
 0x3fe   : > { %12926 = vmatprep.subr.bf16.mxu0 %v13143_v43  ;;  %v8493_v54 = vmul.f32 %v19294_v7, %v17067_v21  ;;  %12961 = vmatpush3.bf16.msra.mxu1 %v16727_v19  ;;  %v17105_v19 = vld [vmem:[%s18159_s5 + $0x78] sm:$0xff]  }
 0x3ff   : > { %12962 = vmatprep.subr.bf16.mxu1 %v13145_v47  ;;  %v8519_v49 = vpack.c.bf16 %v8491_v9, %v17093_v16  ;;  %v17117_v38 = vld [vmem:[#allocation4 + $0x71] sm:$0xff]  ;;  %v17119_v9 = vld [vmem:[#allocation4 + $0x109] sm:$0xff] }
 0x400   : > { %12927 = vmatpush3.bf16.msra.mxu0 %v13143_v43  ;;  %v8520_v50 = vpack.c.bf16 %v8493_v54, %v17099_v55  ;;  %v17113_v43 = vmul.f32 %v19296_v34, %v17091_v52  ;;  %19298 = vst [vmem:[#allocation85_spill] sm:$0xff] %v17119_v9  ;;  %v17146_v9 = vld [vmem:[#allocation4 + $0x91] sm:$0xff]  ;;  %v17166_v52 = vld [vmem:[#allocation4 + $0xa1] sm:$0xff] }
 0x401   : > { %12996 = vmatprep.subr.bf16.mxu0 %v17086_v32 }
 0x402   : > { %12963 = vmatpush3.bf16.msra.mxu1 %v13145_v47  ;;  %19297 = vst [vmem:[#allocation107_spill] sm:$0xff] %v17113_v43  ;;  %v8495_v47 = vmul.f32 %v19299_v2, %v17109_v46  ;;  %v17138_v43 = vld [vmem:[#allocation4 + $0x69] sm:$0xff] }
 0x403   : > { %12861 = vmatmul.mubr.msk.bf16.gmra.mxu0 %vm7802_vm1, %v8519_v49  ;;  %13032 = vmatprep.subr.bf16.mxu1 %v17105_v19  ;;  %v17132_v49 = vld [vmem:[#allocation4 + $0x59] sm:$0xff] }
 0x404   : > { %12897 = vmatmul.mubr.msk.bf16.gmra.mxu1 %vm7802_vm1, %v8857_v12  ;;  %12864 = vmatprep.mubr.msk.bf16.mxu0 %vm7802_vm1, %v8520_v50  ;;  %v19300_v12 = vld [vmem:[#allocation49_spill] sm:$0xff]  ;;  %v8834_v50 = vmul.f32 %v19235_v15, %v16809_v22  ;;  %v8836_v22 = vmul.f32 %v19245_v53, %v16830_v45  ;;  %v17170_v53 = vld [vmem:[#allocation4 + $0xb1] sm:$0xff] }
 0x405   : > { %12900 = vmatprep.mubr.msk.bf16.mxu1 %vm7802_vm1, %v8858_v35  ;;  %v8497_v54 = vmul.f32 %v19300_v12, %v17117_v38  ;;  %v8521_v35 = vpack.c.bf16 %v8495_v47, %v17132_v49  ;;  %v19301_v15 = vld [vmem:[#allocation53_spill] sm:$0xff]  ;;  %v19302_v47 = vld [vmem:[#allocation55_spill] sm:$0xff] }
 0x406   : > { %v8860_v17 = vpack.c.bf16 %v16826_v60, %v8834_v50  ;;  %v8499_v42 = vmul.f32 %v19301_v15, %v17142_v57  ;;  %v8501_v33 = vmul.f32 %v19302_v47, %v17146_v9 }
 0x407   : > { %v8522_v44 = vpack.c.bf16 %v8497_v54, %v17138_v43  ;;  %v17156_v54 = vld [vmem:[#allocation4 + $0x79] sm:$0xff] }
 0x408   : > { %v8523_v50 = vpack.c.bf16 %v8499_v42, %v17156_v54  ;;  %v19304_v42 = vld [vmem:[#allocation70_spill] sm:$0xff] }
 0x40b   : > { %12865 = vmatmul.mubr.msk.bf16.gmra.mxu0 %vm7802_vm1, %v8521_v35  ;;  %v17162_v35 = vld [vmem:[#allocation4 + $0x89] sm:$0xff] }
 0x40c   : > { %12901 = vmatmul.mubr.msk.bf16.gmra.mxu1 %vm7802_vm1, %v8859_v27  ;;  %12868 = vmatprep.mubr.msk.bf16.mxu0 %vm7802_vm1, %v8522_v44  ;;  %v8838_v27 = vmul.f32 %v19248_v39, %v16854_v18  ;;  %v8861_v44 = vpack.c.bf16 %v16843_v20, %v8836_v22  ;;  %v19303_v39 = vld [vmem:[#allocation62_spill] sm:$0xff]  ;;  %v8840_v18 = vmul.f32 %v19258_v62, %v16872_v41  ;;  %v17190_v20 = vld [vmem:[#allocation4 + $0xc1] sm:$0xff] }
 0x40d   : > { %12904 = vmatprep.mubr.msk.bf16.mxu1 %vm7802_vm1, %v8860_v17  ;;  %v8524_v17 = vpack.c.bf16 %v8501_v33, %v17162_v35  ;;  %v8503_v45 = vmul.f32 %v19303_v39, %v17166_v52  ;;  %v8505_v22 = vmul.f32 %v19304_v42, %v17170_v53  ;;  %v17180_v33 = vld [vmem:[#allocation4 + $0x99] sm:$0xff]  ;;  %v17194_v62 = vld [vmem:[#allocation4 + $0xd1] sm:$0xff] }
 0x40e   : > { %v8862_v60 = vpack.c.bf16 %v16868_v63, %v8838_v27  ;;  %v8842_v27 = vmul.f32 %v19261_v28, %v16899_v56  ;;  %v19305_v41 = vld [vmem:[#allocation74_spill] sm:$0xff]  ;;  %v8844_v56 = vmul.f32 %v19266_v24, %v16910_v23  ;;  %v19307_v23 = vld [vmem:[#allocation99_spill] sm:$0xff] }
 0x40f   : > { %v8507_v28 = vmul.f32 %v19305_v41, %v17190_v20  ;;  %v17218_v24 = vld [vmem:[#allocation4 + $0xf1] sm:$0xff] }
 0x410   : > { %v8864_v63 = vpack.c.bf16 %v16906_v31, %v8842_v27  ;;  %v8846_v27 = vmul.f32 %v19269_v3, %v16931_v36  ;;  %v8848_v36 = vmul.f32 %v19272_v5, %v16945_v6  ;;  %v19308_v6 = vld [vmem:[#allocation108_spill] sm:$0xff] }
 0x412   : > { %v8866_v31 = vpack.c.bf16 %v16943_v0, %v8846_v27  ;;  %v17238_v0 = vld [vmem:[#allocation4 + $0x101] sm:$0xff] }
 0x413   : > { %12869 = vmatmul.mubr.msk.bf16.gmra.mxu0 %vm7802_vm1, %v8523_v50  ;;  %v8525_v50 = vpack.c.bf16 %v8503_v45, %v17180_v33  ;;  %v19306_v45 = vld [vmem:[#allocation94_spill] sm:$0xff] }
 0x414   : > { %12905 = vmatmul.mubr.msk.bf16.gmra.mxu1 %vm7802_vm1, %v8861_v44  ;;  %12872 = vmatprep.mubr.msk.bf16.mxu0 %vm7802_vm1, %v8524_v17  ;;  %v8863_v44 = vpack.c.bf16 %v16888_v59, %v8840_v18  ;;  %v17186_v17 = vld [vmem:[#allocation4 + $0xa9] sm:$0xff]  ;;  %v8509_v18 = vmul.f32 %v19306_v45, %v17194_v62  ;;  %v17214_v59 = vld [vmem:[#allocation4 + $0xe1] sm:$0xff] }
 0x415   : > { %12908 = vmatprep.mubr.msk.bf16.mxu1 %vm7802_vm1, %v8862_v60  ;;  %v8526_v60 = vpack.c.bf16 %v8505_v22, %v17186_v17  ;;  %v17204_v22 = vld [vmem:[#allocation4 + $0xb9] sm:$0xff]  ;;  %v8511_v3 = vmul.f32 %v19307_v23, %v17214_v59 }
 0x41b   : > { %12873 = vmatmul.mubr.msk.bf16.gmra.mxu0 %vm7802_vm1, %v8525_v50  ;;  %v8527_v50 = vpack.c.bf16 %v8507_v28, %v17204_v22  ;;  %v8513_v28 = vmul.f32 %v19296_v34, %v17218_v24 }
 0x41c   : > { %12909 = vmatmul.mubr.msk.bf16.gmra.mxu1 %vm7802_vm1, %v8863_v44  ;;  %12876 = vmatprep.mubr.msk.bf16.mxu0 %vm7802_vm1, %v8526_v60  ;;  %v8865_v44 = vpack.c.bf16 %v16925_v61, %v8844_v56  ;;  %v17210_v60 = vld [vmem:[#allocation4 + $0xc9] sm:$0xff]  ;;  %v17228_v56 = vld [vmem:[#allocation4 + $0xd9] sm:$0xff] }
 0x41d   : > { %12912 = vmatprep.mubr.msk.bf16.mxu1 %vm7802_vm1, %v8864_v63  ;;  %v8528_v63 = vpack.c.bf16 %v8509_v18, %v17210_v60  ;;  %v8850_v18 = vmul.f32 %v19276_v1, %v16963_v14  ;;  %v8529_v27 = vpack.c.bf16 %v8511_v3, %v17228_v56  ;;  %v8515_v1 = vmul.f32 %v19308_v6, %v17238_v0 }
 0x41e   : > { %v8852_v14 = vmul.f32 %v19278_v48, %v17005_v8  ;;  %v9435_v3 = vmul.f32 %v19291_v25, %v16970_v11  ;;  %v9437_v48 = vmul.f32 %v19280_v4, %v16980_v10  ;;  %v19309_v11 = vld [vmem:[#allocation36_spill] sm:$0xff]  ;;  %v13149_v10 = vld [vmem:[%s18159_s5 + $0x70] sm:$0xff]  }
 0x41f   : > { %v9439_v8 = vmul.f32 %v19309_v11, %v17056_v26  ;;  %v19311_v26 = vld [vmem:[#allocation29_spill] sm:$0xff] }
 0x420   : > { %v9467_v25 = vpack.c.bf16 %v9437_v48, %v17040_v58  ;;  %v19319_v48 = vld [vmem:[#allocation11_spill] sm:$0xff] }
 0x423   : > { %12877 = vmatmul.mubr.msk.bf16.gmra.mxu0 %vm7802_vm1, %v8527_v50  ;;  %v8867_v50 = vpack.c.bf16 %v16955_v37, %v8848_v36 }
 0x424   : > { %12913 = vmatmul.mubr.msk.bf16.gmra.mxu1 %vm7802_vm1, %v8865_v44  ;;  %12880 = vmatprep.mubr.msk.bf16.mxu0 %vm7802_vm1, %v8528_v63  ;;  %v17234_v44 = vld [vmem:[#allocation4 + $0xe9] sm:$0xff]  ;;  %v8868_v63 = vpack.c.bf16 %v16972_v51, %v8850_v18  ;;  %v17250_v51 = vld [vmem:[#allocation4 + $0xf9] sm:$0xff]  ;;  %v9466_v18 = vpack.c.bf16 %v9435_v3, %v16986_v13  ;;  %v19315_v3 = vld [vmem:[#allocation28_spill] sm:$0xff] }
 0x425   : > { %12916 = vmatprep.mubr.msk.bf16.mxu1 %vm7802_vm1, %v8866_v31  ;;  %v8530_v31 = vpack.c.bf16 %v8513_v28, %v17234_v44  ;;  %v8531_v36 = vpack.c.bf16 %v8515_v1, %v17250_v51  ;;  %v8869_v28 = vpack.c.bf16 %v17058_v30, %v8852_v14  ;;  %v13147_v13 = vld [vmem:[%s18159_s5 + $0x60] sm:$0xff]   ;;  %v19313_v1 = vld [vmem:[#allocation9_spill] sm:$0xff] }
 0x426   : > { %v19314_v14 = vld [vmem:[#allocation8_spill] sm:$0xff] }
 0x42b   : > { %12881 = vmatmul.mubr.msk.bf16.gmra.mxu0 %vm7802_vm1, %v8529_v27  ;;  %v19310_v27 = vld [vmem:[#allocation27_spill] sm:$0xff] }
 0x42c   : > { %12917 = vmatmul.mubr.msk.bf16.gmra.mxu1 %vm7802_vm1, %v8867_v50  ;;  %12884 = vmatprep.mubr.msk.bf16.mxu0 %vm7802_vm1, %v8530_v31  ;;  %v9441_v50 = vmul.f32 %v19293_v40, %v17067_v21  ;;  %v17284_v31 = vld [vmem:[%s18159_s5 + $0x88] sm:$0xff]   ;;  %v19312_v21 = vld [vmem:[#allocation67_spill] sm:$0xff] }
 0x42d   : > { %12920 = vmatprep.mubr.msk.bf16.mxu1 %vm7802_vm1, %v8868_v63 }
 0x433   : > { %12885 = vmatmul.mubr.msk.bf16.gmra.mxu0 %vm7802_vm1, %v8531_v36  ;;  %v19316_v36 = vld [vmem:[#allocation92_spill] sm:$0xff] }
 0x434   : > { %12921 = vmatmul.mubr.msk.bf16.gmra.mxu1 %vm7802_vm1, %v8869_v28  ;;  %12928 = vmatprep.mubr.msk.bf16.mxu0 %vm7802_vm1, %v16593_v29  ;;  %v9468_v29 = vpack.c.bf16 %v9439_v8, %v17093_v16  ;;  %v9443_v16 = vmul.f32 %v19294_v7, %v17109_v46  ;;  %v9445_v46 = vmul.f32 %v19299_v2, %v17117_v38  ;;  %v19317_v28 = vld [vmem:[#allocation80_spill] sm:$0xff] }
 0x435   : > { %12964 = vmatprep.mubr.msk.bf16.mxu1 %vm7802_vm1, %v9466_v18  ;;  %v9449_v38 = vmul.f32 %v19301_v15, %v17146_v9  ;;  %v9453_v9 = vmul.f32 %v19303_v39, %v17170_v53  ;;  %v19318_v18 = vld [vmem:[#allocation65_spill] sm:$0xff]  ;;  %v9457_v53 = vmul.f32 %v19305_v41, %v17194_v62  ;;  %v19320_v8 = vld [vmem:[#allocation76_spill] sm:$0xff]  ;;  %v9461_v62 = vmul.f32 %v19307_v23, %v17218_v24 }
 0x436   : > { %v9470_v63 = vpack.c.bf16 %v9443_v16, %v17132_v49  ;;  %v10078_v16 = vld [vmem:[#allocation4 + $0x28] sm:$0xff] }
 0x43b   : > { %12929 = vmatmul.mubr.msk.bf16.vlgmr.msra.gmra.mxu0 %vm7802_vm1, %v19310_v27  ;;  %v9740_v27 = vld [vmem:[#allocation4 + $0x27] sm:$0xff] }
 0x43c   : > { %12965 = vmatmul.mubr.msk.bf16.vlgmr.msra.gmra.mxu1 %vm7802_vm1, %v9467_v25  ;;  %12997 = vmatpush3.bf16.msra.mxu0 %v17086_v32  ;;  %v9469_v32 = vpack.c.bf16 %v9441_v50, %v17099_v55  ;;  %v9447_v55 = vmul.f32 %v19300_v12, %v17142_v57  ;;  %v9451_v57 = vmul.f32 %v19302_v47, %v17166_v52  ;;  %v19321_v25 = vld [vmem:[#allocation83_spill] sm:$0xff] }
 0x43d   : > { %12932 = vmatprep.mubr.msk.bf16.mxu0 %vm7802_vm1, %v19311_v26  ;;  %12968 = vmatprep.mubr.msk.bf16.mxu1 %vm7802_vm1, %v9468_v29  ;;  %v9455_v52 = vmul.f32 %v19304_v42, %v17190_v20  ;;  %v9459_v20 = vmul.f32 %v19306_v45, %v17214_v59  ;;  %v9463_v59 = vmul.f32 %v19296_v34, %v17238_v0  ;;  %v19323_v29 = vld [vmem:[#allocation40_spill] sm:$0xff]  ;;  %v19325_v26 = vld [vmem:[#allocation79_spill] sm:$0xff]  ;;  %v10079_v34 = vld [vmem:[#allocation4 + $0x30] sm:$0xff] }
 0x43e   : > { %12998 = vmatprep.subr.bf16.mxu0 %v13147_v13  ;;  %13033 = vmatpush3.bf16.msra.mxu1 %v17105_v19  ;;  %v9471_v19 = vpack.c.bf16 %v9445_v46, %v17138_v43  ;;  %v9472_v49 = vpack.c.bf16 %v9447_v55, %v17156_v54  ;;  %v9473_v43 = vpack.c.bf16 %v9449_v38, %v17162_v35  ;;  %v9743_v46 = vld [vmem:[#allocation4 + $0x3f] sm:$0xff] }
 0x43f   : > { %13034 = vmatprep.subr.bf16.mxu1 %v13149_v10  ;;  %v9474_v54 = vpack.c.bf16 %v9451_v57, %v17180_v33  ;;  %v9475_v35 = vpack.c.bf16 %v9453_v9, %v17186_v17  ;;  %v9476_v33 = vpack.c.bf16 %v9455_v52, %v17204_v22  ;;  %v9477_v17 = vpack.c.bf16 %v9457_v53, %v17210_v60  ;;  %v10081_v55 = vld [vmem:[#allocation4 + $0x40] sm:$0xff]  ;;  %v10080_v38 = vld [vmem:[#allocation4 + $0x38] sm:$0xff]  ;;  %v10083_v57 = vld [vmem:[#allocation4 + $0x50] sm:$0xff] }
 0x440   : > { %12999 = vmatpush3.bf16.msra.mxu0 %v13147_v13  ;;  %v9478_v22 = vpack.c.bf16 %v9459_v20, %v17228_v56  ;;  %v9479_v60 = vpack.c.bf16 %v9461_v62, %v17234_v44  ;;  %v9480_v56 = vpack.c.bf16 %v9463_v59, %v17250_v51  ;;  %v19322_v13 = vld [vmem:[#allocation72_spill] sm:$0xff]  ;;  %v9772_v0 = vmul.f32 %v19325_v26, %v9740_v27  ;;  %v19326_v44 = vld [vmem:[#allocation85_spill] sm:$0xff]  ;;  %v9746_v20 = vld [vmem:[#allocation4 + $0x57] sm:$0xff] }
 0x441   : > { %13068 = vmatprep.subr.bf16.mxu0 %v17284_v31  ;;  %v9741_v51 = vld [vmem:[#allocation4 + $0x2f] sm:$0xff]  ;;  %v10085_v62 = vld [vmem:[#allocation4 + $0x60] sm:$0xff] }
 0x442   : > { %13035 = vmatpush3.bf16.msra.mxu1 %v13149_v10  ;;  %v19324_v10 = vld [vmem:[#allocation60_spill] sm:$0xff]  ;;  %v19330_v59 = vld [vmem:[#allocation43_spill] sm:$0xff]  ;;  %v19331_v27 = vld [vmem:[#allocation41_spill] sm:$0xff] }
 0x443   : > { %12933 = vmatmul.mubr.msk.bf16.gmra.mxu0 %vm7802_vm1, %v19312_v21  ;;  %v9465_v24 = vmul.f32 %v19308_v6, %v19324_v10  ;;  %v19327_v21 = vld [vmem:[#allocation78_spill] sm:$0xff]  ;;  %v10082_v52 = vld [vmem:[#allocation4 + $0x48] sm:$0xff] }
 0x444   : > { %12969 = vmatmul.mubr.msk.bf16.gmra.mxu1 %vm7802_vm1, %v9469_v32  ;;  %12936 = vmatprep.mubr.msk.bf16.mxu0 %vm7802_vm1, %v19313_v1  ;;  %v9804_v32 = vpack.c.bf16 %v9741_v51, %v9772_v0  ;;  %v9744_v1 = vld [vmem:[#allocation4 + $0x47] sm:$0xff]  ;;  %v9742_v6 = vld [vmem:[#allocation4 + $0x37] sm:$0xff]  ;;  %v9749_v51 = vld [vmem:[#allocation4 + $0x6f] sm:$0xff] }
 0x445   : > { %12972 = vmatprep.mubr.msk.bf16.mxu1 %vm7802_vm1, %v9470_v63  ;;  %v9481_v50 = vpack.c.bf16 %v9465_v24, %v19326_v44  ;;  %v10142_v63 = vpack.c.bf16 %v10079_v34, %v10078_v16  ;;  %v10087_v10 = vld [vmem:[#allocation4 + $0x70] sm:$0xff]  ;;  %v10084_v24 = vld [vmem:[#allocation4 + $0x58] sm:$0xff]  ;;  %v10086_v16 = vld [vmem:[#allocation4 + $0x68] sm:$0xff] }
 0x44b   : > { %12937 = vmatmul.mubr.msk.bf16.gmra.mxu0 %vm7802_vm1, %v19314_v14  ;;  %v19329_v14 = vld [vmem:[#allocation35_spill] sm:$0xff] }
 0x44c   : > { %12973 = vmatmul.mubr.msk.bf16.gmra.mxu1 %vm7802_vm1, %v9471_v19  ;;  %12940 = vmatprep.mubr.msk.bf16.mxu0 %vm7802_vm1, %v19315_v3  ;;  %v19328_v19 = vld [vmem:[#allocation37_spill] sm:$0xff]  ;;  %v9774_v3 = vmul.f32 %v19329_v14, %v9742_v6  ;;  %v10089_v14 = vld [vmem:[#allocation4 + $0x80] sm:$0xff] }
 0x44d   : > { %12976 = vmatprep.mubr.msk.bf16.mxu1 %vm7802_vm1, %v9472_v49  ;;  %v9776_v49 = vmul.f32 %v19328_v19, %v9744_v1 }
 0x453   : > { %12941 = vmatmul.mubr.msk.bf16.gmra.mxu0 %vm7802_vm1, %v19316_v36  ;;  %v9745_v36 = vld [vmem:[#allocation4 + $0x4f] sm:$0xff] }
 0x454   : > { %12977 = vmatmul.mubr.msk.bf16.gmra.mxu1 %vm7802_vm1, %v9473_v43  ;;  %12944 = vmatprep.mubr.msk.bf16.mxu0 %vm7802_vm1, %v19317_v28  ;;  %v9805_v43 = vpack.c.bf16 %v9743_v46, %v9774_v3  ;;  %v13151_v28 = vld [vmem:[%s18159_s5 + $0x80] sm:$0xff]   ;;  %v9806_v9 = vpack.c.bf16 %v9745_v36, %v9776_v49 }
 0x455   : > { %12980 = vmatprep.mubr.msk.bf16.mxu1 %vm7802_vm1, %v9474_v54  ;;  %v10143_v54 = vpack.c.bf16 %v10081_v55, %v10080_v38 }
 0x45b   : > { %12945 = vmatmul.mubr.msk.bf16.gmra.mxu0 %vm7802_vm1, %v19318_v18  ;;  %v10144_v18 = vpack.c.bf16 %v10083_v57, %v10082_v52  ;;  %v10091_v57 = vld [vmem:[#allocation4 + $0x90] sm:$0xff]  ;;  %v10090_v52 = vld [vmem:[#allocation4 + $0x88] sm:$0xff] }
 0x45c   : > { %12981 = vmatmul.mubr.msk.bf16.gmra.mxu1 %vm7802_vm1, %v9475_v35  ;;  %12948 = vmatprep.mubr.msk.bf16.mxu0 %vm7802_vm1, %v19319_v48  ;;  %v9748_v48 = vld [vmem:[#allocation4 + $0x67] sm:$0xff] }
 0x45d   : > { %12984 = vmatprep.mubr.msk.bf16.mxu1 %vm7802_vm1, %v9476_v33 }
 0x463   : > { %12949 = vmatmul.mubr.msk.bf16.gmra.mxu0 %vm7802_vm1, %v19320_v8 }
 0x464   : > { %12985 = vmatmul.mubr.msk.bf16.gmra.mxu1 %vm7802_vm1, %v9477_v17  ;;  %12952 = vmatprep.mubr.msk.bf16.mxu0 %vm7802_vm1, %v19321_v25  ;;  %v9747_v25 = vld [vmem:[#allocation4 + $0x5f] sm:$0xff] }
 0x465   : > { %12988 = vmatprep.mubr.msk.bf16.mxu1 %vm7802_vm1, %v9478_v22 }
 0x46b   : > { %12953 = vmatmul.mubr.msk.bf16.gmra.mxu0 %vm7802_vm1, %v19322_v13 }
 0x46c   : > { %12989 = vmatmul.mubr.msk.bf16.gmra.mxu1 %vm7802_vm1, %v9479_v60  ;;  %12956 = vmatprep.mubr.msk.bf16.mxu0 %vm7802_vm1, %v19323_v29  ;;  %v9780_v60 = vmul.f32 %v19330_v59, %v9748_v48  ;;  %v9778_v29 = vmul.f32 %v19331_v27, %v9746_v20  ;;  %v19332_v20 = vld [vmem:[#allocation71_spill] sm:$0xff]  ;;  %v19336_v59 = vld [vmem:[#allocation98_spill] sm:$0xff] }
 0x46d   : > { %12992 = vmatprep.mubr.msk.bf16.mxu1 %vm7802_vm1, %v9480_v56 }
 0x46e   : > { %v9807_v34 = vpack.c.bf16 %v9747_v25, %v9778_v29 }
 0x473   : > { %12957 = vmatmul.mubr.msk.bf16.gmra.mxu0 %vm7802_vm1, %v19327_v21  ;;  %v10146_v21 = vpack.c.bf16 %v10087_v10, %v10086_v16  ;;  %v19338_v16 = vld [vmem:[#allocation93_spill] sm:$0xff] }
 0x474   : > { %12993 = vmatmul.mubr.msk.bf16.gmra.mxu1 %vm7802_vm1, %v9481_v50  ;;  %13000 = vmatprep.mubr.msk.bf16.mxu0 %vm7802_vm1, %v9804_v32  ;;  %v10145_v50 = vpack.c.bf16 %v10085_v62, %v10084_v24  ;;  %v19335_v62 = vld [vmem:[#allocation75_spill] sm:$0xff] }
 0x475   : > { %13036 = vmatprep.mubr.msk.bf16.mxu1 %vm7802_vm1, %v10142_v63  ;;  %v9808_v63 = vpack.c.bf16 %v9749_v51, %v9780_v60  ;;  %v19337_v60 = vpack.c.bf16 %v19335_v62, %v19336_v59  ;;  %v19349_v59 = vld [vmem:[#allocation31_spill] sm:$0xff] }
 0x479   : > { %v12786_v35 = vpop.f32.mrf.mxu0  ;;  %v12822_v33 = vpop.f32.mrf.mxu1 }
 0x47a   : > { %v17374_v53 = vadd.f32 %v12822_v33, %v12786_v35  ;;  %v10148_v33 = vpack.c.bf16 %v10091_v57, %v10090_v52 }
 0x47b   : > { %13001 = vmatmul.mubr.msk.bf16.vlgmr.msra.gmra.mxu0 %vm7802_vm1, %v9805_v43  ;;  %v8104_v17 = vpop.f32.mrf.mxu0  ;;  %v8325_v22 = vpop.f32.mrf.mxu1 }
 0x47c   : > { %13037 = vmatmul.mubr.msk.bf16.vlgmr.msra.gmra.mxu1 %vm7802_vm1, %v10143_v54  ;;  %13069 = vmatpush3.bf16.msra.mxu0 %v17284_v31  ;;  %v17379_v8 = vadd.f32 %v8325_v22, %v8104_v17  ;;  %v10088_v54 = vld [vmem:[#allocation4 + $0x78] sm:$0xff]  ;;  %v19333_v17 = vld [vmem:[#allocation48_spill] sm:$0xff] }
 0x47d   : > { %13004 = vmatprep.mubr.msk.bf16.mxu0 %vm7802_vm1, %v9806_v9  ;;  %13040 = vmatprep.mubr.msk.bf16.mxu1 %vm7802_vm1, %v10144_v18  ;;  %v12787_v56 = vpop.f32.mrf.mxu0  ;;  %v12823_v13 = vpop.f32.mrf.mxu1  ;;  %v10147_v9 = vpack.c.bf16 %v10089_v14, %v10088_v54  ;;  %v19334_v22 = vpack.c.bf16 %v19332_v20, %v19333_v17  ;;  %v19346_v17 = vld [vmem:[#allocation82_spill] sm:$0xff] }
 0x47e   : > { %13070 = vmatprep.subr.bf16.mxu0 %v13151_v28  ;;  %v17383_v31 = vadd.f32 %v12823_v13, %v12787_v56 }
 0x47f   : > { %v8107_v26 = vpop.f32.mrf.mxu0  ;;  %v8328_v0 = vpop.f32.mrf.mxu1 }
 0x480   : > { %13071 = vmatpush3.bf16.msra.mxu0 %v13151_v28  ;;  %v17385_v32 = vadd.f32 %v8328_v0, %v8107_v26 }
 0x482   : > { %v12790_v1 = vpop.f32.mrf.mxu0  ;;  %v12826_v6 = vpop.f32.mrf.mxu1 }
 0x483   : > { %13005 = vmatmul.mubr.msk.bf16.gmra.mxu0 %vm7802_vm1, %v9807_v34  ;;  %v17389_v46 = vadd.f32 %v12826_v6, %v12790_v1  ;;  %v19341_v1 = vld [vmem:[#allocation16_spill] sm:$0xff] }
 0x484   : > { %13041 = vmatmul.mubr.msk.bf16.gmra.mxu1 %vm7802_vm1, %v10145_v50  ;;  %13008 = vmatprep.mubr.msk.bf16.mxu0 %vm7802_vm1, %v9808_v63  ;;  %v8120_v55 = vpop.f32.mrf.mxu0  ;;  %v8341_v19 = vpop.f32.mrf.mxu1  ;;  %v19339_v63 = vld [vmem:[#allocation64_spill] sm:$0xff] }
 0x485   : > { %13044 = vmatprep.mubr.msk.bf16.mxu1 %vm7802_vm1, %v10146_v21  ;;  %v17393_v49 = vadd.f32 %v8341_v19, %v8120_v55  ;;  %v19340_v21 = vpack.c.bf16 %v19338_v16, %v19339_v63  ;;  %v19342_v55 = vld [vmem:[#allocation81_spill] sm:$0xff]  ;;  %v19343_v19 = vld [vmem:[#allocation95_spill] sm:$0xff] }
 0x486   : > { %v12791_v3 = vpop.f32.mrf.mxu0  ;;  %v12827_v38 = vpop.f32.mrf.mxu1  ;;  %v19344_v14 = vpack.c.bf16 %v19342_v55, %v19343_v19 }
 0x487   : > { %v17395_v43 = vadd.f32 %v12827_v38, %v12791_v3  ;;  %v19345_v3 = vld [vmem:[#allocation91_spill] sm:$0xff] }
 0x488   : > { %v8123_v36 = vpop.f32.mrf.mxu0  ;;  %v8344_v28 = vpop.f32.mrf.mxu1 }
 0x489   : > { %v17397_v35 = vadd.f32 %v8344_v28, %v8123_v36 }
 0x48a   : > { %v12794_v18 = vpop.f32.mrf.mxu0  ;;  %v12830_v48 = vpop.f32.mrf.mxu1 }
 0x48b   : > { %13009 = vmatmul.mubr.msk.bf16.gmra.mxu0 %vm7802_vm1, %v19334_v22  ;;  %v17404_v25 = vadd.f32 %v12830_v48, %v12794_v18  ;;  %v19347_v22 = vld [vmem:[#allocation101_spill] sm:$0xff] }
 0x48c   : > { %13045 = vmatmul.mubr.msk.bf16.gmra.mxu1 %vm7802_vm1, %v10147_v9  ;;  %13012 = vmatprep.mubr.msk.bf16.mxu0 %vm7802_vm1, %v19337_v60  ;;  %v8136_v56 = vpop.f32.mrf.mxu0  ;;  %v8357_v13 = vpop.f32.mrf.mxu1  ;;  %v19348_v62 = vpack.c.bf16 %v19346_v17, %v19347_v22  ;;  %v9767_v22 = vld [vmem:[#allocation4 + $0xff] sm:$0xff] }
 0x48d   : > { %13048 = vmatprep.mubr.msk.bf16.mxu1 %vm7802_vm1, %v10148_v33  ;;  %v17411_v27 = vadd.f32 %v8357_v13, %v8136_v56  ;;  %v19350_v56 = vld [vmem:[#allocation45_spill] sm:$0xff] }
 0x48e   : > { %v12795_v29 = vpop.f32.mrf.mxu0  ;;  %v12831_v10 = vpop.f32.mrf.mxu1  ;;  %v19351_v13 = vpack.c.bf16 %v16925_v61, %v19350_v56  ;;  %v19353_v61 = vld [vmem:[#allocation96_spill] sm:$0xff] }
 0x48f   : > { %v17413_v24 = vadd.f32 %v12831_v10, %v12795_v29  ;;  %v19352_v29 = vld [vmem:[#allocation26_spill] sm:$0xff] }
 0x490   : > { %v8139_v26 = vpop.f32.mrf.mxu0  ;;  %v8360_v0 = vpop.f32.mrf.mxu1 }
 0x491   : > { %v17415_v34 = vadd.f32 %v8360_v0, %v8139_v26 }
 0x493   : > { %v12798_v50 = vpop.f32.mrf.mxu0  ;;  %13013 = vmatmul.mubr.msk.bf16.gmra.mxu0 %vm7802_vm1, %v19340_v21 }
 0x494   : > { %v12834_v51 = vpop.f32.mrf.mxu1  ;;  %13049 = vmatmul.mubr.msk.bf16.gmra.mxu1 %vm7802_vm1, %v19341_v1  ;;  %13016 = vmatprep.mubr.msk.bf16.mxu0 %vm7802_vm1, %v19344_v14  ;;  %v19354_v14 = vld [vmem:[#allocation66_spill] sm:$0xff] }
 0x495   : > { %v17423_v6 = vadd.f32 %v12834_v51, %v12798_v50  ;;  %13052 = vmatprep.mubr.msk.bf16.mxu1 %vm7802_vm1, %v19345_v3  ;;  %v8152_v38 = vpop.f32.mrf.mxu0  ;;  %v19355_v3 = vpack.c.bf16 %v19353_v61, %v19354_v14 }
 0x496   : > { %v8373_v57 = vpop.f32.mrf.mxu1 }
 0x497   : > { %v17431_v54 = vadd.f32 %v8373_v57, %v8152_v38  ;;  %v12799_v36 = vpop.f32.mrf.mxu0  ;;  %v19356_v38 = vld [vmem:[#allocation104_spill] sm:$0xff] }
 0x498   : > { %v12835_v28 = vpop.f32.mrf.mxu1 }
 0x499   : > { %v17433_v9 = vadd.f32 %v12835_v28, %v12799_v36  ;;  %v8155_v52 = vpop.f32.mrf.mxu0  ;;  %v19357_v36 = vld [vmem:[#allocation25_spill] sm:$0xff] }
 0x49a   : > { %v8376_v33 = vpop.f32.mrf.mxu1  ;;  %v19358_v28 = vpack.c.bf16 %v16955_v37, %v19357_v36  ;;  %v10104_v37 = vld [vmem:[#allocation4 + $0xf8] sm:$0xff] }
 0x49b   : > { %v17435_v18 = vadd.f32 %v8376_v33, %v8155_v52  ;;  %v12802_v48 = vpop.f32.mrf.mxu0  ;;  %13017 = vmatmul.mubr.msk.bf16.gmra.mxu0 %vm7802_vm1, %v19348_v62  ;;  %v19359_v52 = vld [vmem:[#allocation7_spill] sm:$0xff] }
 0x49c   : > { %v12838_v20 = vpop.f32.mrf.mxu1  ;;  %13053 = vmatmul.mubr.msk.bf16.gmra.mxu1 %vm7802_vm1, %v19349_v59  ;;  %13020 = vmatprep.mubr.msk.bf16.mxu0 %vm7802_vm1, %v19351_v13  ;;  %v9766_v33 = vld [vmem:[#allocation4 + $0xf7] sm:$0xff]  ;;  %v10105_v62 = vld [vmem:[#allocation4 + $0x100] sm:$0xff] }
 0x49d   : > { %v17443_v60 = vadd.f32 %v12838_v20, %v12802_v48  ;;  %13056 = vmatprep.mubr.msk.bf16.mxu1 %vm7802_vm1, %v19352_v29  ;;  %v8168_v10 = vpop.f32.mrf.mxu0  ;;  %v9798_v13 = vmul.f32 %v19272_v5, %v9766_v33  ;;  %v10107_v29 = vld [vmem:[#allocation4 + $0x110] sm:$0xff] }
 0x49e   : > { %v8389_v26 = vpop.f32.mrf.mxu1 }
 0x49f   : > { %v17451_v0 = vadd.f32 %v8389_v26, %v8168_v10  ;;  %v12803_v50 = vpop.f32.mrf.mxu0  ;;  %v10108_v26 = vld [vmem:[#allocation4 + $0x118] sm:$0xff] }
 0x4a0   : > { %v12839_v51 = vpop.f32.mrf.mxu1  ;;  %v10140_v5 = vmul.f32 0.0, %v10108_v26 }
 0x4a1   : > { %v17453_v16 = vadd.f32 %v12839_v51, %v12803_v50  ;;  %v8171_v63 = vpop.f32.mrf.mxu0  ;;  %v10109_v50 = vld [vmem:[#allocation4 + $0x120] sm:$0xff] }
 0x4a2   : > { %v8392_v21 = vpop.f32.mrf.mxu1 }
 0x4a3   : > { %v17455_v1 = vadd.f32 %v8392_v21, %v8171_v63  ;;  %v12806_v55 = vpop.f32.mrf.mxu0  ;;  %13021 = vmatmul.mubr.msk.bf16.gmra.mxu0 %vm7802_vm1, %v19355_v3  ;;  %v9817_v21 = vpack.c.bf16 %v9767_v22, %v9798_v13  ;;  %v9770_v3 = vld [vmem:[#allocation4 + $0x117] sm:$0xff] }
 0x4a4   : > { %v12842_v19 = vpop.f32.mrf.mxu1  ;;  %13057 = vmatmul.mubr.msk.bf16.gmra.mxu1 %vm7802_vm1, %v19356_v38  ;;  %13024 = vmatprep.mubr.msk.bf16.mxu0 %vm7802_vm1, %v19358_v28  ;;  %v9771_v38 = vld [vmem:[#allocation4 + $0x11f] sm:$0xff] }
 0x4a5   : > { %v17463_v57 = vadd.f32 %v12842_v19, %v12806_v55  ;;  %13060 = vmatprep.mubr.msk.bf16.mxu1 %vm7802_vm1, %v19359_v52  ;;  %v8184_v48 = vpop.f32.mrf.mxu0  ;;  %v10155_v55 = vpack.c.bf16 %v10105_v62, %v10104_v37  ;;  %v10106_v19 = vld [vmem:[#allocation4 + $0x108] sm:$0xff]  ;;  %v10141_v52 = vmul.f32 0.0, %v10109_v50 }
 0x4a6   : > { %v8405_v20 = vpop.f32.mrf.mxu1  ;;  %v10156_v14 = vpack.c.bf16 %v10107_v29, %v10106_v19 }
 0x4a7   : > { %v17471_v17 = vadd.f32 %v8405_v20, %v8184_v48  ;;  %v12807_v59 = vpop.f32.mrf.mxu0  ;;  %v19360_v48 = vld [vmem:[#allocation63_spill] sm:$0xff] }
 0x4a8   : > { %v12843_v56 = vpop.f32.mrf.mxu1  ;;  %v19361_v20 = vpack.c.bf16 %v17058_v30, %v19360_v48  ;;  %v10419_v30 = vld [vmem:[#allocation4 + $0x41] sm:$0xff] }
 0x4a9   : > { %v17474_v10 = vadd.f32 %v12843_v56, %v12807_v59  ;;  %v8187_v51 = vpop.f32.mrf.mxu0  ;;  %v9802_v59 = vmul.f32 0.0, %v9770_v3  ;;  %v9803_v56 = vmul.f32 0.0, %v9771_v38  ;;  %v19362_v38 = vld [vmem:[#allocation102_spill] sm:$0xff]  ;;  %v10451_v48 = vmul.f32 %v19280_v4, %v10419_v30 }
 0x4aa   : > { %v8408_v63 = vpop.f32.mrf.mxu1  ;;  %v10425_v4 = vld [vmem:[#allocation4 + $0x71] sm:$0xff] }
 0x4ab   : > { %v17476_v61 = vadd.f32 %v8408_v63, %v8187_v51  ;;  %v12810_v36 = vpop.f32.mrf.mxu0  ;;  %13025 = vmatmul.mubr.msk.bf16.gmra.mxu0 %vm7802_vm1, %v9817_v21  ;;  %v10157_v51 = vpack.c.bf16 %v10141_v52, %v10140_v5  ;;  %v9819_v21 = vpack.c.bf16 %v9803_v56, %v9802_v59 }
 0x4ac   : > { %v12846_v28 = vpop.f32.mrf.mxu1  ;;  %13061 = vmatmul.mubr.msk.bf16.gmra.mxu1 %vm7802_vm1, %v10155_v55  ;;  %13028 = vmatprep.mubr.msk.bf16.mxu0 %vm7802_vm1, %v19361_v20 }
 0x4ad   : > { %v17480_v33 = vadd.f32 %v12846_v28, %v12810_v36  ;;  %13064 = vmatprep.mubr.msk.bf16.mxu1 %vm7802_vm1, %v10156_v14  ;;  %v8200_v22 = vpop.f32.mrf.mxu0  ;;  %v10421_v14 = vld [vmem:[#allocation4 + $0x51] sm:$0xff]  ;;  %v19363_v28 = vpack.c.bf16 %v19362_v38, %v17040_v58 }
 0x4ae   : > { %v8421_v62 = vpop.f32.mrf.mxu1 }
 0x4af   : > { %v17487_v13 = vadd.f32 %v8421_v62, %v8200_v22  ;;  %v12811_v29 = vpop.f32.mrf.mxu0  ;;  %v10453_v22 = vmul.f32 %v19309_v11, %v10421_v14 }
 0x4b0   : > { %v12847_v37 = vpop.f32.mrf.mxu1 }
 0x4b1   : > { %v17489_v26 = vadd.f32 %v12847_v37, %v12811_v29  ;;  %v8203_v50 = vpop.f32.mrf.mxu0  ;;  %v10418_v29 = vld [vmem:[#allocation4 + $0x39] sm:$0xff] }
 0x4b2   : > { %v8424_v63 = vpop.f32.mrf.mxu1 }
 0x4b3   : > { %v17491_v55 = vadd.f32 %v8424_v63, %v8203_v50  ;;  %v12814_v19 = vpop.f32.mrf.mxu0  ;;  %13029 = vmatmul.mubr.msk.bf16.gmra.mxu0 %vm7802_vm1, %v9819_v21  ;;  %v10481_v50 = vpack.c.bf16 %v10451_v48, %v10418_v29  ;;  %v10420_v63 = vld [vmem:[#allocation4 + $0x49] sm:$0xff]  ;;  %v10457_v48 = vmul.f32 %v19294_v7, %v10425_v4  ;;  %v10429_v7 = vld [vmem:[#allocation4 + $0x91] sm:$0xff] }
 0x4b4   : > { %v12850_v36 = vpop.f32.mrf.mxu1  ;;  %13065 = vmatmul.mubr.msk.bf16.gmra.mxu1 %vm7802_vm1, %v10157_v51  ;;  %13072 = vmatprep.mubr.msk.bf16.mxu0 %vm7802_vm1, %v19363_v28  ;;  %v10482_v21 = vpack.c.bf16 %v10453_v22, %v10420_v63  ;;  %v10424_v63 = vld [vmem:[#allocation4 + $0x69] sm:$0xff] }
 0x4b5   : > { %v17495_v3 = vadd.f32 %v12850_v36, %v12814_v19  ;;  %v8216_v5 = vpop.f32.mrf.mxu0  ;;  %v10423_v19 = vld [vmem:[#allocation4 + $0x61] sm:$0xff] }
 0x4b6   : > { %v8437_v52 = vpop.f32.mrf.mxu1  ;;  %v10455_v28 = vmul.f32 %v19293_v40, %v10423_v19  ;;  %v10484_v19 = vpack.c.bf16 %v10457_v48, %v10424_v63 }
 0x4b7   : > { %v17502_v20 = vadd.f32 %v8437_v52, %v8216_v5  ;;  %v12815_v62 = vpop.f32.mrf.mxu0 }
 0x4b8   : > { %v12851_v59 = vpop.f32.mrf.mxu1 }
 0x4b9   : > { %v17505_v56 = vadd.f32 %v12851_v59, %v12815_v62  ;;  %v8219_v37 = vpop.f32.mrf.mxu0 }
 0x4ba   : > { %v8440_v51 = vpop.f32.mrf.mxu1 }
 0x4bb   : > { %v17507_v58 = vadd.f32 %v8440_v51, %v8219_v37  ;;  %v12858_v36 = vpop.f32.mrf.mxu0  ;;  %13073 = vmatmul.mubr.msk.bf16.vlgmr.msra.gmra.mxu0 %vm7802_vm1, %v10481_v50  ;;  %v10422_v37 = vld [vmem:[#allocation4 + $0x59] sm:$0xff] }
 0x4bc   : > { %v12894_v38 = vpop.f32.mrf.mxu1  ;;  %v8760_v11 = vadd.f32 %v12858_v36, %v17374_v53  ;;  %13076 = vmatprep.mubr.msk.bf16.mxu0 %vm7802_vm1, %v10482_v21  ;;  %v10483_v50 = vpack.c.bf16 %v10455_v28, %v10422_v37  ;;  %v10427_v36 = vld [vmem:[#allocation4 + $0x81] sm:$0xff]  ;;  %v10426_v37 = vld [vmem:[#allocation4 + $0x79] sm:$0xff] }
 0x4bd   : > { %v8631_v30 = vpop.f32.mrf.mxu0 }
 0x4be   : > { %v8969_v14 = vpop.f32.mrf.mxu1  ;;  %v17513_v5 = vadd.f32 %v12894_v38, %v8760_v11  ;;  %v8758_v52 = vadd.f32 %v8631_v30, %v17379_v8 }
 0x4bf   : > { %v12859_v22 = vpop.f32.mrf.mxu0 }
 0x4c0   : > { %v12895_v62 = vpop.f32.mrf.mxu1  ;;  %v17517_v59 = vadd.f32 %v8969_v14, %v8758_v52  ;;  %v8761_v29 = vadd.f32 %v12859_v22, %v17383_v31  ;;  %v10459_v14 = vmul.f32 %v19299_v2, %v10427_v36  ;;  %v10461_v52 = vmul.f32 %v19300_v12, %v10429_v7  ;;  %v10433_v12 = vld [vmem:[#allocation4 + $0xb1] sm:$0xff] }
 0x4c1   : > { %v8634_v53 = vpop.f32.mrf.mxu0 }
 0x4c2   : > { %v8972_v51 = vpop.f32.mrf.mxu1  ;;  %v17520_v21 = vadd.f32 %v12895_v62, %v8761_v29  ;;  %v8759_v40 = vadd.f32 %v8634_v53, %v17385_v32 }
 0x4c3   : > { %v12862_v8 = vpop.f32.mrf.mxu0  ;;  %13077 = vmatmul.mubr.msk.bf16.gmra.mxu0 %vm7802_vm1, %v10483_v50  ;;  %v10428_v50 = vld [vmem:[#allocation4 + $0x89] sm:$0xff] }
 0x4c4   : > { %v12898_v38 = vpop.f32.mrf.mxu1  ;;  %v17524_v4 = vadd.f32 %v8972_v51, %v8759_v40  ;;  %v8764_v31 = vadd.f32 %v12862_v8, %v17389_v46  ;;  %13080 = vmatprep.mubr.msk.bf16.mxu0 %vm7802_vm1, %v10484_v19  ;;  %v10485_v51 = vpack.c.bf16 %v10459_v14, %v10426_v37  ;;  %v10486_v40 = vpack.c.bf16 %v10461_v52, %v10428_v50  ;;  %v10431_v19 = vld [vmem:[#allocation4 + $0xa1] sm:$0xff] }
 0x4c5   : > { %v8647_v11 = vpop.f32.mrf.mxu0  ;;  %v10435_v50 = vld [vmem:[#allocation4 + $0xc1] sm:$0xff] }
 0x4c6   : > { %v8985_v30 = vpop.f32.mrf.mxu1  ;;  %v17529_v28 = vadd.f32 %v12898_v38, %v8764_v31  ;;  %v8762_v32 = vadd.f32 %v8647_v11, %v17393_v49  ;;  %v10463_v31 = vmul.f32 %v19301_v15, %v10431_v19 }
 0x4c7   : > { %v12863_v48 = vpop.f32.mrf.mxu0 }
 0x4c8   : > { %v12899_v22 = vpop.f32.mrf.mxu1  ;;  %v17533_v62 = vadd.f32 %v8985_v30, %v8762_v32  ;;  %v8765_v29 = vadd.f32 %v12863_v48, %v17395_v43  ;;  %v10465_v30 = vmul.f32 %v19302_v47, %v10433_v12  ;;  %v10437_v47 = vld [vmem:[#allocation4 + $0xd1] sm:$0xff] }
 0x4c9   : > { %v8650_v46 = vpop.f32.mrf.mxu0 }
 0x4ca   : > { %v8988_v53 = vpop.f32.mrf.mxu1  ;;  %v17536_v63 = vadd.f32 %v12899_v22, %v8765_v29  ;;  %v8763_v2 = vadd.f32 %v8650_v46, %v17397_v35  ;;  %v10430_v22 = vld [vmem:[#allocation4 + $0x99] sm:$0xff]  ;;  %v10432_v46 = vld [vmem:[#allocation4 + $0xa9] sm:$0xff] }
 0x4cb   : > { %v12866_v49 = vpop.f32.mrf.mxu0  ;;  %13081 = vmatmul.mubr.msk.bf16.gmra.mxu0 %vm7802_vm1, %v10485_v51  ;;  %v10487_v37 = vpack.c.bf16 %v10463_v31, %v10430_v22  ;;  %v10488_v51 = vpack.c.bf16 %v10465_v30, %v10432_v46  ;;  %v10434_v30 = vld [vmem:[#allocation4 + $0xb9] sm:$0xff] }
 0x4cc   : > { %v12902_v36 = vpop.f32.mrf.mxu1  ;;  %v17540_v8 = vadd.f32 %v8988_v53, %v8763_v2  ;;  %v8768_v43 = vadd.f32 %v12866_v49, %v17404_v25  ;;  %13084 = vmatprep.mubr.msk.bf16.mxu0 %vm7802_vm1, %v10486_v40 }
 0x4cd   : > { %v8663_v38 = vpop.f32.mrf.mxu0 }
 0x4ce   : > { %v9001_v7 = vpop.f32.mrf.mxu1  ;;  %v17545_v11 = vadd.f32 %v12902_v36, %v8768_v43  ;;  %v8766_v35 = vadd.f32 %v8663_v38, %v17411_v27  ;;  %v10467_v36 = vmul.f32 %v19303_v39, %v10435_v50  ;;  %v10469_v43 = vmul.f32 %v19304_v42, %v10437_v47  ;;  %v10441_v42 = vld [vmem:[#allocation4 + $0xf1] sm:$0xff] }
 0x4cf   : > { %v12867_v14 = vpop.f32.mrf.mxu0 }
 0x4d0   : > { %v12903_v32 = vpop.f32.mrf.mxu1  ;;  %v17549_v52 = vadd.f32 %v9001_v7, %v8766_v35  ;;  %v8769_v48 = vadd.f32 %v12867_v14, %v17413_v24 }
 0x4d1   : > { %v8666_v25 = vpop.f32.mrf.mxu0 }
 0x4d2   : > { %v9004_v29 = vpop.f32.mrf.mxu1  ;;  %v17552_v53 = vadd.f32 %v12903_v32, %v8769_v48  ;;  %v8767_v15 = vadd.f32 %v8666_v25, %v17415_v34  ;;  %v10489_v32 = vpack.c.bf16 %v10467_v36, %v10434_v30  ;;  %v10436_v48 = vld [vmem:[#allocation4 + $0xc9] sm:$0xff]  ;;  %v10438_v36 = vld [vmem:[#allocation4 + $0xd9] sm:$0xff]  ;;  %v10443_v30 = vld [vmem:[#allocation4 + $0x101] sm:$0xff] }
 0x4d3   : > { %v12870_v27 = vpop.f32.mrf.mxu0  ;;  %13085 = vmatmul.mubr.msk.bf16.gmra.mxu0 %vm7802_vm1, %v10487_v37  ;;  %v10490_v25 = vpack.c.bf16 %v10469_v43, %v10436_v48  ;;  %v10475_v48 = vmul.f32 %v19307_v23, %v10443_v30 }
 0x4d4   : > { %v12906_v2 = vpop.f32.mrf.mxu1  ;;  %v17556_v40 = vadd.f32 %v9004_v29, %v8767_v15  ;;  %v8772_v24 = vadd.f32 %v12870_v27, %v17423_v6  ;;  %13088 = vmatprep.mubr.msk.bf16.mxu0 %vm7802_vm1, %v10488_v51  ;;  %v10439_v29 = vld [vmem:[#allocation4 + $0xe1] sm:$0xff] }
 0x4d5   : > { %v8679_v19 = vpop.f32.mrf.mxu0  ;;  %v10471_v50 = vmul.f32 %v19305_v41, %v10439_v29 }
 0x4d6   : > { %v9017_v49 = vpop.f32.mrf.mxu1  ;;  %v17561_v12 = vadd.f32 %v12906_v2, %v8772_v24  ;;  %v8770_v34 = vadd.f32 %v8679_v19, %v17431_v54  ;;  %v10473_v2 = vmul.f32 %v19306_v45, %v10441_v42  ;;  %v10442_v42 = vld [vmem:[#allocation4 + $0xf9] sm:$0xff] }
 0x4d7   : > { %v12871_v38 = vpop.f32.mrf.mxu0  ;;  %v10491_v43 = vpack.c.bf16 %v10471_v50, %v10438_v36  ;;  %v10493_v50 = vpack.c.bf16 %v10475_v48, %v10442_v42  ;;  %v19364_v36 = vld [vmem:[#allocation107_spill] sm:$0xff] }
 0x4d8   : > { %v12907_v7 = vpop.f32.mrf.mxu1  ;;  %v17565_v31 = vadd.f32 %v9017_v49, %v8770_v34  ;;  %v8773_v35 = vadd.f32 %v12871_v38, %v17433_v9  ;;  %v10440_v38 = vld [vmem:[#allocation4 + $0xe9] sm:$0xff] }
 0x4d9   : > { %v8682_v6 = vpop.f32.mrf.mxu0 }
 0x4da   : > { %v9020_v14 = vpop.f32.mrf.mxu1  ;;  %v17568_v22 = vadd.f32 %v12907_v7, %v8773_v35  ;;  %v8771_v39 = vadd.f32 %v8682_v6, %v17435_v18  ;;  %v10492_v35 = vpack.c.bf16 %v10473_v2, %v10440_v38 }
 0x4db   : > { %v12874_v54 = vpop.f32.mrf.mxu0  ;;  %13089 = vmatmul.mubr.msk.bf16.gmra.mxu0 %vm7802_vm1, %v10489_v32 }
 0x4dc   : > { %v12910_v37 = vpop.f32.mrf.mxu1  ;;  %v17572_v46 = vadd.f32 %v9020_v14, %v8771_v39  ;;  %v8776_v9 = vadd.f32 %v12874_v54, %v17443_v60  ;;  %13092 = vmatprep.mubr.msk.bf16.mxu0 %vm7802_vm1, %v10490_v25 }
 0x4dd   : > { %v8695_v15 = vpop.f32.mrf.mxu0 }
 0x4de   : > { %v9033_v51 = vpop.f32.mrf.mxu1  ;;  %v17577_v27 = vadd.f32 %v12910_v37, %v8776_v9  ;;  %v8774_v18 = vadd.f32 %v8695_v15, %v17451_v0  ;;  %v10446_v9 = vld [vmem:[#allocation4 + $0x119] sm:$0xff]  ;;  %v10447_v15 = vld [vmem:[#allocation4 + $0x121] sm:$0xff] }
 0x4df   : > { %v12875_v47 = vpop.f32.mrf.mxu0 }
 0x4e0   : > { %v12911_v24 = vpop.f32.mrf.mxu1  ;;  %v17581_v19 = vadd.f32 %v9033_v51, %v8774_v18  ;;  %v8777_v49 = vadd.f32 %v12875_v47, %v17453_v16 }
 0x4e1   : > { %v8698_v60 = vpop.f32.mrf.mxu0 }
 0x4e2   : > { %v9036_v34 = vpop.f32.mrf.mxu1  ;;  %v17584_v7 = vadd.f32 %v12911_v24, %v8777_v49  ;;  %v8775_v41 = vadd.f32 %v8698_v60, %v17455_v1  ;;  %v10479_v24 = vmul.f32 0.0, %v10447_v15  ;;  %v19365_v60 = vpack.c.bf16 %v19364_v36, %v19326_v44 }
 0x4e3   : > { %v12878_v0 = vpop.f32.mrf.mxu0  ;;  %13093 = vmatmul.mubr.msk.bf16.gmra.mxu0 %vm7802_vm1, %v10491_v43 }
 0x4e4   : > { %v12914_v6 = vpop.f32.mrf.mxu1  ;;  %v17588_v45 = vadd.f32 %v9036_v34, %v8775_v41  ;;  %v8780_v14 = vadd.f32 %v12878_v0, %v17463_v57  ;;  %13096 = vmatprep.mubr.msk.bf16.mxu0 %vm7802_vm1, %v10492_v35 }
 0x4e5   : > { %v8711_v16 = vpop.f32.mrf.mxu0 }
 0x4e6   : > { %v9049_v32 = vpop.f32.mrf.mxu1  ;;  %v17593_v39 = vadd.f32 %v12914_v6, %v8780_v14  ;;  %v8778_v1 = vadd.f32 %v8711_v16, %v17471_v17  ;;  %v10478_v17 = vmul.f32 0.0, %v10446_v9 }
 0x4e7   : > { %v12879_v25 = vpop.f32.mrf.mxu0 }
 0x4e8   : > { %v12915_v29 = vpop.f32.mrf.mxu1  ;;  %v17596_v54 = vadd.f32 %v9049_v32, %v8778_v1  ;;  %v8781_v37 = vadd.f32 %v12879_v25, %v17474_v10  ;;  %v10495_v30 = vpack.c.bf16 %v10479_v24, %v10478_v17 }
 0x4e9   : > { %v8714_v57 = vpop.f32.mrf.mxu0 }
 0x4ea   : > { %v9052_v51 = vpop.f32.mrf.mxu1  ;;  %v17599_v18 = vadd.f32 %v12915_v29, %v8781_v37  ;;  %v8779_v23 = vadd.f32 %v8714_v57, %v17476_v61 }
 0x4eb   : > { %v12882_v2 = vpop.f32.mrf.mxu0  ;;  %13097 = vmatmul.mubr.msk.bf16.gmra.mxu0 %vm7802_vm1, %v10493_v50 }
 0x4ec   : > { %v12918_v47 = vpop.f32.mrf.mxu1  ;;  %v17603_v49 = vadd.f32 %v9052_v51, %v8779_v23  ;;  %v8784_v10 = vadd.f32 %v12882_v2, %v17480_v33  ;;  %13100 = vmatprep.mubr.msk.bf16.mxu0 %vm7802_vm1, %v19365_v60 }
 0x4ed   : > { %v8727_v34 = vpop.f32.mrf.mxu0 }
 0x4ee   : > { %v9065_v43 = vpop.f32.mrf.mxu1  ;;  %v17610_v38 = vadd.f32 %v12918_v47, %v8784_v10  ;;  %v8782_v61 = vadd.f32 %v8727_v34, %v17487_v13 }
 0x4ef   : > { %v12883_v41 = vpop.f32.mrf.mxu0 }
 0x4f0   : > { %v12919_v35 = vpop.f32.mrf.mxu1  ;;  %v17613_v0 = vadd.f32 %v9065_v43, %v8782_v61  ;;  %v8785_v6 = vadd.f32 %v12883_v41, %v17489_v26 }
 0x4f1   : > { %v8730_v14 = vpop.f32.mrf.mxu0 }
 0x4f2   : > { %v9068_v33 = vpop.f32.mrf.mxu1  ;;  %v17616_v16 = vadd.f32 %v12919_v35, %v8785_v6  ;;  %v8783_v44 = vadd.f32 %v8730_v14, %v17491_v55 }
 0x4f3   : > { %v12886_v32 = vpop.f32.mrf.mxu0  ;;  %13101 = vmatmul.mubr.msk.bf16.gmra.mxu0 %vm7802_vm1, %v10495_v30 }
 0x4f4   : > { %v12922_v48 = vpop.f32.mrf.mxu1  ;;  %v17620_v1 = vadd.f32 %v9068_v33, %v8783_v44  ;;  %v8788_v13 = vadd.f32 %v12886_v32, %v17495_v3 }
 0x4f5   : > { %v8743_v25 = vpop.f32.mrf.mxu0 }
 0x4f6   : > { %v9081_v29 = vpop.f32.mrf.mxu1  ;;  %v17623_v37 = vadd.f32 %v12922_v48, %v8788_v13  ;;  %v8786_v26 = vadd.f32 %v8743_v25, %v17502_v20 }
 0x4f7   : > { %v12887_v42 = vpop.f32.mrf.mxu0 }
 0x4f8   : > { %v12923_v9 = vpop.f32.mrf.mxu1  ;;  %v17626_v15 = vadd.f32 %v9081_v29, %v8786_v26  ;;  %v8789_v55 = vadd.f32 %v12887_v42, %v17505_v56 }
 0x4f9   : > { %v8746_v57 = vpop.f32.mrf.mxu0 }
 0x4fa   : > { %v9084_v51 = vpop.f32.mrf.mxu1  ;;  %v17629_v50 = vadd.f32 %v12923_v9, %v8789_v55  ;;  %v8787_v23 = vadd.f32 %v8746_v57, %v17507_v58 }
 0x4fb   : > { %v12930_v2 = vpop.f32.mrf.mxu0 }
 0x4fc   : > { %v17632_v3 = vpop.f32.mrf.mxu1  ;;  %v17634_v47 = vadd.f32 %v9084_v51, %v8787_v23  ;;  %v17637_v17 = vadd.f32 %v12930_v2, %v17513_v5 }
 0x4fd   : > { %v9243_v20 = vpop.f32.mrf.mxu0 }
 0x4fe   : > { %v17639_v24 = vpop.f32.mrf.mxu1  ;;  %v17642_v10 = vadd.f32 %v9243_v20, %v17517_v59 }
 0x4ff   : > { %v12931_v56 = vpop.f32.mrf.mxu0 }
 0x500   : > { %v17644_v36 = vpop.f32.mrf.mxu1  ;;  %v17647_v60 = vadd.f32 %v12931_v56, %v17520_v21 }
 0x501   : > { %v9246_v58 = vpop.f32.mrf.mxu0 }
 0x502   : > { %v17649_v34 = vpop.f32.mrf.mxu1  ;;  %v17652_v43 = vadd.f32 %v9246_v58, %v17524_v4 }
 0x503   : > { %v12934_v5 = vpop.f32.mrf.mxu0 }
 0x504   : > { %v12970_v61 = vpop.f32.mrf.mxu1  ;;  %v9376_v41 = vadd.f32 %v12934_v5, %v17529_v28 }
 0x505   : > { %v9259_v35 = vpop.f32.mrf.mxu0 }
 0x506   : > { %v17655_v30 = vpop.f32.mrf.mxu1  ;;  %v17657_v59 = vadd.f32 %v12970_v61, %v9376_v41  ;;  %v17660_v6 = vadd.f32 %v9259_v35, %v17533_v62 }
 0x507   : > { %v12935_v21 = vpop.f32.mrf.mxu0 }
 0x508   : > { %v12971_v14 = vpop.f32.mrf.mxu1  ;;  %v9377_v33 = vadd.f32 %v12935_v21, %v17536_v63 }
 0x509   : > { %v9262_v44 = vpop.f32.mrf.mxu0 }
 0x50a   : > { %v17663_v32 = vpop.f32.mrf.mxu1  ;;  %v17665_v4 = vadd.f32 %v12971_v14, %v9377_v33  ;;  %v17668_v48 = vadd.f32 %v9262_v44, %v17540_v8 }
 0x50b   : > { %v12938_v28 = vpop.f32.mrf.mxu0 }
 0x50c   : > { %v12974_v13 = vpop.f32.mrf.mxu1  ;;  %v9380_v25 = vadd.f32 %v12938_v28, %v17545_v11 }
 0x50d   : > { %v9275_v29 = vpop.f32.mrf.mxu0 }
 0x50e   : > { %v17671_v26 = vpop.f32.mrf.mxu1  ;;  %v17673_v62 = vadd.f32 %v12974_v13, %v9380_v25  ;;  %v17676_v42 = vadd.f32 %v9275_v29, %v17549_v52 }
 0x50f   : > { %v12939_v63 = vpop.f32.mrf.mxu0 }
 0x510   : > { %v12975_v9 = vpop.f32.mrf.mxu1  ;;  %v9381_v55 = vadd.f32 %v12939_v63, %v17552_v53 }
 0x511   : > { %v9278_v57 = vpop.f32.mrf.mxu0 }
 0x512   : > { %v17679_v51 = vpop.f32.mrf.mxu1  ;;  %v17681_v8 = vadd.f32 %v12975_v9, %v9381_v55  ;;  %v17684_v23 = vadd.f32 %v9278_v57, %v17556_v40 }
 0x513   : > { %v12942_v11 = vpop.f32.mrf.mxu0 }
 0x514   : > { %v12978_v2 = vpop.f32.mrf.mxu1  ;;  %v9384_v20 = vadd.f32 %v12942_v11, %v17561_v12 }
 0x515   : > { %v9291_v56 = vpop.f32.mrf.mxu0 }
 0x516   : > { %v17687_v58 = vpop.f32.mrf.mxu1  ;;  %v17689_v52 = vadd.f32 %v12978_v2, %v9384_v20  ;;  %v17692_v5 = vadd.f32 %v9291_v56, %v17565_v31 }
 0x517   : > { %v12943_v53 = vpop.f32.mrf.mxu0 }
 0x518   : > { %v12979_v61 = vpop.f32.mrf.mxu1  ;;  %v9385_v41 = vadd.f32 %v12943_v53, %v17568_v22 }
 0x519   : > { %v9294_v35 = vpop.f32.mrf.mxu0 }
 0x51a   : > { %v17695_v21 = vpop.f32.mrf.mxu1  ;;  %v17697_v40 = vadd.f32 %v12979_v61, %v9385_v41  ;;  %v17700_v14 = vadd.f32 %v9294_v35, %v17572_v46 }
 0x51b   : > { %v12946_v12 = vpop.f32.mrf.mxu0 }
 0x51c   : > { %v12982_v33 = vpop.f32.mrf.mxu1  ;;  %v9388_v44 = vadd.f32 %v12946_v12, %v17577_v27 }
 0x51d   : > { %v9307_v28 = vpop.f32.mrf.mxu0 }
 0x51e   : > { %v17703_v13 = vpop.f32.mrf.mxu1  ;;  %v17705_v31 = vadd.f32 %v12982_v33, %v9388_v44  ;;  %v17708_v25 = vadd.f32 %v9307_v28, %v17581_v19 }
 0x51f   : > { %19366 = vst [vmem:[#allocation15_spill] sm:$0xff] %v17703_v13  ;;  %v12947_v22 = vpop.f32.mrf.mxu0 }
 0x520   : > { %v12983_v29 = vpop.f32.mrf.mxu1  ;;  %v9389_v63 = vadd.f32 %v12947_v22, %v17584_v7 }
 0x521   : > { %v9310_v9 = vpop.f32.mrf.mxu0 }
 0x522   : > { %v17711_v55 = vpop.f32.mrf.mxu1  ;;  %v17713_v46 = vadd.f32 %v12983_v29, %v9389_v63  ;;  %v17716_v57 = vadd.f32 %v9310_v9, %v17588_v45 }
 0x523   : > { %19367 = vst [vmem:[#allocation58_spill] sm:$0xff] %v17711_v55  ;;  %v12950_v27 = vpop.f32.mrf.mxu0 }
 0x524   : > { %19368 = vst [vmem:[#allocation110_spill] sm:$0xff] %v17716_v57  ;;  %v12986_v11 = vpop.f32.mrf.mxu1  ;;  %v9392_v2 = vadd.f32 %v12950_v27, %v17593_v39 }
 0x525   : > { %v9323_v20 = vpop.f32.mrf.mxu0 }
 0x526   : > { %v17719_v56 = vpop.f32.mrf.mxu1  ;;  %v17721_v19 = vadd.f32 %v12986_v11, %v9392_v2  ;;  %v17724_v53 = vadd.f32 %v9323_v20, %v17596_v54 }
 0x527   : > { %19369 = vst [vmem:[#allocation19_spill] sm:$0xff] %v17719_v56  ;;  %v12951_v7 = vpop.f32.mrf.mxu0 }
 0x528   : > { %19370 = vst [vmem:[#allocation56_spill] sm:$0xff] %v17724_v53  ;;  %v12987_v61 = vpop.f32.mrf.mxu1  ;;  %v9393_v41 = vadd.f32 %v12951_v7, %v17599_v18 }
 0x529   : > { %v9326_v35 = vpop.f32.mrf.mxu0 }
 0x52a   : > { %v17727_v12 = vpop.f32.mrf.mxu1  ;;  %v17729_v45 = vadd.f32 %v12987_v61, %v9393_v41  ;;  %v17732_v33 = vadd.f32 %v9326_v35, %v17603_v49 }
 0x52b   : > { %19371 = vst [vmem:[#allocation52_spill] sm:$0xff] %v17727_v12  ;;  %v12954_v39 = vpop.f32.mrf.mxu0 }
 0x52c   : > { %19372 = vst [vmem:[#allocation21_spill] sm:$0xff] %v17732_v33  ;;  %v12990_v44 = vpop.f32.mrf.mxu1  ;;  %v9396_v28 = vadd.f32 %v12954_v39, %v17610_v38 }
 0x52d   : > { %v9339_v22 = vpop.f32.mrf.mxu0 }
 0x52e   : > { %v17735_v29 = vpop.f32.mrf.mxu1  ;;  %v17737_v54 = vadd.f32 %v12990_v44, %v9396_v28  ;;  %v17740_v63 = vadd.f32 %v9339_v22, %v17613_v0 }
 0x52f   : > { %19373 = vst [vmem:[#allocation100_spill] sm:$0xff] %v17735_v29  ;;  %v12955_v18 = vpop.f32.mrf.mxu0 }
 0x530   : > { %19374 = vst [vmem:[#allocation22_spill] sm:$0xff] %v17740_v63  ;;  %v12991_v9 = vpop.f32.mrf.mxu1  ;;  %v9397_v27 = vadd.f32 %v12955_v18, %v17616_v16 }
 0x531   : > { %v9342_v11 = vpop.f32.mrf.mxu0 }
 0x532   : > { %v17743_v2 = vpop.f32.mrf.mxu1  ;;  %v17745_v49 = vadd.f32 %v12991_v9, %v9397_v27  ;;  %v17748_v20 = vadd.f32 %v9342_v11, %v17620_v1 }
 0x533   : > { %19375 = vst [vmem:[#allocation51_spill] sm:$0xff] %v17743_v2  ;;  %v12958_v38 = vpop.f32.mrf.mxu0 }
 0x534   : > { %19376 = vst [vmem:[#allocation86_spill] sm:$0xff] %v17748_v20  ;;  %v12994_v7 = vpop.f32.mrf.mxu1  ;;  %v9400_v61 = vadd.f32 %v12958_v38, %v17623_v37 }
 0x535   : > { %v9355_v41 = vpop.f32.mrf.mxu0 }
 0x536   : > { %v17751_v35 = vpop.f32.mrf.mxu1  ;;  %v17753_v0 = vadd.f32 %v12994_v7, %v9400_v61  ;;  %v17756_v39 = vadd.f32 %v9355_v41, %v17626_v15 }
 0x537   : > { %19377 = vst [vmem:[#allocation115_spill] sm:$0xff] %v17751_v35  ;;  %v12959_v16 = vpop.f32.mrf.mxu0 }
 0x538   : > { %19378 = vst [vmem:[#allocation23_spill] sm:$0xff] %v17756_v39  ;;  %v12995_v44 = vpop.f32.mrf.mxu1  ;;  %v9401_v28 = vadd.f32 %v12959_v16, %v17629_v50 }
 0x539   : > { %v9358_v22 = vpop.f32.mrf.mxu0 }
 0x53a   : > { %v17759_v18 = vpop.f32.mrf.mxu1  ;;  %v17761_v1 = vadd.f32 %v12995_v44, %v9401_v28  ;;  %v17764_v9 = vadd.f32 %v9358_v22, %v17634_v47 }
 0x53b   : > { %19379 = vst [vmem:[#allocation33_spill] sm:$0xff] %v17759_v18  ;;  %v13002_v37 = vpop.f32.mrf.mxu0 }
 0x53c   : > { %19380 = vst [vmem:[#allocation57_spill] sm:$0xff] %v17764_v9  ;;  %v17766_v27 = vpop.f32.mrf.mxu1 }
 0x53d   : > { %v9919_v11 = vpop.f32.mrf.mxu0 }
 0x53e   : > { %v17768_v38 = vpop.f32.mrf.mxu1 }
 0x53f   : > { %v17770_v15 = vpop.f32.mrf.mxu0 }
 0x540   : > { %v17774_v61 = vpop.f32.mrf.mxu1 }
 0x541   : > { %v17772_v7 = vpop.f32.mrf.mxu0 }
 0x542   : > { %v17781_v47 = vpop.f32.mrf.mxu1 }
 0x543   : > { %v13006_v50 = vpop.f32.mrf.mxu0 }
 0x544   : > { %v17777_v41 = vadd.f32 %v13006_v50, %v17657_v59  ;;  %v17788_v18 = vpop.f32.mrf.mxu1 }
 0x545   : > { %v17779_v16 = vpop.f32.mrf.mxu0 }
 0x546   : > { %v17795_v59 = vpop.f32.mrf.mxu1 }
 0x547   : > { %v13007_v44 = vpop.f32.mrf.mxu0 }
 0x548   : > { %v17784_v28 = vadd.f32 %v13007_v44, %v17665_v4  ;;  %v17802_v4 = vpop.f32.mrf.mxu1 }
 0x549   : > { %v17786_v22 = vpop.f32.mrf.mxu0 }
 0x54b   : > { %v13010_v9 = vpop.f32.mrf.mxu0 }
 0x54c   : > { %v17791_v35 = vadd.f32 %v13010_v9, %v17673_v62  ;;  %v17809_v62 = vpop.f32.mrf.mxu1 }
 0x54d   : > { %v17793_v39 = vpop.f32.mrf.mxu0 }
 0x54f   : > { %v13011_v50 = vpop.f32.mrf.mxu0 }
 0x550   : > { %v17798_v2 = vadd.f32 %v13011_v50, %v17681_v8  ;;  %v17816_v8 = vpop.f32.mrf.mxu1 }
 0x551   : > { %v17800_v20 = vpop.f32.mrf.mxu0 }
 0x553   : > { %v13014_v44 = vpop.f32.mrf.mxu0 }
 0x554   : > { %v17805_v29 = vadd.f32 %v13014_v44, %v17689_v52  ;;  %v17823_v52 = vpop.f32.mrf.mxu1 }
 0x555   : > { %v17807_v63 = vpop.f32.mrf.mxu0 }
 0x557   : > { %v13015_v9 = vpop.f32.mrf.mxu0 }
 0x558   : > { %v17812_v12 = vadd.f32 %v13015_v9, %v17697_v40  ;;  %v17830_v40 = vpop.f32.mrf.mxu1 }
 0x559   : > { %v17814_v33 = vpop.f32.mrf.mxu0 }
 0x55a   : > { %19381 = vst [vmem:[#allocation47_spill] sm:$0xff] %v17812_v12 }
 0x55b   : > { %v13018_v50 = vpop.f32.mrf.mxu0 }
 0x55c   : > { %v17819_v56 = vadd.f32 %v13018_v50, %v17705_v31  ;;  %v17837_v31 = vpop.f32.mrf.mxu1 }
 0x55d   : > { %v17821_v53 = vpop.f32.mrf.mxu0 }
 0x55e   : > { %19382 = vst [vmem:[#allocation20_spill] sm:$0xff] %v17819_v56  ;;  %19383 = vst [vmem:[#allocation10_spill] sm:$0xff] %v17821_v53 }
 0x55f   : > { %v13019_v44 = vpop.f32.mrf.mxu0 }
 0x560   : > { %v17826_v55 = vadd.f32 %v13019_v44, %v17713_v46  ;;  %v17844_v46 = vpop.f32.mrf.mxu1 }
 0x561   : > { %v17828_v57 = vpop.f32.mrf.mxu0 }
 0x562   : > { %19384 = vst [vmem:[#allocation84_spill] sm:$0xff] %v17826_v55  ;;  %19385 = vst [vmem:[#allocation61_spill] sm:$0xff] %v17828_v57 }
 0x563   : > { %v13022_v9 = vpop.f32.mrf.mxu0 }
 0x564   : > { %v17833_v12 = vadd.f32 %v13022_v9, %v17721_v19  ;;  %v17851_v19 = vpop.f32.mrf.mxu1 }
 0x565   : > { %v17835_v13 = vpop.f32.mrf.mxu0 }
 0x566   : > { %19386 = vst [vmem:[#allocation12_spill] sm:$0xff] %v17833_v12  ;;  %19387 = vst [vmem:[#allocation13_spill] sm:$0xff] %v17835_v13 }
 0x567   : > { %v13023_v50 = vpop.f32.mrf.mxu0 }
 0x568   : > { %v17840_v56 = vadd.f32 %v13023_v50, %v17729_v45  ;;  %v17858_v45 = vpop.f32.mrf.mxu1 }
 0x569   : > { %v17842_v53 = vpop.f32.mrf.mxu0 }
 0x56a   : > { %19388 = vst [vmem:[#allocation39_spill] sm:$0xff] %v17840_v56  ;;  %19389 = vst [vmem:[#allocation46_spill] sm:$0xff] %v17842_v53  ;;  %v9710_v56 = vadd.f32 %v17632_v3, %v17637_v17  ;;  %v9709_v17 = vadd.f32 %v17649_v34, %v17652_v43  ;;  %v9712_v34 = vadd.f32 %v17655_v30, %v17660_v6 }
 0x56b   : > { %v13026_v44 = vpop.f32.mrf.mxu0 }
 0x56c   : > { %v17847_v55 = vadd.f32 %v13026_v44, %v17737_v54  ;;  %v9708_v44 = vadd.f32 %v17639_v24, %v17642_v10 }
 0x56d   : > { %v17849_v57 = vpop.f32.mrf.mxu0 }
 0x56e   : > { %19390 = vst [vmem:[#allocation89_spill] sm:$0xff] %v17847_v55  ;;  %19391 = vst [vmem:[#allocation50_spill] sm:$0xff] %v17849_v57  ;;  %v10048_v55 = vadd.f32 %v13002_v37, %v9710_v56  ;;  %v17869_v57 = vpop.f32.mrf.mxu1 }
 0x56f   : > { %v13027_v9 = vpop.f32.mrf.mxu0 }
 0x570   : > { %v17854_v12 = vadd.f32 %v13027_v9, %v17745_v49  ;;  %v9711_v9 = vadd.f32 %v17644_v36, %v17647_v60  ;;  %v17882_v10 = vpop.f32.mrf.mxu1  ;;  %v17887_v36 = vld [vmem:[%s18160_s6] ss:$0 sm:$0xff] }
 0x571   : > { %v17856_v13 = vpop.f32.mrf.mxu0 }
 0x572   : > { %19392 = vst [vmem:[#allocation68_spill] sm:$0xff] %v17854_v12  ;;  %19393 = vst [vmem:[#allocation111_spill] sm:$0xff] %v17856_v13  ;;  %v10046_v12 = vadd.f32 %v9919_v11, %v9708_v44  ;;  %v10049_v24 = vadd.f32 %v17770_v15, %v9711_v9  ;;  %v10050_v15 = vadd.f32 %v17779_v16, %v9712_v34 }
 0x573   : > { %v13030_v50 = vpop.f32.mrf.mxu0 }
 0x574   : > { %v17863_v53 = vadd.f32 %v13030_v50, %v17753_v0  ;;  %v10386_v0 = vadd.f32 %v17766_v27, %v10048_v55  ;;  %v10384_v60 = vadd.f32 %v17768_v38, %v10046_v12  ;;  %v10387_v55 = vadd.f32 %v17774_v61, %v10049_v24  ;;  %v17896_v50 = vpop.f32.mrf.mxu1  ;;  %v10827_v12 = vld [vmem:[%s18161_s7 + $0x10] sm:$0xff] }
 0x575   : > { %v17865_v54 = vpop.f32.mrf.mxu0  ;;  %v9713_v61 = vadd.f32 %v17663_v32, %v17668_v48  ;;  %v10828_v48 = vld [vmem:[%s18161_s7 + $0x18] sm:$0xff] }
 0x577   : > { %v13031_v49 = vpop.f32.mrf.mxu0 }
 0x578   : > { %v17874_v13 = vadd.f32 %v13031_v49, %v17761_v1  ;;  %v10047_v1 = vadd.f32 %v17772_v7, %v9709_v17  ;;  %v10390_v49 = vadd.f32 %v17788_v18, %v17777_v41 }
 0x579   : > { %v17876_v3 = vpop.f32.mrf.mxu0 }
 0x57a   : > { %v10385_v38 = vadd.f32 %v17781_v47, %v10047_v1  ;;  %v10825_v47 = vld [vmem:[%s18161_s7] sm:$0xff]  ;;  %v17913_v1 = vpop.f32.mrf.mxu1 }
 0x57b   : > { %v13074_v56 = vpop.f32.mrf.mxu0 }
 0x57c   : > { %v10724_v37 = vadd.f32 %v13074_v56, %v10386_v0  ;;  %v10388_v56 = vadd.f32 %v17795_v59, %v10050_v15 }
 0x57d   : > { %v10595_v43 = vpop.f32.mrf.mxu0 }
 0x57e   : > { %v10763_v27 = vadd.f32 %v17887_v36, %v10724_v37  ;;  %v10722_v11 = vadd.f32 %v10595_v43, %v10384_v60  ;;  %v10051_v60 = vadd.f32 %v17786_v22, %v9713_v61  ;;  %v9716_v43 = vadd.f32 %v17671_v26, %v17676_v42 }
 0x57f   : > { %v13075_v44 = vpop.f32.mrf.mxu0  ;;  %v10391_v22 = vadd.f32 %v17802_v4, %v17784_v28  ;;  %v9717_v61 = vadd.f32 %v17679_v51, %v17684_v23 }
 0x580   : > { %v10795_v7 = vmax.f32 %v10763_v27, 0.0  ;;  %v10761_v30 = vadd.f32 %v17887_v36, %v10722_v11  ;;  %v10725_v6 = vadd.f32 %v13075_v44, %v10387_v55  ;;  %v10826_v44 = vld [vmem:[%s18161_s7 + $0x8] sm:$0xff] }
 0x581   : > { %v10598_v16 = vpop.f32.mrf.mxu0 }
 0x582   : > { %v10793_v9 = vmax.f32 %v10761_v30, 0.0  ;;  %v10764_v17 = vadd.f32 %v17887_v36, %v10725_v6  ;;  %v10723_v0 = vadd.f32 %v10598_v16, %v10385_v38  ;;  %v10860_v24 = vmul.f32 %v10827_v12, %v10795_v7  ;;  %v17928_v38 = vpop.f32.mrf.mxu1  ;;  %v10829_v16 = vld [vmem:[%s18161_s7 + $0x20] sm:$0xff] }
 0x583   : > { %v13078_v32 = vpop.f32.mrf.mxu0  ;;  %v10054_v12 = vadd.f32 %v17793_v39, %v9716_v43  ;;  %v10389_v30 = vadd.f32 %v17809_v62, %v10051_v60  ;;  %v10055_v60 = vadd.f32 %v17800_v20, %v9717_v61  ;;  %v10395_v20 = vadd.f32 %v17830_v40, %v17798_v2 }
 0x584   : > { %v10796_v18 = vmax.f32 %v10764_v17, 0.0  ;;  %v10762_v41 = vadd.f32 %v17887_v36, %v10723_v0  ;;  %v10728_v37 = vadd.f32 %v13078_v32, %v10390_v49  ;;  %v10897_v34 = vsel %vm10890_vm6, %v10860_v24, 0.0 }
 0x585   : > { %v10611_v55 = vpop.f32.mrf.mxu0  ;;  %10898 = vadd.xlane.f32.xlu1 %v10897_v34  ;;  %v10858_v59 = vmul.f32 %v10825_v47, %v10793_v9  ;;  %v10394_v9 = vadd.f32 %v17816_v8, %v17791_v35  ;;  %v10392_v24 = vadd.f32 %v17823_v52, %v10054_v12  ;;  %v17944_v47 = vpop.f32.mrf.mxu1  ;;  %v10831_v35 = vld [vmem:[%s18161_s7 + $0x30] sm:$0xff]  ;;  %v9720_v8 = vadd.f32 %v17687_v58, %v17692_v5 }
 0x586   : > { %v10794_v27 = vmax.f32 %v10762_v41, 0.0  ;;  %v10726_v11 = vadd.f32 %v10611_v55, %v10388_v56  ;;  %v10861_v15 = vmul.f32 %v10828_v48, %v10796_v18  ;;  %v10767_v7 = vadd.f32 %v17887_v36, %v10728_v37  ;;  %v10830_v37 = vld [vmem:[%s18161_s7 + $0x28] sm:$0xff] }
 0x587   : > { %v13079_v26 = vpop.f32.mrf.mxu0  ;;  %v10891_v42 = vsel %vm10890_vm6, %v10858_v59, 0.0  ;;  %v10832_v59 = vld [vmem:[%s18161_s7 + $0x38] sm:$0xff]  ;;  %v17964_v58 = vpop.f32.mrf.mxu1  ;;  %v9721_v12 = vadd.f32 %v17695_v21, %v17700_v14 }
 0x588   : > { %v10765_v28 = vadd.f32 %v17887_v36, %v10726_v11  ;;  %v10729_v4 = vadd.f32 %v13079_v26, %v10391_v22  ;;  %10892 = vadd.xlane.f32.xlu0 %v10891_v42  ;;  %v10900_v6 = vsel %vm10890_vm6, %v10861_v15, 0.0  ;;  %v10859_v39 = vmul.f32 %v10826_v44, %v10794_v27  ;;  %v10833_v42 = vld [vmem:[%s18161_s7 + $0x40] sm:$0xff] }
 0x589   : > { %v10614_v49 = vpop.f32.mrf.mxu0  ;;  %10901 = vadd.xlane.f32.xlu1 %v10900_v6  ;;  %v10799_v56 = vmax.f32 %v10767_v7, 0.0  ;;  %v10058_v22 = vadd.f32 %v17807_v63, %v9720_v8  ;;  %v10393_v15 = vadd.f32 %v17837_v31, %v10055_v60  ;;  %v10398_v7 = vadd.f32 %v17844_v46, %v17805_v29  ;;  %v17979_v61 = vpop.f32.mrf.mxu1 }
 0x58a   : > { %v10797_v62 = vmax.f32 %v10765_v28, 0.0  ;;  %v10768_v17 = vadd.f32 %v17887_v36, %v10729_v4  ;;  %v10727_v0 = vadd.f32 %v10614_v49, %v10389_v30  ;;  %v10894_v23 = vsel %vm10890_vm6, %v10859_v39, 0.0 }
 0x58b   : > { %v13082_v51 = vpop.f32.mrf.mxu0  ;;  %v10864_v11 = vmul.f32 %v10831_v35, %v10799_v56  ;;  %v10396_v6 = vadd.f32 %v17851_v19, %v10058_v22  ;;  %v10059_v46 = vadd.f32 %v17814_v33, %v9721_v12  ;;  %v19394_v19 = vld [vmem:[#allocation15_spill] sm:$0xff]  ;;  %v10834_v33 = vld [vmem:[%s18161_s7 + $0x48] sm:$0xff]  ;;  %v18000_v35 = vpop.f32.mrf.mxu1 }
 0x58c   : > { %v10766_v32 = vadd.f32 %v17887_v36, %v10727_v0  ;;  %v10732_v48 = vadd.f32 %v13082_v51, %v10394_v9  ;;  %10895 = vadd.xlane.f32.xlu0 %v10894_v23  ;;  %v10862_v18 = vmul.f32 %v10829_v16, %v10797_v62  ;;  %v10800_v52 = vmax.f32 %v10768_v17, 0.0  ;;  %v10835_v9 = vld [vmem:[%s18161_s7 + $0x50] sm:$0xff]  ;;  %v19395_v17 = vld [vmem:[#allocation47_spill] sm:$0xff]  ;;  %v19399_v22 = vld [vmem:[#allocation20_spill] sm:$0xff] }
 0x58d   : > { %v10627_v41 = vpop.f32.mrf.mxu0  ;;  %v10909_v29 = vsel %vm10890_vm6, %v10864_v11, 0.0  ;;  %v9724_v62 = vadd.f32 %v19394_v19, %v17708_v25  ;;  %v10399_v0 = vadd.f32 %v17858_v45, %v19395_v17  ;;  %v19396_v25 = vld [vmem:[#allocation10_spill] sm:$0xff] }
 0x58e   : > { %v10798_v34 = vmax.f32 %v10766_v32, 0.0  ;;  %v10730_v43 = vadd.f32 %v10627_v41, %v10392_v24  ;;  %v10903_v55 = vsel %vm10890_vm6, %v10862_v18, 0.0  ;;  %v10771_v5 = vadd.f32 %v17887_v36, %v10732_v48  ;;  %v10836_v48 = vld [vmem:[%s18161_s7 + $0x58] sm:$0xff] }
 0x58f   : > { %v13083_v27 = vpop.f32.mrf.mxu0  ;;  %v10865_v26 = vmul.f32 %v10832_v59, %v10800_v52  ;;  %v10062_v18 = vadd.f32 %v19396_v25, %v9724_v62  ;;  %v10397_v41 = vadd.f32 %v17869_v57, %v10059_v46 }
 0x590   : > { %v10769_v2 = vadd.f32 %v17887_v36, %v10730_v43  ;;  %v10733_v40 = vadd.f32 %v13083_v27, %v10395_v20  ;;  %10904 = vadd.xlane.f32.xlu0 %v10903_v55  ;;  %v10863_v44 = vmul.f32 %v10830_v37, %v10798_v34  ;;  %v10803_v21 = vmax.f32 %v10771_v5, 0.0  ;;  %v19397_v43 = vld [vmem:[#allocation110_spill] sm:$0xff] }
 0x591   : > { %v10630_v63 = vpop.f32.mrf.mxu0  ;;  %v10912_v60 = vsel %vm10890_vm6, %v10865_v26, 0.0  ;;  %v19398_v55 = vld [vmem:[#allocation58_spill] sm:$0xff]  ;;  %v10402_v5 = vadd.f32 %v17882_v10, %v19399_v22  ;;  %v10400_v12 = vadd.f32 %v17896_v50, %v10062_v18  ;;  %v19402_v50 = vld [vmem:[#allocation19_spill] sm:$0xff]  ;;  %v19405_v18 = vld [vmem:[#allocation21_spill] sm:$0xff] }
 0x592   : > { %v10801_v30 = vmax.f32 %v10769_v2, 0.0  ;;  %v10772_v31 = vadd.f32 %v17887_v36, %v10733_v40  ;;  %v10731_v28 = vadd.f32 %v10630_v63, %v10393_v15  ;;  %v10906_v4 = vsel %vm10890_vm6, %v10863_v44, 0.0  ;;  %v10837_v15 = vld [vmem:[%s18161_s7 + $0x60] sm:$0xff] }
 0x593   : > { %v13086_v14 = vpop.f32.mrf.mxu0  ;;  %10907 = vadd.xlane.f32.xlu1 %v10906_v4  ;;  %v10868_v52 = vmul.f32 %v10835_v9, %v10803_v21  ;;  %v9725_v59 = vadd.f32 %v19398_v55, %v19397_v43  ;;  %v19401_v21 = vld [vmem:[#allocation56_spill] sm:$0xff] }
 0x594   : > { %v10770_v49 = vadd.f32 %v17887_v36, %v10731_v28  ;;  %v10736_v39 = vadd.f32 %v13086_v14, %v10398_v7  ;;  %10910 = vadd.xlane.f32.xlu0 %v10909_v29  ;;  %v10866_v16 = vmul.f32 %v10833_v42, %v10801_v30  ;;  %v10804_v24 = vmax.f32 %v10772_v31, 0.0  ;;  %v18015_v7 = vpop.f32.mrf.mxu1  ;;  %v19400_v42 = vld [vmem:[#allocation61_spill] sm:$0xff]  ;;  %v19403_v29 = vld [vmem:[#allocation84_spill] sm:$0xff] }
 0x595   : > { %v10643_v56 = vpop.f32.mrf.mxu0  ;;  %v10921_v10 = vsel %vm10890_vm6, %v10868_v52, 0.0  ;;  %v10063_v30 = vadd.f32 %v19400_v42, %v9725_v59  ;;  %v9728_v14 = vadd.f32 %v19402_v50, %v19401_v21  ;;  %v10403_v46 = vadd.f32 %v17913_v1, %v19403_v29  ;;  %v19407_v52 = vld [vmem:[#allocation12_spill] sm:$0xff]  ;;  %v19412_v29 = vld [vmem:[#allocation50_spill] sm:$0xff] }
 0x596   : > { %v10802_v51 = vmax.f32 %v10770_v49, 0.0  ;;  %v10734_v23 = vadd.f32 %v10643_v56, %v10396_v6  ;;  %v10915_v32 = vsel %vm10890_vm6, %v10866_v16, 0.0  ;;  %v10775_v45 = vadd.f32 %v17887_v36, %v10736_v39  ;;  %v10839_v6 = vld [vmem:[%s18161_s7 + $0x70] sm:$0xff]  ;;  %v10838_v16 = vld [vmem:[%s18161_s7 + $0x68] sm:$0xff] }
 0x597   : > { %v13087_v8 = vpop.f32.mrf.mxu0  ;;  %10913 = vadd.xlane.f32.xlu1 %v10912_v60  ;;  %v10869_v11 = vmul.f32 %v10836_v48, %v10804_v24  ;;  %v19404_v24 = vld [vmem:[#allocation13_spill] sm:$0xff]  ;;  %v10401_v60 = vadd.f32 %v17928_v38, %v10063_v30 }
 0x598   : > { %v10773_v37 = vadd.f32 %v17887_v36, %v10734_v23  ;;  %v10737_v20 = vadd.f32 %v13087_v8, %v10399_v0  ;;  %10916 = vadd.xlane.f32.xlu0 %v10915_v32  ;;  %v10867_v34 = vmul.f32 %v10834_v33, %v10802_v51  ;;  %v10807_v63 = vmax.f32 %v10775_v45, 0.0  ;;  %v10840_v0 = vld [vmem:[%s18161_s7 + $0x78] sm:$0xff]  ;;  %v10353_v33 = vpop.f32.mrf.mxu1  ;;  %v19406_v45 = vld [vmem:[#allocation52_spill] sm:$0xff] }
 0x599   : > { %v10646_v27 = vpop.f32.mrf.mxu0  ;;  %v10924_v62 = vsel %vm10890_vm6, %v10869_v11, 0.0  ;;  %v10066_v56 = vadd.f32 %v19404_v24, %v9728_v14  ;;  %v9729_v8 = vadd.f32 %v19406_v45, %v19405_v18  ;;  %v10844_v14 = vld [vmem:[%s18161_s7 + $0x98] sm:$0xff] }
 0x59a   : > { %v10805_v2 = vmax.f32 %v10773_v37, 0.0  ;;  %v10776_v57 = vadd.f32 %v17887_v36, %v10737_v20  ;;  %v10735_v40 = vadd.f32 %v10646_v27, %v10397_v41  ;;  %v10918_v44 = vsel %vm10890_vm6, %v10867_v34, 0.0  ;;  %v10841_v34 = vld [vmem:[%s18161_s7 + $0x80] sm:$0xff] }
 0x59b   : > { %v13090_v26 = vpop.f32.mrf.mxu0  ;;  %10919 = vadd.xlane.f32.xlu1 %v10918_v44  ;;  %v10872_v23 = vmul.f32 %v10839_v6, %v10807_v63  ;;  %v10406_v41 = vadd.f32 %v17944_v47, %v19407_v52  ;;  %v10404_v22 = vadd.f32 %v17964_v58, %v10066_v56  ;;  %v19409_v63 = vld [vmem:[#allocation22_spill] sm:$0xff]  ;;  %v19414_v24 = vld [vmem:[#allocation51_spill] sm:$0xff] }
 0x59c   : > { %v10774_v31 = vadd.f32 %v17887_v36, %v10735_v40  ;;  %v10740_v28 = vadd.f32 %v13090_v26, %v10402_v5  ;;  %10922 = vadd.xlane.f32.xlu0 %v10921_v10  ;;  %v10870_v4 = vmul.f32 %v10837_v15, %v10805_v2  ;;  %v10808_v49 = vmax.f32 %v10776_v57, 0.0  ;;  %v13063_v5 = vpop.f32.mrf.mxu1  ;;  %v19408_v15 = vld [vmem:[#allocation46_spill] sm:$0xff]  ;;  %v19410_v26 = vld [vmem:[#allocation100_spill] sm:$0xff]  ;;  %v19411_v10 = vld [vmem:[#allocation39_spill] sm:$0xff] }
 0x59d   : > { %v10659_v39 = vpop.f32.mrf.mxu0  ;;  %v10933_v47 = vsel %vm10890_vm6, %v10872_v23, 0.0  ;;  %v10067_v2 = vadd.f32 %v19408_v15, %v9729_v8  ;;  %v9732_v58 = vadd.f32 %v19410_v26, %v19409_v63  ;;  %v10407_v42 = vadd.f32 %v17979_v61, %v19411_v10  ;;  %v10848_v26 = vld [vmem:[%s18161_s7 + $0xb8] sm:$0xff] }
 0x59e   : > { %v10806_v9 = vmax.f32 %v10774_v31, 0.0  ;;  %v10738_v19 = vadd.f32 %v10659_v39, %v10400_v12  ;;  %v10927_v17 = vsel %vm10890_vm6, %v10870_v4, 0.0  ;;  %v10779_v1 = vadd.f32 %v17887_v36, %v10740_v28  ;;  %v10843_v12 = vld [vmem:[%s18161_s7 + $0x90] sm:$0xff]  ;;  %v10842_v28 = vld [vmem:[%s18161_s7 + $0x88] sm:$0xff] }
 0x59f   : > { %v13091_v51 = vpop.f32.mrf.mxu0  ;;  %10925 = vadd.xlane.f32.xlu1 %v10924_v62  ;;  %v10873_v20 = vmul.f32 %v10840_v0, %v10808_v49  ;;  %v10356_v49 = vpop.f32.mrf.mxu1  ;;  %v19413_v0 = vld [vmem:[#allocation86_spill] sm:$0xff] }
 0x5a0   : > { %v10777_v32 = vadd.f32 %v17887_v36, %v10738_v19  ;;  %v10741_v48 = vadd.f32 %v13091_v51, %v10403_v46  ;;  %10928 = vadd.xlane.f32.xlu0 %v10927_v17  ;;  %v10871_v25 = vmul.f32 %v10838_v16, %v10806_v9  ;;  %v10811_v27 = vmax.f32 %v10779_v1, 0.0  ;;  %v19415_v1 = vld [vmem:[#allocation89_spill] sm:$0xff] }
 0x5a1   : > { %v10662_v37 = vpop.f32.mrf.mxu0  ;;  %v10936_v21 = vsel %vm10890_vm6, %v10873_v20, 0.0  ;;  %v10070_v46 = vadd.f32 %v19412_v29, %v9732_v58  ;;  %v10405_v9 = vadd.f32 %v18000_v35, %v10067_v2  ;;  %v9733_v56 = vadd.f32 %v19414_v24, %v19413_v0  ;;  %v13066_v23 = vpop.f32.mrf.mxu1 }
 0x5a2   : > { %v10809_v43 = vmax.f32 %v10777_v32, 0.0  ;;  %v10780_v38 = vadd.f32 %v17887_v36, %v10741_v48  ;;  %v10739_v55 = vadd.f32 %v10662_v37, %v10401_v60  ;;  %v10930_v59 = vsel %vm10890_vm6, %v10871_v25, 0.0  ;;  %v10845_v48 = vld [vmem:[%s18161_s7 + $0xa0] sm:$0xff] }
 0x5a3   : > { %v13094_v11 = vpop.f32.mrf.mxu0  ;;  %10931 = vadd.xlane.f32.xlu1 %v10930_v59  ;;  %v10876_v16 = vmul.f32 %v10843_v12, %v10811_v27  ;;  %v10410_v51 = vadd.f32 %v18015_v7, %v19415_v1  ;;  %v10408_v8 = vadd.f32 %v10353_v33, %v10070_v46  ;;  %v19416_v7 = vld [vmem:[#allocation111_spill] sm:$0xff]  ;;  %v19419_v33 = vld [vmem:[#allocation68_spill] sm:$0xff] }
 0x5a4   : > { %v10778_v57 = vadd.f32 %v17887_v36, %v10739_v55  ;;  %v10744_v40 = vadd.f32 %v13094_v11, %v10406_v41  ;;  %10934 = vadd.xlane.f32.xlu0 %v10933_v47  ;;  %v10874_v44 = vmul.f32 %v10841_v34, %v10809_v43  ;;  %v10812_v30 = vmax.f32 %v10780_v38, 0.0  ;;  %v10847_v55 = vld [vmem:[%s18161_s7 + $0xb0] sm:$0xff]  ;;  %v19417_v59 = vld [vmem:[#allocation23_spill] sm:$0xff]  ;;  %v10369_v47 = vpop.f32.mrf.mxu1 }
 0x5a5   : > { %v10675_v31 = vpop.f32.mrf.mxu0  ;;  %v10945_v37 = vsel %vm10890_vm6, %v10876_v16, 0.0  ;;  %v10071_v20 = vadd.f32 %v19416_v7, %v9733_v56  ;;  %v10411_v11 = vadd.f32 %v13063_v5, %v19419_v33 }
 0x5a6   : > { %v10810_v4 = vmax.f32 %v10778_v57, 0.0  ;;  %v10742_v6 = vadd.f32 %v10675_v31, %v10404_v22  ;;  %v10939_v50 = vsel %vm10890_vm6, %v10874_v44, 0.0  ;;  %v10783_v61 = vadd.f32 %v17887_v36, %v10744_v40  ;;  %v19418_v22 = vld [vmem:[#allocation115_spill] sm:$0xff]  ;;  %v10846_v57 = vld [vmem:[%s18161_s7 + $0xa8] sm:$0xff]  ;;  %v13067_v29 = vpop.f32.mrf.mxu1 }
 0x5a7   : > { %v13095_v39 = vpop.f32.mrf.mxu0  ;;  %10937 = vadd.xlane.f32.xlu1 %v10936_v21  ;;  %v10877_v32 = vmul.f32 %v10844_v14, %v10812_v30  ;;  %v9736_v27 = vadd.f32 %v19418_v22, %v19417_v59  ;;  %v10409_v30 = vadd.f32 %v10356_v49, %v10071_v20  ;;  %v19421_v21 = vld [vmem:[#allocation33_spill] sm:$0xff]  ;;  %v10414_v14 = vadd.f32 %v13066_v23, %v17863_v53 }
 0x5a8   : > { %v10781_v19 = vadd.f32 %v17887_v36, %v10742_v6  ;;  %v10745_v62 = vadd.f32 %v13095_v39, %v10407_v42  ;;  %10940 = vadd.xlane.f32.xlu0 %v10939_v50  ;;  %v10875_v17 = vmul.f32 %v10842_v28, %v10810_v4  ;;  %v10815_v52 = vmax.f32 %v10783_v61, 0.0  ;;  %v19420_v6 = vld [vmem:[#allocation57_spill] sm:$0xff] }
 0x5a9   : > { %v10678_v60 = vpop.f32.mrf.mxu0  ;;  %v10948_v12 = vsel %vm10890_vm6, %v10877_v32, 0.0  ;;  %v10074_v58 = vadd.f32 %v17865_v54, %v9736_v27  ;;  %v9737_v50 = vadd.f32 %v19421_v21, %v19420_v6  ;;  %v10849_v54 = vld [vmem:[%s18161_s7 + $0xc0] sm:$0xff]  ;;  %v10415_v23 = vadd.f32 %v13067_v29, %v17874_v13 }
 0x5aa   : > { %v10813_v25 = vmax.f32 %v10781_v19, 0.0  ;;  %v10784_v35 = vadd.f32 %v17887_v36, %v10745_v62  ;;  %v10743_v18 = vadd.f32 %v10678_v60, %v10405_v9  ;;  %v10942_v45 = vsel %vm10890_vm6, %v10875_v17, 0.0  ;;  %v10372_v60 = vpop.f32.mrf.mxu1 }
 0x5ab   : > { %v13098_v41 = vpop.f32.mrf.mxu0  ;;  %10943 = vadd.xlane.f32.xlu1 %v10942_v45  ;;  %v10880_v42 = vmul.f32 %v10847_v55, %v10815_v52  ;;  %v10412_v19 = vadd.f32 %v10369_v47, %v10074_v58  ;;  %v10075_v53 = vadd.f32 %v17876_v3, %v9737_v50  ;;  %v10853_v55 = vld [vmem:[%s18161_s7 + $0xe0] sm:$0xff] }
 0x5ac   : > { %v10782_v34 = vadd.f32 %v17887_v36, %v10743_v18  ;;  %v10748_v43 = vadd.f32 %v13098_v41, %v10410_v51  ;;  %10946 = vadd.xlane.f32.xlu0 %v10945_v37  ;;  %v10878_v38 = vmul.f32 %v10845_v48, %v10813_v25  ;;  %v10816_v15 = vmax.f32 %v10784_v35, 0.0  ;;  %v10851_v51 = vld [vmem:[%s18161_s7 + $0xd0] sm:$0xff]  ;;  %v10850_v25 = vld [vmem:[%s18161_s7 + $0xc8] sm:$0xff] }
 0x5ad   : > { %v10691_v2 = vpop.f32.mrf.mxu0  ;;  %v10957_v0 = vsel %vm10890_vm6, %v10880_v42, 0.0  ;;  %v10413_v37 = vadd.f32 %v10372_v60, %v10075_v53 }
 0x5ae   : > { %v10814_v40 = vmax.f32 %v10782_v34, 0.0  ;;  %v10746_v44 = vadd.f32 %v10691_v2, %v10408_v8  ;;  %v10951_v63 = vsel %vm10890_vm6, %v10878_v38, 0.0  ;;  %v10787_v5 = vadd.f32 %v17887_v36, %v10748_v43  ;;  %v10852_v8 = vld [vmem:[%s18161_s7 + $0xd8] sm:$0xff] }
 0x5af   : > { %v13099_v10 = vpop.f32.mrf.mxu0  ;;  %10949 = vadd.xlane.f32.xlu1 %v10948_v12  ;;  %v10881_v61 = vmul.f32 %v10848_v26, %v10816_v15  ;;  %v10856_v15 = vld [vmem:[%s18161_s7 + $0xf8] sm:$0xff]  ;;  %v10854_v12 = vld [vmem:[%s18161_s7 + $0xe8] sm:$0xff] }
 0x5b0   : > { %v10785_v31 = vadd.f32 %v17887_v36, %v10746_v44  ;;  %v10749_v28 = vadd.f32 %v13099_v10, %v10411_v11  ;;  %10952 = vadd.xlane.f32.xlu0 %v10951_v63  ;;  %v10879_v4 = vmul.f32 %v10846_v57, %v10814_v40  ;;  %v10819_v62 = vmax.f32 %v10787_v5, 0.0  ;;  %v10855_v44 = vld [vmem:[%s18161_s7 + $0xf0] sm:$0xff] }
 0x5b1   : > { %v10694_v46 = vpop.f32.mrf.mxu0  ;;  %v10960_v18 = vsel %vm10890_vm6, %v10881_v61, 0.0 }
 0x5b2   : > { %v10817_v39 = vmax.f32 %v10785_v31, 0.0  ;;  %v10788_v49 = vadd.f32 %v17887_v36, %v10749_v28  ;;  %v10747_v16 = vadd.f32 %v10694_v46, %v10409_v30  ;;  %v10954_v9 = vsel %vm10890_vm6, %v10879_v4, 0.0 }
 0x5b3   : > { %v13102_v17 = vpop.f32.mrf.mxu0  ;;  %10955 = vadd.xlane.f32.xlu1 %v10954_v9  ;;  %v10884_v41 = vmul.f32 %v10851_v51, %v10819_v62 }
 0x5b4   : > { %v10786_v24 = vadd.f32 %v17887_v36, %v10747_v16  ;;  %v10752_v56 = vadd.f32 %v13102_v17, %v10414_v14  ;;  %10958 = vadd.xlane.f32.xlu0 %v10957_v0  ;;  %v10882_v1 = vmul.f32 %v10849_v54, %v10817_v39  ;;  %v10820_v32 = vmax.f32 %v10788_v49, 0.0 }
 0x5b5   : > { %v10707_v48 = vpop.f32.mrf.mxu0  ;;  %v10969_v47 = vsel %vm10890_vm6, %v10884_v41, 0.0 }
 0x5b6   : > { %v10818_v35 = vmax.f32 %v10786_v24, 0.0  ;;  %v10750_v3 = vadd.f32 %v10707_v48, %v10412_v19  ;;  %v10963_v45 = vsel %vm10890_vm6, %v10882_v1, 0.0  ;;  %v10791_v52 = vadd.f32 %v17887_v36, %v10752_v56 }
 0x5b7   : > { %v13103_v13 = vpop.f32.mrf.mxu0  ;;  %10961 = vadd.xlane.f32.xlu1 %v10960_v18  ;;  %v10885_v38 = vmul.f32 %v10852_v8, %v10820_v32 }
 0x5b8   : > { %v10789_v7 = vadd.f32 %v17887_v36, %v10750_v3  ;;  %v10753_v20 = vadd.f32 %v13103_v13, %v10415_v23  ;;  %10964 = vadd.xlane.f32.xlu0 %v10963_v45  ;;  %v10883_v34 = vmul.f32 %v10850_v25, %v10818_v35  ;;  %v10823_v11 = vmax.f32 %v10791_v52, 0.0 }
 0x5b9   : > { %v10710_v43 = vpop.f32.mrf.mxu0  ;;  %v10972_v26 = vsel %vm10890_vm6, %v10885_v38, 0.0 }
 0x5ba   : > { %v10821_v59 = vmax.f32 %v10789_v7, 0.0  ;;  %v10792_v22 = vadd.f32 %v17887_v36, %v10753_v20  ;;  %v10751_v27 = vadd.f32 %v10710_v43, %v10413_v37  ;;  %v10966_v33 = vsel %vm10890_vm6, %v10883_v34, 0.0 }
 0x5bb   : > { %10967 = vadd.xlane.f32.xlu1 %v10966_v33  ;;  %v10888_v10 = vmul.f32 %v10855_v44, %v10823_v11 }
 0x5bc   : > { %v10824_v2 = vmax.f32 %v10792_v22, 0.0  ;;  %v10790_v57 = vadd.f32 %v17887_v36, %v10751_v27  ;;  %10970 = vadd.xlane.f32.xlu0 %v10969_v47  ;;  %v10886_v40 = vmul.f32 %v10853_v55, %v10821_v59 }
 0x5bd   : > { %v10981_v31 = vsel %vm10890_vm6, %v10888_v10, 0.0 }
 0x5be   : > { %v10822_v63 = vmax.f32 %v10790_v57, 0.0  ;;  %v10975_v58 = vsel %vm10890_vm6, %v10886_v40, 0.0  ;;  %v10889_v5 = vmul.f32 %v10856_v15, %v10824_v2 }
 0x5bf   : > { %10973 = vadd.xlane.f32.xlu1 %v10972_v26 }
 0x5c0   : > { %10976 = vadd.xlane.f32.xlu0 %v10975_v58  ;;  %v10887_v36 = vmul.f32 %v10854_v12, %v10822_v63  ;;  %v10984_v42 = vsel %vm10890_vm6, %v10889_v5, 0.0 }
 0x5c2   : > { %v10978_v30 = vsel %vm10890_vm6, %v10887_v36, 0.0 }
 0x5c3   : > { %10979 = vadd.xlane.f32.xlu1 %v10978_v30 }
 0x5c4   : > { %10982 = vadd.xlane.f32.xlu0 %v10981_v31 }
 0x5c7   : > { %10985 = vadd.xlane.f32.xlu1 %v10984_v42 }
 0x60e   : > { %v10899_v4 = vpop.xlane.xlu1 %10898 }
 0x611   : > { %v10893_v28 = vpop.xlane.xlu0 %10892 }
 0x612   : > { %v10902_v50 = vpop.xlane.xlu1 %10901 }
 0x615   : > { %v10896_v6 = vpop.xlane.xlu0 %10895 }
 0x616   : > { %v10987_v21 = vadd.f32 %v10896_v6, %v10893_v28 }
 0x618   : > { %v10988_v14 = vadd.f32 %v10987_v21, %v10899_v4 }
 0x619   : > { %v10905_v29 = vpop.xlane.xlu0 %10904 }
 0x61a   : > { %v10989_v46 = vadd.f32 %v10988_v14, %v10902_v50  ;;  %v10857_v50 = vld [vmem:[#allocation5] sm:$0x1] }
 0x61c   : > { %v10990_v61 = vadd.f32 %v10989_v46, %v10905_v29  ;;  %v10908_v54 = vpop.xlane.xlu1 %10907 }
 0x61d   : > { %v10911_v39 = vpop.xlane.xlu0 %10910 }
 0x61e   : > { %v10991_v49 = vadd.f32 %v10990_v61, %v10908_v54 }
 0x620   : > { %v10992_v16 = vadd.f32 %v10991_v49, %v10911_v39  ;;  %v10914_v9 = vpop.xlane.xlu1 %10913 }
 0x621   : > { %v10917_v19 = vpop.xlane.xlu0 %10916 }
 0x622   : > { %v10993_v62 = vadd.f32 %v10992_v16, %v10914_v9 }
 0x624   : > { %v10994_v17 = vadd.f32 %v10993_v62, %v10917_v19  ;;  %v10920_v0 = vpop.xlane.xlu1 %10919 }
 0x625   : > { %v10923_v53 = vpop.xlane.xlu0 %10922 }
 0x626   : > { %v10995_v24 = vadd.f32 %v10994_v17, %v10920_v0 }
 0x628   : > { %v10996_v56 = vadd.f32 %v10995_v24, %v10923_v53  ;;  %v10926_v1 = vpop.xlane.xlu1 %10925 }
 0x629   : > { %v10929_v51 = vpop.xlane.xlu0 %10928 }
 0x62a   : > { %v10997_v23 = vadd.f32 %v10996_v56, %v10926_v1 }
 0x62c   : > { %v10998_v60 = vadd.f32 %v10997_v23, %v10929_v51  ;;  %v10932_v32 = vpop.xlane.xlu1 %10931 }
 0x62d   : > { %v10935_v48 = vpop.xlane.xlu0 %10934 }
 0x62e   : > { %v10999_v25 = vadd.f32 %v10998_v60, %v10932_v32 }
 0x630   : > { %v11000_v35 = vadd.f32 %v10999_v25, %v10935_v48  ;;  %v10938_v3 = vpop.xlane.xlu1 %10937 }
 0x631   : > { %v10941_v18 = vpop.xlane.xlu0 %10940 }
 0x632   : > { %v11001_v45 = vadd.f32 %v11000_v35, %v10938_v3 }
 0x634   : > { %v11002_v8 = vadd.f32 %v11001_v45, %v10941_v18  ;;  %v10944_v52 = vpop.xlane.xlu1 %10943 }
 0x635   : > { %v10947_v13 = vpop.xlane.xlu0 %10946 }
 0x636   : > { %v11003_v41 = vadd.f32 %v11002_v8, %v10944_v52 }
 0x638   : > { %v11004_v37 = vadd.f32 %v11003_v41, %v10947_v13  ;;  %v10950_v7 = vpop.xlane.xlu1 %10949 }
 0x639   : > { %v10953_v20 = vpop.xlane.xlu0 %10952 }
 0x63a   : > { %v11005_v34 = vadd.f32 %v11004_v37, %v10950_v7 }
 0x63c   : > { %v11006_v43 = vadd.f32 %v11005_v34, %v10953_v20  ;;  %v10956_v38 = vpop.xlane.xlu1 %10955 }
 0x63d   : > { %v10959_v55 = vpop.xlane.xlu0 %10958 }
 0x63e   : > { %v11007_v59 = vadd.f32 %v11006_v43, %v10956_v38 }
 0x640   : > { %v11008_v22 = vadd.f32 %v11007_v59, %v10959_v55  ;;  %v10962_v27 = vpop.xlane.xlu1 %10961 }
 0x641   : > { %v10965_v33 = vpop.xlane.xlu0 %10964 }
 0x642   : > { %v11009_v11 = vadd.f32 %v11008_v22, %v10962_v27 }
 0x644   : > { %v11010_v47 = vadd.f32 %v11009_v11, %v10965_v33  ;;  %v10968_v15 = vpop.xlane.xlu1 %10967 }
 0x645   : > { %v10971_v2 = vpop.xlane.xlu0 %10970 }
 0x646   : > { %v11011_v57 = vadd.f32 %v11010_v47, %v10968_v15 }
 0x648   : > { %v11012_v40 = vadd.f32 %v11011_v57, %v10971_v2  ;;  %v10974_v44 = vpop.xlane.xlu1 %10973 }
 0x649   : > { %v10977_v12 = vpop.xlane.xlu0 %10976 }
 0x64a   : > { %v11013_v63 = vadd.f32 %v11012_v40, %v10974_v44 }
 0x64c   : > { %v11014_v26 = vadd.f32 %v11013_v63, %v10977_v12  ;;  %v10980_v58 = vpop.xlane.xlu1 %10979 }
 0x64d   : > { %v10983_v10 = vpop.xlane.xlu0 %10982 }
 0x64e   : > { %v11015_v5 = vadd.f32 %v11014_v26, %v10980_v58 }
 0x650   : > { %v11016_v36 = vadd.f32 %v11015_v5, %v10983_v10  ;;  %v10986_v42 = vpop.xlane.xlu1 %10985 }
 0x652   : > { %v11017_v30 = vadd.f32 %v11016_v36, %v10986_v42 }
 0x654   : > { %v11018_v31 = vrot.slane %v11017_v30, 4 }
 0x656   : > { %v11019_v28 = vadd.f32 %v11018_v31, %v11017_v30 }
 0x658   : > { %v11020_v4 = vrot.slane %v11019_v28, 2 }
 0x65a   : > { %v11021_v6 = vadd.f32 %v11020_v4, %v11019_v28 }
 0x65c   : > { %v11022_v21 = vrot.slane %v11021_v6, 1 }
 0x65e   : > { %v11023_v14 = vadd.f32 %v11022_v21, %v11021_v6 }
 0x660   : > { %v11024_v29 = vadd.f32 %v11023_v14, %v10857_v50 }
 0x662   : > { %v11697_v46 = vmul.f32 -1.442695, %v11024_v29 }
 0x664   : > { %13152 = vpow2.f32 %v11697_v46 }
 0x671   : > { %v13153_v61 = vpop.eup %13152 }
 0x672   : > { %v11028_v54 = vadd.f32 1.0, %v13153_v61 }
 0x674   : > { %13154 = vrcp.f32 %v11028_v54 }
 0x681   : > { %v13155_v39 = vpop.eup %13154 }
 0x682   : > { %11032 = vst.msk [vmem:[%s332_s21] sm:$0x1] %vm11031_vm7, %v13155_v39 }
 0x683 PF: > { %s21_s11 = sadd.s32 1, %s13162_s11  }
 0x684   : > { %p18_p5 = scmp.ge.s32.totalorder %s21_s11, 4  }
 0x686   :  { %20 = sbr.rel (!%p18_p5) target bundleno = 3 (0x3), region = 110 }

</bundles_post_ra>
